<compile_context>
chip_gen: v5e
topology: v5e:2x2
jax: 0.10.0
libtpu: 0.0.40
codegen_flags: <defaults>
</compile_context>

<pallas_src>
import jax
import jax.numpy as jnp
from jax.experimental import pallas as pl
from jax.experimental.pallas import tpu as pltpu


MAX_POOL_K = (5, 9, 13)
PAD = max(MAX_POOL_K) // 2          # 6 : -inf halo wide enough for the cascade
_VMEM_LIMIT = 64 * 1024 * 1024      # explicit scoped-VMEM budget (v5e default is
                                    # only 16 MiB; v7x physical is 64 MiB)


# ----------------------------------------------------------------------------
# Kernel 1: fused 1x1 conv (row-tiled matmul) + folded-BN bias + SiLU
# ----------------------------------------------------------------------------
def _mm_bias_silu_kernel(x_ref, w_ref, b_ref, o_ref):
    y = jnp.dot(x_ref[...], w_ref[...], preferred_element_type=jnp.float32)
    y = y + b_ref[...]              # BN scale folded into w; bias is the BN shift
    o_ref[...] = (y * jax.nn.sigmoid(y)).astype(o_ref.dtype)


def _pick_block_m(m, target):
    """Row block that divides M (avoids an XLA pad pass) and is a multiple of 8
    (sublane constraint).  Falls back to padding only for awkward M."""
    if m <= target:
        return m, 0
    start = target - (target % 8)
    for bm in range(start, 127, -8):
        if m % bm == 0:
            return bm, 0
    return target, (-m) % target    # rare fallback: pad rows through HBM


def _conv1x1_bn_silu(x_rows, w_io, bias, *, block_m=1024):
    """x_rows: (M, Cin); w_io: (Cin, Cout) with BN scale folded in; bias: (Cout,).
    Returns the cv1 activation as bf16 (kernel-2 consumes it as bf16)."""
    m, cin = x_rows.shape
    cout = w_io.shape[1]
    bm, m_pad = _pick_block_m(m, block_m)
    x_rows = x_rows.astype(jnp.bfloat16)
    if m_pad:
        x_rows = jnp.pad(x_rows, ((0, m_pad), (0, 0)))
    mp = m + m_pad

    out = pl.pallas_call(
        _mm_bias_silu_kernel,
        out_shape=jax.ShapeDtypeStruct((mp, cout), jnp.bfloat16),
        grid=(mp // bm,),
        in_specs=[
            pl.BlockSpec((bm, cin), lambda i: (i, 0)),
            pl.BlockSpec((cin, cout), lambda i: (0, 0)),   # resident weights
            pl.BlockSpec((1, cout), lambda i: (0, 0)),     # resident bias
        ],
        out_specs=pl.BlockSpec((bm, cout), lambda i: (i, 0)),
        compiler_params=pltpu.CompilerParams(
            dimension_semantics=("parallel",),
            vmem_limit_bytes=_VMEM_LIMIT),
    )(x_rows, w_io.astype(jnp.bfloat16),
      bias.reshape(1, cout).astype(jnp.float32))
    return out[:m] if m_pad else out


# ----------------------------------------------------------------------------
# Kernel 2: fused [identity + SPPF-cascade maxpool(5,9,13)] + cv2 + BN + SiLU
# ----------------------------------------------------------------------------
def _make_spp_tail_kernel(H, W, c_mid):
    def pool5(cur):
        # Separable +/-2 (kernel-5, stride-1) max; consumes a 2-wide halo on
        # each side, so the tile shrinks by 4 in H and W each cascade stage.
        rows, cols = cur.shape[0] - 4, cur.shape[1] - 4
        m = cur[:, 0:cols, :]
        for j in range(1, 5):                       # W pass (sublane axis)
            m = jnp.maximum(m, cur[:, j:j + cols, :])
        out = m[0:rows]
        for i in range(1, 5):                       # H pass (leading axis)
            out = jnp.maximum(out, m[i:i + rows])
        return out

    def kernel(x_ref, w_ref, b_ref, o_ref, pad_ref):
        # Build the -inf-padded tile entirely in VMEM.  It is re-filled every
        # grid step: with a "parallel" batch axis each TensorCore owns its own
        # scratch, so a program_id==0-only init would leave a core's halo
        # uninitialized.
        pad_ref[...] = jnp.full(pad_ref.shape, -jnp.inf, pad_ref.dtype)
        x = x_ref[0]                                # (H, W, c_mid) bf16
        pad_ref[PAD:PAD + H, PAD:PAD + W, :] = x

        # Branch 0 (identity) matmul first: kicks the MXU off so the first
        # cascade stage's shift-max (VPU) overlaps it.
        acc = jnp.dot(x.reshape(H * W, c_mid), w_ref[0:c_mid, :],
                      preferred_element_type=jnp.float32)

        # SPPF cascade: pool5 o pool5 o pool5 == maxpool 5 / 9 / 13 (stride 1,
        # -inf "same" padding).  Each stage's matmul is issued immediately so
        # the next stage's pooling hides under the MXU; the channel concat
        # never materializes (cv2 == sum of per-branch matmuls).
        cur = pad_ref[...]
        for t in range(1, 4):
            cur = pool5(cur)                        # frame offset is now 2*t
            off = PAD - 2 * t
            branch = cur[off:off + H, off:off + W, :]
            acc = acc + jnp.dot(branch.reshape(H * W, c_mid),
                                w_ref[t * c_mid:(t + 1) * c_mid, :],
                                preferred_element_type=jnp.float32)

        y = acc + b_ref[...]
        o_ref[0] = (y * jax.nn.sigmoid(y)).astype(o_ref.dtype)

    return kernel


def _spp_tail(x1, w2_io, bias2):
    """x1: (B, H, W, c_mid) bf16 (unpadded); w2_io: (4*c_mid, cout), BN folded."""
    B, H, W, c_mid = x1.shape
    cout = w2_io.shape[1]
    hp, wp = H + 2 * PAD, W + 2 * PAD

    out = pl.pallas_call(
        _make_spp_tail_kernel(H, W, c_mid),
        out_shape=jax.ShapeDtypeStruct((B, H * W, cout), jnp.float32),
        grid=(B,),
        in_specs=[
            pl.BlockSpec((1, H, W, c_mid), lambda b: (b, 0, 0, 0)),
            pl.BlockSpec((4 * c_mid, cout), lambda b: (0, 0)),   # one resident block
            pl.BlockSpec((1, cout), lambda b: (0, 0)),
        ],
        out_specs=pl.BlockSpec((1, H * W, cout), lambda b: (b, 0, 0)),
        scratch_shapes=[pltpu.VMEM((hp, wp, c_mid), jnp.bfloat16)],
        compiler_params=pltpu.CompilerParams(
            dimension_semantics=("parallel",),
            vmem_limit_bytes=_VMEM_LIMIT),
    )(x1.astype(jnp.bfloat16), w2_io.astype(jnp.bfloat16),
      bias2.reshape(1, cout).astype(jnp.float32))
    return out.reshape(B, H, W, cout)


# ----------------------------------------------------------------------------
# Parameter folding & public forward (NCHW in / NCHW out, like the PyTorch module)
# ----------------------------------------------------------------------------
def _fold_bn(gamma, beta, mean, var, eps=1e-5):
    scale = gamma / jnp.sqrt(var + eps)
    return scale, beta - mean * scale


def _prep_conv1x1(w_oihw, scale):
    # (O, I, 1, 1) -> (I, O) with the BN scale folded into the output columns.
    o, i = w_oihw.shape[0], w_oihw.shape[1]
    return jnp.transpose(w_oihw.reshape(o, i), (1, 0)) * scale[None, :]


def spp_forward(x_nchw, params):
    """SPP forward.  Input/output are NCHW f32 to match the PyTorch module."""
    B, c1, H, W = x_nchw.shape
    p1, p2 = params["cv1"], params["cv2"]
    w1 = _prep_conv1x1(p1["w"], p1["scale"])
    w2 = _prep_conv1x1(p2["w"], p2["scale"])
    c_mid = w1.shape[1]

    # Single NCHW -> NHWC transpose (bf16) at the boundary; kernels are
    # channel-last so channels sit on the lane axis.
    x = jnp.transpose(x_nchw, (0, 2, 3, 1)).astype(jnp.bfloat16)

    x1 = _conv1x1_bn_silu(x.reshape(B * H * W, c1), w1, p1["bias"])
    x1 = x1.reshape(B, H, W, c_mid)                       # bf16 intermediate

    out = _spp_tail(x1, w2, p2["bias"])                   # (B, H, W, c2) f32
    return jnp.transpose(out, (0, 3, 1, 2))               # NCHW


# ----------------------------------------------------------------------------
# Pure-JAX reference (inference-mode BN folded the same way, all f32)
# ----------------------------------------------------------------------------
def _ref_conv1x1(x, w, scale, bias):
    y = jax.lax.conv_general_dilated(
        x, w, (1, 1), [(0, 0), (0, 0)],
        dimension_numbers=("NCHW", "OIHW", "NCHW"))
    y = y * scale[None, :, None, None] + bias[None, :, None, None]
    return y * jax.nn.sigmoid(y)


def _ref_maxpool(x, k):
    p = k // 2
    return jax.lax.reduce_window(
        x, -jnp.inf, jax.lax.max,
        window_dimensions=(1, 1, k, k), window_strides=(1, 1, 1, 1),
        padding=[(0, 0), (0, 0), (p, p), (p, p)])


def _ref_forward(x, params):
    p1, p2 = params["cv1"], params["cv2"]
    x1 = _ref_conv1x1(x, p1["w"], p1["scale"], p1["bias"])
    cat = jnp.concatenate([x1] + [_ref_maxpool(x1, k) for k in MAX_POOL_K], axis=1)
    return _ref_conv1x1(cat, p2["w"], p2["scale"], p2["bias"])


# ----------------------------------------------------------------------------
# Deterministic parameter construction + self-test
# ----------------------------------------------------------------------------
def _make_conv_params(key, c_out, c_in):
    kw, kg, kb, km, kv = jax.random.split(key, 5)
    w = jax.random.normal(kw, (c_out, c_in, 1, 1), jnp.float32) * 0.1
    gamma = jax.random.uniform(kg, (c_out,), jnp.float32, 0.5, 1.5)
    beta = jax.random.normal(kb, (c_out,), jnp.float32) * 0.1
    mean = jax.random.normal(km, (c_out,), jnp.float32) * 0.1
    var = jax.random.uniform(kv, (c_out,), jnp.float32, 0.5, 1.5)
    scale, bias = _fold_bn(gamma, beta, mean, var)
    return {"w": w, "scale": scale, "bias": bias}


if __name__ == "__main__":
    key = jax.random.PRNGKey(0)
    kx, k1, k2 = jax.random.split(key, 3)

    # Small shapes consistent with the module: SPP(c1=4, c2=8), batch=2, 16x16.
    B, C1, C2, H, W = 2, 4, 8, 16, 16
    C_ = C1 // 2
    x = jax.random.normal(kx, (B, C1, H, W), jnp.float32)

    params = {
        "cv1": _make_conv_params(k1, C_, C1),
        "cv2": _make_conv_params(k2, C2, 4 * C_),
    }

    out = jax.block_until_ready(jax.jit(spp_forward)(x, params))
    ref = jax.block_until_ready(_ref_forward(x, params))

    assert out.shape == (B, C2, H, W), out.shape
    max_err = float(jnp.max(jnp.abs(out - ref)))
    # bf16 activations/weights (f32 accumulate) vs an all-f32 reference.
    assert jnp.allclose(out, ref, atol=3e-2, rtol=3e-2), max_err

    print("KERNEL_OK")
</pallas_src>

<mosaic_0001>
module attributes {stable_mosaic.version = 11 : i64} {
  func.func @_mm_bias_silu_kernel(%arg0: i32, %arg1: memref<512x4xbf16, #tpu.memory_space<vmem>>, %arg2: memref<4x2xbf16, #tpu.memory_space<vmem>>, %arg3: memref<1x2xf32, #tpu.memory_space<vmem>>, %arg4: memref<512x2xbf16, #tpu.memory_space<vmem>>) attributes {dimension_semantics = [#tpu.dimension_semantics<parallel>], iteration_bounds = array<i64: 1>, scalar_prefetch = 0 : i64, scratch_operands = 0 : i64, tpu.core_type = #tpu.core_type<tc>, window_params = [{transform_indices = @transform_0, window_bounds = array<i64: 512, 4>}, {pipeline_mode = #tpu.pipeline_mode<synchronous>, transform_indices = @transform_1, window_bounds = array<i64: 4, 2>}, {pipeline_mode = #tpu.pipeline_mode<synchronous>, transform_indices = @transform_2, window_bounds = array<i64: 1, 2>}, {transform_indices = @transform_3, window_bounds = array<i64: 512, 2>}]} {
    %c0 = arith.constant 0 : index
    %c0_0 = arith.constant 0 : index
    %0 = vector.load %arg1[%c0, %c0_0] : memref<512x4xbf16, #tpu.memory_space<vmem>>, vector<512x4xbf16>
    %c0_1 = arith.constant 0 : index
    %c0_2 = arith.constant 0 : index
    %1 = vector.load %arg2[%c0_1, %c0_2] : memref<4x2xbf16, #tpu.memory_space<vmem>>, vector<4x2xbf16>
    %cst = arith.constant dense<0.000000e+00> : vector<512x2xf32>
    %2 = tpu.matmul %0, %1, %cst {dimension_numbers = #tpu.dot_dimension_numbers<[1], [0], [0], [1], [0, 0, 1, 1], [], []>} : vector<512x4xbf16>, vector<4x2xbf16>, vector<512x2xf32> -> vector<512x2xf32>
    %c0_3 = arith.constant 0 : index
    %c0_4 = arith.constant 0 : index
    %3 = vector.load %arg3[%c0_3, %c0_4] : memref<1x2xf32, #tpu.memory_space<vmem>>, vector<1x2xf32>
    %4 = vector.broadcast %3 : vector<1x2xf32> to vector<512x2xf32>
    %5 = arith.addf %2, %4 : vector<512x2xf32>
    %6 = arith.negf %5 : vector<512x2xf32>
    %7 = math.exp %6 : vector<512x2xf32>
    %cst_5 = arith.constant 1.000000e+00 : f32
    %8 = vector.broadcast %cst_5 : f32 to vector<512x2xf32>
    %9 = arith.addf %8, %7 : vector<512x2xf32>
    %10 = arith.divf %8, %9 : vector<512x2xf32>
    %11 = arith.mulf %5, %10 : vector<512x2xf32>
    %12 = arith.truncf %11 : vector<512x2xf32> to vector<512x2xbf16>
    %c0_6 = arith.constant 0 : index
    %c0_7 = arith.constant 0 : index
    %13 = vector.load %arg4[%c0_6, %c0_7] : memref<512x2xbf16, #tpu.memory_space<vmem>>, vector<512x2xbf16>
    tpu.vector_store %arg4[%c0_6, %c0_7], %12 {strides = array<i32>} : memref<512x2xbf16, #tpu.memory_space<vmem>>, vector<512x2xbf16>,
    return
  }
  func.func @transform_0(%arg0: i32) -> (i32, i32) {
    %c0_i32 = arith.constant 0 : i32
    %c0_i32_0 = arith.constant 0 : i32
    return %arg0, %c0_i32 : i32, i32
  }
  func.func @transform_1(%arg0: i32) -> (i32, i32) {
    %c0_i32 = arith.constant 0 : i32
    %c0_i32_0 = arith.constant 0 : i32
    %c0_i32_1 = arith.constant 0 : i32
    return %c0_i32, %c0_i32_0 : i32, i32
  }
  func.func @transform_2(%arg0: i32) -> (i32, i32) {
    %c0_i32 = arith.constant 0 : i32
    %c0_i32_0 = arith.constant 0 : i32
    %c0_i32_1 = arith.constant 0 : i32
    return %c0_i32, %c0_i32_0 : i32, i32
  }
  func.func @transform_3(%arg0: i32) -> (i32, i32) {
    %c0_i32 = arith.constant 0 : i32
    %c0_i32_0 = arith.constant 0 : i32
    return %arg0, %c0_i32 : i32, i32
  }
}

module attributes {stable_mosaic.version = 11 : i64} {
  func.func @kernel(%arg0: i32, %arg1: memref<1x16x16x2xbf16, #tpu.memory_space<vmem>>, %arg2: memref<8x8xbf16, #tpu.memory_space<vmem>>, %arg3: memref<1x8xf32, #tpu.memory_space<vmem>>, %arg4: memref<1x256x8xf32, #tpu.memory_space<vmem>>, %arg5: memref<28x28x2xbf16, #tpu.memory_space<vmem>>) attributes {dimension_semantics = [#tpu.dimension_semantics<parallel>], iteration_bounds = array<i64: 2>, scalar_prefetch = 0 : i64, scratch_operands = 1 : i64, tpu.core_type = #tpu.core_type<tc>, window_params = [{transform_indices = @transform_0, window_bounds = array<i64: 1, 16, 16, 2>}, {pipeline_mode = #tpu.pipeline_mode<synchronous>, transform_indices = @transform_1, window_bounds = array<i64: 8, 8>}, {pipeline_mode = #tpu.pipeline_mode<synchronous>, transform_indices = @transform_2, window_bounds = array<i64: 1, 8>}, {transform_indices = @transform_3, window_bounds = array<i64: 1, 256, 8>}]} {
    %cst = arith.constant 0xFF80 : bf16
    %0 = vector.broadcast %cst : bf16 to vector<28x28x2xbf16>
    %c0 = arith.constant 0 : index
    %c0_0 = arith.constant 0 : index
    %c0_1 = arith.constant 0 : index
    %1 = vector.load %arg5[%c0, %c0_0, %c0_1] : memref<28x28x2xbf16, #tpu.memory_space<vmem>>, vector<28x28x2xbf16>
    tpu.vector_store %arg5[%c0, %c0_0, %c0_1], %0 {strides = array<i32>} : memref<28x28x2xbf16, #tpu.memory_space<vmem>>, vector<28x28x2xbf16>,
    %c0_2 = arith.constant 0 : index
    %c0_3 = arith.constant 0 : index
    %c0_4 = arith.constant 0 : index
    %c0_5 = arith.constant 0 : index
    %2 = vector.load %arg1[%c0_2, %c0_3, %c0_4, %c0_5] : memref<1x16x16x2xbf16, #tpu.memory_space<vmem>>, vector<1x16x16x2xbf16>
    %3 = vector.shape_cast %2 : vector<1x16x16x2xbf16> to vector<16x16x2xbf16>
    %c6 = arith.constant 6 : index
    %c6_6 = arith.constant 6 : index
    %c0_7 = arith.constant 0 : index
    %4 = vector.load %arg5[%c6, %c6_6, %c0_7] : memref<28x28x2xbf16, #tpu.memory_space<vmem>>, vector<16x16x2xbf16>
    tpu.vector_store %arg5[%c6, %c6_6, %c0_7], %3 {strides = array<i32>} : memref<28x28x2xbf16, #tpu.memory_space<vmem>>, vector<16x16x2xbf16>,
    %5 = vector.shape_cast %3 : vector<16x16x2xbf16> to vector<256x2xbf16>
    %c0_8 = arith.constant 0 : index
    %c0_9 = arith.constant 0 : index
    %6 = vector.load %arg2[%c0_8, %c0_9] : memref<8x8xbf16, #tpu.memory_space<vmem>>, vector<2x8xbf16>
    %cst_10 = arith.constant dense<0.000000e+00> : vector<256x8xf32>
    %7 = tpu.matmul %5, %6, %cst_10 {dimension_numbers = #tpu.dot_dimension_numbers<[1], [0], [0], [1], [0, 0, 1, 1], [], []>} : vector<256x2xbf16>, vector<2x8xbf16>, vector<256x8xf32> -> vector<256x8xf32>
    %c0_11 = arith.constant 0 : index
    %c0_12 = arith.constant 0 : index
    %c0_13 = arith.constant 0 : index
    %8 = vector.load %arg5[%c0_11, %c0_12, %c0_13] : memref<28x28x2xbf16, #tpu.memory_space<vmem>>, vector<28x28x2xbf16>
    %9 = vector.extract_strided_slice %8 {offsets = [0, 0, 0], sizes = [28, 24, 2], strides = [1, 1, 1]} : vector<28x28x2xbf16> to vector<28x24x2xbf16>
    %10 = vector.extract_strided_slice %8 {offsets = [0, 1, 0], sizes = [28, 24, 2], strides = [1, 1, 1]} : vector<28x28x2xbf16> to vector<28x24x2xbf16>
    %11 = arith.maximumf %9, %10 : vector<28x24x2xbf16>
    %12 = vector.extract_strided_slice %8 {offsets = [0, 2, 0], sizes = [28, 24, 2], strides = [1, 1, 1]} : vector<28x28x2xbf16> to vector<28x24x2xbf16>
    %13 = arith.maximumf %11, %12 : vector<28x24x2xbf16>
    %14 = vector.extract_strided_slice %8 {offsets = [0, 3, 0], sizes = [28, 24, 2], strides = [1, 1, 1]} : vector<28x28x2xbf16> to vector<28x24x2xbf16>
    %15 = arith.maximumf %13, %14 : vector<28x24x2xbf16>
    %16 = vector.extract_strided_slice %8 {offsets = [0, 4, 0], sizes = [28, 24, 2], strides = [1, 1, 1]} : vector<28x28x2xbf16> to vector<28x24x2xbf16>
    %17 = arith.maximumf %15, %16 : vector<28x24x2xbf16>
    %18 = vector.extract_strided_slice %17 {offsets = [0, 0, 0], sizes = [24, 24, 2], strides = [1, 1, 1]} : vector<28x24x2xbf16> to vector<24x24x2xbf16>
    %19 = vector.extract_strided_slice %17 {offsets = [1, 0, 0], sizes = [24, 24, 2], strides = [1, 1, 1]} : vector<28x24x2xbf16> to vector<24x24x2xbf16>
    %20 = arith.maximumf %18, %19 : vector<24x24x2xbf16>
    %21 = vector.extract_strided_slice %17 {offsets = [2, 0, 0], sizes = [24, 24, 2], strides = [1, 1, 1]} : vector<28x24x2xbf16> to vector<24x24x2xbf16>
    %22 = arith.maximumf %20, %21 : vector<24x24x2xbf16>
    %23 = vector.extract_strided_slice %17 {offsets = [3, 0, 0], sizes = [24, 24, 2], strides = [1, 1, 1]} : vector<28x24x2xbf16> to vector<24x24x2xbf16>
    %24 = arith.maximumf %22, %23 : vector<24x24x2xbf16>
    %25 = vector.extract_strided_slice %17 {offsets = [4, 0, 0], sizes = [24, 24, 2], strides = [1, 1, 1]} : vector<28x24x2xbf16> to vector<24x24x2xbf16>
    %26 = arith.maximumf %24, %25 : vector<24x24x2xbf16>
    %27 = vector.extract_strided_slice %26 {offsets = [4, 4, 0], sizes = [16, 16, 2], strides = [1, 1, 1]} : vector<24x24x2xbf16> to vector<16x16x2xbf16>
    %28 = vector.shape_cast %27 : vector<16x16x2xbf16> to vector<256x2xbf16>
    %c2 = arith.constant 2 : index
    %c0_14 = arith.constant 0 : index
    %29 = vector.load %arg2[%c2, %c0_14] : memref<8x8xbf16, #tpu.memory_space<vmem>>, vector<2x8xbf16>
    %cst_15 = arith.constant dense<0.000000e+00> : vector<256x8xf32>
    %30 = tpu.matmul %28, %29, %cst_15 {dimension_numbers = #tpu.dot_dimension_numbers<[1], [0], [0], [1], [0, 0, 1, 1], [], []>} : vector<256x2xbf16>, vector<2x8xbf16>, vector<256x8xf32> -> vector<256x8xf32>
    %31 = arith.addf %7, %30 : vector<256x8xf32>
    %32 = vector.extract_strided_slice %26 {offsets = [0, 0, 0], sizes = [24, 20, 2], strides = [1, 1, 1]} : vector<24x24x2xbf16> to vector<24x20x2xbf16>
    %33 = vector.extract_strided_slice %26 {offsets = [0, 1, 0], sizes = [24, 20, 2], strides = [1, 1, 1]} : vector<24x24x2xbf16> to vector<24x20x2xbf16>
    %34 = arith.maximumf %32, %33 : vector<24x20x2xbf16>
    %35 = vector.extract_strided_slice %26 {offsets = [0, 2, 0], sizes = [24, 20, 2], strides = [1, 1, 1]} : vector<24x24x2xbf16> to vector<24x20x2xbf16>
    %36 = arith.maximumf %34, %35 : vector<24x20x2xbf16>
    %37 = vector.extract_strided_slice %26 {offsets = [0, 3, 0], sizes = [24, 20, 2], strides = [1, 1, 1]} : vector<24x24x2xbf16> to vector<24x20x2xbf16>
    %38 = arith.maximumf %36, %37 : vector<24x20x2xbf16>
    %39 = vector.extract_strided_slice %26 {offsets = [0, 4, 0], sizes = [24, 20, 2], strides = [1, 1, 1]} : vector<24x24x2xbf16> to vector<24x20x2xbf16>
    %40 = arith.maximumf %38, %39 : vector<24x20x2xbf16>
    %41 = vector.extract_strided_slice %40 {offsets = [0, 0, 0], sizes = [20, 20, 2], strides = [1, 1, 1]} : vector<24x20x2xbf16> to vector<20x20x2xbf16>
    %42 = vector.extract_strided_slice %40 {offsets = [1, 0, 0], sizes = [20, 20, 2], strides = [1, 1, 1]} : vector<24x20x2xbf16> to vector<20x20x2xbf16>
    %43 = arith.maximumf %41, %42 : vector<20x20x2xbf16>
    %44 = vector.extract_strided_slice %40 {offsets = [2, 0, 0], sizes = [20, 20, 2], strides = [1, 1, 1]} : vector<24x20x2xbf16> to vector<20x20x2xbf16>
    %45 = arith.maximumf %43, %44 : vector<20x20x2xbf16>
    %46 = vector.extract_strided_slice %40 {offsets = [3, 0, 0], sizes = [20, 20, 2], strides = [1, 1, 1]} : vector<24x20x2xbf16> to vector<20x20x2xbf16>
    %47 = arith.maximumf %45, %46 : vector<20x20x2xbf16>
    %48 = vector.extract_strided_slice %40 {offsets = [4, 0, 0], sizes = [20, 20, 2], strides = [1, 1, 1]} : vector<24x20x2xbf16> to vector<20x20x2xbf16>
    %49 = arith.maximumf %47, %48 : vector<20x20x2xbf16>
    %50 = vector.extract_strided_slice %49 {offsets = [2, 2, 0], sizes = [16, 16, 2], strides = [1, 1, 1]} : vector<20x20x2xbf16> to vector<16x16x2xbf16>
    %51 = vector.shape_cast %50 : vector<16x16x2xbf16> to vector<256x2xbf16>
    %c4 = arith.constant 4 : index
    %c0_16 = arith.constant 0 : index
    %52 = vector.load %arg2[%c4, %c0_16] : memref<8x8xbf16, #tpu.memory_space<vmem>>, vector<2x8xbf16>
    %cst_17 = arith.constant dense<0.000000e+00> : vector<256x8xf32>
    %53 = tpu.matmul %51, %52, %cst_17 {dimension_numbers = #tpu.dot_dimension_numbers<[1], [0], [0], [1], [0, 0, 1, 1], [], []>} : vector<256x2xbf16>, vector<2x8xbf16>, vector<256x8xf32> -> vector<256x8xf32>
    %54 = arith.addf %31, %53 : vector<256x8xf32>
    %55 = vector.extract_strided_slice %49 {offsets = [0, 0, 0], sizes = [20, 16, 2], strides = [1, 1, 1]} : vector<20x20x2xbf16> to vector<20x16x2xbf16>
    %56 = vector.extract_strided_slice %49 {offsets = [0, 1, 0], sizes = [20, 16, 2], strides = [1, 1, 1]} : vector<20x20x2xbf16> to vector<20x16x2xbf16>
    %57 = arith.maximumf %55, %56 : vector<20x16x2xbf16>
    %58 = vector.extract_strided_slice %49 {offsets = [0, 2, 0], sizes = [20, 16, 2], strides = [1, 1, 1]} : vector<20x20x2xbf16> to vector<20x16x2xbf16>
    %59 = arith.maximumf %57, %58 : vector<20x16x2xbf16>
    %60 = vector.extract_strided_slice %49 {offsets = [0, 3, 0], sizes = [20, 16, 2], strides = [1, 1, 1]} : vector<20x20x2xbf16> to vector<20x16x2xbf16>
    %61 = arith.maximumf %59, %60 : vector<20x16x2xbf16>
    %62 = vector.extract_strided_slice %49 {offsets = [0, 4, 0], sizes = [20, 16, 2], strides = [1, 1, 1]} : vector<20x20x2xbf16> to vector<20x16x2xbf16>
    %63 = arith.maximumf %61, %62 : vector<20x16x2xbf16>
    %64 = vector.extract_strided_slice %63 {offsets = [0, 0, 0], sizes = [16, 16, 2], strides = [1, 1, 1]} : vector<20x16x2xbf16> to vector<16x16x2xbf16>
    %65 = vector.extract_strided_slice %63 {offsets = [1, 0, 0], sizes = [16, 16, 2], strides = [1, 1, 1]} : vector<20x16x2xbf16> to vector<16x16x2xbf16>
    %66 = arith.maximumf %64, %65 : vector<16x16x2xbf16>
    %67 = vector.extract_strided_slice %63 {offsets = [2, 0, 0], sizes = [16, 16, 2], strides = [1, 1, 1]} : vector<20x16x2xbf16> to vector<16x16x2xbf16>
    %68 = arith.maximumf %66, %67 : vector<16x16x2xbf16>
    %69 = vector.extract_strided_slice %63 {offsets = [3, 0, 0], sizes = [16, 16, 2], strides = [1, 1, 1]} : vector<20x16x2xbf16> to vector<16x16x2xbf16>
    %70 = arith.maximumf %68, %69 : vector<16x16x2xbf16>
    %71 = vector.extract_strided_slice %63 {offsets = [4, 0, 0], sizes = [16, 16, 2], strides = [1, 1, 1]} : vector<20x16x2xbf16> to vector<16x16x2xbf16>
    %72 = arith.maximumf %70, %71 : vector<16x16x2xbf16>
    %73 = vector.shape_cast %72 : vector<16x16x2xbf16> to vector<256x2xbf16>
    %c6_18 = arith.constant 6 : index
    %c0_19 = arith.constant 0 : index
    %74 = vector.load %arg2[%c6_18, %c0_19] : memref<8x8xbf16, #tpu.memory_space<vmem>>, vector<2x8xbf16>
    %cst_20 = arith.constant dense<0.000000e+00> : vector<256x8xf32>
    %75 = tpu.matmul %73, %74, %cst_20 {dimension_numbers = #tpu.dot_dimension_numbers<[1], [0], [0], [1], [0, 0, 1, 1], [], []>} : vector<256x2xbf16>, vector<2x8xbf16>, vector<256x8xf32> -> vector<256x8xf32>
    %76 = arith.addf %54, %75 : vector<256x8xf32>
    %c0_21 = arith.constant 0 : index
    %c0_22 = arith.constant 0 : index
    %77 = vector.load %arg3[%c0_21, %c0_22] : memref<1x8xf32, #tpu.memory_space<vmem>>, vector<1x8xf32>
    %78 = vector.broadcast %77 : vector<1x8xf32> to vector<256x8xf32>
    %79 = arith.addf %76, %78 : vector<256x8xf32>
    %80 = arith.negf %79 : vector<256x8xf32>
    %81 = math.exp %80 : vector<256x8xf32>
    %cst_23 = arith.constant 1.000000e+00 : f32
    %82 = vector.broadcast %cst_23 : f32 to vector<256x8xf32>
    %83 = arith.addf %82, %81 : vector<256x8xf32>
    %84 = arith.divf %82, %83 : vector<256x8xf32>
    %85 = arith.mulf %79, %84 : vector<256x8xf32>
    %c0_24 = arith.constant 0 : index
    %c0_25 = arith.constant 0 : index
    %c0_26 = arith.constant 0 : index
    %86 = vector.load %arg4[%c0_24, %c0_25, %c0_26] : memref<1x256x8xf32, #tpu.memory_space<vmem>>, vector<1x256x8xf32>
    %87 = vector.shape_cast %86 : vector<1x256x8xf32> to vector<256x8xf32>
    %88 = vector.shape_cast %85 : vector<256x8xf32> to vector<1x256x8xf32>
    tpu.vector_store %arg4[%c0_24, %c0_25, %c0_26], %88 {strides = array<i32>} : memref<1x256x8xf32, #tpu.memory_space<vmem>>, vector<1x256x8xf32>,
    return
  }
  func.func @transform_0(%arg0: i32) -> (i32, i32, i32, i32) {
    %c0_i32 = arith.constant 0 : i32
    %c0_i32_0 = arith.constant 0 : i32
    %c0_i32_1 = arith.constant 0 : i32
    %c0_i32_2 = arith.constant 0 : i32
    return %arg0, %c0_i32, %c0_i32_0, %c0_i32_1 : i32, i32, i32, i32
  }
  func.func @transform_1(%arg0: i32) -> (i32, i32) {
    %c0_i32 = arith.constant 0 : i32
    %c0_i32_0 = arith.constant 0 : i32
    %c0_i32_1 = arith.constant 0 : i32
    return %c0_i32, %c0_i32_0 : i32, i32
  }
  func.func @transform_2(%arg0: i32) -> (i32, i32) {
    %c0_i32 = arith.constant 0 : i32
    %c0_i32_0 = arith.constant 0 : i32
    %c0_i32_1 = arith.constant 0 : i32
    return %c0_i32, %c0_i32_0 : i32, i32
  }
  func.func @transform_3(%arg0: i32) -> (i32, i32, i32) {
    %c0_i32 = arith.constant 0 : i32
    %c0_i32_0 = arith.constant 0 : i32
    %c0_i32_1 = arith.constant 0 : i32
    return %arg0, %c0_i32, %c0_i32_0 : i32, i32, i32
  }
}

</mosaic_0001>

<bundles_post_ra>
// kernel: spp_forward.2
= control target key start
LH: loop header
LB: loop body
LE: loop exit
PB: predicated region body
PF: predicated region fallthrough
CT: control target
= control target key end

     0   :  { %vm341_vm0 = vcmask 1041408   ;;  %vm244_vm1 = vcmask 31744   ;;  %vm1858_vm7 = vcmask 11264   ;;  %s4078_s1 = inlined_call_operand.vmem [shape: bf16[4,2], index: 1, kind: input, shape index: {}]   ;;  %s4079_s0 = inlined_call_operand.vmem [shape: bf16[512,4], index: 0, kind: input, shape index: {}]   ;;  %s4080_s2 = inlined_call_operand.vmem [shape: f32[1,2], index: 2, kind: input, shape index: {}]   ;;  %s4081_s3 = inlined_call_operand.vmem [shape: bf16[512,2], index: 3, kind: output, shape index: {}]  }
   0x1   :  { %v79_v0 = vld [vmem:[%s4078_s1] sm:$0x3]  ;;  %v2152_v6 = vld [vmem:[%s4079_s0 + $0x8] sm:$0xff]  ;;  %v2153_v10 = vld [vmem:[%s4079_s0 + $0x10] sm:$0xff] }
   0x2   :  { %v343_v1 = vsel %vm341_vm0, %v79_v0, 0  ;;  %v2151_v2 = vld [vmem:[%s4079_s0] sm:$0xff]  ;;  %v2160_v7 = vld [vmem:[%s4079_s0 + $0x48] sm:$0xff]  ;;  %v2161_v11 = vld [vmem:[%s4079_s0 + $0x50] sm:$0xff] }
   0x3   :  { %v2159_v3 = vld [vmem:[%s4079_s0 + $0x40] sm:$0xff]  ;;  %352 = vmatpush.bf16.msra.mxu0 %v343_v1  ;;  %2183 = vmatpush.bf16.msra.mxu1 %v343_v1  ;;  %v2168_v8 = vld [vmem:[%s4079_s0 + $0x88] sm:$0xff]  ;;  %v2169_v12 = vld [vmem:[%s4079_s0 + $0x90] sm:$0xff] }
   0x4   :  { %v2167_v4 = vld [vmem:[%s4079_s0 + $0x80] sm:$0xff]  ;;  %2184 = vmatpush.bf16.msra.mxu2 %v343_v1  ;;  %2185 = vmatpush.bf16.msra.mxu3 %v343_v1  ;;  %v2176_v9 = vld [vmem:[%s4079_s0 + $0xc8] sm:$0xff]  ;;  %v2177_v13 = vld [vmem:[%s4079_s0 + $0xd0] sm:$0xff] }
   0x5   :  { %v2175_v5 = vld [vmem:[%s4079_s0 + $0xc0] sm:$0xff]  ;;  %v2154_v14 = vld [vmem:[%s4079_s0 + $0x18] sm:$0xff]  ;;  %v2156_v22 = vld [vmem:[%s4079_s0 + $0x28] sm:$0xff] }
   0x6   :  { %2055 = vmatmul.msk.bf16.vlgmr.msra.gmra.mxu0 %vm244_vm1, %v2151_v2  ;;  %2063 = vmatmul.msk.bf16.vlgmr.msra.gmra.mxu1 %vm244_vm1, %v2159_v3  ;;  %v2162_v15 = vld [vmem:[%s4079_s0 + $0x58] sm:$0xff]  ;;  %v2155_v18 = vld [vmem:[%s4079_s0 + $0x20] sm:$0xff]  ;;  %v2164_v23 = vld [vmem:[%s4079_s0 + $0x68] sm:$0xff] }
   0x7   :  { %2071 = vmatmul.msk.bf16.vlgmr.msra.gmra.mxu2 %vm244_vm1, %v2167_v4  ;;  %2079 = vmatmul.msk.bf16.vlgmr.msra.gmra.mxu3 %vm244_vm1, %v2175_v5  ;;  %v2170_v16 = vld [vmem:[%s4079_s0 + $0x98] sm:$0xff]  ;;  %v2163_v19 = vld [vmem:[%s4079_s0 + $0x60] sm:$0xff]  ;;  %v2172_v24 = vld [vmem:[%s4079_s0 + $0xa8] sm:$0xff] }
   0x8   :  { %v2178_v17 = vld [vmem:[%s4079_s0 + $0xd8] sm:$0xff]  ;;  %v2171_v20 = vld [vmem:[%s4079_s0 + $0xa0] sm:$0xff]  ;;  %v2180_v25 = vld [vmem:[%s4079_s0 + $0xe8] sm:$0xff] }
   0x9   :  { %v2179_v21 = vld [vmem:[%s4079_s0 + $0xe0] sm:$0xff]  ;;  %v2157_v26 = vld [vmem:[%s4079_s0 + $0x30] sm:$0xff]  ;;  %v2158_v30 = vld [vmem:[%s4079_s0 + $0x38] sm:$0xff] }
   0xa   :  { %v2165_v27 = vld [vmem:[%s4079_s0 + $0x70] sm:$0xff]  ;;  %v2166_v31 = vld [vmem:[%s4079_s0 + $0x78] sm:$0xff]  ;;  %v2599_v34 = vld [vmem:[%s4080_s2] ss:$0 sm:$0xff] }
   0xb   :  { %v2173_v28 = vld [vmem:[%s4079_s0 + $0xb0] sm:$0xff]  ;;  %v2174_v32 = vld [vmem:[%s4079_s0 + $0xb8] sm:$0xff] }
   0xc   :  { %v2181_v29 = vld [vmem:[%s4079_s0 + $0xf0] sm:$0xff]  ;;  %v2182_v33 = vld [vmem:[%s4079_s0 + $0xf8] sm:$0xff] }
  0x16   :  { %2056 = vmatmul.msk.bf16.gmra.mxu0 %vm244_vm1, %v2152_v6  ;;  %2064 = vmatmul.msk.bf16.gmra.mxu1 %vm244_vm1, %v2160_v7 }
  0x17   :  { %2072 = vmatmul.msk.bf16.gmra.mxu2 %vm244_vm1, %v2168_v8  ;;  %2080 = vmatmul.msk.bf16.gmra.mxu3 %vm244_vm1, %v2176_v9 }
  0x26   :  { %2057 = vmatmul.msk.bf16.gmra.mxu0 %vm244_vm1, %v2153_v10  ;;  %2065 = vmatmul.msk.bf16.gmra.mxu1 %vm244_vm1, %v2161_v11 }
  0x27   :  { %2073 = vmatmul.msk.bf16.gmra.mxu2 %vm244_vm1, %v2169_v12  ;;  %2081 = vmatmul.msk.bf16.gmra.mxu3 %vm244_vm1, %v2177_v13 }
  0x36   :  { %2058 = vmatmul.msk.bf16.gmra.mxu0 %vm244_vm1, %v2154_v14  ;;  %2066 = vmatmul.msk.bf16.gmra.mxu1 %vm244_vm1, %v2162_v15 }
  0x37   :  { %2074 = vmatmul.msk.bf16.gmra.mxu2 %vm244_vm1, %v2170_v16  ;;  %2082 = vmatmul.msk.bf16.gmra.mxu3 %vm244_vm1, %v2178_v17 }
  0x46   :  { %2059 = vmatmul.msk.bf16.gmra.mxu0 %vm244_vm1, %v2155_v18  ;;  %2067 = vmatmul.msk.bf16.gmra.mxu1 %vm244_vm1, %v2163_v19 }
  0x47   :  { %2075 = vmatmul.msk.bf16.gmra.mxu2 %vm244_vm1, %v2171_v20  ;;  %2083 = vmatmul.msk.bf16.gmra.mxu3 %vm244_vm1, %v2179_v21 }
  0x56   :  { %2060 = vmatmul.msk.bf16.gmra.mxu0 %vm244_vm1, %v2156_v22  ;;  %2068 = vmatmul.msk.bf16.gmra.mxu1 %vm244_vm1, %v2164_v23 }
  0x57   :  { %2076 = vmatmul.msk.bf16.gmra.mxu2 %vm244_vm1, %v2172_v24  ;;  %2084 = vmatmul.msk.bf16.gmra.mxu3 %vm244_vm1, %v2180_v25 }
  0x66   :  { %2061 = vmatmul.msk.bf16.gmra.mxu0 %vm244_vm1, %v2157_v26  ;;  %2069 = vmatmul.msk.bf16.gmra.mxu1 %vm244_vm1, %v2165_v27 }
  0x67   :  { %2077 = vmatmul.msk.bf16.gmra.mxu2 %vm244_vm1, %v2173_v28  ;;  %2085 = vmatmul.msk.bf16.gmra.mxu3 %vm244_vm1, %v2181_v29 }
  0x76   :  { %2062 = vmatmul.msk.bf16.gmra.mxu0 %vm244_vm1, %v2158_v30  ;;  %2070 = vmatmul.msk.bf16.gmra.mxu1 %vm244_vm1, %v2166_v31 }
  0x77   :  { %2078 = vmatmul.msk.bf16.gmra.mxu2 %vm244_vm1, %v2174_v32  ;;  %2086 = vmatmul.msk.bf16.gmra.mxu3 %vm244_vm1, %v2182_v33 }
  0x83   :  { %v354_v35 = vpop.f32.mrf.mxu0  ;;  %v394_v36 = vpop.f32.mrf.mxu1 }
  0x84   :  { %v2602_v37 = vadd.f32 %v2599_v34, %v354_v35  ;;  %v2605_v38 = vadd.f32 %v2599_v34, %v394_v36 }
  0x86   :  { %v2087_v39 = vmul.f32 -1.442695, %v2602_v37  ;;  %v2103_v40 = vmul.f32 -1.442695, %v2605_v38 }
  0x88   :  { %2187 = vpow2.f32 %v2087_v39 }
  0x89   :  { %2189 = vpow2.f32 %v2103_v40 }
  0x8a   :  { %v434_v41 = vpop.f32.mrf.mxu2  ;;  %v474_v42 = vpop.f32.mrf.mxu3 }
  0x8b   :  { %v2610_v43 = vadd.f32 %v2599_v34, %v434_v41  ;;  %v2613_v44 = vadd.f32 %v2599_v34, %v474_v42  ;;  %v356_v45 = vpop.f32.mrf.mxu0  ;;  %v396_v46 = vpop.f32.mrf.mxu1 }
  0x8c   :  { %v2616_v47 = vadd.f32 %v2599_v34, %v356_v45  ;;  %v2619_v48 = vadd.f32 %v2599_v34, %v396_v46 }
  0x8d   :  { %v2119_v49 = vmul.f32 -1.442695, %v2610_v43  ;;  %v2135_v50 = vmul.f32 -1.442695, %v2613_v44 }
  0x8e   :  { %v2188_v51 = vpop.eup %2187  ;;  %v2088_v54 = vmul.f32 -1.442695, %v2616_v47  ;;  %v2104_v56 = vmul.f32 -1.442695, %v2619_v48 }
  0x8f   :  { %v2190_v52 = vpop.eup %2189  ;;  %v2623_v53 = vadd.f32 1.0, %v2188_v51  ;;  %2191 = vpow2.f32 %v2119_v49 }
  0x90   :  { %v2626_v55 = vadd.f32 1.0, %v2190_v52  ;;  %2193 = vpow2.f32 %v2135_v50 }
  0x91   :  { %2195 = vrcp.f32 %v2623_v53  ;;  %v779_v61 = vand.u32 2147483647, %v2623_v53  ;;  %v781_v62 = vand.u32 2147483648, %v2623_v53  ;;  %vm775_vm2 = vweird.f32 %v2623_v53 }
  0x92   :  { %2197 = vrcp.f32 %v2626_v55  ;;  %v436_v57 = vpop.f32.mrf.mxu2  ;;  %v476_v58 = vpop.f32.mrf.mxu3  ;;  %v1019_v1 = vand.u32 2147483647, %v2626_v55  ;;  %v1021_v5 = vand.u32 2147483648, %v2626_v55  ;;  %vm1015_vm3 = vweird.f32 %v2626_v55 }
  0x93   :  { %2199 = vpow2.f32 %v2088_v54  ;;  %v2632_v59 = vadd.f32 %v2599_v34, %v436_v57  ;;  %v359_v60 = vpop.f32.mrf.mxu0  ;;  %v399_v63 = vpop.f32.mrf.mxu1  ;;  %v2639_v3 = vadd.f32 %v2599_v34, %v476_v58  ;;  %vm2655_vm4 = vcmp.eq.f32.partialorder %v779_v61, 8.507059e+37 }
  0x94   :  { %2201 = vpow2.f32 %v2104_v56  ;;  %v2645_v7 = vadd.f32 %v2599_v34, %v359_v60  ;;  %v2652_v10 = vadd.f32 %v2599_v34, %v399_v63  ;;  %v782_v14 = vor.u32 1.1754944e-38, %v781_v62 }
  0x95   :  { %v2192_v0 = vpop.eup %2191  ;;  %v2120_v2 = vmul.f32 -1.442695, %v2632_v59  ;;  %vm2661_vm5 = vcmp.eq.f32.partialorder %v1019_v1, 8.507059e+37  ;;  %v2136_v18 = vmul.f32 -1.442695, %v2639_v3  ;;  %v1022_v21 = vor.u32 1.1754944e-38, %v1021_v5 }
  0x96   :  { %v2194_v4 = vpop.eup %2193  ;;  %v2642_v6 = vadd.f32 1.0, %v2192_v0  ;;  %v2668_v22 = vmul.f32 -1.442695, %v2645_v7  ;;  %v2672_v25 = vmul.f32 -1.442695, %v2652_v10 }
  0x97   :  { %v2196_v8 = vpop.eup %2195  ;;  %v2649_v9 = vadd.f32 1.0, %v2194_v4 }
  0x98   :  { %v2198_v11 = vpop.eup %2197  ;;  %v771_v12 = vmul.f32 %v2196_v8, %v2623_v53  ;;  %2203 = vrcp.f32 %v2642_v6  ;;  %vm776_vm6 = vweird.f32 %v2196_v8  ;;  %v1259_v24 = vand.u32 2147483647, %v2642_v6 }
  0x99   :  { %v2200_v15 = vpop.eup %2199  ;;  %v1011_v16 = vmul.f32 %v2198_v11, %v2626_v55  ;;  %2205 = vpow2.f32 %v2120_v2  ;;  %v1261_v27 = vand.u32 2147483648, %v2642_v6  ;;  %vm1016_vm8 = vweird.f32 %v2198_v11  ;;  %vm777_vm10 = vmor %vm775_vm2, %vm776_vm6 }
  0x9a   :  { %v2202_v19 = vpop.eup %2201  ;;  %v772_v20 = vsub.f32 1.0, %v771_v12  ;;  %2207 = vrcp.f32 %v2649_v9  ;;  %v2675_v28 = vadd.f32 1.0, %v2200_v15  ;;  %v1499_v31 = vand.u32 2147483647, %v2649_v9  ;;  %v439_v42 = vpop.f32.mrf.mxu2  ;;  %vm1017_vm13 = vmor %vm1015_vm3, %vm1016_vm8 }
  0x9b   :  { %v1012_v23 = vsub.f32 1.0, %v1011_v16  ;;  %v2677_v29 = vadd.f32 1.0, %v2202_v19  ;;  %2209 = vpow2.f32 %v2136_v18  ;;  %vm1255_vm9 = vweird.f32 %v2642_v6 }
  0x9c   :  { %v773_v26 = vmul.f32 %v2196_v8, %v772_v20  ;;  %v1501_v35 = vand.u32 2147483648, %v2649_v9  ;;  %2211 = vrcp.f32 %v2675_v28  ;;  %vm2687_vm11 = vcmp.eq.f32.partialorder %v1259_v24, 8.507059e+37 }
  0x9d   :  { %v1013_v30 = vmul.f32 %v2198_v11, %v1012_v23  ;;  %vm1495_vm12 = vweird.f32 %v2649_v9  ;;  %v1262_v49 = vor.u32 1.1754944e-38, %v1261_v27  ;;  %v794_v50 = vand.u32 2147483647, %v2675_v28 }
  0x9e   :  { %v2204_v32 = vpop.eup %2203  ;;  %v774_v33 = vadd.f32 %v2196_v8, %v773_v26  ;;  %2213 = vrcp.f32 %v2677_v29  ;;  %vm2700_vm14 = vcmp.eq.f32.partialorder %v1499_v31, 8.507059e+37  ;;  %v1502_v58 = vor.u32 1.1754944e-38, %v1501_v35 }
  0x9f   :  { %v2206_v36 = vpop.eup %2205  ;;  %v1014_v39 = vadd.f32 %v2198_v11, %v1013_v30  ;;  %v1251_v40 = vmul.f32 %v2204_v32, %v2642_v6  ;;  %v2708_v60 = vadd.f32 %v2599_v34, %v439_v42  ;;  %vm1256_vm15 = vweird.f32 %v2204_v32 }
  0xa0   :  { %v2208_v45 = vpop.eup %2207  ;;  %v778_v46 = vsel %vm777_vm10, %v2196_v8, %v774_v33  ;;  %vm790_vm0 = vweird.f32 %v2675_v28  ;;  %v2713_v4 = vadd.f32 1.0, %v2206_v36  ;;  %vm2716_vm2 = vcmp.eq.f32.partialorder %v794_v50, 8.507059e+37  ;;  %vm1257_vm3 = vmor %vm1255_vm9, %vm1256_vm15 }
  0xa1   :  { %v783_v51 = vsel %vm2655_vm4, %v782_v14, %v778_v46  ;;  %v1018_v52 = vsel %vm1017_vm13, %v2198_v11, %v1014_v39  ;;  %v1252_v53 = vsub.f32 1.0, %v1251_v40  ;;  %v1491_v54 = vmul.f32 %v2208_v45, %v2649_v9  ;;  %v2210_v61 = vpop.eup %2209 }
  0xa2   :  { %v1730_v57 = vmul.f32 %v783_v51, %v2602_v37  ;;  %v1023_v55 = vsel %vm2661_vm5, %v1022_v21, %v1018_v52  ;;  %v2212_v1 = vpop.eup %2211  ;;  %vm1496_vm1 = vweird.f32 %v2208_v45  ;;  %v796_v37 = vand.u32 2147483648, %v2675_v28 }
  0xa3   :  { %v1746_v62 = vmul.f32 %v1023_v55, %v2605_v38  ;;  %v1253_v63 = vmul.f32 %v2204_v32, %v1252_v53  ;;  %v1492_v0 = vsub.f32 1.0, %v1491_v54  ;;  %v786_v12 = vmul.f32 %v2212_v1, %v2675_v28  ;;  %vm1497_vm5 = vmor %vm1495_vm12, %vm1496_vm1  ;;  %v479_v28 = vpop.f32.mrf.mxu3  ;;  %v361_v54 = vpop.f32.mrf.mxu0 }
  0xa4   :  { %v1794_v2 = vpack.c.bf16 %v1730_v57, %v1730_v57  ;;  %v2214_v38 = vpop.eup %2213  ;;  %vm1030_vm4 = vweird.f32 %v2677_v29  ;;  %v1034_v14 = vand.u32 2147483647, %v2677_v29  ;;  %2215 = vrcp.f32 %v2713_v4 }
  0xa5   :  { %v1810_v5 = vpack.c.bf16 %v1746_v62, %v1746_v62  ;;  %v1254_v8 = vadd.f32 %v2204_v32, %v1253_v63  ;;  %v1493_v11 = vmul.f32 %v2208_v45, %v1492_v0  ;;  %v2730_v15 = vadd.f32 1.0, %v2210_v61 }
  0xa6   :  { %1859 = vst.msk [vmem:[%s4081_s3] sm:$0xf] %vm1858_vm7, %v1794_v2  ;;  %v787_v18 = vsub.f32 1.0, %v786_v12  ;;  %v1026_v19 = vmul.f32 %v2214_v38, %v2677_v29  ;;  %vm791_vm6 = vweird.f32 %v2212_v1  ;;  %vm1031_vm8 = vweird.f32 %v2214_v38 }
  0xa7   :  { %1875 = vst.msk [vmem:[%s4081_s3 + $0x40] sm:$0xf] %vm1858_vm7, %v1810_v5  ;;  %v1258_v16 = vsel %vm1257_vm3, %v2204_v32, %v1254_v8  ;;  %v1494_v17 = vadd.f32 %v2208_v45, %v1493_v11  ;;  %v1036_v20 = vand.u32 2147483648, %v2677_v29  ;;  %v1274_v30 = vand.u32 2147483647, %v2713_v4  ;;  %vm792_vm9 = vmor %vm790_vm0, %vm791_vm6 }
  0xa8   :  { %v1263_v6 = vsel %vm2687_vm11, %v1262_v49, %v1258_v16  ;;  %v788_v24 = vmul.f32 %v2212_v1, %v787_v18  ;;  %v1027_v26 = vsub.f32 1.0, %v1026_v19  ;;  %v1276_v31 = vand.u32 2147483648, %v2713_v4  ;;  %vm1032_vm12 = vmor %vm1030_vm4, %vm1031_vm8 }
  0xa9   :  { %v1762_v21 = vmul.f32 %v1263_v6, %v2610_v43  ;;  %v1498_v23 = vsel %vm1497_vm5, %v2208_v45, %v1494_v17  ;;  %2217 = vrcp.f32 %v2730_v15  ;;  %v797_v43 = vor.u32 1.1754944e-38, %v796_v37  ;;  %v441_v37 = vpop.f32.mrf.mxu2 }
  0xaa   :  { %v1503_v27 = vsel %vm2700_vm14, %v1502_v58, %v1498_v23  ;;  %v789_v33 = vadd.f32 %v2212_v1, %v788_v24  ;;  %v1028_v35 = vmul.f32 %v2214_v38, %v1027_v26  ;;  %v2216_v36 = vpop.eup %2215  ;;  %vm2753_vm10 = vcmp.eq.f32.partialorder %v1034_v14, 8.507059e+37  ;;  %v401_v58 = vpop.f32.mrf.mxu1 }
  0xab   :  { %v1826_v9 = vpack.c.bf16 %v1762_v21, %v1762_v21  ;;  %v1778_v32 = vmul.f32 %v1503_v27, %v2613_v44  ;;  %v1037_v40 = vor.u32 1.1754944e-38, %v1036_v20  ;;  %vm1270_vm11 = vweird.f32 %v2713_v4  ;;  %v481_v21 = vpop.f32.mrf.mxu3 }
  0xac   :  { %v793_v41 = vsel %vm792_vm9, %v2212_v1, %v789_v33  ;;  %v1029_v42 = vadd.f32 %v2214_v38, %v1028_v35  ;;  %v1266_v45 = vmul.f32 %v2216_v36, %v2713_v4  ;;  %vm1271_vm13 = vweird.f32 %v2216_v36 }
  0xad   :  { %1891 = vst.msk [vmem:[%s4081_s3 + $0x80] sm:$0xf] %vm1858_vm7, %v1826_v9  ;;  %v1842_v44 = vpack.c.bf16 %v1778_v32, %v1778_v32  ;;  %v798_v46 = vsel %vm2716_vm2, %v797_v43, %v793_v41  ;;  %vm2768_vm14 = vcmp.eq.f32.partialorder %v1274_v30, 8.507059e+37  ;;  %v1277_v50 = vor.u32 1.1754944e-38, %v1276_v31  ;;  %vm1272_vm0 = vmor %vm1270_vm11, %vm1271_vm13  ;;  %v364_v30 = vpop.f32.mrf.mxu0 }
  0xae   :  { %v1731_v51 = vmul.f32 %v798_v46, %v2616_v47  ;;  %v1033_v52 = vsel %vm1032_vm12, %v2214_v38, %v1029_v42  ;;  %v1267_v53 = vsub.f32 1.0, %v1266_v45  ;;  %2219 = vpow2.f32 %v2668_v22 }
  0xaf   :  { %1907 = vst.msk [vmem:[%s4081_s3 + $0xc0] sm:$0xf] %vm1858_vm7, %v1842_v44  ;;  %v2218_v29 = vpop.eup %2217  ;;  %v1038_v56 = vsel %vm2753_vm10, %v1037_v40, %v1033_v52  ;;  %2221 = vpow2.f32 %v2672_v25  ;;  %v2121_v57 = vmul.f32 -1.442695, %v2708_v60  ;;  %v2783_v55 = vadd.f32 %v2599_v34, %v479_v28 }
  0xb0   :  { %v1795_v61 = vpack.c.bf16 %v1731_v51, %v1731_v51  ;;  %v1747_v47 = vmul.f32 %v1038_v56, %v2619_v48  ;;  %v1268_v62 = vmul.f32 %v2216_v36, %v1267_v53  ;;  %v1506_v63 = vmul.f32 %v2218_v29, %v2730_v15 }
  0xb1   :  { %vm1510_vm15 = vweird.f32 %v2730_v15  ;;  %2223 = vpow2.f32 %v2121_v57  ;;  %v2137_v22 = vmul.f32 -1.442695, %v2783_v55  ;;  %v2790_v0 = vadd.f32 %v2599_v34, %v361_v54 }
  0xb2   :  { %1860 = vst.msk [vmem:[%s4081_s3 + $0x4] sm:$0xf] %vm1858_vm7, %v1795_v61  ;;  %v1811_v25 = vpack.c.bf16 %v1747_v47, %v1747_v47  ;;  %v1269_v1 = vadd.f32 %v2216_v36, %v1268_v62  ;;  %v1507_v2 = vsub.f32 1.0, %v1506_v63  ;;  %v2797_v48 = vadd.f32 %v2599_v34, %v401_v58 }
  0xb3   :  { %v1514_v5 = vand.u32 2147483647, %v2730_v15  ;;  %v1516_v8 = vand.u32 2147483648, %v2730_v15  ;;  %2225 = vpow2.f32 %v2137_v22  ;;  %v2090_v11 = vmul.f32 -1.442695, %v2790_v0 }
  0xb4   :  { %v2220_v12 = vpop.eup %2219  ;;  %1876 = vst.msk [vmem:[%s4081_s3 + $0x44] sm:$0xf] %vm1858_vm7, %v1811_v25  ;;  %v1273_v13 = vsel %vm1272_vm0, %v2216_v36, %v1269_v1  ;;  %v1508_v38 = vmul.f32 %v2218_v29, %v1507_v2  ;;  %vm1511_vm1 = vweird.f32 %v2218_v29  ;;  %v2106_v14 = vmul.f32 -1.442695, %v2797_v48 }
  0xb5   :  { %v2222_v4 = vpop.eup %2221  ;;  %v1278_v16 = vsel %vm2768_vm14, %v1277_v50, %v1273_v13  ;;  %v2812_v17 = vadd.f32 1.0, %v2220_v12  ;;  %2227 = vpow2.f32 %v2090_v11  ;;  %v2815_v18 = vadd.f32 %v2599_v34, %v441_v37  ;;  %vm1512_vm2 = vmor %vm1510_vm15, %vm1511_vm1 }
  0xb6   :  { %v1763_v19 = vmul.f32 %v1278_v16, %v2632_v59  ;;  %v1509_v6 = vadd.f32 %v2218_v29, %v1508_v38  ;;  %v2818_v20 = vadd.f32 1.0, %v2222_v4  ;;  %2229 = vpow2.f32 %v2106_v14 }
  0xb7   :  { %v2224_v23 = vpop.eup %2223  ;;  %v1517_v24 = vor.u32 1.1754944e-38, %v1516_v8  ;;  %2231 = vrcp.f32 %v2812_v17  ;;  %vm1515_vm3 = vcmp.eq.f32.partialorder %v1514_v5, 8.507059e+37  ;;  %v809_v9 = vand.u32 2147483647, %v2812_v17  ;;  %v484_v8 = vpop.f32.mrf.mxu3 }
  0xb8   :  { %v1827_v26 = vpack.c.bf16 %v1763_v19, %v1763_v19  ;;  %v1513_v27 = vsel %vm1512_vm2, %v2218_v29, %v1509_v6  ;;  %2233 = vrcp.f32 %v2818_v20  ;;  %v2122_v32 = vmul.f32 -1.442695, %v2815_v18 }
  0xb9   :  { %v2226_v31 = vpop.eup %2225  ;;  %v1518_v59 = vsel %vm1515_vm3, %v1517_v24, %v1513_v27  ;;  %v2827_v33 = vadd.f32 %v2599_v34, %v481_v21  ;;  %v811_v35 = vand.u32 2147483648, %v2812_v17  ;;  %v2835_v36 = vadd.f32 1.0, %v2224_v23 }
  0xba   :  { %1892 = vst.msk [vmem:[%s4081_s3 + $0x84] sm:$0xf] %vm1858_vm7, %v1827_v26  ;;  %v1779_v15 = vmul.f32 %v1518_v59, %v2639_v3  ;;  %v2837_v43 = vadd.f32 1.0, %v2226_v31  ;;  %v1049_v40 = vand.u32 2147483647, %v2818_v20  ;;  %v1051_v44 = vand.u32 2147483648, %v2818_v20 }
  0xbb   :  { %v2228_v39 = vpop.eup %2227  ;;  %v2842_v41 = vadd.f32 %v2599_v34, %v364_v30  ;;  %2235 = vrcp.f32 %v2835_v36  ;;  %vm805_vm4 = vweird.f32 %v2812_v17  ;;  %vm1045_vm5 = vweird.f32 %v2818_v20 }
  0xbc   :  { %v2230_v42 = vpop.eup %2229  ;;  %v1843_v45 = vpack.c.bf16 %v1779_v15, %v1779_v15  ;;  %2237 = vrcp.f32 %v2837_v43  ;;  %v2138_v3 = vmul.f32 -1.442695, %v2827_v33  ;;  %vm2854_vm6 = vcmp.eq.f32.partialorder %v809_v9, 8.507059e+37 }
  0xbd   :  { %v2232_v28 = vpop.eup %2231  ;;  %v812_v51 = vor.u32 1.1754944e-38, %v811_v35  ;;  %2239 = vpow2.f32 %v2122_v32  ;;  %vm2859_vm8 = vcmp.eq.f32.partialorder %v1049_v40, 8.507059e+37  ;;  %v1052_v54 = vor.u32 1.1754944e-38, %v1051_v44 }
  0xbe   :  { %v2234_v46 = vpop.eup %2233  ;;  %1908 = vst.msk [vmem:[%s4081_s3 + $0xc4] sm:$0xf] %vm1858_vm7, %v1843_v45  ;;  %v801_v49 = vmul.f32 %v2232_v28, %v2812_v17  ;;  %v1289_v29 = vand.u32 2147483647, %v2835_v36  ;;  %v2865_v56 = vmul.f32 -1.442695, %v2842_v41  ;;  %vm1285_vm9 = vweird.f32 %v2835_v36  ;;  %v404_v45 = vpop.f32.mrf.mxu1 }
  0xbf   :  { %v1041_v52 = vmul.f32 %v2234_v46, %v2818_v20  ;;  %v1291_v58 = vand.u32 2147483648, %v2835_v36  ;;  %v1529_v61 = vand.u32 2147483647, %v2837_v43  ;;  %v2869_v47 = vadd.f32 1.0, %v2228_v39 }
  0xc0   :  { %v802_v57 = vsub.f32 1.0, %v801_v49  ;;  %v1531_v63 = vand.u32 2147483648, %v2837_v43  ;;  %v2873_v22 = vadd.f32 1.0, %v2230_v42  ;;  %2241 = vpow2.f32 %v2138_v3 }
  0xc1   :  { %v1042_v62 = vsub.f32 1.0, %v1041_v52  ;;  %v2236_v25 = vpop.eup %2235  ;;  %vm806_vm10 = vweird.f32 %v2232_v28  ;;  %vm1525_vm11 = vweird.f32 %v2837_v43  ;;  %2243 = vrcp.f32 %v2869_v47 }
  0xc2   :  { %v803_v1 = vmul.f32 %v2232_v28, %v802_v57  ;;  %v2238_v2 = vpop.eup %2237  ;;  %vm1046_vm12 = vweird.f32 %v2234_v46  ;;  %v1281_v5 = vmul.f32 %v2236_v25, %v2835_v36  ;;  %vm2878_vm13 = vcmp.eq.f32.partialorder %v1289_v29, 8.507059e+37  ;;  %vm807_vm15 = vmor %vm805_vm4, %vm806_vm10 }
  0xc3   :  { %v1043_v37 = vmul.f32 %v2234_v46, %v1042_v62  ;;  %v2240_v11 = vpop.eup %2239  ;;  %v1292_v13 = vor.u32 1.1754944e-38, %v1291_v58  ;;  %v1521_v38 = vmul.f32 %v2238_v2, %v2837_v43  ;;  %vm2883_vm14 = vcmp.eq.f32.partialorder %v1529_v61, 8.507059e+37  ;;  %vm1047_vm0 = vmor %vm1045_vm5, %vm1046_vm12 }
  0xc4   :  { %v804_v12 = vadd.f32 %v2232_v28, %v803_v1  ;;  %v1282_v16 = vsub.f32 1.0, %v1281_v5  ;;  %v1532_v19 = vor.u32 1.1754944e-38, %v1531_v63  ;;  %2245 = vrcp.f32 %v2873_v22 }
  0xc5   :  { %v1044_v4 = vadd.f32 %v2234_v46, %v1043_v37  ;;  %vm1286_vm1 = vweird.f32 %v2236_v25  ;;  %v1522_v21 = vsub.f32 1.0, %v1521_v38  ;;  %v824_v23 = vand.u32 2147483647, %v2869_v47 }
  0xc6   :  { %v808_v6 = vsel %vm807_vm15, %v2232_v28, %v804_v12  ;;  %v2242_v24 = vpop.eup %2241  ;;  %v1283_v17 = vmul.f32 %v2236_v25, %v1282_v16  ;;  %v826_v30 = vand.u32 2147483648, %v2869_v47  ;;  %vm1526_vm2 = vweird.f32 %v2238_v2  ;;  %vm1287_vm3 = vmor %vm1285_vm9, %vm1286_vm1  ;;  %v366_v16 = vpop.f32.mrf.mxu0 }
  0xc7   :  { %v813_v26 = vsel %vm2854_vm6, %v812_v51, %v808_v6  ;;  %v1048_v27 = vsel %vm1047_vm0, %v2234_v46, %v1044_v4  ;;  %v2244_v31 = vpop.eup %2243  ;;  %v1523_v20 = vmul.f32 %v2238_v2, %v1522_v21  ;;  %v1064_v39 = vand.u32 2147483647, %v2873_v22  ;;  %vm1527_vm4 = vmor %vm1525_vm11, %vm1526_vm2 }
  0xc8   :  { %v1732_v59 = vmul.f32 %v813_v26, %v2645_v7  ;;  %v1053_v9 = vsel %vm2859_vm8, %v1052_v54, %v1048_v27  ;;  %v1284_v15 = vadd.f32 %v2236_v25, %v1283_v17  ;;  %v816_v35 = vmul.f32 %v2244_v31, %v2869_v47  ;;  %v444_v54 = vpop.f32.mrf.mxu2 }
  0xc9   :  { %v1748_v32 = vmul.f32 %v1053_v9, %v2652_v10  ;;  %v1524_v44 = vadd.f32 %v2238_v2, %v1523_v20  ;;  %v1066_v7 = vand.u32 2147483648, %v2873_v22  ;;  %v2906_v42 = vadd.f32 1.0, %v2240_v11 }
  0xca   :  { %v1796_v40 = vpack.c.bf16 %v1732_v59, %v1732_v59  ;;  %v2246_v28 = vpop.eup %2245  ;;  %v1288_v46 = vsel %vm1287_vm3, %v2236_v25, %v1284_v15  ;;  %v817_v10 = vsub.f32 1.0, %v816_v35  ;;  %v2910_v49 = vadd.f32 1.0, %v2242_v24 }
  0xcb   :  { %v1812_v3 = vpack.c.bf16 %v1748_v32, %v1748_v32  ;;  %v1293_v36 = vsel %vm2878_vm13, %v1292_v13, %v1288_v46  ;;  %v1528_v50 = vsel %vm1527_vm4, %v2238_v2, %v1524_v44  ;;  %vm821_vm5 = vweird.f32 %v2244_v31 }
  0xcc   :  { %1861 = vst.msk [vmem:[%s4081_s3 + $0x8] sm:$0xf] %vm1858_vm7, %v1796_v40  ;;  %v1056_v51 = vmul.f32 %v2246_v28, %v2873_v22  ;;  %v1764_v43 = vmul.f32 %v1293_v36, %v2708_v60  ;;  %v1533_v52 = vsel %vm2883_vm14, %v1532_v19, %v1528_v50  ;;  %v818_v53 = vmul.f32 %v2244_v31, %v817_v10  ;;  %v406_v19 = vpop.f32.mrf.mxu1 }
  0xcd   :  { %1877 = vst.msk [vmem:[%s4081_s3 + $0x48] sm:$0xf] %vm1858_vm7, %v1812_v3  ;;  %2247 = vrcp.f32 %v2906_v42  ;;  %v1780_v29 = vmul.f32 %v1533_v52, %v2783_v55  ;;  %vm820_vm6 = vweird.f32 %v2869_v47  ;;  %v2930_v58 = vadd.f32 %v2599_v34, %v404_v45 }
  0xce   :  { %v1057_v57 = vsub.f32 1.0, %v1056_v51  ;;  %v1828_v61 = vpack.c.bf16 %v1764_v43, %v1764_v43  ;;  %v819_v62 = vadd.f32 %v2244_v31, %v818_v53  ;;  %vm825_vm8 = vcmp.eq.f32.partialorder %v824_v23, 8.507059e+37  ;;  %vm822_vm9 = vmor %vm820_vm6, %vm821_vm5 }
  0xcf   :  { %2249 = vrcp.f32 %v2910_v49  ;;  %v1844_v60 = vpack.c.bf16 %v1780_v29, %v1780_v29  ;;  %v827_v63 = vor.u32 1.1754944e-38, %v826_v30  ;;  %vm1061_vm10 = vweird.f32 %v2246_v28 }
  0xd0   :  { %v1058_v25 = vmul.f32 %v2246_v28, %v1057_v57  ;;  %1893 = vst.msk [vmem:[%s4081_s3 + $0x88] sm:$0xf] %vm1858_vm7, %v1828_v61  ;;  %v823_v55 = vsel %vm822_vm9, %v2244_v31, %v819_v62  ;;  %vm1060_vm11 = vweird.f32 %v2873_v22  ;;  %vm2939_vm12 = vcmp.eq.f32.partialorder %v1064_v39, 8.507059e+37 }
  0xd1   :  { %v1067_v1 = vor.u32 1.1754944e-38, %v1066_v7  ;;  %1909 = vst.msk [vmem:[%s4081_s3 + $0xc8] sm:$0xf] %vm1858_vm7, %v1844_v60  ;;  %v828_v2 = vsel %vm825_vm8, %v827_v63, %v823_v55  ;;  %vm1300_vm13 = vweird.f32 %v2906_v42  ;;  %2251 = vpow2.f32 %v2865_v56  ;;  %vm1062_vm14 = vmor %vm1060_vm11, %vm1061_vm10 }
  0xd2   :  { %v1059_v37 = vadd.f32 %v2246_v28, %v1058_v25  ;;  %v2107_v5 = vmul.f32 -1.442695, %v2930_v58  ;;  %v1733_v11 = vmul.f32 %v828_v2, %v2790_v0  ;;  %v1304_v12 = vand.u32 2147483647, %v2906_v42 }
  0xd3   :  { %v2248_v22 = vpop.eup %2247  ;;  %v1306_v13 = vand.u32 2147483648, %v2906_v42  ;;  %v2955_v38 = vadd.f32 %v2599_v34, %v444_v54  ;;  %v1544_v56 = vand.u32 2147483647, %v2910_v49  ;;  %v2963_v24 = vadd.f32 %v2599_v34, %v484_v8  ;;  %v486_v54 = vpop.f32.mrf.mxu3 }
  0xd4   :  { %v1063_v14 = vsel %vm1062_vm14, %v2246_v28, %v1059_v37  ;;  %v1296_v4 = vmul.f32 %v2248_v22, %v2906_v42  ;;  %2253 = vpow2.f32 %v2107_v5  ;;  %v1797_v21 = vpack.c.bf16 %v1733_v11, %v1733_v11 }
  0xd5   :  { %v2250_v6 = vpop.eup %2249  ;;  %v1068_v0 = vsel %vm2939_vm12, %v1067_v1, %v1063_v14  ;;  %v2123_v23 = vmul.f32 -1.442695, %v2955_v38  ;;  %v1546_v30 = vand.u32 2147483648, %v2910_v49  ;;  %v2139_v31 = vmul.f32 -1.442695, %v2963_v24 }
  0xd6   :  { %v1749_v26 = vmul.f32 %v1068_v0, %v2797_v48  ;;  %v1297_v27 = vsub.f32 1.0, %v1296_v4  ;;  %v1536_v17 = vmul.f32 %v2250_v6, %v2910_v49  ;;  %1862 = vst.msk [vmem:[%s4081_s3 + $0xc] sm:$0xf] %vm1858_vm7, %v1797_v21  ;;  %v2974_v59 = vadd.f32 %v2599_v34, %v366_v16  ;;  %v446_v48 = vpop.f32.mrf.mxu2 }
  0xd7   :  { %2255 = vpow2.f32 %v2123_v23  ;;  %v2977_v9 = vadd.f32 %v2599_v34, %v406_v19  ;;  %v2252_v20 = vpop.eup %2251  ;;  %vm1301_vm15 = vweird.f32 %v2248_v22  ;;  %vm1541_vm0 = vweird.f32 %v2250_v6 }
  0xd8   :  { %v1813_v32 = vpack.c.bf16 %v1749_v26, %v1749_v26  ;;  %v1298_v15 = vmul.f32 %v2248_v22, %v1297_v27  ;;  %v1537_v35 = vsub.f32 1.0, %v1536_v17  ;;  %v2979_v39 = vadd.f32 1.0, %v2252_v20  ;;  %vm1302_vm1 = vmor %vm1300_vm13, %vm1301_vm15 }
  0xd9   :  { %2257 = vpow2.f32 %v2139_v31  ;;  %v2092_v40 = vmul.f32 -1.442695, %v2974_v59  ;;  %v2108_v44 = vmul.f32 -1.442695, %v2977_v9  ;;  %v2988_v3 = vadd.f32 %v2599_v34, %v446_v48 }
  0xda   :  { %v2254_v7 = vpop.eup %2253  ;;  %1878 = vst.msk [vmem:[%s4081_s3 + $0x4c] sm:$0xf] %vm1858_vm7, %v1813_v32  ;;  %v1299_v45 = vadd.f32 %v2248_v22, %v1298_v15  ;;  %v1538_v28 = vmul.f32 %v2250_v6, %v1537_v35  ;;  %vm1305_vm2 = vcmp.eq.f32.partialorder %v1304_v12, 8.507059e+37  ;;  %v1307_v46 = vor.u32 1.1754944e-38, %v1306_v13 }
  0xdb   :  { %vm1540_vm3 = vweird.f32 %v2910_v49  ;;  %2259 = vrcp.f32 %v2979_v39  ;;  %v2994_v50 = vadd.f32 1.0, %v2254_v7  ;;  %vm1545_vm5 = vcmp.eq.f32.partialorder %v1544_v56, 8.507059e+37  ;;  %v489_v16 = vpop.f32.mrf.mxu3 }
  0xdc   :  { %v1303_v10 = vsel %vm1302_vm1, %v2248_v22, %v1299_v45  ;;  %v1539_v36 = vadd.f32 %v2250_v6, %v1538_v28  ;;  %2261 = vpow2.f32 %v2092_v40  ;;  %vm1542_vm4 = vmor %vm1540_vm3, %vm1541_vm0  ;;  %v1547_v52 = vor.u32 1.1754944e-38, %v1546_v30 }
  0xdd   :  { %v2256_v51 = vpop.eup %2255  ;;  %v1308_v43 = vsel %vm1305_vm2, %v1307_v46, %v1303_v10  ;;  %2263 = vpow2.f32 %v2108_v44  ;;  %v2124_v49 = vmul.f32 -1.442695, %v2988_v3  ;;  %v839_v61 = vand.u32 2147483647, %v2979_v39 }
  0xde   :  { %v1765_v42 = vmul.f32 %v1308_v43, %v2815_v18  ;;  %v1543_v53 = vsel %vm1542_vm4, %v2250_v6, %v1539_v36  ;;  %2265 = vrcp.f32 %v2994_v50  ;;  %v841_v62 = vand.u32 2147483648, %v2979_v39 }
  0xdf   :  { %v2258_v29 = vpop.eup %2257  ;;  %v1548_v57 = vsel %vm1545_vm5, %v1547_v52, %v1543_v53  ;;  %v3001_v60 = vadd.f32 1.0, %v2256_v51  ;;  %v1079_v47 = vand.u32 2147483647, %v2994_v50  ;;  %v1081_v1 = vand.u32 2147483648, %v2994_v50 }
  0xe0   :  { %v1829_v63 = vpack.c.bf16 %v1765_v42, %v1765_v42  ;;  %v1781_v25 = vmul.f32 %v1548_v57, %v2827_v33  ;;  %v3004_v55 = vadd.f32 1.0, %v2258_v29  ;;  %v3010_v2 = vadd.f32 %v2599_v34, %v486_v54 }
  0xe1   :  { %v2260_v18 = vpop.eup %2259  ;;  %2267 = vrcp.f32 %v3001_v60  ;;  %vm835_vm6 = vweird.f32 %v2979_v39  ;;  %vm3018_vm8 = vcmp.eq.f32.partialorder %v839_v61, 8.507059e+37  ;;  %v842_v11 = vor.u32 1.1754944e-38, %v841_v62  ;;  %v369_v62 = vpop.f32.mrf.mxu0 }
  0xe2   :  { %v2262_v37 = vpop.eup %2261  ;;  %1894 = vst.msk [vmem:[%s4081_s3 + $0x8c] sm:$0xf] %vm1858_vm7, %v1829_v63  ;;  %v1845_v5 = vpack.c.bf16 %v1781_v25, %v1781_v25  ;;  %v831_v33 = vmul.f32 %v2260_v18, %v2979_v39  ;;  %2269 = vpow2.f32 %v2124_v49  ;;  %v1319_v34 = vand.u32 2147483647, %v3001_v60 }
  0xe3   :  { %v2264_v8 = vpop.eup %2263  ;;  %2271 = vrcp.f32 %v3004_v55  ;;  %vm1075_vm9 = vweird.f32 %v2994_v50  ;;  %v1321_v14 = vand.u32 2147483648, %v3001_v60  ;;  %v3030_v4 = vadd.f32 1.0, %v2262_v37 }
  0xe4   :  { %v2266_v12 = vpop.eup %2265  ;;  %1910 = vst.msk [vmem:[%s4081_s3 + $0xcc] sm:$0xf] %vm1858_vm7, %v1845_v5  ;;  %v832_v13 = vsub.f32 1.0, %v831_v33  ;;  %vm3033_vm10 = vcmp.eq.f32.partialorder %v1079_v47, 8.507059e+37  ;;  %v1082_v19 = vor.u32 1.1754944e-38, %v1081_v1  ;;  %v1561_v6 = vand.u32 2147483648, %v3004_v55  ;;  %v449_v47 = vpop.f32.mrf.mxu2 }
  0xe5   :  { %v1071_v56 = vmul.f32 %v2266_v12, %v2994_v50  ;;  %vm836_vm11 = vweird.f32 %v2260_v18  ;;  %v1559_v0 = vand.u32 2147483647, %v3004_v55  ;;  %2273 = vrcp.f32 %v3030_v4 }
  0xe6   :  { %v833_v21 = vmul.f32 %v2260_v18, %v832_v13  ;;  %vm1315_vm12 = vweird.f32 %v3001_v60  ;;  %v856_v27 = vand.u32 2147483648, %v3030_v4  ;;  %v3042_v17 = vadd.f32 1.0, %v2264_v8  ;;  %vm837_vm0 = vmor %vm835_vm6, %vm836_vm11 }
  0xe7   :  { %v2268_v23 = vpop.eup %2267  ;;  %v1072_v26 = vsub.f32 1.0, %v1071_v56  ;;  %vm1076_vm13 = vweird.f32 %v2266_v12  ;;  %vm3045_vm14 = vcmp.eq.f32.partialorder %v1319_v34, 8.507059e+37  ;;  %v1322_v32 = vor.u32 1.1754944e-38, %v1321_v14 }
  0xe8   :  { %v2270_v30 = vpop.eup %2269  ;;  %v834_v31 = vadd.f32 %v2260_v18, %v833_v21  ;;  %v1311_v48 = vmul.f32 %v2268_v23, %v3001_v60  ;;  %vm1555_vm15 = vweird.f32 %v3004_v55  ;;  %v1562_v40 = vor.u32 1.1754944e-38, %v1561_v6  ;;  %vm1077_vm4 = vmor %vm1075_vm9, %vm1076_vm13 }
  0xe9   :  { %v2272_v15 = vpop.eup %2271  ;;  %v1073_v35 = vmul.f32 %v2266_v12, %v1072_v26  ;;  %v854_v44 = vand.u32 2147483647, %v3030_v4  ;;  %2275 = vrcp.f32 %v3042_v17  ;;  %vm1316_vm1 = vweird.f32 %v2268_v23 }
  0xea   :  { %v838_v7 = vsel %vm837_vm0, %v2260_v18, %v834_v31  ;;  %v1312_v45 = vsub.f32 1.0, %v1311_v48  ;;  %v1551_v28 = vmul.f32 %v2272_v15, %v3004_v55  ;;  %vm3056_vm2 = vcmp.eq.f32.partialorder %v1559_v0, 8.507059e+37  ;;  %v409_v18 = vpop.f32.mrf.mxu1  ;;  %v3116_v31 = vld [vmem:[%s4080_s2] ss:$0 sm:$0xff] }
  0xeb   :  { %v843_v10 = vsel %vm3018_vm8, %v842_v11, %v838_v7  ;;  %v1074_v39 = vadd.f32 %v2266_v12, %v1073_v35  ;;  %vm850_vm3 = vweird.f32 %v3030_v4  ;;  %v857_v36 = vor.u32 1.1754944e-38, %v856_v27  ;;  %v2274_v43 = vpop.eup %2273  ;;  %vm1317_vm8 = vmor %vm1315_vm12, %vm1316_vm1 }
  0xec   :  { %v3063_v51 = vadd.f32 1.0, %v2270_v30  ;;  %v1734_v52 = vmul.f32 %v843_v10, %v2842_v41  ;;  %v1313_v42 = vmul.f32 %v2268_v23, %v1312_v45  ;;  %v1552_v53 = vsub.f32 1.0, %v1551_v28  ;;  %v451_v46 = vpop.f32.mrf.mxu2 }
  0xed   :  { %vm1556_vm5 = vweird.f32 %v2272_v15  ;;  %v1078_v49 = vsel %vm1077_vm4, %v2266_v12, %v1074_v39  ;;  %v846_v54 = vmul.f32 %v2274_v43, %v3030_v4  ;;  %vm3070_vm6 = vcmp.eq.f32.partialorder %v854_v44, 8.507059e+37  ;;  %v371_v44 = vpop.f32.mrf.mxu0 }
  0xee   :  { %v1094_v57 = vand.u32 2147483647, %v3042_v17  ;;  %v1096_v61 = vand.u32 2147483648, %v3042_v17  ;;  %v1798_v41 = vpack.c.bf16 %v1734_v52, %v1734_v52  ;;  %v1083_v50 = vsel %vm3033_vm10, %v1082_v19, %v1078_v49  ;;  %vm1557_vm11 = vmor %vm1555_vm15, %vm1556_vm5 }
  0xef   :  { %v1314_v63 = vadd.f32 %v2268_v23, %v1313_v42  ;;  %v1553_v25 = vmul.f32 %v2272_v15, %v1552_v53  ;;  %v2276_v1 = vpop.eup %2275  ;;  %v1750_v37 = vmul.f32 %v1083_v50, %v2930_v58  ;;  %v847_v5 = vsub.f32 1.0, %v846_v54 }
  0xf0   :  { %vm1090_vm9 = vweird.f32 %v3042_v17  ;;  %2277 = vrcp.f32 %v3063_v51  ;;  %1863 = vst.msk [vmem:[%s4081_s3 + $0x10] sm:$0xf] %vm1858_vm7, %v1798_v41  ;;  %vm851_vm10 = vweird.f32 %v2274_v43  ;;  %v1086_v22 = vmul.f32 %v2276_v1, %v3042_v17  ;;  %v491_v41 = vpop.f32.mrf.mxu3 }
  0xf1   :  { %v1318_v33 = vsel %vm1317_vm8, %v2268_v23, %v1314_v63  ;;  %v1554_v8 = vadd.f32 %v2272_v15, %v1553_v25  ;;  %v1814_v58 = vpack.c.bf16 %v1750_v37, %v1750_v37  ;;  %v848_v11 = vmul.f32 %v2274_v43, %v847_v5 }
  0xf2   :  { %v1323_v60 = vsel %vm3045_vm14, %v1322_v32, %v1318_v33  ;;  %vm3094_vm12 = vcmp.eq.f32.partialorder %v1094_v57, 8.507059e+37  ;;  %v1087_v14 = vsub.f32 1.0, %v1086_v22  ;;  %v1097_v56 = vor.u32 1.1754944e-38, %v1096_v61  ;;  %vm852_vm14 = vmor %vm850_vm3, %vm851_vm10  ;;  %v411_v28 = vpop.f32.mrf.mxu1 }
  0xf3   :  { %v1766_v12 = vmul.f32 %v1323_v60, %v2955_v38  ;;  %v1558_v13 = vsel %vm1557_vm11, %v2272_v15, %v1554_v8  ;;  %1879 = vst.msk [vmem:[%s4081_s3 + $0x50] sm:$0xf] %vm1858_vm7, %v1814_v58  ;;  %v849_v19 = vadd.f32 %v2274_v43, %v848_v11  ;;  %vm1091_vm13 = vweird.f32 %v2276_v1 }
  0xf4   :  { %v1563_v55 = vsel %vm3056_vm2, %v1562_v40, %v1558_v13  ;;  %v2140_v6 = vmul.f32 -1.442695, %v3010_v2  ;;  %v1088_v38 = vmul.f32 %v2276_v1, %v1087_v14  ;;  %vm1330_vm15 = vweird.f32 %v3063_v51  ;;  %vm1092_vm0 = vmor %vm1090_vm9, %vm1091_vm13 }
  0xf5   :  { %v1830_v21 = vpack.c.bf16 %v1766_v12, %v1766_v12  ;;  %v1782_v0 = vmul.f32 %v1563_v55, %v2963_v24  ;;  %v1334_v23 = vand.u32 2147483647, %v3063_v51  ;;  %v853_v27 = vsel %vm852_vm14, %v2274_v43, %v849_v19  ;;  %v374_v14 = vpop.f32.mrf.mxu0 }
  0xf6   :  { %v2278_v26 = vpop.eup %2277  ;;  %v1336_v30 = vand.u32 2147483648, %v3063_v51  ;;  %2279 = vpow2.f32 %v2140_v6  ;;  %v3119_v24 = vadd.f32 %v3116_v31, %v369_v62  ;;  %v858_v48 = vsel %vm3070_vm6, %v857_v36, %v853_v27 }
  0xf7   :  { %1895 = vst.msk [vmem:[%s4081_s3 + $0x90] sm:$0xf] %vm1858_vm7, %v1830_v21  ;;  %v1846_v4 = vpack.c.bf16 %v1782_v0, %v1782_v0  ;;  %v1089_v20 = vadd.f32 %v2276_v1, %v1088_v38  ;;  %v1326_v32 = vmul.f32 %v2278_v26, %v3063_v51  ;;  %v1735_v15 = vmul.f32 %v858_v48, %v2974_v59 }
  0xf8   :  { %vm1331_vm1 = vweird.f32 %v2278_v26  ;;  %v2093_v35 = vmul.f32 -1.442695, %v3119_v24  ;;  %v3134_v40 = vadd.f32 %v3116_v31, %v409_v18  ;;  %v3141_v59 = vadd.f32 %v3116_v31, %v449_v47 }
  0xf9   :  { %1911 = vst.msk [vmem:[%s4081_s3 + $0xd0] sm:$0xf] %vm1858_vm7, %v1846_v4  ;;  %v1093_v7 = vsel %vm1092_vm0, %v2276_v1, %v1089_v20  ;;  %v1327_v45 = vsub.f32 1.0, %v1326_v32  ;;  %v3144_v17 = vadd.f32 %v3116_v31, %v489_v16  ;;  %v1799_v10 = vpack.c.bf16 %v1735_v15, %v1735_v15  ;;  %vm1332_vm2 = vmor %vm1330_vm15, %vm1331_vm1 }
  0xfa   :  { %v1098_v39 = vsel %vm3094_vm12, %v1097_v56, %v1093_v7  ;;  %2281 = vpow2.f32 %v2093_v35  ;;  %v2109_v36 = vmul.f32 -1.442695, %v3134_v40  ;;  %v2125_v42 = vmul.f32 -1.442695, %v3141_v59  ;;  %v414_v27 = vpop.f32.mrf.mxu1 }
  0xfb   :  { %v1751_v43 = vmul.f32 %v1098_v39, %v2977_v9  ;;  %v1328_v52 = vmul.f32 %v2278_v26, %v1327_v45  ;;  %v2141_v53 = vmul.f32 -1.442695, %v3144_v17  ;;  %1864 = vst.msk [vmem:[%s4081_s3 + $0x14] sm:$0xf] %vm1858_vm7, %v1799_v10  ;;  %v3157_v54 = vadd.f32 %v3116_v31, %v371_v44 }
  0xfc   :  { %v2280_v49 = vpop.eup %2279  ;;  %2283 = vpow2.f32 %v2109_v36  ;;  %v3160_v29 = vadd.f32 %v3116_v31, %v411_v28  ;;  %v3163_v9 = vadd.f32 %v3116_v31, %v451_v46  ;;  %v1337_v50 = vor.u32 1.1754944e-38, %v1336_v30 }
  0xfd   :  { %v1815_v57 = vpack.c.bf16 %v1751_v43, %v1751_v43  ;;  %v1329_v61 = vadd.f32 %v2278_v26, %v1328_v52  ;;  %v3165_v62 = vadd.f32 1.0, %v2280_v49  ;;  %2285 = vpow2.f32 %v2125_v42 }
  0xfe   :  { %2287 = vpow2.f32 %v2141_v53  ;;  %v2094_v63 = vmul.f32 -1.442695, %v3157_v54  ;;  %vm1335_vm3 = vcmp.eq.f32.partialorder %v1334_v23, 8.507059e+37  ;;  %v2110_v1 = vmul.f32 -1.442695, %v3160_v29 }
  0xff   :  { %1880 = vst.msk [vmem:[%s4081_s3 + $0x54] sm:$0xf] %vm1858_vm7, %v1815_v57  ;;  %v1333_v25 = vsel %vm1332_vm2, %v2278_v26, %v1329_v61  ;;  %2289 = vrcp.f32 %v3165_v62  ;;  %v3178_v51 = vadd.f32 %v3116_v31, %v491_v41  ;;  %v2126_v33 = vmul.f32 -1.442695, %v3163_v9 }
 0x100   :  { %v2282_v18 = vpop.eup %2281  ;;  %v1338_v47 = vsel %vm1335_vm3, %v1337_v50, %v1333_v25  ;;  %2291 = vpow2.f32 %v2094_v63  ;;  %v1574_v60 = vand.u32 2147483647, %v3165_v62  ;;  %v1576_v11 = vand.u32 2147483648, %v3165_v62 }
 0x101   :  { %v1767_v37 = vmul.f32 %v1338_v47, %v2988_v3  ;;  %v3181_v5 = vadd.f32 1.0, %v2282_v18  ;;  %v2142_v3 = vmul.f32 -1.442695, %v3178_v51  ;;  %vm1570_vm4 = vweird.f32 %v3165_v62 }
 0x102   :  { %v2284_v8 = vpop.eup %2283  ;;  %vm3202_vm5 = vcmp.eq.f32.partialorder %v1574_v60, 8.507059e+37  ;;  %v3209_v0 = vadd.f32 %v3116_v31, %v374_v14  ;;  %v1577_v26 = vor.u32 1.1754944e-38, %v1576_v11  ;;  %v3228_v39 = vadd.f32 %v3116_v31, %v414_v27 }
 0x103   :  { %v2286_v22 = vpop.eup %2285  ;;  %v1831_v58 = vpack.c.bf16 %v1767_v37, %v1767_v37  ;;  %2293 = vrcp.f32 %v3181_v5  ;;  %v3187_v12 = vadd.f32 1.0, %v2284_v8  ;;  %v869_v19 = vand.u32 2147483647, %v3181_v5 }
 0x104   :  { %v2288_v34 = vpop.eup %2287  ;;  %v3189_v13 = vadd.f32 1.0, %v2286_v22  ;;  %2295 = vpow2.f32 %v2110_v1  ;;  %v871_v21 = vand.u32 2147483648, %v3181_v5  ;;  %vm865_vm6 = vweird.f32 %v3181_v5 }
 0x105   :  { %v2290_v56 = vpop.eup %2289  ;;  %1896 = vst.msk [vmem:[%s4081_s3 + $0x94] sm:$0xf] %vm1858_vm7, %v1831_v58  ;;  %v3196_v16 = vadd.f32 1.0, %v2288_v34  ;;  %2297 = vpow2.f32 %v2126_v33  ;;  %v1109_v4 = vand.u32 2147483647, %v3187_v12  ;;  %v1111_v48 = vand.u32 2147483648, %v3187_v12 }
 0x106   :  { %v1566_v55 = vmul.f32 %v2290_v56, %v3165_v62  ;;  %2299 = vrcp.f32 %v3187_v12  ;;  %v2292_v38 = vpop.eup %2291  ;;  %v1351_v20 = vand.u32 2147483648, %v3189_v13  ;;  %vm1571_vm8 = vweird.f32 %v2290_v56 }
 0x107   :  { %2301 = vrcp.f32 %v3189_v13  ;;  %vm3217_vm9 = vcmp.eq.f32.partialorder %v869_v19, 8.507059e+37  ;;  %v1349_v7 = vand.u32 2147483647, %v3189_v13  ;;  %v872_v28 = vor.u32 1.1754944e-38, %v871_v21  ;;  %vm1572_vm12 = vmor %vm1570_vm4, %vm1571_vm8 }
 0x108   :  { %v1567_v23 = vsub.f32 1.0, %v1566_v55  ;;  %2303 = vpow2.f32 %v2142_v3  ;;  %v3222_v46 = vadd.f32 1.0, %v2292_v38  ;;  %v3225_v10 = vmul.f32 -1.442695, %v3209_v0 }
 0x109   :  { %v2294_v30 = vpop.eup %2293  ;;  %2305 = vrcp.f32 %v3196_v16  ;;  %vm1105_vm10 = vweird.f32 %v3187_v12  ;;  %vm1345_vm11 = vweird.f32 %v3189_v13  ;;  %vm3236_vm14 = vcmp.eq.f32.partialorder %v1109_v4, 8.507059e+37 }
 0x10a   :  { %v2296_v32 = vpop.eup %2295  ;;  %v1568_v15 = vmul.f32 %v2290_v56, %v1567_v23  ;;  %v861_v35 = vmul.f32 %v2294_v30, %v3181_v5  ;;  %vm866_vm13 = vweird.f32 %v2294_v30  ;;  %v1112_v57 = vor.u32 1.1754944e-38, %v1111_v48 }
 0x10b   :  { %v2298_v45 = vpop.eup %2297  ;;  %v1352_v61 = vor.u32 1.1754944e-38, %v1351_v20  ;;  %vm3243_vm15 = vcmp.eq.f32.partialorder %v1349_v7, 8.507059e+37  ;;  %vm1585_vm0 = vweird.f32 %v3196_v16  ;;  %v1589_v62 = vand.u32 2147483647, %v3196_v16  ;;  %vm867_vm1 = vmor %vm865_vm6, %vm866_vm13 }
 0x10c   :  { %v2300_v36 = vpop.eup %2299  ;;  %v1569_v43 = vadd.f32 %v2290_v56, %v1568_v15  ;;  %v862_v52 = vsub.f32 1.0, %v861_v35  ;;  %2307 = vrcp.f32 %v3222_v46  ;;  %v3252_v33 = vadd.f32 1.0, %v2296_v32 }
 0x10d   :  { %v2302_v42 = vpop.eup %2301  ;;  %v1101_v53 = vmul.f32 %v2300_v36, %v3187_v12  ;;  %vm1106_vm2 = vweird.f32 %v2300_v36  ;;  %v1591_v34 = vand.u32 2147483648, %v3196_v16  ;;  %v884_v6 = vand.u32 2147483647, %v3222_v46 }
 0x10e   :  { %v3240_v41 = vpop.eup %2303  ;;  %v1573_v50 = vsel %vm1572_vm12, %v2290_v56, %v1569_v43  ;;  %v863_v63 = vmul.f32 %v2294_v30, %v862_v52  ;;  %v1341_v25 = vmul.f32 %v2302_v42, %v3189_v13  ;;  %vm1346_vm3 = vweird.f32 %v2302_v42 }
 0x10f   :  { %v2306_v47 = vpop.eup %2305  ;;  %v1578_v1 = vsel %vm3202_vm5, %v1577_v26, %v1573_v50  ;;  %v1102_v37 = vsub.f32 1.0, %v1101_v53  ;;  %vm1107_vm5 = vmor %vm1105_vm10, %vm1106_vm2  ;;  %2309 = vrcp.f32 %v3252_v33  ;;  %vm3274_vm8 = vcmp.eq.f32.partialorder %v1589_v62, 8.507059e+37  ;;  %v454_v50 = vpop.f32.mrf.mxu2 }
 0x110   :  { %v1783_v8 = vmul.f32 %v1578_v1, %v3010_v2  ;;  %v864_v22 = vadd.f32 %v2294_v30, %v863_v63  ;;  %v1342_v58 = vsub.f32 1.0, %v1341_v25  ;;  %v1581_v60 = vmul.f32 %v2306_v47, %v3196_v16  ;;  %vm1347_vm6 = vmor %vm1345_vm11, %vm1346_vm3 }
 0x111   :  { %v1103_v11 = vmul.f32 %v2300_v36, %v1102_v37  ;;  %vm1586_vm4 = vweird.f32 %v2306_v47  ;;  %v3278_v4 = vadd.f32 1.0, %v2298_v45  ;;  %v886_v35 = vand.u32 2147483648, %v3222_v46 }
 0x112   :  { %v1847_v3 = vpack.c.bf16 %v1783_v8, %v1783_v8  ;;  %v868_v14 = vsel %vm867_vm1, %v2294_v30, %v864_v22  ;;  %v1343_v56 = vmul.f32 %v2302_v42, %v1342_v58  ;;  %v1582_v55 = vsub.f32 1.0, %v1581_v60  ;;  %v2308_v23 = vpop.eup %2307  ;;  %v494_v22 = vpop.f32.mrf.mxu3 }
 0x113   :  { %v873_v2 = vsel %vm3217_vm9, %v872_v28, %v868_v14  ;;  %v1104_v19 = vadd.f32 %v2300_v36, %v1103_v11  ;;  %v1592_v30 = vor.u32 1.1754944e-38, %v1591_v34  ;;  %vm1587_vm9 = vmor %vm1585_vm0, %vm1586_vm4  ;;  %v876_v13 = vmul.f32 %v2308_v23, %v3222_v46  ;;  %v376_v58 = vpop.f32.mrf.mxu0 }
 0x114   :  { %1912 = vst.msk [vmem:[%s4081_s3 + $0xd4] sm:$0xf] %vm1858_vm7, %v1847_v3  ;;  %v1736_v5 = vmul.f32 %v873_v2, %v3119_v24  ;;  %v1344_v21 = vadd.f32 %v2302_v42, %v1343_v56  ;;  %v1583_v38 = vmul.f32 %v2306_v47, %v1582_v55  ;;  %vm880_vm10 = vweird.f32 %v3222_v46 }
 0x115   :  { %v1108_v26 = vsel %vm1107_vm5, %v2300_v36, %v1104_v19  ;;  %vm3296_vm11 = vcmp.eq.f32.partialorder %v884_v6, 8.507059e+37  ;;  %v877_v28 = vsub.f32 1.0, %v876_v13  ;;  %2311 = vrcp.f32 %v3278_v4  ;;  %v2310_v36 = vpop.eup %2309 }
 0x116   :  { %v1800_v24 = vpack.c.bf16 %v1736_v5, %v1736_v5  ;;  %v1113_v12 = vsel %vm3236_vm14, %v1112_v57, %v1108_v26  ;;  %v1348_v48 = vsel %vm1347_vm6, %v2302_v42, %v1344_v21  ;;  %v1584_v20 = vadd.f32 %v2306_v47, %v1583_v38  ;;  %v416_v38 = vpop.f32.mrf.mxu1 }
 0x117   :  { %v1752_v32 = vmul.f32 %v1113_v12, %v3134_v40  ;;  %v1353_v15 = vsel %vm3243_vm15, %v1352_v61, %v1348_v48  ;;  %v1126_v42 = vand.u32 2147483648, %v3252_v33  ;;  %v878_v53 = vmul.f32 %v2308_v23, %v877_v28 }
 0x118   :  { %1865 = vst.msk [vmem:[%s4081_s3 + $0x18] sm:$0xf] %vm1858_vm7, %v1800_v24  ;;  %v1768_v44 = vmul.f32 %v1353_v15, %v3141_v59  ;;  %v1588_v7 = vsel %vm1587_vm9, %v2306_v47, %v1584_v20  ;;  %v1124_v59 = vand.u32 2147483647, %v3252_v33  ;;  %vm881_vm12 = vweird.f32 %v2308_v23 }
 0x119   :  { %v1816_v16 = vpack.c.bf16 %v1752_v32, %v1752_v32  ;;  %v1593_v45 = vsel %vm3274_vm8, %v1592_v30, %v1588_v7  ;;  %v887_v49 = vor.u32 1.1754944e-38, %v886_v35  ;;  %v1116_v57 = vmul.f32 %v2310_v36, %v3252_v33  ;;  %vm882_vm14 = vmor %vm880_vm10, %vm881_vm12 }
 0x11a   :  { %v1832_v43 = vpack.c.bf16 %v1768_v44, %v1768_v44  ;;  %v1784_v52 = vmul.f32 %v1593_v45, %v3144_v17  ;;  %vm1120_vm13 = vweird.f32 %v3252_v33  ;;  %v3317_v61 = vadd.f32 1.0, %v3240_v41  ;;  %v496_v41 = vpop.f32.mrf.mxu3 }
 0x11b   :  { %1881 = vst.msk [vmem:[%s4081_s3 + $0x58] sm:$0xf] %vm1858_vm7, %v1816_v16  ;;  %2313 = vpow2.f32 %v3225_v10  ;;  %v879_v63 = vadd.f32 %v2308_v23, %v878_v53  ;;  %v1117_v25 = vsub.f32 1.0, %v1116_v57  ;;  %v1364_v18 = vand.u32 2147483647, %v3278_v4  ;;  %v2312_v47 = vpop.eup %2311 }
 0x11c   :  { %1897 = vst.msk [vmem:[%s4081_s3 + $0x98] sm:$0xf] %vm1858_vm7, %v1832_v43  ;;  %v1848_v17 = vpack.c.bf16 %v1784_v52, %v1784_v52  ;;  %v2111_v62 = vmul.f32 -1.442695, %v3228_v39  ;;  %vm1121_vm15 = vweird.f32 %v2310_v36  ;;  %vm3328_vm0 = vcmp.eq.f32.partialorder %v1124_v59, 8.507059e+37 }
 0x11d   :  { %v1127_v10 = vor.u32 1.1754944e-38, %v1126_v42  ;;  %2315 = vrcp.f32 %v3317_v61  ;;  %v883_v1 = vsel %vm882_vm14, %v2308_v23, %v879_v63  ;;  %v1118_v37 = vmul.f32 %v2310_v36, %v1117_v25  ;;  %vm1122_vm3 = vmor %vm1120_vm13, %vm1121_vm15 }
 0x11e   :  { %1913 = vst.msk [vmem:[%s4081_s3 + $0xd8] sm:$0xf] %vm1858_vm7, %v1848_v17  ;;  %2317 = vpow2.f32 %v2111_v62  ;;  %v3334_v8 = vadd.f32 %v3116_v31, %v454_v50  ;;  %v888_v46 = vsel %vm3296_vm11, %v887_v49, %v883_v1  ;;  %v1356_v60 = vmul.f32 %v2312_v47, %v3278_v4  ;;  %v456_v17 = vpop.f32.mrf.mxu2 }
 0x11f   :  { %vm1360_vm1 = vweird.f32 %v3278_v4  ;;  %v1366_v11 = vand.u32 2147483648, %v3278_v4  ;;  %v1737_v34 = vmul.f32 %v888_v46, %v3157_v54  ;;  %v1119_v3 = vadd.f32 %v2310_v36, %v1118_v37 }
 0x120   :  { %vm3342_vm2 = vcmp.eq.f32.partialorder %v1364_v18, 8.507059e+37  ;;  %v2127_v56 = vmul.f32 -1.442695, %v3334_v8  ;;  %v1357_v2 = vsub.f32 1.0, %v1356_v60  ;;  %vm1361_vm4 = vweird.f32 %v2312_v47 }
 0x121   :  { %v2314_v55 = vpop.eup %2313  ;;  %v3351_v19 = vadd.f32 %v3116_v31, %v494_v22  ;;  %v3354_v6 = vadd.f32 %v3116_v31, %v376_v58  ;;  %v1801_v54 = vpack.c.bf16 %v1737_v34, %v1737_v34  ;;  %v1123_v5 = vsel %vm1122_vm3, %v2310_v36, %v1119_v3  ;;  %vm1362_vm5 = vmor %vm1360_vm1, %vm1361_vm4 }
 0x122   :  { %v3356_v21 = vadd.f32 1.0, %v2314_v55  ;;  %2319 = vpow2.f32 %v2127_v56  ;;  %v1128_v26 = vsel %vm3328_vm0, %v1127_v10, %v1123_v5  ;;  %v1358_v33 = vmul.f32 %v2312_v47, %v1357_v2 }
 0x123   :  { %v2316_v23 = vpop.eup %2315  ;;  %v2143_v27 = vmul.f32 -1.442695, %v3351_v19  ;;  %v2096_v30 = vmul.f32 -1.442695, %v3354_v6  ;;  %1866 = vst.msk [vmem:[%s4081_s3 + $0x1c] sm:$0xf] %vm1858_vm7, %v1801_v54  ;;  %v1753_v12 = vmul.f32 %v1128_v26, %v3160_v29  ;;  %v3372_v35 = vadd.f32 %v3116_v31, %v416_v38 }
 0x124   :  { %v2318_v24 = vpop.eup %2317  ;;  %v1367_v48 = vor.u32 1.1754944e-38, %v1366_v11  ;;  %v1596_v20 = vmul.f32 %v2316_v23, %v3317_v61  ;;  %2321 = vrcp.f32 %v3356_v21  ;;  %v1359_v32 = vadd.f32 %v2312_v47, %v1358_v33 }
 0x125   :  { %v1604_v15 = vand.u32 2147483647, %v3317_v61  ;;  %v1606_v13 = vand.u32 2147483648, %v3317_v61  ;;  %v1817_v44 = vpack.c.bf16 %v1753_v12, %v1753_v12  ;;  %v3377_v29 = vadd.f32 1.0, %v2318_v24  ;;  %v379_v12 = vpop.f32.mrf.mxu0 }
 0x126   :  { %v1597_v7 = vsub.f32 1.0, %v1596_v20  ;;  %2323 = vpow2.f32 %v2143_v27  ;;  %v1363_v40 = vsel %vm1362_vm5, %v2312_v47, %v1359_v32  ;;  %v899_v16 = vand.u32 2147483647, %v3356_v21 }
 0x127   :  { %v901_v45 = vand.u32 2147483648, %v3356_v21  ;;  %2325 = vpow2.f32 %v2096_v30  ;;  %1882 = vst.msk [vmem:[%s4081_s3 + $0x5c] sm:$0xf] %vm1858_vm7, %v1817_v44  ;;  %v1368_v4 = vsel %vm3342_vm2, %v1367_v48, %v1363_v40  ;;  %vm1601_vm6 = vweird.f32 %v2316_v23 }
 0x128   :  { %v2320_v28 = vpop.eup %2319  ;;  %v1598_v36 = vmul.f32 %v2316_v23, %v1597_v7  ;;  %2327 = vrcp.f32 %v3377_v29  ;;  %v1769_v43 = vmul.f32 %v1368_v4, %v3163_v9  ;;  %vm1600_vm8 = vweird.f32 %v3317_v61 }
 0x129   :  { %vm3390_vm9 = vcmp.eq.f32.partialorder %v1604_v15, 8.507059e+37  ;;  %v3394_v59 = vadd.f32 1.0, %v2320_v28  ;;  %v1607_v49 = vor.u32 1.1754944e-38, %v1606_v13  ;;  %vm895_vm10 = vweird.f32 %v3356_v21  ;;  %vm1602_vm11 = vmor %vm1600_vm8, %vm1601_vm6 }
 0x12a   :  { %v2322_v42 = vpop.eup %2321  ;;  %v1599_v53 = vadd.f32 %v2316_v23, %v1598_v36  ;;  %v2112_v57 = vmul.f32 -1.442695, %v3372_v35  ;;  %v1833_v50 = vpack.c.bf16 %v1769_v43, %v1769_v43  ;;  %vm3399_vm12 = vcmp.eq.f32.partialorder %v899_v16, 8.507059e+37 }
 0x12b   :  { %v891_v9 = vmul.f32 %v2322_v42, %v3356_v21  ;;  %v902_v63 = vor.u32 1.1754944e-38, %v901_v45  ;;  %vm1135_vm13 = vweird.f32 %v3377_v29  ;;  %v1139_v62 = vand.u32 2147483647, %v3377_v29 }
 0x12c   :  { %v2324_v25 = vpop.eup %2323  ;;  %v1603_v18 = vsel %vm1602_vm11, %v2316_v23, %v1599_v53  ;;  %2329 = vrcp.f32 %v3394_v59  ;;  %1898 = vst.msk [vmem:[%s4081_s3 + $0x9c] sm:$0xf] %vm1858_vm7, %v1833_v50  ;;  %v1141_v37 = vand.u32 2147483648, %v3377_v29  ;;  %v3414_v22 = vadd.f32 %v3116_v31, %v456_v17 }
 0x12d   :  { %v2326_v10 = vpop.eup %2325  ;;  %v1608_v47 = vsel %vm3390_vm9, %v1607_v49, %v1603_v18  ;;  %v892_v1 = vsub.f32 1.0, %v891_v9  ;;  %v3417_v60 = vadd.f32 1.0, %v2324_v25  ;;  %2331 = vpow2.f32 %v2112_v57  ;;  %v419_v18 = vpop.f32.mrf.mxu1 }
 0x12e   :  { %v2328_v58 = vpop.eup %2327  ;;  %v1785_v46 = vmul.f32 %v1608_v47, %v3178_v51  ;;  %v3419_v11 = vadd.f32 1.0, %v2326_v10  ;;  %vm896_vm14 = vweird.f32 %v2322_v42  ;;  %v3423_v14 = vadd.f32 %v3116_v31, %v496_v41  ;;  %v459_v47 = vpop.f32.mrf.mxu2 }
 0x12f   :  { %v893_v34 = vmul.f32 %v2322_v42, %v892_v1  ;;  %v1131_v3 = vmul.f32 %v2328_v58, %v3377_v29  ;;  %v1379_v55 = vand.u32 2147483647, %v3394_v59  ;;  %v1381_v2 = vand.u32 2147483648, %v3394_v59  ;;  %vm897_vm0 = vmor %vm895_vm10, %vm896_vm14  ;;  %v499_v1 = vpop.f32.mrf.mxu3 }
 0x130   :  { %v1849_v56 = vpack.c.bf16 %v1785_v46, %v1785_v46  ;;  %2333 = vrcp.f32 %v3417_v60  ;;  %vm3428_vm15 = vcmp.eq.f32.partialorder %v1139_v62, 8.507059e+37  ;;  %v1142_v38 = vor.u32 1.1754944e-38, %v1141_v37 }
 0x131   :  { %v894_v51 = vadd.f32 %v2322_v42, %v893_v34  ;;  %v1132_v54 = vsub.f32 1.0, %v1131_v3  ;;  %vm1136_vm1 = vweird.f32 %v2328_v58  ;;  %vm1375_vm2 = vweird.f32 %v3394_v59 }
 0x132   :  { %v2330_v23 = vpop.eup %2329  ;;  %1914 = vst.msk [vmem:[%s4081_s3 + $0xdc] sm:$0xf] %vm1858_vm7, %v1849_v56  ;;  %v1621_v26 = vand.u32 2147483648, %v3417_v60  ;;  %2335 = vrcp.f32 %v3419_v11  ;;  %v1619_v24 = vand.u32 2147483647, %v3417_v60  ;;  %vm3445_vm3 = vcmp.eq.f32.partialorder %v1379_v55, 8.507059e+37  ;;  %vm1137_vm5 = vmor %vm1135_vm13, %vm1136_vm1  ;;  %v381_v56 = vpop.f32.mrf.mxu0 }
 0x133   :  { %v898_v33 = vsel %vm897_vm0, %v2322_v42, %v894_v51  ;;  %v1133_v27 = vmul.f32 %v2328_v58, %v1132_v54  ;;  %v1371_v30 = vmul.f32 %v2330_v23, %v3394_v59  ;;  %v2332_v48 = vpop.eup %2331  ;;  %v1382_v32 = vor.u32 1.1754944e-38, %v1381_v2 }
 0x134   :  { %v903_v20 = vsel %vm3399_vm12, %v902_v63, %v898_v33  ;;  %v914_v15 = vand.u32 2147483647, %v3419_v11  ;;  %vm1615_vm4 = vweird.f32 %v3417_v60  ;;  %v916_v40 = vand.u32 2147483648, %v3419_v11 }
 0x135   :  { %v1738_v13 = vmul.f32 %v903_v20, %v3209_v0  ;;  %v1134_v44 = vadd.f32 %v2328_v58, %v1133_v27  ;;  %v1372_v7 = vsub.f32 1.0, %v1371_v30  ;;  %vm1376_vm6 = vweird.f32 %v2330_v23 }
 0x136   :  { %v2334_v16 = vpop.eup %2333  ;;  %v1622_v45 = vor.u32 1.1754944e-38, %v1621_v26  ;;  %v3456_v28 = vadd.f32 1.0, %v2332_v48  ;;  %v2128_v4 = vmul.f32 -1.442695, %v3414_v22  ;;  %vm3460_vm8 = vcmp.eq.f32.partialorder %v1619_v24, 8.507059e+37  ;;  %vm1377_vm10 = vmor %vm1375_vm2, %vm1376_vm6 }
 0x137   :  { %v1802_v36 = vpack.c.bf16 %v1738_v13, %v1738_v13  ;;  %v1138_v43 = vsel %vm1137_vm5, %v2328_v58, %v1134_v44  ;;  %v1373_v0 = vmul.f32 %v2330_v23, %v1372_v7  ;;  %v1611_v52 = vmul.f32 %v2334_v16, %v3417_v60 }
 0x138   :  { %vm910_vm9 = vweird.f32 %v3419_v11  ;;  %v2336_v53 = vpop.eup %2335  ;;  %v1143_v29 = vsel %vm3428_vm15, %v1142_v38, %v1138_v43  ;;  %2337 = vrcp.f32 %v3456_v28  ;;  %v2144_v49 = vmul.f32 -1.442695, %v3423_v14 }
 0x139   :  { %v3470_v57 = vadd.f32 %v3116_v31, %v379_v12  ;;  %1867 = vst.msk [vmem:[%s4081_s3 + $0x20] sm:$0xf] %vm1858_vm7, %v1802_v36  ;;  %v1754_v17 = vmul.f32 %v1143_v29, %v3228_v39  ;;  %v1374_v50 = vadd.f32 %v2330_v23, %v1373_v0  ;;  %v1612_v9 = vsub.f32 1.0, %v1611_v52 }
 0x13a   :  { %v906_v61 = vmul.f32 %v2336_v53, %v3419_v11  ;;  %vm1616_vm11 = vweird.f32 %v2334_v16  ;;  %vm3481_vm12 = vcmp.eq.f32.partialorder %v914_v15, 8.507059e+37  ;;  %v917_v25 = vor.u32 1.1754944e-38, %v916_v40 }
 0x13b   :  { %2339 = vpow2.f32 %v2128_v4  ;;  %v1818_v62 = vpack.c.bf16 %v1754_v17, %v1754_v17  ;;  %v1378_v41 = vsel %vm1377_vm10, %v2330_v23, %v1374_v50  ;;  %v1613_v10 = vmul.f32 %v2334_v16, %v1612_v9  ;;  %vm1617_vm14 = vmor %vm1615_vm4, %vm1616_vm11 }
 0x13c   :  { %v907_v39 = vsub.f32 1.0, %v906_v61  ;;  %v1383_v37 = vsel %vm3445_vm3, %v1382_v32, %v1378_v41  ;;  %vm911_vm13 = vweird.f32 %v2336_v53  ;;  %v1154_v59 = vand.u32 2147483647, %v3456_v28 }
 0x13d   :  { %2341 = vpow2.f32 %v2144_v49  ;;  %1883 = vst.msk [vmem:[%s4081_s3 + $0x60] sm:$0xf] %vm1858_vm7, %v1818_v62  ;;  %v1770_v58 = vmul.f32 %v1383_v37, %v3334_v8  ;;  %v1614_v46 = vadd.f32 %v2334_v16, %v1613_v10  ;;  %v2097_v3 = vmul.f32 -1.442695, %v3470_v57  ;;  %vm912_vm15 = vmor %vm910_vm9, %vm911_vm13 }
 0x13e   :  { %v908_v34 = vmul.f32 %v2336_v53, %v907_v39  ;;  %v2338_v55 = vpop.eup %2337  ;;  %v1156_v2 = vand.u32 2147483648, %v3456_v28  ;;  %v3499_v51 = vadd.f32 %v3116_v31, %v419_v18  ;;  %v3502_v54 = vadd.f32 %v3116_v31, %v459_v47 }
 0x13f   :  { %v3505_v8 = vadd.f32 %v3116_v31, %v499_v1  ;;  %v1834_v5 = vpack.c.bf16 %v1770_v58, %v1770_v58  ;;  %v1618_v38 = vsel %vm1617_vm14, %v2334_v16, %v1614_v46  ;;  %v1146_v26 = vmul.f32 %v2338_v55, %v3456_v28 }
 0x140   :  { %v909_v23 = vadd.f32 %v2336_v53, %v908_v34  ;;  %v1623_v60 = vsel %vm3460_vm8, %v1622_v45, %v1618_v38  ;;  %2343 = vpow2.f32 %v2097_v3  ;;  %v2113_v27 = vmul.f32 -1.442695, %v3499_v51 }
 0x141   :  { %v2340_v33 = vpop.eup %2339  ;;  %v3515_v30 = vadd.f32 %v3116_v31, %v381_v56  ;;  %1899 = vst.msk [vmem:[%s4081_s3 + $0xa0] sm:$0xf] %vm1858_vm7, %v1834_v5  ;;  %v1786_v24 = vmul.f32 %v1623_v60, %v3351_v19  ;;  %v1147_v48 = vsub.f32 1.0, %v1146_v26  ;;  %vm1151_vm0 = vweird.f32 %v2338_v55 }
 0x142   :  { %v913_v12 = vsel %vm912_vm15, %v2336_v53, %v909_v23  ;;  %v3522_v20 = vadd.f32 1.0, %v2340_v33  ;;  %2345 = vpow2.f32 %v2113_v27  ;;  %v2129_v32 = vmul.f32 -1.442695, %v3502_v54  ;;  %v421_v53 = vpop.f32.mrf.mxu1 }
 0x143   :  { %v2342_v21 = vpop.eup %2341  ;;  %v918_v11 = vsel %vm3481_vm12, %v917_v25, %v913_v12  ;;  %v1850_v15 = vpack.c.bf16 %v1786_v24, %v1786_v24  ;;  %v1148_v44 = vmul.f32 %v2338_v55, %v1147_v48  ;;  %v2145_v19 = vmul.f32 -1.442695, %v3505_v8  ;;  %v461_v25 = vpop.f32.mrf.mxu2 }
 0x144   :  { %v1739_v13 = vmul.f32 %v918_v11, %v3354_v6  ;;  %2347 = vrcp.f32 %v3522_v20  ;;  %v3529_v7 = vadd.f32 1.0, %v2342_v21  ;;  %vm1150_vm1 = vweird.f32 %v3456_v28 }
 0x145   :  { %1915 = vst.msk [vmem:[%s4081_s3 + $0xe0] sm:$0xf] %vm1858_vm7, %v1850_v15  ;;  %v1149_v16 = vadd.f32 %v2338_v55, %v1148_v44  ;;  %2349 = vpow2.f32 %v2129_v32  ;;  %vm1152_vm2 = vmor %vm1150_vm1, %vm1151_vm0  ;;  %v1157_v6 = vor.u32 1.1754944e-38, %v1156_v2  ;;  %v1394_v4 = vand.u32 2147483647, %v3522_v20 }
 0x146   :  { %v1803_v40 = vpack.c.bf16 %v1739_v13, %v1739_v13  ;;  %v2344_v45 = vpop.eup %2343  ;;  %v1396_v36 = vand.u32 2147483648, %v3522_v20  ;;  %2351 = vrcp.f32 %v3529_v7  ;;  %vm1155_vm3 = vcmp.eq.f32.partialorder %v1154_v59, 8.507059e+37 }
 0x147   :  { %v1153_v43 = vsel %vm1152_vm2, %v2338_v55, %v1149_v16  ;;  %v3545_v0 = vadd.f32 1.0, %v2344_v45  ;;  %v2098_v28 = vmul.f32 -1.442695, %v3515_v30  ;;  %2353 = vpow2.f32 %v2145_v19 }
 0x148   :  { %1868 = vst.msk [vmem:[%s4081_s3 + $0x24] sm:$0xf] %vm1858_vm7, %v1803_v40  ;;  %v2346_v52 = vpop.eup %2345  ;;  %v1158_v42 = vsel %vm1155_vm3, %v1157_v6, %v1153_v43  ;;  %vm1390_vm4 = vweird.f32 %v3522_v20  ;;  %v1634_v17 = vand.u32 2147483647, %v3529_v7  ;;  %vm3553_vm5 = vcmp.eq.f32.partialorder %v1394_v4, 8.507059e+37 }
 0x149   :  { %v1755_v49 = vmul.f32 %v1158_v42, %v3372_v35  ;;  %2355 = vrcp.f32 %v3545_v0  ;;  %v1397_v61 = vor.u32 1.1754944e-38, %v1396_v36  ;;  %v1636_v63 = vand.u32 2147483648, %v3529_v7 }
 0x14a   :  { %v2348_v29 = vpop.eup %2347  ;;  %vm1630_vm6 = vweird.f32 %v3529_v7  ;;  %v3559_v35 = vadd.f32 1.0, %v2346_v52  ;;  %2357 = vpow2.f32 %v2098_v28  ;;  %v3562_v41 = vadd.f32 %v3116_v31, %v421_v53 }
 0x14b   :  { %v1386_v50 = vmul.f32 %v2348_v29, %v3522_v20  ;;  %v2350_v18 = vpop.eup %2349  ;;  %v1819_v62 = vpack.c.bf16 %v1755_v49, %v1755_v49  ;;  %v929_v47 = vand.u32 2147483647, %v3545_v0  ;;  %v931_v1 = vand.u32 2147483648, %v3545_v0  ;;  %v501_v49 = vpop.f32.mrf.mxu3 }
 0x14c   :  { %v2352_v10 = vpop.eup %2351  ;;  %v3566_v37 = vadd.f32 1.0, %v2350_v18  ;;  %vm3573_vm8 = vcmp.eq.f32.partialorder %v1634_v17, 8.507059e+37  ;;  %2359 = vrcp.f32 %v3559_v35  ;;  %v3579_v46 = vadd.f32 %v3116_v31, %v461_v25 }
 0x14d   :  { %v1387_v39 = vsub.f32 1.0, %v1386_v50  ;;  %1884 = vst.msk [vmem:[%s4081_s3 + $0x64] sm:$0xf] %vm1858_vm7, %v1819_v62  ;;  %v1626_v59 = vmul.f32 %v2352_v10, %v3529_v7  ;;  %v2354_v34 = vpop.eup %2353  ;;  %vm1391_vm9 = vweird.f32 %v2348_v29  ;;  %v1637_v56 = vor.u32 1.1754944e-38, %v1636_v63 }
 0x14e   :  { %vm925_vm10 = vweird.f32 %v3545_v0  ;;  %vm1631_vm11 = vweird.f32 %v2352_v10  ;;  %2361 = vrcp.f32 %v3566_v37  ;;  %v2114_v5 = vmul.f32 -1.442695, %v3562_v41  ;;  %vm1392_vm14 = vmor %vm1390_vm4, %vm1391_vm9 }
 0x14f   :  { %v1388_v3 = vmul.f32 %v2348_v29, %v1387_v39  ;;  %v2356_v55 = vpop.eup %2355  ;;  %v1627_v2 = vsub.f32 1.0, %v1626_v59  ;;  %vm3585_vm12 = vcmp.eq.f32.partialorder %v929_v47, 8.507059e+37  ;;  %v932_v31 = vor.u32 1.1754944e-38, %v931_v1  ;;  %vm1632_vm0 = vmor %vm1630_vm6, %vm1631_vm11 }
 0x150   :  { %v921_v23 = vmul.f32 %v2356_v55, %v3545_v0  ;;  %vm1165_vm13 = vweird.f32 %v3559_v35  ;;  %v2358_v33 = vpop.eup %2357  ;;  %v1169_v27 = vand.u32 2147483647, %v3559_v35  ;;  %v1171_v24 = vand.u32 2147483648, %v3559_v35 }
 0x151   :  { %v1389_v38 = vadd.f32 %v2348_v29, %v1388_v3  ;;  %v1628_v60 = vmul.f32 %v2352_v10, %v1627_v2  ;;  %v1409_v12 = vand.u32 2147483647, %v3566_v37  ;;  %vm926_vm15 = vweird.f32 %v2356_v55 }
 0x152   :  { %v922_v21 = vsub.f32 1.0, %v921_v23  ;;  %v3595_v11 = vadd.f32 1.0, %v2354_v34  ;;  %v2360_v32 = vpop.eup %2359  ;;  %v1411_v20 = vand.u32 2147483648, %v3566_v37  ;;  %2363 = vpow2.f32 %v2114_v5  ;;  %vm927_vm3 = vmor %vm925_vm10, %vm926_vm15 }
 0x153   :  { %v1393_v48 = vsel %vm1392_vm14, %v2348_v29, %v1389_v38  ;;  %v1629_v13 = vadd.f32 %v2352_v10, %v1628_v60  ;;  %v1161_v40 = vmul.f32 %v2360_v32, %v3559_v35  ;;  %v3605_v16 = vadd.f32 1.0, %v2358_v33 }
 0x154   :  { %v1398_v15 = vsel %vm3553_vm5, %v1397_v61, %v1393_v48  ;;  %v923_v19 = vmul.f32 %v2356_v55, %v922_v21  ;;  %v2362_v45 = vpop.eup %2361  ;;  %vm3607_vm1 = vcmp.eq.f32.partialorder %v1169_v27, 8.507059e+37  ;;  %v1172_v36 = vor.u32 1.1754944e-38, %v1171_v24  ;;  %v464_v48 = vpop.f32.mrf.mxu2 }
 0x155   :  { %v1771_v44 = vmul.f32 %v1398_v15, %v3414_v22  ;;  %v1633_v6 = vsel %vm1632_vm0, %v2352_v10, %v1629_v13  ;;  %vm1405_vm2 = vweird.f32 %v3566_v37  ;;  %2365 = vrcp.f32 %v3595_v11  ;;  %v504_v13 = vpop.f32.mrf.mxu3 }
 0x156   :  { %v1638_v7 = vsel %vm3573_vm8, %v1637_v56, %v1633_v6  ;;  %v924_v43 = vadd.f32 %v2356_v55, %v923_v19  ;;  %v1162_v28 = vsub.f32 1.0, %v1161_v40  ;;  %vm1166_vm4 = vweird.f32 %v2360_v32  ;;  %v384_v56 = vpop.f32.mrf.mxu0  ;;  %v3681_v19 = vld [vmem:[%s4080_s2] ss:$0 sm:$0xff] }
 0x157   :  { %v1835_v22 = vpack.c.bf16 %v1771_v44, %v1771_v44  ;;  %v1787_v52 = vmul.f32 %v1638_v7, %v3423_v14  ;;  %v1401_v42 = vmul.f32 %v2362_v45, %v3566_v37  ;;  %vm3620_vm5 = vcmp.eq.f32.partialorder %v1409_v12, 8.507059e+37  ;;  %vm1167_vm9 = vmor %vm1165_vm13, %vm1166_vm4  ;;  %v424_v37 = vpop.f32.mrf.mxu1 }
 0x158   :  { %v1412_v29 = vor.u32 1.1754944e-38, %v1411_v20  ;;  %v928_v17 = vsel %vm927_vm3, %v2356_v55, %v924_v43  ;;  %v1163_v14 = vmul.f32 %v2360_v32, %v1162_v28  ;;  %v1649_v50 = vand.u32 2147483647, %v3595_v11  ;;  %v2364_v0 = vpop.eup %2363 }
 0x159   :  { %1900 = vst.msk [vmem:[%s4081_s3 + $0xa4] sm:$0xf] %vm1858_vm7, %v1835_v22  ;;  %2367 = vrcp.f32 %v3605_v16  ;;  %v1851_v9 = vpack.c.bf16 %v1787_v52, %v1787_v52  ;;  %v933_v61 = vsel %vm3585_vm12, %v932_v31, %v928_v17  ;;  %v1402_v63 = vsub.f32 1.0, %v1401_v42 }
 0x15a   :  { %v1651_v25 = vand.u32 2147483648, %v3595_v11  ;;  %v1740_v18 = vmul.f32 %v933_v61, %v3470_v57  ;;  %v1164_v62 = vadd.f32 %v2360_v32, %v1163_v14  ;;  %vm1406_vm6 = vweird.f32 %v2362_v45 }
 0x15b   :  { %vm1645_vm8 = vweird.f32 %v3595_v11  ;;  %v2366_v10 = vpop.eup %2365  ;;  %1916 = vst.msk [vmem:[%s4081_s3 + $0xe4] sm:$0xf] %vm1858_vm7, %v1851_v9  ;;  %v1403_v39 = vmul.f32 %v2362_v45, %v1402_v63  ;;  %v944_v47 = vand.u32 2147483647, %v3605_v16  ;;  %v946_v1 = vand.u32 2147483648, %v3605_v16  ;;  %vm1407_vm12 = vmor %vm1405_vm2, %vm1406_vm6 }
 0x15c   :  { %v3644_v57 = vadd.f32 1.0, %v2364_v0  ;;  %v1804_v59 = vpack.c.bf16 %v1740_v18, %v1740_v18  ;;  %v1168_v58 = vsel %vm1167_vm9, %v2360_v32, %v1164_v62  ;;  %v1641_v34 = vmul.f32 %v2366_v10, %v3595_v11 }
 0x15d   :  { %vm3647_vm10 = vcmp.eq.f32.partialorder %v1649_v50, 8.507059e+37  ;;  %v1173_v35 = vsel %vm3607_vm1, %v1172_v36, %v1168_v58  ;;  %v1404_v55 = vadd.f32 %v2362_v45, %v1403_v39  ;;  %v1652_v2 = vor.u32 1.1754944e-38, %v1651_v25  ;;  %v466_v58 = vpop.f32.mrf.mxu2  ;;  %v506_v60 = vpop.f32.mrf.mxu3 }
 0x15e   :  { %vm940_vm11 = vweird.f32 %v3605_v16  ;;  %v2130_v5 = vmul.f32 -1.442695, %v3579_v46  ;;  %1869 = vst.msk [vmem:[%s4081_s3 + $0x28] sm:$0xf] %vm1858_vm7, %v1804_v59  ;;  %v1756_v23 = vmul.f32 %v1173_v35, %v3499_v51  ;;  %v1642_v26 = vsub.f32 1.0, %v1641_v34  ;;  %v386_v14 = vpop.f32.mrf.mxu0 }
 0x15f   :  { %v2368_v38 = vpop.eup %2367  ;;  %vm1646_vm13 = vweird.f32 %v2366_v10  ;;  %2369 = vrcp.f32 %v3644_v57  ;;  %v1408_v31 = vsel %vm1407_vm12, %v2362_v45, %v1404_v55  ;;  %vm3665_vm14 = vcmp.eq.f32.partialorder %v944_v47, 8.507059e+37  ;;  %v426_v47 = vpop.f32.mrf.mxu1 }
 0x160   :  { %v936_v33 = vmul.f32 %v2368_v38, %v3605_v16  ;;  %v947_v27 = vor.u32 1.1754944e-38, %v946_v1  ;;  %v1820_v24 = vpack.c.bf16 %v1756_v23, %v1756_v23  ;;  %v1413_v51 = vsel %vm3620_vm5, %v1412_v29, %v1408_v31  ;;  %vm1647_vm0 = vmor %vm1645_vm8, %vm1646_vm13 }
 0x161   :  { %v1643_v12 = vmul.f32 %v2366_v10, %v1642_v26  ;;  %vm941_vm15 = vweird.f32 %v2368_v38  ;;  %v1772_v21 = vmul.f32 %v1413_v51, %v3502_v54  ;;  %v1184_v15 = vand.u32 2147483647, %v3644_v57 }
 0x162   :  { %v937_v32 = vsub.f32 1.0, %v936_v33  ;;  %2371 = vpow2.f32 %v2130_v5  ;;  %1885 = vst.msk [vmem:[%s4081_s3 + $0x68] sm:$0xf] %vm1858_vm7, %v1820_v24  ;;  %v1186_v44 = vand.u32 2147483648, %v3644_v57  ;;  %v3684_v54 = vadd.f32 %v3681_v19, %v501_v49  ;;  %vm942_vm2 = vmor %vm940_vm11, %vm941_vm15 }
 0x163   :  { %v1644_v20 = vadd.f32 %v2366_v10, %v1643_v12  ;;  %v3687_v40 = vadd.f32 %v3681_v19, %v384_v56  ;;  %v1836_v45 = vpack.c.bf16 %v1772_v21, %v1772_v21  ;;  %v3693_v4 = vadd.f32 %v3681_v19, %v424_v37 }
 0x164   :  { %v938_v6 = vmul.f32 %v2368_v38, %v937_v32  ;;  %v3696_v36 = vadd.f32 %v3681_v19, %v464_v48  ;;  %v2146_v43 = vmul.f32 -1.442695, %v3684_v54  ;;  %v3701_v52 = vadd.f32 %v3681_v19, %v504_v13 }
 0x165   :  { %v2370_v22 = vpop.eup %2369  ;;  %v1648_v7 = vsel %vm1647_vm0, %v2366_v10, %v1644_v20  ;;  %v2099_v28 = vmul.f32 -1.442695, %v3687_v40  ;;  %1901 = vst.msk [vmem:[%s4081_s3 + $0xa8] sm:$0xf] %vm1858_vm7, %v1836_v45  ;;  %v2115_v49 = vmul.f32 -1.442695, %v3693_v4  ;;  %v3723_v62 = vadd.f32 %v3681_v19, %v386_v14 }
 0x166   :  { %v1653_v11 = vsel %vm3647_vm10, %v1652_v2, %v1648_v7  ;;  %v939_v42 = vadd.f32 %v2368_v38, %v938_v6  ;;  %v1176_v53 = vmul.f32 %v2370_v22, %v3644_v57  ;;  %vm1181_vm1 = vweird.f32 %v2370_v22 }
 0x167   :  { %v1788_v29 = vmul.f32 %v1653_v11, %v3505_v8  ;;  %2373 = vpow2.f32 %v2146_v43  ;;  %v2131_v17 = vmul.f32 -1.442695, %v3696_v36  ;;  %v2147_v61 = vmul.f32 -1.442695, %v3701_v52 }
 0x168   :  { %v2372_v50 = vpop.eup %2371  ;;  %v943_v0 = vsel %vm942_vm2, %v2368_v38, %v939_v42  ;;  %v1177_v9 = vsub.f32 1.0, %v1176_v53  ;;  %2375 = vpow2.f32 %v2099_v28  ;;  %vm1180_vm3 = vweird.f32 %v3644_v57  ;;  %v389_v42 = vpop.f32.mrf.mxu0 }
 0x169   :  { %v1852_v63 = vpack.c.bf16 %v1788_v29, %v1788_v29  ;;  %v948_v8 = vsel %vm3665_vm14, %v947_v27, %v943_v0  ;;  %v3719_v25 = vadd.f32 1.0, %v2372_v50  ;;  %2377 = vpow2.f32 %v2115_v49  ;;  %vm1182_vm4 = vmor %vm1180_vm3, %vm1181_vm1 }
 0x16a   :  { %v1741_v16 = vmul.f32 %v948_v8, %v3515_v30  ;;  %v1178_v18 = vmul.f32 %v2370_v22, %v1177_v9  ;;  %2379 = vpow2.f32 %v2131_v17  ;;  %vm1185_vm5 = vcmp.eq.f32.partialorder %v1184_v15, 8.507059e+37  ;;  %v469_v9 = vpop.f32.mrf.mxu2 }
 0x16b   :  { %1917 = vst.msk [vmem:[%s4081_s3 + $0xe8] sm:$0xf] %vm1858_vm7, %v1852_v63  ;;  %2381 = vrcp.f32 %v3719_v25  ;;  %v1187_v30 = vor.u32 1.1754944e-38, %v1186_v44  ;;  %v1424_v59 = vand.u32 2147483647, %v3719_v25  ;;  %v1426_v56 = vand.u32 2147483648, %v3719_v25 }
 0x16c   :  { %v1805_v10 = vpack.c.bf16 %v1741_v16, %v1741_v16  ;;  %v1179_v39 = vadd.f32 %v2370_v22, %v1178_v18  ;;  %2383 = vpow2.f32 %v2147_v61  ;;  %v2100_v35 = vmul.f32 -1.442695, %v3723_v62 }
 0x16d   :  { %v2374_v1 = vpop.eup %2373  ;;  %v3744_v38 = vadd.f32 %v3681_v19, %v426_v47  ;;  %v3749_v31 = vadd.f32 %v3681_v19, %v466_v58  ;;  %vm1420_vm6 = vweird.f32 %v3719_v25  ;;  %vm3754_vm8 = vcmp.eq.f32.partialorder %v1424_v59, 8.507059e+37 }
 0x16e   :  { %v2376_v34 = vpop.eup %2375  ;;  %1870 = vst.msk [vmem:[%s4081_s3 + $0x2c] sm:$0xf] %vm1858_vm7, %v1805_v10  ;;  %v1183_v3 = vsel %vm1182_vm4, %v2370_v22, %v1179_v39  ;;  %v3738_v57 = vadd.f32 1.0, %v2374_v1  ;;  %v3773_v44 = vadd.f32 %v3681_v19, %v506_v60 }
 0x16f   :  { %v2378_v55 = vpop.eup %2377  ;;  %v1188_v2 = vsel %vm1185_vm5, %v1187_v30, %v1183_v3  ;;  %v3741_v5 = vadd.f32 1.0, %v2376_v34  ;;  %v2116_v32 = vmul.f32 -1.442695, %v3744_v38  ;;  %v3770_v20 = vmul.f32 -1.442695, %v3749_v31 }
 0x170   :  { %v2380_v23 = vpop.eup %2379  ;;  %v1757_v26 = vmul.f32 %v1188_v2, %v3562_v41  ;;  %2385 = vrcp.f32 %v3738_v57  ;;  %v1427_v41 = vor.u32 1.1754944e-38, %v1426_v56  ;;  %v1664_v37 = vand.u32 2147483647, %v3738_v57 }
 0x171   :  { %v2382_v33 = vpop.eup %2381  ;;  %2387 = vrcp.f32 %v3741_v5  ;;  %v1666_v48 = vand.u32 2147483648, %v3738_v57  ;;  %v3760_v21 = vadd.f32 1.0, %v2378_v55  ;;  %v3767_v13 = vadd.f32 1.0, %v2380_v23 }
 0x172   :  { %v2384_v27 = vpop.eup %2383  ;;  %v1821_v24 = vpack.c.bf16 %v1757_v26, %v1757_v26  ;;  %v1416_v51 = vmul.f32 %v2382_v33, %v3719_v25  ;;  %2389 = vpow2.f32 %v2100_v35  ;;  %vm1660_vm9 = vweird.f32 %v3738_v57 }
 0x173   :  { %v959_v45 = vand.u32 2147483647, %v3741_v5  ;;  %v961_v6 = vand.u32 2147483648, %v3741_v5  ;;  %2391 = vrcp.f32 %v3760_v21  ;;  %v3779_v22 = vadd.f32 1.0, %v2384_v27 }
 0x174   :  { %1886 = vst.msk [vmem:[%s4081_s3 + $0x6c] sm:$0xf] %vm1858_vm7, %v1821_v24  ;;  %v1417_v15 = vsub.f32 1.0, %v1416_v51  ;;  %vm1421_vm10 = vweird.f32 %v2382_v33  ;;  %vm955_vm11 = vweird.f32 %v3741_v5  ;;  %2393 = vrcp.f32 %v3767_v13 }
 0x175   :  { %vm3784_vm12 = vcmp.eq.f32.partialorder %v1664_v37, 8.507059e+37  ;;  %v1667_v53 = vor.u32 1.1754944e-38, %v1666_v48  ;;  %2395 = vpow2.f32 %v2116_v32  ;;  %v1199_v14 = vand.u32 2147483647, %v3760_v21  ;;  %vm1422_vm13 = vmor %vm1420_vm6, %vm1421_vm10 }
 0x176   :  { %v2386_v7 = vpop.eup %2385  ;;  %v1418_v43 = vmul.f32 %v2382_v33, %v1417_v15  ;;  %v1201_v50 = vand.u32 2147483648, %v3760_v21  ;;  %vm3793_vm14 = vcmp.eq.f32.partialorder %v959_v45, 8.507059e+37  ;;  %v962_v61 = vor.u32 1.1754944e-38, %v961_v6 }
 0x177   :  { %v2388_v28 = vpop.eup %2387  ;;  %v1656_v11 = vmul.f32 %v2386_v7, %v3738_v57  ;;  %2397 = vrcp.f32 %v3779_v22  ;;  %vm1661_vm15 = vweird.f32 %v2386_v7  ;;  %vm1195_vm0 = vweird.f32 %v3760_v21 }
 0x178   :  { %v2390_v29 = vpop.eup %2389  ;;  %v1419_v49 = vadd.f32 %v2382_v33, %v1418_v43  ;;  %v951_v17 = vmul.f32 %v2388_v28, %v3741_v5  ;;  %vm956_vm1 = vweird.f32 %v2388_v28  ;;  %vm1435_vm2 = vweird.f32 %v3767_v13  ;;  %vm1662_vm4 = vmor %vm1660_vm9, %vm1661_vm15 }
 0x179   :  { %v1657_v0 = vsub.f32 1.0, %v1656_v11  ;;  %v2392_v16 = vpop.eup %2391  ;;  %v1439_v25 = vand.u32 2147483647, %v3767_v13  ;;  %vm3805_vm3 = vcmp.eq.f32.partialorder %v1199_v14, 8.507059e+37  ;;  %v1202_v58 = vor.u32 1.1754944e-38, %v1201_v50  ;;  %vm957_vm6 = vmor %vm955_vm11, %vm956_vm1 }
 0x17a   :  { %v1423_v63 = vsel %vm1422_vm13, %v2382_v33, %v1419_v49  ;;  %v952_v8 = vsub.f32 1.0, %v951_v17  ;;  %v2394_v39 = vpop.eup %2393  ;;  %v1191_v30 = vmul.f32 %v2392_v16, %v3760_v21  ;;  %v1441_v35 = vand.u32 2147483648, %v3767_v13 }
 0x17b   :  { %v1428_v18 = vsel %vm3754_vm8, %v1427_v41, %v1423_v63  ;;  %v1658_v10 = vmul.f32 %v2386_v7, %v1657_v0  ;;  %v2396_v34 = vpop.eup %2395  ;;  %v1431_v56 = vmul.f32 %v2394_v39, %v3767_v13  ;;  %v1679_v55 = vand.u32 2147483647, %v3779_v22  ;;  %v429_v0 = vpop.f32.mrf.mxu1 }
 0x17c   :  { %v1773_v47 = vmul.f32 %v1428_v18, %v3579_v46  ;;  %v953_v1 = vmul.f32 %v2388_v28, %v952_v8  ;;  %v1192_v23 = vsub.f32 1.0, %v1191_v30  ;;  %vm1196_vm5 = vweird.f32 %v2392_v16 }
 0x17d   :  { %v1659_v3 = vadd.f32 %v2386_v7, %v1658_v10  ;;  %v2398_v26 = vpop.eup %2397  ;;  %v1432_v60 = vsub.f32 1.0, %v1431_v56  ;;  %vm1436_vm8 = vweird.f32 %v2394_v39  ;;  %v3818_v27 = vadd.f32 1.0, %v2390_v29  ;;  %vm1197_vm9 = vmor %vm1195_vm0, %vm1196_vm5 }
 0x17e   :  { %v1837_v2 = vpack.c.bf16 %v1773_v47, %v1773_v47  ;;  %v954_v46 = vadd.f32 %v2388_v28, %v953_v1  ;;  %v1193_v51 = vmul.f32 %v2392_v16, %v1192_v23  ;;  %v1671_v12 = vmul.f32 %v2398_v26, %v3779_v22  ;;  %vm1437_vm10 = vmor %vm1435_vm2, %vm1436_vm8 }
 0x17f   :  { %v1663_v33 = vsel %vm1662_vm4, %v2386_v7, %v1659_v3  ;;  %v1433_v37 = vmul.f32 %v2394_v39, %v1432_v60  ;;  %v3830_v48 = vadd.f32 1.0, %v2396_v34  ;;  %2399 = vrcp.f32 %v3818_v27 }
 0x180   :  { %1902 = vst.msk [vmem:[%s4081_s3 + $0xac] sm:$0xf] %vm1858_vm7, %v1837_v2  ;;  %v1668_v57 = vsel %vm3784_vm12, %v1667_v53, %v1663_v33  ;;  %v958_v24 = vsel %vm957_vm6, %v2388_v28, %v954_v46  ;;  %v1194_v15 = vadd.f32 %v2392_v16, %v1193_v51  ;;  %v1672_v45 = vsub.f32 1.0, %v1671_v12 }
 0x181   :  { %v1789_v41 = vmul.f32 %v1668_v57, %v3684_v54  ;;  %v963_v5 = vsel %vm3793_vm14, %v962_v61, %v958_v24  ;;  %v1434_v7 = vadd.f32 %v2394_v39, %v1433_v37  ;;  %v1442_v43 = vor.u32 1.1754944e-38, %v1441_v35 }
 0x182   :  { %v1742_v32 = vmul.f32 %v963_v5, %v3687_v40  ;;  %v1681_v54 = vand.u32 2147483648, %v3779_v22  ;;  %v1198_v11 = vsel %vm1197_vm9, %v2392_v16, %v1194_v15  ;;  %v1673_v40 = vmul.f32 %v2398_v26, %v1672_v45 }
 0x183   :  { %v1853_v6 = vpack.c.bf16 %v1789_v41, %v1789_v41  ;;  %vm1676_vm11 = vweird.f32 %v2398_v26  ;;  %v1203_v21 = vsel %vm3805_vm3, %v1202_v58, %v1198_v11  ;;  %v1438_v53 = vsel %vm1437_vm10, %v2394_v39, %v1434_v7  ;;  %v431_v37 = vpop.f32.mrf.mxu1 }
 0x184   :  { %v1806_v28 = vpack.c.bf16 %v1742_v32, %v1742_v32  ;;  %vm1440_vm12 = vcmp.eq.f32.partialorder %v1439_v25, 8.507059e+37  ;;  %2401 = vrcp.f32 %v3830_v48  ;;  %v1758_v13 = vmul.f32 %v1203_v21, %v3693_v4  ;;  %v471_v32 = vpop.f32.mrf.mxu2 }
 0x185   :  { %1918 = vst.msk [vmem:[%s4081_s3 + $0xec] sm:$0xf] %vm1858_vm7, %v1853_v6  ;;  %v1443_v29 = vsel %vm1440_vm12, %v1442_v43, %v1438_v53  ;;  %v1674_v49 = vadd.f32 %v2398_v26, %v1673_v40  ;;  %vm1675_vm13 = vweird.f32 %v3779_v22  ;;  %vm1680_vm15 = vcmp.eq.f32.partialorder %v1679_v55, 8.507059e+37  ;;  %v2400_v61 = vpop.eup %2399 }
 0x186   :  { %1871 = vst.msk [vmem:[%s4081_s3 + $0x30] sm:$0xf] %vm1858_vm7, %v1806_v28  ;;  %v1774_v17 = vmul.f32 %v1443_v29, %v3696_v36  ;;  %vm1677_vm14 = vmor %vm1675_vm13, %vm1676_vm11  ;;  %v1682_v14 = vor.u32 1.1754944e-38, %v1681_v54  ;;  %v974_v50 = vand.u32 2147483647, %v3818_v27  ;;  %v1822_v63 = vpack.c.bf16 %v1758_v13, %v1758_v13 }
 0x187   :  { %v1678_v8 = vsel %vm1677_vm14, %v2398_v26, %v1674_v49  ;;  %2403 = vpow2.f32 %v3770_v20  ;;  %v2148_v4 = vmul.f32 -1.442695, %v3773_v44  ;;  %v966_v22 = vmul.f32 %v2400_v61, %v3818_v27  ;;  %v391_v26 = vpop.f32.mrf.mxu0 }
 0x188   :  { %v1838_v16 = vpack.c.bf16 %v1774_v17, %v1774_v17  ;;  %v1683_v18 = vsel %vm1680_vm15, %v1682_v14, %v1678_v8  ;;  %1887 = vst.msk [vmem:[%s4081_s3 + $0x70] sm:$0xf] %vm1858_vm7, %v1822_v63  ;;  %vm970_vm0 = vweird.f32 %v3818_v27  ;;  %v3870_v25 = vadd.f32 %v3681_v19, %v389_v42 }
 0x189   :  { %v1790_v36 = vmul.f32 %v1683_v18, %v3701_v52  ;;  %2405 = vpow2.f32 %v2148_v4  ;;  %v967_v20 = vsub.f32 1.0, %v966_v22  ;;  %v3873_v39 = vadd.f32 %v3681_v19, %v429_v0  ;;  %v509_v52 = vpop.f32.mrf.mxu3 }
 0x18a   :  { %v2402_v10 = vpop.eup %2401  ;;  %1903 = vst.msk [vmem:[%s4081_s3 + $0xb0] sm:$0xf] %vm1858_vm7, %v1838_v16  ;;  %v3876_v47 = vadd.f32 %v3681_v19, %v469_v9  ;;  %vm3878_vm1 = vcmp.eq.f32.partialorder %v974_v50, 8.507059e+37  ;;  %v976_v59 = vand.u32 2147483648, %v3818_v27  ;;  %vm971_vm2 = vweird.f32 %v2400_v61 }
 0x18b   :  { %v1854_v1 = vpack.c.bf16 %v1790_v36, %v1790_v36  ;;  %v1206_v58 = vmul.f32 %v2402_v10, %v3830_v48  ;;  %v968_v34 = vmul.f32 %v2400_v61, %v967_v20  ;;  %v2101_v3 = vmul.f32 -1.442695, %v3870_v25  ;;  %vm972_vm3 = vmor %vm970_vm0, %vm971_vm2 }
 0x18c   :  { %v2117_v56 = vmul.f32 -1.442695, %v3873_v39  ;;  %v1214_v2 = vand.u32 2147483647, %v3830_v48  ;;  %v1216_v46 = vand.u32 2147483648, %v3830_v48  ;;  %v3893_v23 = vadd.f32 %v3681_v19, %v509_v52 }
 0x18d   :  { %v2404_v35 = vpop.eup %2403  ;;  %1919 = vst.msk [vmem:[%s4081_s3 + $0xf0] sm:$0xf] %vm1858_vm7, %v1854_v1  ;;  %v1207_v55 = vsub.f32 1.0, %v1206_v58  ;;  %v969_v33 = vadd.f32 %v2400_v61, %v968_v34  ;;  %2407 = vpow2.f32 %v2101_v3  ;;  %v2133_v57 = vmul.f32 -1.442695, %v3876_v47 }
 0x18e   :  { %v3895_v60 = vadd.f32 1.0, %v2404_v35  ;;  %v977_v51 = vor.u32 1.1754944e-38, %v976_v59  ;;  %vm1211_vm4 = vweird.f32 %v2402_v10  ;;  %2409 = vpow2.f32 %v2117_v56 }
 0x18f   :  { %v2406_v24 = vpop.eup %2405  ;;  %v1208_v12 = vmul.f32 %v2402_v10, %v1207_v55  ;;  %v973_v41 = vsel %vm972_vm3, %v2400_v61, %v969_v33  ;;  %vm1210_vm5 = vweird.f32 %v3830_v48  ;;  %v3904_v5 = vadd.f32 %v3681_v19, %v391_v26 }
 0x190   :  { %2411 = vrcp.f32 %v3895_v60  ;;  %v978_v15 = vsel %vm3878_vm1, %v977_v51, %v973_v41  ;;  %v3908_v27 = vadd.f32 1.0, %v2406_v24  ;;  %v2149_v6 = vmul.f32 -1.442695, %v3893_v23  ;;  %vm1212_vm6 = vmor %vm1210_vm5, %vm1211_vm4 }
 0x191   :  { %v1209_v45 = vadd.f32 %v2402_v10, %v1208_v12  ;;  %v1743_v7 = vmul.f32 %v978_v15, %v3723_v62  ;;  %vm1215_vm8 = vcmp.eq.f32.partialorder %v1214_v2, 8.507059e+37  ;;  %v1217_v48 = vor.u32 1.1754944e-38, %v1216_v46  ;;  %v511_v61 = vpop.f32.mrf.mxu3 }
 0x192   :  { %2413 = vpow2.f32 %v2133_v57  ;;  %v3914_v54 = vadd.f32 %v3681_v19, %v431_v37  ;;  %v3917_v28 = vadd.f32 %v3681_v19, %v471_v32  ;;  %v1454_v21 = vand.u32 2147483647, %v3895_v60 }
 0x193   :  { %v1213_v43 = vsel %vm1212_vm6, %v2402_v10, %v1209_v45  ;;  %2415 = vrcp.f32 %v3908_v27  ;;  %v2408_v11 = vpop.eup %2407  ;;  %v1807_v40 = vpack.c.bf16 %v1743_v7, %v1743_v7  ;;  %v2102_v62 = vmul.f32 -1.442695, %v3904_v5 }
 0x194   :  { %v1218_v42 = vsel %vm1215_vm8, %v1217_v48, %v1213_v43  ;;  %v2410_v53 = vpop.eup %2409  ;;  %v1456_v29 = vand.u32 2147483648, %v3895_v60  ;;  %v3923_v49 = vadd.f32 1.0, %v2408_v11  ;;  %2417 = vpow2.f32 %v2149_v6 }
 0x195   :  { %v1759_v13 = vmul.f32 %v1218_v42, %v3744_v38  ;;  %1872 = vst.msk [vmem:[%s4081_s3 + $0x34] sm:$0xf] %vm1858_vm7, %v1807_v40  ;;  %v1694_v14 = vand.u32 2147483647, %v3908_v27  ;;  %v3930_v50 = vadd.f32 1.0, %v2410_v53  ;;  %vm1450_vm9 = vweird.f32 %v3895_v60 }
 0x196   :  { %v2412_v17 = vpop.eup %2411  ;;  %2419 = vrcp.f32 %v3923_v49  ;;  %v2118_v38 = vmul.f32 -1.442695, %v3914_v54  ;;  %vm3936_vm10 = vcmp.eq.f32.partialorder %v1454_v21, 8.507059e+37  ;;  %v1696_v4 = vand.u32 2147483648, %v3908_v27 }
 0x197   :  { %v1823_v0 = vpack.c.bf16 %v1759_v13, %v1759_v13  ;;  %v1446_v9 = vmul.f32 %v2412_v17, %v3895_v60  ;;  %2421 = vrcp.f32 %v3930_v50  ;;  %v1457_v22 = vor.u32 1.1754944e-38, %v1456_v29 }
 0x198   :  { %v2414_v63 = vpop.eup %2413  ;;  %vm1690_vm11 = vweird.f32 %v3908_v27  ;;  %v3948_v36 = vmul.f32 -1.442695, %v3917_v28  ;;  %vm3951_vm12 = vcmp.eq.f32.partialorder %v1694_v14, 8.507059e+37  ;;  %2423 = vpow2.f32 %v2102_v62 }
 0x199   :  { %v2416_v16 = vpop.eup %2415  ;;  %1888 = vst.msk [vmem:[%s4081_s3 + $0x74] sm:$0xf] %vm1858_vm7, %v1823_v0  ;;  %v1447_v18 = vsub.f32 1.0, %v1446_v9  ;;  %v3956_v52 = vadd.f32 %v3681_v19, %v511_v61  ;;  %vm1451_vm13 = vweird.f32 %v2412_v17  ;;  %v989_v59 = vand.u32 2147483647, %v3923_v49 }
 0x19a   :  { %v1686_v10 = vmul.f32 %v2416_v16, %v3908_v27  ;;  %v2418_v1 = vpop.eup %2417  ;;  %v3959_v58 = vadd.f32 1.0, %v2414_v63  ;;  %v1697_v3 = vor.u32 1.1754944e-38, %v1696_v4  ;;  %vm985_vm14 = vweird.f32 %v3923_v49  ;;  %vm1452_vm0 = vmor %vm1450_vm9, %vm1451_vm13 }
 0x19b   :  { %v1448_v30 = vmul.f32 %v2412_v17, %v1447_v18  ;;  %v991_v56 = vand.u32 2147483648, %v3923_v49  ;;  %vm1225_vm15 = vweird.f32 %v3930_v50  ;;  %v3965_v19 = vadd.f32 1.0, %v2418_v1 }
 0x19c   :  { %v1687_v34 = vsub.f32 1.0, %v1686_v10  ;;  %v2420_v35 = vpop.eup %2419  ;;  %2425 = vrcp.f32 %v3959_v58  ;;  %vm1691_vm1 = vweird.f32 %v2416_v16  ;;  %v1229_v33 = vand.u32 2147483647, %v3930_v50 }
 0x19d   :  { %v1449_v55 = vadd.f32 %v2412_v17, %v1448_v30  ;;  %v2422_v2 = vpop.eup %2421  ;;  %v981_v26 = vmul.f32 %v2420_v35, %v3923_v49  ;;  %vm3971_vm2 = vcmp.eq.f32.partialorder %v989_v59, 8.507059e+37  ;;  %v1231_v12 = vand.u32 2147483648, %v3930_v50  ;;  %vm1692_vm3 = vmor %vm1690_vm11, %vm1691_vm1 }
 0x19e   :  { %v1688_v46 = vmul.f32 %v2416_v16, %v1687_v34  ;;  %v1221_v51 = vmul.f32 %v2422_v2, %v3930_v50  ;;  %v2424_v41 = vpop.eup %2423  ;;  %2427 = vpow2.f32 %v2118_v38  ;;  %v992_v45 = vor.u32 1.1754944e-38, %v991_v56 }
 0x19f   :  { %v1453_v57 = vsel %vm1452_vm0, %v2412_v17, %v1449_v55  ;;  %v982_v32 = vsub.f32 1.0, %v981_v26  ;;  %2429 = vrcp.f32 %v3965_v19  ;;  %vm986_vm4 = vweird.f32 %v2420_v35 }
 0x1a0   :  { %v1458_v60 = vsel %vm3936_vm10, %v1457_v22, %v1453_v57  ;;  %v1689_v37 = vadd.f32 %v2416_v16, %v1688_v46  ;;  %v1222_v6 = vsub.f32 1.0, %v1221_v51  ;;  %vm1226_vm5 = vweird.f32 %v2422_v2  ;;  %vm987_vm8 = vmor %vm985_vm14, %vm986_vm4 }
 0x1a1   :  { %v1775_v15 = vmul.f32 %v1458_v60, %v3749_v31  ;;  %v983_v48 = vmul.f32 %v2420_v35, %v982_v32  ;;  %v3985_v21 = vadd.f32 1.0, %v2424_v41  ;;  %vm3988_vm6 = vcmp.eq.f32.partialorder %v1229_v33, 8.507059e+37  ;;  %vm1227_vm9 = vmor %vm1225_vm15, %vm1226_vm5 }
 0x1a2   :  { %v1693_v7 = vsel %vm1692_vm3, %v2416_v16, %v1689_v37  ;;  %v2426_v43 = vpop.eup %2425  ;;  %v1223_v42 = vmul.f32 %v2422_v2, %v1222_v6  ;;  %v1232_v29 = vor.u32 1.1754944e-38, %v1231_v12  ;;  %v1469_v17 = vand.u32 2147483647, %v3959_v58 }
 0x1a3   :  { %v1839_v11 = vpack.c.bf16 %v1775_v15, %v1775_v15  ;;  %v1698_v40 = vsel %vm3951_vm12, %v1697_v3, %v1693_v7  ;;  %v984_v27 = vadd.f32 %v2420_v35, %v983_v48  ;;  %v1461_v53 = vmul.f32 %v2426_v43, %v3959_v58 }
 0x1a4   :  { %v1791_v31 = vmul.f32 %v1698_v40, %v3773_v44  ;;  %v1224_v13 = vadd.f32 %v2422_v2, %v1223_v42  ;;  %2431 = vrcp.f32 %v3985_v21  ;;  %v2428_v44 = vpop.eup %2427  ;;  %v2150_v38 = vmul.f32 -1.442695, %v3956_v52 }
 0x1a5   :  { %1904 = vst.msk [vmem:[%s4081_s3 + $0xb4] sm:$0xf] %vm1858_vm7, %v1839_v11  ;;  %v988_v0 = vsel %vm987_vm8, %v2420_v35, %v984_v27  ;;  %v1462_v9 = vsub.f32 1.0, %v1461_v53  ;;  %v2430_v61 = vpop.eup %2429  ;;  %vm1466_vm10 = vweird.f32 %v2426_v43  ;;  %v1471_v8 = vand.u32 2147483648, %v3959_v58 }
 0x1a6   :  { %v1855_v14 = vpack.c.bf16 %v1791_v31, %v1791_v31  ;;  %v993_v49 = vsel %vm3971_vm2, %v992_v45, %v988_v0  ;;  %v1228_v63 = vsel %vm1227_vm9, %v2422_v2, %v1224_v13  ;;  %v1701_v18 = vmul.f32 %v2430_v61, %v3965_v19 }
 0x1a7   :  { %v1744_v4 = vmul.f32 %v993_v49, %v3870_v25  ;;  %v1233_v50 = vsel %vm3988_vm6, %v1232_v29, %v1228_v63  ;;  %v1463_v16 = vmul.f32 %v2426_v43, %v1462_v9  ;;  %vm1465_vm11 = vweird.f32 %v3959_v58 }
 0x1a8   :  { %1920 = vst.msk [vmem:[%s4081_s3 + $0xf4] sm:$0xf] %vm1858_vm7, %v1855_v14  ;;  %v1760_v22 = vmul.f32 %v1233_v50, %v3873_v39  ;;  %vm4018_vm12 = vcmp.eq.f32.partialorder %v1469_v17, 8.507059e+37  ;;  %v1709_v20 = vand.u32 2147483647, %v3965_v19  ;;  %v1702_v59 = vsub.f32 1.0, %v1701_v18  ;;  %vm1467_vm13 = vmor %vm1465_vm11, %vm1466_vm10 }
 0x1a9   :  { %v1808_v1 = vpack.c.bf16 %v1744_v4, %v1744_v4  ;;  %v1464_v30 = vadd.f32 %v2426_v43, %v1463_v16  ;;  %v4023_v25 = vadd.f32 1.0, %v2428_v44  ;;  %v1472_v56 = vor.u32 1.1754944e-38, %v1471_v8 }
 0x1aa   :  { %v2432_v34 = vpop.eup %2431  ;;  %v1824_v3 = vpack.c.bf16 %v1760_v22, %v1760_v22  ;;  %v1711_v39 = vand.u32 2147483648, %v3965_v19  ;;  %2433 = vpow2.f32 %v3948_v36  ;;  %v1703_v35 = vmul.f32 %v2430_v61, %v1702_v59 }
 0x1ab   :  { %1873 = vst.msk [vmem:[%s4081_s3 + $0x38] sm:$0xf] %vm1858_vm7, %v1808_v1  ;;  %v1468_v58 = vsel %vm1467_vm13, %v2426_v43, %v1464_v30  ;;  %vm1706_vm14 = vweird.f32 %v2430_v61  ;;  %v996_v55 = vmul.f32 %v2432_v34, %v3985_v21  ;;  %vm1705_vm15 = vweird.f32 %v3965_v19 }
 0x1ac   :  { %1889 = vst.msk [vmem:[%s4081_s3 + $0x78] sm:$0xf] %vm1858_vm7, %v1824_v3  ;;  %v1473_v2 = vsel %vm4018_vm12, %v1472_v56, %v1468_v58  ;;  %2435 = vrcp.f32 %v4023_v25  ;;  %v1704_v46 = vadd.f32 %v2430_v61, %v1703_v35  ;;  %vm1710_vm0 = vcmp.eq.f32.partialorder %v1709_v20, 8.507059e+37  ;;  %vm1707_vm1 = vmor %vm1705_vm15, %vm1706_vm14 }
 0x1ad   :  { %v1776_v36 = vmul.f32 %v1473_v2, %v3876_v47  ;;  %v997_v26 = vsub.f32 1.0, %v996_v55  ;;  %v1712_v33 = vor.u32 1.1754944e-38, %v1711_v39  ;;  %v1004_v57 = vand.u32 2147483647, %v3985_v21 }
 0x1ae   :  { %v1006_v24 = vand.u32 2147483648, %v3985_v21  ;;  %2437 = vpow2.f32 %v2150_v38  ;;  %v1708_v12 = vsel %vm1707_vm1, %v2430_v61, %v1704_v46  ;;  %vm1001_vm2 = vweird.f32 %v2432_v34 }
 0x1af   :  { %v1840_v51 = vpack.c.bf16 %v1776_v36, %v1776_v36  ;;  %v998_v41 = vmul.f32 %v2432_v34, %v997_v26  ;;  %v1713_v19 = vsel %vm1710_vm0, %v1712_v33, %v1708_v12  ;;  %vm1000_vm3 = vweird.f32 %v3985_v21 }
 0x1b0   :  { %v2434_v60 = vpop.eup %2433  ;;  %v1792_v47 = vmul.f32 %v1713_v19, %v3893_v23  ;;  %vm1002_vm4 = vmor %vm1000_vm3, %vm1001_vm2  ;;  %v1007_v45 = vor.u32 1.1754944e-38, %v1006_v24  ;;  %vm1005_vm5 = vcmp.eq.f32.partialorder %v1004_v57, 8.507059e+37  ;;  %v1244_v21 = vand.u32 2147483647, %v4023_v25 }
 0x1b1   :  { %1905 = vst.msk [vmem:[%s4081_s3 + $0xb8] sm:$0xf] %vm1858_vm7, %v1840_v51  ;;  %v999_v37 = vadd.f32 %v2432_v34, %v998_v41  ;;  %v753_v32 = vadd.f32 1.0, %v2434_v60  ;;  %v1246_v31 = vand.u32 2147483648, %v4023_v25  ;;  %vm1240_vm8 = vweird.f32 %v4023_v25 }
 0x1b2   :  { %v2436_v15 = vpop.eup %2435  ;;  %v1856_v6 = vpack.c.bf16 %v1792_v47, %v1792_v47  ;;  %vm1245_vm10 = vcmp.eq.f32.partialorder %v1244_v21, 8.507059e+37 }
 0x1b3   :  { %v1003_v7 = vsel %vm1002_vm4, %v2432_v34, %v999_v37  ;;  %v1236_v48 = vmul.f32 %v2436_v15, %v4023_v25  ;;  %2439 = vrcp.f32 %v753_v32  ;;  %vm1241_vm6 = vweird.f32 %v2436_v15 }
 0x1b4   :  { %v2438_v43 = vpop.eup %2437  ;;  %v1008_v11 = vsel %vm1005_vm5, %v1007_v45, %v1003_v7  ;;  %1921 = vst.msk [vmem:[%s4081_s3 + $0xf8] sm:$0xf] %vm1858_vm7, %v1856_v6  ;;  %vm1242_vm9 = vmor %vm1240_vm8, %vm1241_vm6  ;;  %v1486_v38 = vand.u32 2147483648, %v753_v32  ;;  %v1484_v8 = vand.u32 2147483647, %v753_v32  ;;  %vm1480_vm12 = vweird.f32 %v753_v32 }
 0x1b5   :  { %v1745_v23 = vmul.f32 %v1008_v11, %v3904_v5  ;;  %v1237_v40 = vsub.f32 1.0, %v1236_v48  ;;  %v769_v42 = vadd.f32 1.0, %v2438_v43  ;;  %v1247_v5 = vor.u32 1.1754944e-38, %v1246_v31 }
 0x1b6   :  { %v1487_v18 = vor.u32 1.1754944e-38, %v1486_v38  ;;  %vm1485_vm15 = vcmp.eq.f32.partialorder %v1484_v8, 8.507059e+37 }
 0x1b7   :  { %v1809_v27 = vpack.c.bf16 %v1745_v23, %v1745_v23  ;;  %v1238_v62 = vmul.f32 %v2436_v15, %v1237_v40  ;;  %2441 = vrcp.f32 %v769_v42  ;;  %v1726_v16 = vand.u32 2147483648, %v769_v42 }
 0x1b8   :  { %vm1720_vm0 = vweird.f32 %v769_v42 }
 0x1b9   :  { %1874 = vst.msk [vmem:[%s4081_s3 + $0x3c] sm:$0xf] %vm1858_vm7, %v1809_v27  ;;  %v1239_v53 = vadd.f32 %v2436_v15, %v1238_v62  ;;  %v2440_v13 = vpop.eup %2439  ;;  %v1727_v59 = vor.u32 1.1754944e-38, %v1726_v16 }
 0x1ba   :  { %v1476_v17 = vmul.f32 %v2440_v13, %v753_v32  ;;  %vm1481_vm11 = vweird.f32 %v2440_v13 }
 0x1bb   :  { %v1243_v29 = vsel %vm1242_vm9, %v2436_v15, %v1239_v53  ;;  %vm1482_vm13 = vmor %vm1480_vm12, %vm1481_vm11 }
 0x1bc   :  { %v1248_v44 = vsel %vm1245_vm10, %v1247_v5, %v1243_v29  ;;  %v1477_v9 = vsub.f32 1.0, %v1476_v17 }
 0x1bd   :  { %v2442_v14 = vpop.eup %2441  ;;  %v1761_v0 = vmul.f32 %v1248_v44, %v3914_v54  ;;  %v1724_v54 = vand.u32 2147483647, %v769_v42 }
 0x1be   :  { %v1716_v61 = vmul.f32 %v2442_v14, %v769_v42  ;;  %v1478_v63 = vmul.f32 %v2440_v13, %v1477_v9  ;;  %vm1721_vm14 = vweird.f32 %v2442_v14 }
 0x1bf   :  { %v1825_v49 = vpack.c.bf16 %v1761_v0, %v1761_v0  ;;  %vm1722_vm1 = vmor %vm1720_vm0, %vm1721_vm14  ;;  %vm1725_vm2 = vcmp.eq.f32.partialorder %v1724_v54, 8.507059e+37 }
 0x1c0   :  { %v1717_v4 = vsub.f32 1.0, %v1716_v61  ;;  %v1479_v50 = vadd.f32 %v2440_v13, %v1478_v63 }
 0x1c1   :  { %1890 = vst.msk [vmem:[%s4081_s3 + $0x7c] sm:$0xf] %vm1858_vm7, %v1825_v49 }
 0x1c2   :  { %v1718_v22 = vmul.f32 %v2442_v14, %v1717_v4  ;;  %v1483_v10 = vsel %vm1482_vm13, %v2440_v13, %v1479_v50 }
 0x1c3   :  { %v1488_v20 = vsel %vm1485_vm15, %v1487_v18, %v1483_v10 }
 0x1c4   :  { %v1719_v1 = vadd.f32 %v2442_v14, %v1718_v22  ;;  %v1777_v30 = vmul.f32 %v1488_v20, %v3917_v28 }
 0x1c6   :  { %v1723_v25 = vsel %vm1722_vm1, %v2442_v14, %v1719_v1  ;;  %v1841_v34 = vpack.c.bf16 %v1777_v30, %v1777_v30 }
 0x1c7   :  { %v1728_v3 = vsel %vm1725_vm2, %v1727_v59, %v1723_v25 }
 0x1c8   :  { %v1793_v56 = vmul.f32 %v1728_v3, %v3956_v52  ;;  %1906 = vst.msk [vmem:[%s4081_s3 + $0xbc] sm:$0xf] %vm1858_vm7, %v1841_v34 }
 0x1ca   :  { %v1857_v39 = vpack.c.bf16 %v1793_v56, %v1793_v56 }
 0x1cc   :  { %1922 = vst.msk [vmem:[%s4081_s3 + $0xfc] sm:$0xf] %vm1858_vm7, %v1857_v39 }

// kernel: spp_forward.3
= control target key start
LH: loop header
LB: loop body
LE: loop exit
PB: predicated region body
PF: predicated region fallthrough
CT: control target
= control target key end

     0   :  { %s10224_s12 = smov 0   ;;  %s15816_s0 = inlined_call_operand.vmem [shape: bf16[2,16,16,2], index: 0, kind: input, shape index: {}]   ;;  %s15817_s1 = inlined_call_operand.vmem [shape: bf16[8,8], index: 1, kind: input, shape index: {}]   ;;  %s15818_s2 = inlined_call_operand.vmem [shape: f32[1,8], index: 2, kind: input, shape index: {}]   ;;  %s15819_s3 = inlined_call_operand.vmem [shape: f32[2,256,8], index: 3, kind: output, shape index: {}]  }
   0x1 LB: > { %s9694_s13 = sadd.s32 4294967295, %s10201_s12   ;;  %p9698_p0 = scmp.ge.s32.totalorder %s10201_s12, 1  ;;  %s10201_s12 = sphi %s10224_s12, %s13_s12  }
   0x2   : > { %p137_p1 = scmp.lt.s32.totalorder %s10201_s12, 3 }
   0x4   : > { %p138_p2 = pnand %p9698_p0, %p137_p1 }
   0x6   : > { %141 = sbr.rel (%p138_p2) target bundleno = 1329 (0x531), region = 32 }
   0xb   : > { %v6936_v0 = vld [vmem:[%s15817_s1] sm:$0x4]  ;;  %p161_p3 = scmp.lt.s32.totalorder %s9694_s13, 1  ;;  %vm173_vm0 = vcmask 11264   ;;  %vm177_vm1 = vcmask 9216   ;;  %vm4059_vm2 = vcmask 1040384  }
   0xc   : > { %v6986_v1 = vunpack.c.l.b16 %v6936_v0  ;;  %v15827_v2 = vmov 4286644096   ;;  %vm351_vm3 = vcmask 1042432   ;;  %vm352_vm4 = vcmask 1046532  }
   0xd   : > { %s16729_s13 = smov (!%p161_p3, %s9694_s13), 1  ;;  %183 = vst.msk [vmem:[#allocation2 + $0x20] sm:$0xf] %vm173_vm0, %v15827_v2  ;;  %vm10295_vm5 = vmor %vm351_vm3, %vm352_vm4  ;;  %v16122_v23 = vmov 0  ;;  %vm870_vm6 = vcmask 1046528   ;;  %vm483_vm7 = vcmask 11267  }
   0xe   : > { %v6987_v3 = vpack.c.b16 %v6986_v1, %v6986_v1  ;;  %184 = vst.msk [vmem:[#allocation2 + $0x24] sm:$0xf] %vm173_vm0, %v15827_v2  ;;  %s9897_s16 = sshll.u32 %s16729_s13, 7  ;;  %v16123_v23 = vsel %vm10295_vm5, 4294967295, %v16122_v23  ;;  %vm486_vm8 = vcmask 10240   ;;  %vm1403_vm9 = vcmask 1045504  }
   0xf   : > { %185 = vst.msk [vmem:[#allocation2 + $0x28] sm:$0xf] %vm173_vm0, %v15827_v2  ;;  %s10247_s19 = scalar_lea.vmem %s15816_s0, %s9897_s16  ;;  %vm1936_vm10 = vcmask 1044480   ;;  %vm2469_vm11 = vcmask 1043456   ;;  %vm4010_vm12 = vcmask 15360   ;;  %vm3842_vm13 = vcmask 1041408  }
  0x10   : > { %v6988_v4 = vrot.slane %v6987_v3, 2  ;;  %186 = vst.msk [vmem:[#allocation2 + $0x2c] sm:$0x3] %vm177_vm1, %v15827_v2  ;;  %v10254_v5 = vld [vmem:[%s10247_s19] sm:$0xf]  ;;  %vm3843_vm14 = vcmask 1045508  }
  0x11   : > { %187 = vst.msk [vmem:[#allocation2 + $0x30] sm:$0xf] %vm173_vm0, %v15827_v2  ;;  %v288_v6 = vld [vmem:[%s10247_s19 + $0x4] sm:$0xf]  ;;  %v10261_v8 = vld [vmem:[%s10247_s19 + $0x8] sm:$0xf]  ;;  %vm11713_vm15 = vmor %vm3842_vm13, %vm3843_vm14 }
  0x12   : > { %v7038_v7 = vsel %vm4059_vm2, %v6988_v4, 0  ;;  %188 = vst.msk [vmem:[#allocation2 + $0x34] sm:$0xf] %vm173_vm0, %v15827_v2  ;;  %v15824_v9 = vrot.slane %v10254_v5, 5  ;;  %v290_v10 = vld [vmem:[%s10247_s19 + $0xc] sm:$0xf] }
  0x13   : > { %7047 = vmatpush.bf16.msra.mxu2 %v7038_v7  ;;  %189 = vst.msk [vmem:[#allocation2 + $0x38] sm:$0xf] %vm173_vm0, %v15827_v2  ;;  %v10268_v11 = vld [vmem:[%s10247_s19 + $0x10] sm:$0xf]  ;;  %v292_v12 = vld [vmem:[%s10247_s19 + $0x14] sm:$0xf] }
  0x14   : > { %190 = vst.msk [vmem:[#allocation2 + $0x3c] sm:$0x3] %vm177_vm1, %v15827_v2  ;;  %v10274_v13 = vld [vmem:[%s10247_s19 + $0x18] sm:$0xf]  ;;  %v294_v14 = vld [vmem:[%s10247_s19 + $0x1c] sm:$0xf] }
  0x15   : > { %191 = vst.msk [vmem:[#allocation2 + $0x40] sm:$0xf] %vm173_vm0, %v15827_v2  ;;  %v10280_v15 = vld [vmem:[%s10247_s19 + $0x20] sm:$0xf]  ;;  %v296_v16 = vld [vmem:[%s10247_s19 + $0x24] sm:$0xf] }
  0x16   : > { %192 = vst.msk [vmem:[#allocation2 + $0x44] sm:$0xf] %vm173_vm0, %v15827_v2  ;;  %v355_v17 = vrot.slane %v15824_v9, 4  ;;  %v356_v18 = vrot.slane %v288_v6, 5  ;;  %v15823_v19 = vrot.slane %v10261_v8, 5  ;;  %v361_v20 = vrot.slane %v290_v10, 5 }
  0x17   : > { %193 = vst.msk [vmem:[#allocation2 + $0x48] sm:$0xf] %vm173_vm0, %v15827_v2  ;;  %v15822_v21 = vrot.slane %v10268_v11, 5  ;;  %v366_v22 = vrot.slane %v292_v12, 5  ;;  %v15821_v24 = vrot.slane %v10274_v13, 5  ;;  %v371_v25 = vrot.slane %v294_v14, 5 }
  0x18   : > { %194 = vst.msk [vmem:[#allocation2 + $0x4c] sm:$0x3] %vm177_vm1, %v15827_v2  ;;  %v10028_v26 = vld [vmem:[#allocation2 + $0x20] sm:$0xff]   ;;  %v10302_v27 = vrot.slane %v356_v18, 4  ;;  %v360_v28 = vrot.slane %v15823_v19, 4  ;;  %v10306_v29 = vrot.slane %v361_v20, 4  ;;  %v10321_v35 = vsel %vm10295_vm5, %v355_v17, %v356_v18 }
  0x19   : > { %16124 = vst [vmem:[#allocation3_spill] sm:$0xff] %v16123_v23  ;;  %v365_v30 = vrot.slane %v15822_v21, 4  ;;  %v10312_v31 = vrot.slane %v366_v22, 4  ;;  %v370_v32 = vrot.slane %v15821_v24, 4  ;;  %v15820_v33 = vrot.slane %v10280_v15, 5  ;;  %v10029_v39 = vld [vmem:[#allocation2 + $0x30] sm:$0xff]  }
  0x1a   : > { %195 = vst.msk [vmem:[#allocation2 + $0x50] sm:$0xf] %vm173_vm0, %v15827_v2  ;;  %v376_v34 = vrot.slane %v296_v16, 5  ;;  %v10323_v36 = vrot.slane %v371_v25, 4  ;;  %v10325_v37 = vunpack.c.l.bf16 %v10028_v26  ;;  %v544_v38 = vld [vmem:[#allocation2 + $0x28] sm:$0xf]  ;;  %v10331_v40 = vsel %vm10295_vm5, %v360_v28, %v361_v20 }
  0x1b   : > { %196 = vst.msk [vmem:[#allocation2 + $0x54] sm:$0xf] %vm173_vm0, %v15827_v2  ;;  %v10335_v41 = vsel %vm10295_vm5, %v365_v30, %v366_v22  ;;  %v375_v42 = vrot.slane %v15820_v33, 4  ;;  %v10339_v43 = vunpack.c.h.bf16 %v10028_v26  ;;  %v545_v44 = vld [vmem:[#allocation2 + $0x2c] sm:$0x3]  ;;  %v10343_v45 = vunpack.c.l.bf16 %v10029_v39  ;;  %s9898_s28 = sshll.u32 %s16729_s13, 8 }
  0x1c   : > { %197 = vst.msk [vmem:[#allocation2 + $0x58] sm:$0xf] %vm173_vm0, %v15827_v2  ;;  %v10345_v46 = vunpack.c.h.bf16 %v10029_v39  ;;  %v548_v47 = vld [vmem:[#allocation2 + $0x38] sm:$0xf]  ;;  %v549_v48 = vld [vmem:[#allocation2 + $0x3c] sm:$0x3]  ;;  %v10347_v49 = vunpack.c.l.bf16 %v544_v38  ;;  %v10349_v50 = vunpack.c.l.bf16 %v545_v44  ;;  %v10355_v51 = vsel %vm10295_vm5, %v370_v32, %v371_v25  ;;  %s14185_s4 = scalar_lea.vmem %s15819_s3, %s9898_s28 }
  0x1d   : > { %16125 = vst [vmem:[#allocation4_spill] sm:$0xff] %v10325_v37  ;;  %v10359_v52 = vsel %vm10295_vm5, %v375_v42, %v376_v34  ;;  %v10361_v53 = vrot.slane %v376_v34, 4  ;;  %v10030_v54 = vld [vmem:[#allocation2 + $0x40] sm:$0xff]   ;;  %v10363_v56 = vunpack.c.l.bf16 %v548_v47  ;;  %v10369_v59 = vunpack.c.l.bf16 %v549_v48 }
  0x1e   : > { %198 = vst.msk [vmem:[#allocation2 + $0x5c] sm:$0x3] %vm177_vm1, %v15827_v2  ;;  %v552_v55 = vld [vmem:[#allocation2 + $0x48] sm:$0xf]  ;;  %v10367_v57 = vunpack.c.l.bf16 %v10030_v54  ;;  %v885_v60 = vrot.slane %v10325_v37, 1  ;;  %v10374_v61 = vunpack.c.h.bf16 %v10030_v54  ;;  %v886_v62 = vrot.slane %v10339_v43, 1 }
  0x1f   : > { %16126 = vst [vmem:[#allocation5_spill] sm:$0xff] %v10339_v43  ;;  %v553_v58 = vld [vmem:[#allocation2 + $0x4c] sm:$0x3]  ;;  %v888_v63 = vrot.slane %v10347_v49, 1  ;;  %v890_v0 = vrot.slane %v10349_v50, 1  ;;  %v10381_v3 = vunpack.c.l.bf16 %v552_v55  ;;  %v892_v6 = vrot.slane %v10343_v45, 1 }
  0x20   : > { %199 = vst.msk [vmem:[#allocation2 + $0x60] sm:$0xf] %vm173_vm0, %v15827_v2  ;;  %v10383_v4 = vunpack.c.l.bf16 %v553_v58  ;;  %v893_v7 = vrot.slane %v10345_v46, 1  ;;  %v10394_v16 = vsel %vm870_vm6, %v885_v60, %v886_v62  ;;  %v895_v17 = vrot.slane %v10363_v56, 1 }
  0x21   : > { %16127 = vst [vmem:[#allocation6_spill] sm:$0xff] %v10347_v49  ;;  %v10402_v22 = vsel %vm870_vm6, %v886_v62, %v888_v63  ;;  %v10405_v25 = vsel %vm870_vm6, %v888_v63, %v890_v0  ;;  %v897_v30 = vrot.slane %v10369_v59, 1  ;;  %v899_v32 = vrot.slane %v10367_v57, 1 }
  0x22   : > { %16128 = vst [vmem:[#allocation7_spill] sm:$0xff] %v10349_v50  ;;  %v10031_v1 = vld [vmem:[#allocation2 + $0x50] sm:$0xff]   ;;  %v10408_v26 = vsel %vm870_vm6, %v892_v6, %v893_v7  ;;  %v900_v34 = vrot.slane %v10374_v61, 1  ;;  %v902_v38 = vrot.slane %v10381_v3, 1  ;;  %v904_v39 = vrot.slane %v10383_v4, 1 }
  0x23   : > { %200 = vst.msk [vmem:[#allocation2 + $0x64] sm:$0xf] %vm173_vm0, %v15827_v2  ;;  %v10389_v10 = vunpack.c.l.bf16 %v10031_v1  ;;  %v10391_v12 = vunpack.c.h.bf16 %v10031_v1  ;;  %v556_v14 = vld [vmem:[#allocation2 + $0x58] sm:$0xf]  ;;  %v10426_v47 = vsel %vm870_vm6, %v893_v7, %v895_v17  ;;  %v10429_v48 = vsel %vm870_vm6, %v895_v17, %v897_v30 }
  0x24   : > { %201 = vst.msk [vmem:[#allocation2 + $0x68] sm:$0xf] %vm173_vm0, %v15827_v2  ;;  %v10399_v20 = vunpack.c.l.bf16 %v556_v14  ;;  %v10436_v60 = vsel %vm870_vm6, %v899_v32, %v900_v34  ;;  %v10439_v62 = vsel %vm870_vm6, %v900_v34, %v902_v38  ;;  %v10442_v63 = vsel %vm870_vm6, %v902_v38, %v904_v39 }
  0x25   : > { %16129 = vst [vmem:[#allocation8_spill] sm:$0xff] %v10369_v59  ;;  %v557_v18 = vld [vmem:[#allocation2 + $0x5c] sm:$0x3]  ;;  %v906_v42 = vrot.slane %v10389_v10, 1  ;;  %v907_v44 = vrot.slane %v10391_v12, 1  ;;  %v1418_v33 = vrot.slane %v10325_v37, 2 }
  0x26   : > { %202 = vst.msk [vmem:[#allocation2 + $0x6c] sm:$0x3] %vm177_vm1, %v15827_v2  ;;  %v10412_v28 = vunpack.c.l.bf16 %v557_v18  ;;  %v909_v54 = vrot.slane %v10399_v20, 1  ;;  %v1419_v24 = vrot.slane %v10339_v43, 2  ;;  %v1428_v39 = vrot.slane %v10363_v56, 2 }
  0x27   : > { %203 = vst.msk [vmem:[#allocation2 + $0x70] sm:$0xf] %vm173_vm0, %v15827_v2  ;;  %v10445_v0 = vsel %vm870_vm6, %v906_v42, %v907_v44  ;;  %v1421_v42 = vrot.slane %v10347_v49, 2  ;;  %v1430_v32 = vrot.slane %v10369_v59, 2  ;;  %v1432_v19 = vrot.slane %v10367_v57, 2 }
  0x28   : > { %16130 = vst [vmem:[#allocation9_spill] sm:$0xff] %v10383_v4  ;;  %v911_v55 = vrot.slane %v10412_v28, 1  ;;  %v10452_v6 = vsel %vm870_vm6, %v907_v44, %v909_v54  ;;  %v1420_v21 = vsel %vm1403_vm9, %v1418_v33, %v1419_v24  ;;  %v1435_v9 = vrot.slane %v10381_v3, 2 }
  0x29   : > { %204 = vst.msk [vmem:[#allocation2 + $0x74] sm:$0xf] %vm173_vm0, %v15827_v2  ;;  %v1422_v18 = vsel %vm1403_vm9, %v1419_v24, %v1421_v42  ;;  %v16136_v23 = vrot.slane %v10254_v5, 5  ;;  %v1437_v24 = vrot.slane %v10383_v4, 2  ;;  %v1444_v5 = vrot.slane %v10412_v28, 2 }
  0x2a   : > { %205 = vst.msk [vmem:[#allocation2 + $0x78] sm:$0xf] %vm173_vm0, %v15827_v2  ;;  %v10455_v7 = vsel %vm870_vm6, %v909_v54, %v911_v55  ;;  %v1423_v55 = vrot.slane %v10349_v50, 2  ;;  %v1425_v54 = vrot.slane %v10343_v45, 2  ;;  %vm9606_vm3 = vcmask 64512  }
  0x2b   : > { %16131 = vst [vmem:[#allocation10_spill] sm:$0xff] %v10399_v20  ;;  %v1168_v38 = vmax.f32 %v10399_v20, %v10455_v7  ;;  %v1438_v59 = vsel %vm1403_vm9, %v1435_v9, %v1437_v24 }
  0x2c   : > { %206 = vst.msk [vmem:[#allocation2 + $0x7c] sm:$0x3] %vm177_vm1, %v15827_v2  ;;  %v1424_v17 = vsel %vm1403_vm9, %v1421_v42, %v1423_v55  ;;  %v1439_v42 = vrot.slane %v10389_v10, 2  ;;  %v1442_v55 = vrot.slane %v10399_v20, 2 }
  0x2d   : > { %16132 = vst [vmem:[#allocation11_spill] sm:$0xff] %v10412_v28  ;;  %v561_v58 = vld [vmem:[#allocation2 + $0x6c] sm:$0x3] }
  0x2e   : > { %207 = vst.msk [vmem:[#allocation2 + $0x80] sm:$0xf] %vm173_vm0, %v15827_v2  ;;  %v10449_v1 = vunpack.c.l.bf16 %v561_v58  ;;  %v1426_v58 = vrot.slane %v10345_v46, 2 }
  0x2f   : > { %208 = vst.msk [vmem:[#allocation2 + $0x84] sm:$0xf] %vm173_vm0, %v15827_v2 }
  0x30   : > { %209 = vst.msk [vmem:[#allocation2 + $0x88] sm:$0xf] %vm173_vm0, %v15827_v2  ;;  %v1427_v14 = vsel %vm1403_vm9, %v1425_v54, %v1426_v58  ;;  %v1429_v33 = vsel %vm1403_vm9, %v1426_v58, %v1428_v39  ;;  %v1440_v54 = vrot.slane %v10391_v12, 2  ;;  %v1431_v58 = vsel %vm1403_vm9, %v1428_v39, %v1430_v32 }
  0x31   : > { %210 = vst.msk [vmem:[#allocation2 + $0x8c] sm:$0x3] %vm177_vm1, %v15827_v2 }
  0x32   : > { %16133 = vst [vmem:[#allocation12_spill] sm:$0xff] %v10449_v1  ;;  %v1441_v20 = vsel %vm1403_vm9, %v1439_v42, %v1440_v54 }
  0x33   : > { %211 = vst.msk [vmem:[#allocation2 + $0x90] sm:$0xf] %vm173_vm0, %v15827_v2  ;;  %v565_v44 = vld [vmem:[#allocation2 + $0x7c] sm:$0x3] }
  0x34   : > { %212 = vst.msk [vmem:[#allocation2 + $0x94] sm:$0xf] %vm173_vm0, %v15827_v2  ;;  %v10488_v34 = vunpack.c.l.bf16 %v565_v44  ;;  %v1433_v44 = vrot.slane %v10374_v61, 2 }
  0x35   : > { %213 = vst.msk [vmem:[#allocation2 + $0x98] sm:$0xf] %vm173_vm0, %v15827_v2 }
  0x36   : > { %214 = vst.msk [vmem:[#allocation2 + $0x9c] sm:$0x3] %vm177_vm1, %v15827_v2  ;;  %v1436_v4 = vsel %vm1403_vm9, %v1433_v44, %v1435_v9 }
  0x37   : > { %16134 = vst [vmem:[#allocation13_spill] sm:$0xff] %v10488_v34 }
  0x38   : > { %215 = vst.msk [vmem:[#allocation2 + $0xa0] sm:$0xf] %vm173_vm0, %v15827_v2  ;;  %v569_v30 = vld [vmem:[#allocation2 + $0x8c] sm:$0x3] }
  0x39   : > { %216 = vst.msk [vmem:[#allocation2 + $0xa4] sm:$0xf] %vm173_vm0, %v15827_v2  ;;  %v10514_v7 = vunpack.c.l.bf16 %v569_v30  ;;  %v16137_v30 = vrot.slane %v10261_v8, 5  ;;  %v16141_v8 = vmax.f32 %v10339_v43, %v10402_v22  ;;  %v16147_v22 = vmax.f32 %v10345_v46, %v10426_v47 }
  0x3a   : > { %217 = vst.msk [vmem:[#allocation2 + $0xa8] sm:$0xf] %vm173_vm0, %v15827_v2  ;;  %v16154_v47 = vmax.f32 %v10374_v61, %v10439_v62  ;;  %v16161_v62 = vmax.f32 %v10391_v12, %v10452_v6 }
  0x3b   : > { %218 = vst.msk [vmem:[#allocation2 + $0xac] sm:$0x3] %vm177_vm1, %v15827_v2  ;;  %v1434_v2 = vsel %vm1403_vm9, %v1432_v19, %v1433_v44  ;;  %v1445_v19 = vsel %vm1403_vm9, %v1442_v55, %v1444_v5  ;;  %v16139_v44 = vmax.f32 %v10325_v37, %v10394_v16  ;;  %v10557_v42 = vmax.f32 %v16141_v8, %v1422_v18 }
  0x3c   : > { %16135 = vst [vmem:[#allocation14_spill] sm:$0xff] %v10514_v7  ;;  %v10576_v18 = vmax.f32 %v16147_v22, %v1429_v33  ;;  %v10594_v33 = vmax.f32 %v16154_v47, %v1436_v4 }
  0x3d   : > { %484 = vst.msk [vmem:[#allocation2 + $0x60] sm:$0x8] %vm483_vm7, %v16136_v23  ;;  %v573_v23 = vld [vmem:[#allocation2 + $0x9c] sm:$0x3]  ;;  %v10552_v24 = vmax.f32 %v16139_v44, %v1420_v21  ;;  %v16145_v21 = vmax.f32 %v10343_v45, %v10408_v26  ;;  %v16152_v26 = vmax.f32 %v10367_v57, %v10436_v60  ;;  %v16159_v60 = vmax.f32 %v10389_v10, %v10445_v0 }
  0x3e   : > { %485 = vst.msk [vmem:[#allocation2 + $0x64] sm:$0xf] %vm173_vm0, %v10321_v35  ;;  %v1443_v35 = vsel %vm1403_vm9, %v1440_v54, %v1442_v55  ;;  %v10541_v32 = vunpack.c.l.bf16 %v573_v23  ;;  %v16143_v54 = vmax.f32 %v10347_v49, %v10405_v25  ;;  %v16149_v25 = vrot.slane %v10268_v11, 5 }
  0x3f   : > { %487 = vst.msk [vmem:[#allocation2 + $0x68] sm:$0x7] %vm486_vm8, %v10302_v27  ;;  %v10571_v16 = vmax.f32 %v16145_v21, %v1427_v14  ;;  %v10589_v14 = vmax.f32 %v16152_v26, %v1434_v2  ;;  %v16156_v11 = vmax.f32 %v10381_v3, %v10442_v63  ;;  %v10608_v2 = vmax.f32 %v16159_v60, %v1441_v20 }
  0x40   : > { %488 = vst.msk [vmem:[#allocation2 + $0x70] sm:$0x8] %vm483_vm7, %v16137_v30  ;;  %v10562_v55 = vmax.f32 %v16143_v54, %v1424_v17  ;;  %v10613_v4 = vmax.f32 %v16161_v62, %v1443_v35  ;;  %v10617_v63 = vmax.f32 %v1168_v38, %v1445_v19  ;;  %v1954_v0 = vrot.slane %v10347_v49, 3 }
  0x41   : > { %16138 = vst [vmem:[#allocation15_spill] sm:$0xff] %v10541_v32  ;;  %v10599_v23 = vmax.f32 %v16156_v11, %v1438_v59  ;;  %v16164_v20 = vrot.slane %v10274_v13, 5  ;;  %v1956_v54 = vrot.slane %v10349_v50, 3  ;;  %v16180_v30 = vrot.slane %v10488_v34, 1 }
  0x42   : > { %489 = vst.msk [vmem:[#allocation2 + $0x74] sm:$0xf] %vm173_vm0, %v10331_v40  ;;  %v577_v17 = vld [vmem:[#allocation2 + $0xac] sm:$0x3] }
  0x43   : > { %16140 = vst [vmem:[#allocation16_spill] sm:$0xff] %v10552_v24 }
  0x44   : > { %16142 = vst [vmem:[#allocation17_spill] sm:$0xff] %v10557_v42  ;;  %v16197_v42 = vrot.slane %v10514_v7, 2 }
  0x45   : > { %16144 = vst [vmem:[#allocation18_spill] sm:$0xff] %v10562_v55  ;;  %v10032_v59 = vld [vmem:[#allocation2 + $0x60] sm:$0xff]  }
  0x46   : > { %490 = vst.msk [vmem:[#allocation2 + $0x78] sm:$0x7] %vm486_vm8, %v10306_v29  ;;  %v16150_v29 = vmax.f32 %v10363_v56, %v10429_v48  ;;  %v10603_v48 = vunpack.c.l.bf16 %v577_v17  ;;  %v10625_v6 = vunpack.c.l.bf16 %v10032_v59  ;;  %v10627_v35 = vunpack.c.h.bf16 %v10032_v59  ;;  %v560_v44 = vld [vmem:[#allocation2 + $0x68] sm:$0xf] }
  0x47   : > { %16146 = vst [vmem:[#allocation19_spill] sm:$0xff] %v10571_v16  ;;  %v10633_v19 = vunpack.c.l.bf16 %v560_v44  ;;  %v16175_v44 = vrot.slane %v10449_v1, 1 }
  0x48   : > { %16148 = vst [vmem:[#allocation20_spill] sm:$0xff] %v10576_v18  ;;  %v10584_v5 = vmax.f32 %v16150_v29, %v1431_v58  ;;  %v1952_v58 = vrot.slane %v10339_v43, 3  ;;  %v913_v22 = vrot.slane %v10625_v6, 1  ;;  %v16170_v29 = vrot.slane %v10280_v15, 5 }
  0x49   : > { %491 = vst.msk [vmem:[#allocation2 + $0x80] sm:$0x8] %vm483_vm7, %v16149_v25  ;;  %v10033_v21 = vld [vmem:[#allocation2 + $0x70] sm:$0xff]   ;;  %v914_v25 = vrot.slane %v10627_v35, 1 }
  0x4a   : > { %16151 = vst [vmem:[#allocation21_spill] sm:$0xff] %v10584_v5  ;;  %v10639_v13 = vsel %vm1936_vm10, %v1952_v58, %v1954_v0  ;;  %v10652_v26 = vunpack.c.l.bf16 %v10033_v21  ;;  %v10654_v47 = vunpack.c.h.bf16 %v10033_v21  ;;  %v16196_v5 = vrot.slane %v10488_v34, 2 }
  0x4b   : > { %16153 = vst [vmem:[#allocation22_spill] sm:$0xff] %v10589_v14  ;;  %v10663_v59 = vsel %vm870_vm6, %v913_v22, %v914_v25 }
  0x4c   : > { %16155 = vst [vmem:[#allocation23_spill] sm:$0xff] %v10594_v33  ;;  %v920_v21 = vrot.slane %v10652_v26, 1  ;;  %v921_v22 = vrot.slane %v10654_v47, 1  ;;  %v16195_v33 = vrot.slane %v10603_v48, 1  ;;  %v1453_v14 = vrot.slane %v10652_v26, 2 }
  0x4d   : > { %16157 = vst [vmem:[#allocation24_spill] sm:$0xff] %v10599_v23  ;;  %v564_v11 = vld [vmem:[#allocation2 + $0x78] sm:$0xf] }
  0x4e   : > { %492 = vst.msk [vmem:[#allocation2 + $0x84] sm:$0xf] %vm173_vm0, %v10335_v41  ;;  %v1951_v41 = vrot.slane %v10325_v37, 3  ;;  %v10660_v62 = vunpack.c.l.bf16 %v564_v11  ;;  %v16178_v11 = vmov 4286644096   ;;  %v16190_v37 = vrot.slane %v10625_v6, 2 }
  0x4f   : > { %16158 = vst [vmem:[#allocation25_spill] sm:$0xff] %v10603_v48 }
  0x50   : > { %16160 = vst [vmem:[#allocation26_spill] sm:$0xff] %v10608_v2  ;;  %v10636_v8 = vsel %vm1936_vm10, %v1951_v41, %v1952_v58  ;;  %v10667_v41 = vsel %vm1936_vm10, %v1954_v0, %v1956_v54  ;;  %v16193_v2 = vrot.slane %v10449_v1, 2 }
  0x51   : > { %16162 = vst [vmem:[#allocation27_spill] sm:$0xff] %v10613_v4  ;;  %v16191_v4 = vrot.slane %v10633_v19, 2 }
  0x52   : > { %493 = vst.msk [vmem:[#allocation2 + $0x88] sm:$0x7] %vm486_vm8, %v10312_v31 }
  0x53   : > { %16163 = vst [vmem:[#allocation28_spill] sm:$0xff] %v10617_v63 }
  0x54   : > { %494 = vst.msk [vmem:[#allocation2 + $0x90] sm:$0x8] %vm483_vm7, %v16164_v20 }
  0x55   : > { %16165 = vst [vmem:[#allocation29_spill] sm:$0xff] %v10625_v6  ;;  %v10034_v58 = vld [vmem:[#allocation2 + $0x80] sm:$0xff]  }
  0x56   : > { %16166 = vst [vmem:[#allocation30_spill] sm:$0xff] %v10627_v35  ;;  %v10683_v0 = vunpack.c.h.bf16 %v10034_v58 }
  0x57   : > { %495 = vst.msk [vmem:[#allocation2 + $0x94] sm:$0xf] %vm173_vm0, %v10355_v51  ;;  %v16184_v51 = vrot.slane %v10514_v7, 1 }
  0x58   : > { %16167 = vst [vmem:[#allocation31_spill] sm:$0xff] %v10633_v19  ;;  %v928_v9 = vrot.slane %v10683_v0, 1 }
  0x59   : > { %16168 = vst [vmem:[#allocation32_spill] sm:$0xff] %v10636_v8  ;;  %v568_v54 = vld [vmem:[#allocation2 + $0x88] sm:$0xf]  ;;  %v16188_v8 = vrot.slane %v10541_v32, 1 }
  0x5a   : > { %16169 = vst [vmem:[#allocation33_spill] sm:$0xff] %v10639_v13  ;;  %v10690_v17 = vunpack.c.l.bf16 %v568_v54 }
  0x5b   : > { %496 = vst.msk [vmem:[#allocation2 + $0x98] sm:$0x7] %vm486_vm8, %v10323_v36  ;;  %v916_v36 = vrot.slane %v10633_v19, 1 }
  0x5c   : > { %497 = vst.msk [vmem:[#allocation2 + $0xa0] sm:$0x8] %vm483_vm7, %v16170_v29  ;;  %v10681_v29 = vunpack.c.l.bf16 %v10034_v58 }
  0x5d   : > { %16171 = vst [vmem:[#allocation34_spill] sm:$0xff] %v10652_v26  ;;  %v10672_v20 = vsel %vm870_vm6, %v914_v25, %v916_v36 }
  0x5e   : > { %16172 = vst [vmem:[#allocation35_spill] sm:$0xff] %v10654_v47  ;;  %v10035_v38 = vld [vmem:[#allocation2 + $0x90] sm:$0xff]  }
  0x5f   : > { %498 = vst.msk [vmem:[#allocation2 + $0xa4] sm:$0xf] %vm173_vm0, %v10359_v52  ;;  %v10677_v52 = vsel %vm870_vm6, %v916_v36, %v16175_v44  ;;  %v10693_v36 = vsel %vm870_vm6, %v920_v21, %v921_v22  ;;  %v927_v21 = vrot.slane %v10681_v29, 1  ;;  %v10713_v58 = vunpack.c.l.bf16 %v10035_v38 }
  0x60   : > { %16173 = vst [vmem:[#allocation36_spill] sm:$0xff] %v10660_v62  ;;  %v10715_v44 = vunpack.c.h.bf16 %v10035_v38 }
  0x61   : > { %16174 = vst [vmem:[#allocation37_spill] sm:$0xff] %v10667_v41 }
  0x62   : > { %499 = vst.msk [vmem:[#allocation2 + $0xa8] sm:$0x7] %vm486_vm8, %v10361_v53  ;;  %v923_v53 = vrot.slane %v10660_v62, 1  ;;  %v572_v27 = vld [vmem:[#allocation2 + $0x98] sm:$0xf]  ;;  %v935_v60 = vrot.slane %v10715_v44, 1 }
  0x63   : > { %16176 = vst [vmem:[#allocation38_spill] sm:$0xff] %v10681_v29  ;;  %v1468_v16 = vrot.slane %v10715_v44, 2 }
  0x64   : > { %16177 = vst [vmem:[#allocation39_spill] sm:$0xff] %v10683_v0  ;;  %v10702_v25 = vsel %vm870_vm6, %v921_v22, %v923_v53  ;;  %v10707_v54 = vsel %vm870_vm6, %v923_v53, %v16180_v30  ;;  %v930_v22 = vrot.slane %v10690_v17, 1  ;;  %v10722_v30 = vunpack.c.l.bf16 %v572_v27 }
  0x65   : > { %174 = vst.msk [vmem:[#allocation2] sm:$0xf] %vm173_vm0, %v16178_v11  ;;  %v10725_v53 = vsel %vm870_vm6, %v927_v21, %v928_v9  ;;  %v934_v21 = vrot.slane %v10713_v58, 1 }
  0x66   : > { %16179 = vst [vmem:[#allocation40_spill] sm:$0xff] %v10690_v17  ;;  %v10036_v15 = vld [vmem:[#allocation2 + $0xa0] sm:$0xff]   ;;  %v10734_v31 = vsel %vm870_vm6, %v928_v9, %v930_v22  ;;  %v10739_v27 = vsel %vm870_vm6, %v930_v22, %v16184_v51  ;;  %v937_v9 = vrot.slane %v10722_v30, 1 }
  0x67   : > { %175 = vst.msk [vmem:[#allocation2 + $0x4] sm:$0xf] %vm173_vm0, %v16178_v11  ;;  %v10745_v38 = vunpack.c.l.bf16 %v10036_v15  ;;  %v10747_v39 = vunpack.c.h.bf16 %v10036_v15  ;;  %v10757_v22 = vsel %vm870_vm6, %v934_v21, %v935_v60 }
  0x68   : > { %176 = vst.msk [vmem:[#allocation2 + $0x8] sm:$0xf] %vm173_vm0, %v16178_v11  ;;  %v10766_v50 = vsel %vm870_vm6, %v935_v60, %v937_v9  ;;  %v1178_v24 = vmax.f32 %v10713_v58, %v10757_v22 }
  0x69   : > { %16181 = vst [vmem:[#allocation41_spill] sm:$0xff] %v10713_v58  ;;  %v576_v40 = vld [vmem:[#allocation2 + $0xa8] sm:$0xf]  ;;  %v941_v21 = vrot.slane %v10745_v38, 1  ;;  %v942_v49 = vrot.slane %v10747_v39, 1  ;;  %v1179_v60 = vmax.f32 %v10715_v44, %v10766_v50 }
  0x6a   : > { %16182 = vst [vmem:[#allocation42_spill] sm:$0xff] %v10715_v44  ;;  %v10754_v51 = vunpack.c.l.bf16 %v576_v40  ;;  %v10771_v40 = vsel %vm870_vm6, %v937_v9, %v16188_v8  ;;  %v16189_v9 = vrot.slane %v10627_v35, 2 }
  0x6b   : > { %178 = vst.msk [vmem:[#allocation2 + $0xc] sm:$0x3] %vm177_vm1, %v16178_v11  ;;  %v1180_v43 = vmax.f32 %v10722_v30, %v10771_v40  ;;  %v943_v8 = vsel %vm870_vm6, %v941_v21, %v942_v49  ;;  %v16194_v40 = vmov %v16191_v4 }
  0x6c   : > { %16183 = vst [vmem:[#allocation43_spill] sm:$0xff] %v10722_v30  ;;  %v944_v15 = vrot.slane %v10754_v51, 1  ;;  %v1448_v63 = vsel %vm1403_vm9, %v16190_v37, %v16189_v9  ;;  %v16192_v22 = vmov %v16189_v9  ;;  %v1452_v23 = vsel %vm1403_vm9, %v16194_v40, %v16193_v2 }
  0x6d   : > { %179 = vst.msk [vmem:[#allocation2 + $0x10] sm:$0xf] %vm173_vm0, %v16178_v11  ;;  %v1450_v50 = vsel %vm1403_vm9, %v16192_v22, %v16191_v4  ;;  %v1181_v9 = vmax.f32 %v10745_v38, %v943_v8  ;;  %v1454_v22 = vrot.slane %v10654_v47, 2  ;;  %v1456_v40 = vrot.slane %v10660_v62, 2 }
  0x6e   : > { %180 = vst.msk [vmem:[#allocation2 + $0x14] sm:$0xf] %vm173_vm0, %v16178_v11  ;;  %v945_v21 = vsel %vm870_vm6, %v942_v49, %v944_v15  ;;  %v947_v37 = vsel %vm870_vm6, %v944_v15, %v16195_v33  ;;  %v1460_v49 = vrot.slane %v10681_v29, 2  ;;  %v1461_v33 = vrot.slane %v10683_v0, 2 }
  0x6f   : > { %16185 = vst [vmem:[#allocation44_spill] sm:$0xff] %v10745_v38  ;;  %v1182_v4 = vmax.f32 %v10747_v39, %v945_v21  ;;  %v1183_v2 = vmax.f32 %v10754_v51, %v947_v37  ;;  %v1463_v15 = vrot.slane %v10690_v17, 2  ;;  %v1467_v8 = vrot.slane %v10713_v58, 2 }
  0x70   : > { %16186 = vst [vmem:[#allocation45_spill] sm:$0xff] %v10747_v39  ;;  %v1455_v21 = vsel %vm1403_vm9, %v1453_v14, %v1454_v22  ;;  %v1457_v37 = vsel %vm1403_vm9, %v1454_v22, %v1456_v40  ;;  %v1459_v18 = vsel %vm1403_vm9, %v1456_v40, %v16196_v5  ;;  %v1462_v55 = vsel %vm1403_vm9, %v1460_v49, %v1461_v33 }
  0x71   : > { %181 = vst.msk [vmem:[#allocation2 + $0x18] sm:$0xf] %vm173_vm0, %v16178_v11  ;;  %v1464_v41 = vsel %vm1403_vm9, %v1461_v33, %v1463_v15  ;;  %v1466_v13 = vsel %vm1403_vm9, %v1463_v15, %v16197_v42  ;;  %v1470_v14 = vrot.slane %v10722_v30, 2  ;;  %v1469_v5 = vsel %vm1403_vm9, %v1467_v8, %v1468_v16 }
  0x72   : > { %16187 = vst [vmem:[#allocation46_spill] sm:$0xff] %v10754_v51  ;;  %v1474_v22 = vrot.slane %v10745_v38, 2  ;;  %v1475_v40 = vrot.slane %v10747_v39, 2  ;;  %v1477_v44 = vrot.slane %v10754_v51, 2  ;;  %v16198_v42 = vrot.slane %v10541_v32, 2 }
  0x73   : > { %182 = vst.msk [vmem:[#allocation2 + $0x1c] sm:$0x3] %vm177_vm1, %v16178_v11  ;;  %v1471_v49 = vsel %vm1403_vm9, %v1468_v16, %v1470_v14  ;;  %v16199_v15 = vmax.f32 %v10625_v6, %v10663_v59  ;;  %v16200_v8 = vmax.f32 %v10627_v35, %v10672_v20  ;;  %v16201_v38 = vrot.slane %v10603_v48, 2 }
  0x74   : > { %219 = vst.msk [vmem:[#allocation2 + $0xb0] sm:$0xf] %vm173_vm0, %v16178_v11  ;;  %v1473_v33 = vsel %vm1403_vm9, %v1470_v14, %v16198_v42  ;;  %v1476_v51 = vsel %vm1403_vm9, %v1474_v22, %v1475_v40  ;;  %v1478_v16 = vsel %vm1403_vm9, %v1475_v40, %v1477_v44  ;;  %v16203_v20 = vmax.f32 %v10652_v26, %v10693_v36 }
  0x75   : > { %220 = vst.msk [vmem:[#allocation2 + $0xb4] sm:$0xf] %vm173_vm0, %v16178_v11  ;;  %v10853_v30 = vmax.f32 %v16199_v15, %v1448_v63  ;;  %v10858_v39 = vmax.f32 %v16200_v8, %v1450_v50  ;;  %v1480_v14 = vsel %vm1403_vm9, %v1477_v44, %v16201_v38  ;;  %v16202_v63 = vmax.f32 %v10633_v19, %v10677_v52 }
  0x76   : > { %221 = vst.msk [vmem:[#allocation2 + $0xb8] sm:$0xf] %vm173_vm0, %v16178_v11  ;;  %v10877_v50 = vmax.f32 %v16203_v20, %v1455_v21  ;;  %v16204_v22 = vmax.f32 %v10654_v47, %v10702_v25  ;;  %v16206_v44 = vmax.f32 %v10660_v62, %v10707_v54  ;;  %v16210_v36 = vmax.f32 %v10683_v0, %v10734_v31  ;;  %v16224_v20 = vld [vmem:[#allocation10_spill] sm:$0xff] }
  0x77   : > { %222 = vst.msk [vmem:[#allocation2 + $0xbc] sm:$0x3] %vm177_vm1, %v16178_v11  ;;  %v10870_v59 = vmax.f32 %v16202_v63, %v1452_v23  ;;  %v16208_v23 = vmax.f32 %v10681_v29, %v10725_v53  ;;  %v16212_v25 = vmax.f32 %v10690_v17, %v10739_v27  ;;  %v10908_v54 = vmax.f32 %v1179_v60, %v1471_v49  ;;  %v16220_v27 = vld [vmem:[#allocation8_spill] sm:$0xff] }
  0x78   : > { %223 = vst.msk [vmem:[#allocation2 + $0xc0] sm:$0xf] %vm173_vm0, %v16178_v11  ;;  %v10882_v40 = vmax.f32 %v16204_v22, %v1457_v37  ;;  %v10887_v38 = vmax.f32 %v16206_v44, %v1459_v18  ;;  %v10899_v21 = vmax.f32 %v16210_v36, %v1464_v41  ;;  %v10906_v18 = vmax.f32 %v1178_v24, %v1469_v5 }
  0x79   : > { %224 = vst.msk [vmem:[#allocation2 + $0xc4] sm:$0xf] %vm173_vm0, %v16178_v11  ;;  %v10892_v52 = vmax.f32 %v16208_v23, %v1462_v55  ;;  %v10904_v37 = vmax.f32 %v16212_v25, %v1466_v13  ;;  %v10912_v55 = vmax.f32 %v1180_v43, %v1473_v33  ;;  %v10914_v53 = vmax.f32 %v1181_v9, %v1476_v51 }
  0x7a   : > { %225 = vst.msk [vmem:[#allocation2 + $0xc8] sm:$0xf] %vm173_vm0, %v16178_v11  ;;  %v10916_v42 = vmax.f32 %v1182_v4, %v1478_v16  ;;  %v10918_v31 = vmax.f32 %v1183_v2, %v1480_v14  ;;  %v1958_v13 = vrot.slane %v10343_v45, 3  ;;  %v1959_v24 = vrot.slane %v10345_v46, 3  ;;  %v16221_v4 = vld [vmem:[#allocation9_spill] sm:$0xff] }
  0x7b   : > { %226 = vst.msk [vmem:[#allocation2 + $0xcc] sm:$0x3] %vm177_vm1, %v16178_v11  ;;  %v1961_v41 = vrot.slane %v10363_v56, 3  ;;  %v1963_v60 = vrot.slane %v16220_v27, 3  ;;  %v1965_v43 = vrot.slane %v10367_v57, 3  ;;  %v1966_v51 = vrot.slane %v10374_v61, 3 }
  0x7c   : > { %227 = vst.msk [vmem:[#allocation2 + $0xd0] sm:$0xf] %vm173_vm0, %v16178_v11  ;;  %v1968_v9 = vrot.slane %v10381_v3, 3  ;;  %v1970_v2 = vrot.slane %v16221_v4, 3  ;;  %v10935_v5 = vsel %vm1936_vm10, %v1958_v13, %v1959_v24  ;;  %v1972_v15 = vrot.slane %v10389_v10, 3 }
  0x7d   : > { %228 = vst.msk [vmem:[#allocation2 + $0xd4] sm:$0xf] %vm173_vm0, %v16178_v11  ;;  %v10938_v49 = vsel %vm1936_vm10, %v1959_v24, %v1961_v41  ;;  %v10941_v33 = vsel %vm1936_vm10, %v1961_v41, %v1963_v60  ;;  %v10947_v8 = vsel %vm1936_vm10, %v1965_v43, %v1966_v51  ;;  %v1973_v63 = vrot.slane %v10391_v12, 3 }
  0x7e   : > { %229 = vst.msk [vmem:[#allocation2 + $0xd8] sm:$0xf] %vm173_vm0, %v16178_v11  ;;  %v10950_v16 = vsel %vm1936_vm10, %v1966_v51, %v1968_v9  ;;  %v10953_v14 = vsel %vm1936_vm10, %v1968_v9, %v1970_v2  ;;  %v1975_v22 = vrot.slane %v16224_v20, 3  ;;  %v1977_v44 = vrot.slane %v10412_v28, 3  ;;  %v16252_v28 = vld [vmem:[#allocation26_spill] sm:$0xff] }
  0x7f   : > { %16205 = vst [vmem:[#allocation47_spill] sm:$0xff] %v10882_v40  ;;  %v1979_v23 = vrot.slane %v10625_v6, 3  ;;  %v1980_v36 = vrot.slane %v10627_v35, 3  ;;  %v10965_v25 = vsel %vm1936_vm10, %v1972_v15, %v1973_v63  ;;  %v1982_v13 = vrot.slane %v10633_v19, 3  ;;  %v16249_v35 = vld [vmem:[#allocation22_spill] sm:$0xff] }
  0x80   : > { %16207 = vst [vmem:[#allocation48_spill] sm:$0xff] %v10887_v38  ;;  %v1984_v24 = vrot.slane %v10449_v1, 3  ;;  %v1986_v41 = vrot.slane %v10652_v26, 3  ;;  %v10973_v60 = vsel %vm1936_vm10, %v1973_v63, %v1975_v22  ;;  %v10976_v43 = vsel %vm1936_vm10, %v1975_v22, %v1977_v44  ;;  %v16234_v1 = vld [vmem:[#allocation45_spill] sm:$0xff] }
  0x81   : > { %16209 = vst [vmem:[#allocation49_spill] sm:$0xff] %v10892_v52  ;;  %v10979_v51 = vsel %vm1936_vm10, %v1979_v23, %v1980_v36  ;;  %v1987_v9 = vrot.slane %v10654_v47, 3  ;;  %v10985_v2 = vsel %vm1936_vm10, %v1980_v36, %v1982_v13  ;;  %v1989_v63 = vrot.slane %v10660_v62, 3 }
  0x82   : > { %230 = vst.msk [vmem:[#allocation2 + $0xdc] sm:$0x3] %vm177_vm1, %v16178_v11  ;;  %v10988_v15 = vsel %vm1936_vm10, %v1982_v13, %v1984_v24  ;;  %v1991_v26 = vrot.slane %v10488_v34, 3  ;;  %v1993_v44 = vrot.slane %v10681_v29, 3  ;;  %v1994_v23 = vrot.slane %v10683_v0, 3  ;;  %v16230_v29 = vld [vmem:[#allocation42_spill] sm:$0xff] }
  0x83   : > { %16211 = vst [vmem:[#allocation50_spill] sm:$0xff] %v10899_v21  ;;  %v10995_v22 = vsel %vm1936_vm10, %v1986_v41, %v1987_v9  ;;  %v1996_v36 = vrot.slane %v10690_v17, 3  ;;  %v11003_v13 = vsel %vm1936_vm10, %v1987_v9, %v1989_v63  ;;  %v1998_v34 = vrot.slane %v10514_v7, 3  ;;  %v16231_v9 = vld [vmem:[#allocation43_spill] sm:$0xff] }
  0x84   : > { %16213 = vst [vmem:[#allocation51_spill] sm:$0xff] %v10904_v37  ;;  %v11006_v24 = vsel %vm1936_vm10, %v1989_v63, %v1991_v26  ;;  %v2000_v41 = vrot.slane %v10713_v58, 3  ;;  %v11013_v0 = vsel %vm1936_vm10, %v1993_v44, %v1994_v23  ;;  %v2001_v62 = vrot.slane %v16230_v29, 3  ;;  %v16233_v58 = vld [vmem:[#allocation44_spill] sm:$0xff]  ;;  %v16237_v29 = vld [vmem:[#allocation46_spill] sm:$0xff] }
  0x85   : > { %16214 = vst [vmem:[#allocation52_spill] sm:$0xff] %v10906_v18  ;;  %v11016_v17 = vsel %vm1936_vm10, %v1994_v23, %v1996_v36  ;;  %v2003_v47 = vrot.slane %v16231_v9, 3  ;;  %v11023_v26 = vsel %vm1936_vm10, %v1996_v36, %v1998_v34  ;;  %v2005_v63 = vrot.slane %v10541_v32, 3  ;;  %v16241_v32 = vld [vmem:[#allocation17_spill] sm:$0xff]  ;;  %v16269_v18 = vld [vmem:[#allocation39_spill] sm:$0xff]  ;;  %v16271_v37 = vld [vmem:[#allocation14_spill] sm:$0xff] }
  0x86   : > { %16215 = vst [vmem:[#allocation53_spill] sm:$0xff] %v10908_v54  ;;  %v2007_v7 = vrot.slane %v16233_v58, 3  ;;  %v2008_v44 = vrot.slane %v16234_v1, 3  ;;  %v11031_v23 = vsel %vm1936_vm10, %v2000_v41, %v2001_v62  ;;  %v2010_v19 = vrot.slane %v16237_v29, 3  ;;  %v16254_v41 = vld [vmem:[#allocation28_spill] sm:$0xff] }
  0x87   : > { %231 = vst.msk [vmem:[#allocation2 + $0xe0] sm:$0xf] %vm173_vm0, %v16178_v11  ;;  %v11034_v9 = vsel %vm1936_vm10, %v2001_v62, %v2003_v47  ;;  %v2012_v34 = vrot.slane %v10603_v48, 3  ;;  %v11041_v36 = vsel %vm1936_vm10, %v2003_v47, %v2005_v63  ;;  %v16246_v47 = vld [vmem:[#allocation19_spill] sm:$0xff]  ;;  %v16248_v62 = vld [vmem:[#allocation21_spill] sm:$0xff]  ;;  %v2492_v58 = vrot.slane %v10345_v46, 4 }
  0x88   : > { %16216 = vst [vmem:[#allocation54_spill] sm:$0xff] %v10912_v55  ;;  %v11044_v1 = vsel %vm1936_vm10, %v2007_v7, %v2008_v44  ;;  %v11053_v48 = vsel %vm1936_vm10, %v2008_v44, %v2010_v19  ;;  %v16250_v44 = vld [vmem:[#allocation23_spill] sm:$0xff]  ;;  %v16255_v7 = vld [vmem:[#allocation4_spill] sm:$0xff]  ;;  %v16256_v63 = vld [vmem:[#allocation5_spill] sm:$0xff]  ;;  %v2499_v46 = vrot.slane %v10374_v61, 4  ;;  %v2503_v61 = vrot.slane %v16221_v4, 4 }
  0x89   : > { %16217 = vst [vmem:[#allocation55_spill] sm:$0xff] %v10914_v53  ;;  %v11056_v29 = vsel %vm1936_vm10, %v2010_v19, %v2012_v34  ;;  %v16251_v19 = vld [vmem:[#allocation24_spill] sm:$0xff]  ;;  %v2485_v6 = vrot.slane %v16256_v63, 4  ;;  %v2491_v53 = vrot.slane %v10343_v45, 4  ;;  %v2494_v34 = vrot.slane %v10363_v56, 4  ;;  %v16261_v4 = vld [vmem:[#allocation30_spill] sm:$0xff] }
  0x8a   : > { %16218 = vst [vmem:[#allocation56_spill] sm:$0xff] %v10916_v42  ;;  %v16264_v42 = vld [vmem:[#allocation34_spill] sm:$0xff] }
  0x8b   : > { %16219 = vst [vmem:[#allocation57_spill] sm:$0xff] %v10918_v31  ;;  %v11146_v56 = vsel %vm2469_vm11, %v2491_v53, %v2492_v58  ;;  %v2506_v53 = vrot.slane %v10391_v12, 4  ;;  %v2513_v12 = vrot.slane %v16261_v4, 4  ;;  %v16262_v31 = vld [vmem:[#allocation31_spill] sm:$0xff]  ;;  %v16266_v4 = vld [vmem:[#allocation36_spill] sm:$0xff] }
  0x8c   : > { %232 = vst.msk [vmem:[#allocation2 + $0xe4] sm:$0xf] %vm173_vm0, %v16178_v11  ;;  %v2522_v54 = vrot.slane %v16266_v4, 4 }
  0x8d   : > { %233 = vst.msk [vmem:[#allocation2 + $0xe8] sm:$0xf] %vm173_vm0, %v16178_v11 }
  0x8e   : > { %234 = vst.msk [vmem:[#allocation2 + $0xec] sm:$0x3] %vm177_vm1, %v16178_v11 }
  0x8f   : > { %16222 = vst [vmem:[#allocation8_spill] sm:$0xff] %v10938_v49  ;;  %v16253_v49 = vld [vmem:[#allocation27_spill] sm:$0xff] }
  0x90   : > { %16223 = vst [vmem:[#allocation9_spill] sm:$0xff] %v10941_v33  ;;  %v16258_v33 = vld [vmem:[#allocation7_spill] sm:$0xff] }
  0x91   : > { %235 = vst.msk [vmem:[#allocation2 + $0xf0] sm:$0xf] %vm173_vm0, %v16178_v11 }
  0x92   : > { %236 = vst.msk [vmem:[#allocation2 + $0xf4] sm:$0xf] %vm173_vm0, %v16178_v11 }
  0x93   : > { %237 = vst.msk [vmem:[#allocation2 + $0xf8] sm:$0xf] %vm173_vm0, %v16178_v11 }
  0x94   : > { %238 = vst.msk [vmem:[#allocation2 + $0xfc] sm:$0x3] %vm177_vm1, %v16178_v11 }
  0x95   : > { %239 = vst.msk [vmem:[#allocation2 + $0x100] sm:$0xf] %vm173_vm0, %v16178_v11 }
  0x96   : > { %240 = vst.msk [vmem:[#allocation2 + $0x104] sm:$0xf] %vm173_vm0, %v16178_v11 }
  0x97   : > { %16225 = vst [vmem:[#allocation10_spill] sm:$0xff] %v10995_v22 }
  0x98   : > { %241 = vst.msk [vmem:[#allocation2 + $0x108] sm:$0xf] %vm173_vm0, %v16178_v11 }
  0x99   : > { %16226 = vst [vmem:[#allocation58_spill] sm:$0xff] %v11003_v13  ;;  %v16281_v13 = vld [vmem:[#allocation32_spill] sm:$0xff] }
  0x9a   : > { %16227 = vst [vmem:[#allocation59_spill] sm:$0xff] %v11006_v24  ;;  %v16278_v24 = vld [vmem:[#allocation46_spill] sm:$0xff] }
  0x9b   : > { %242 = vst.msk [vmem:[#allocation2 + $0x10c] sm:$0x3] %vm177_vm1, %v16178_v11  ;;  %v2543_v38 = vrot.slane %v16278_v24, 4 }
  0x9c   : > { %16228 = vst [vmem:[#allocation60_spill] sm:$0xff] %v11013_v0  ;;  %v16275_v0 = vld [vmem:[#allocation15_spill] sm:$0xff] }
  0x9d   : > { %16229 = vst [vmem:[#allocation61_spill] sm:$0xff] %v11016_v17  ;;  %v2531_v17 = vrot.slane %v16271_v37, 4  ;;  %v2538_v52 = vrot.slane %v16275_v0, 4 }
  0x9e   : > { %243 = vst.msk [vmem:[#allocation2 + $0x110] sm:$0xf] %vm173_vm0, %v16178_v11 }
  0x9f   : > { %16232 = vst [vmem:[#allocation62_spill] sm:$0xff] %v11023_v26  ;;  %v2527_v26 = vrot.slane %v16269_v18, 4 }
  0xa0   : > { %244 = vst.msk [vmem:[#allocation2 + $0x114] sm:$0xf] %vm173_vm0, %v16178_v11 }
  0xa1   : > { %16235 = vst [vmem:[#allocation63_spill] sm:$0xff] %v11031_v23  ;;  %v2484_v23 = vrot.slane %v16255_v7, 4  ;;  %v2496_v7 = vrot.slane %v16220_v27, 4 }
  0xa2   : > { %16236 = vst [vmem:[#allocation64_spill] sm:$0xff] %v11034_v9  ;;  %v2519_v9 = vrot.slane %v16264_v42, 4 }
  0xa3   : > { %245 = vst.msk [vmem:[#allocation2 + $0x118] sm:$0xf] %vm173_vm0, %v16178_v11  ;;  %v11152_v27 = vsel %vm2469_vm11, %v2494_v34, %v2496_v7 }
  0xa4   : > { %16238 = vst [vmem:[#allocation65_spill] sm:$0xff] %v11041_v36  ;;  %v16257_v36 = vld [vmem:[#allocation6_spill] sm:$0xff] }
  0xa5   : > { %16239 = vst [vmem:[#allocation66_spill] sm:$0xff] %v11044_v1  ;;  %v2487_v55 = vrot.slane %v16257_v36, 4  ;;  %v2489_v1 = vrot.slane %v16258_v33, 4  ;;  %v11134_v36 = vsel %vm2469_vm11, %v2484_v23, %v2485_v6  ;;  %v2508_v23 = vrot.slane %v16224_v20, 4 }
  0xa6   : > { %246 = vst.msk [vmem:[#allocation2 + $0x11c] sm:$0x3] %vm177_vm1, %v16178_v11 }
  0xa7   : > { %16244 = vst [vmem:[#allocation17_spill] sm:$0xff] %v11053_v48  ;;  %v11137_v33 = vsel %vm2469_vm11, %v2485_v6, %v2487_v55  ;;  %v11140_v45 = vsel %vm2469_vm11, %v2487_v55, %v2489_v1  ;;  %v2501_v6 = vrot.slane %v10381_v3, 4  ;;  %v2505_v55 = vrot.slane %v10389_v10, 4  ;;  %v16259_v3 = vld [vmem:[#allocation11_spill] sm:$0xff] }
  0xa8   : > { %16245 = vst [vmem:[#allocation67_spill] sm:$0xff] %v11056_v29  ;;  %v2498_v29 = vrot.slane %v10367_v57, 4  ;;  %v11149_v57 = vsel %vm2469_vm11, %v2492_v58, %v2494_v34  ;;  %v2510_v63 = vrot.slane %v16259_v3, 4  ;;  %v16260_v34 = vld [vmem:[#allocation29_spill] sm:$0xff]  ;;  %v2515_v48 = vrot.slane %v16262_v31, 4  ;;  %v16263_v3 = vld [vmem:[#allocation12_spill] sm:$0xff] }
  0xa9   : > { %247 = vst.msk [vmem:[#allocation2 + $0x120] sm:$0xf] %vm173_vm0, %v16178_v11  ;;  %v2502_v58 = vsel %vm2469_vm11, %v2499_v46, %v2501_v6  ;;  %v2512_v7 = vrot.slane %v16260_v34, 4  ;;  %v2507_v10 = vsel %vm2469_vm11, %v2505_v55, %v2506_v53  ;;  %v2509_v20 = vsel %vm2469_vm11, %v2506_v53, %v2508_v23  ;;  %v16265_v55 = vld [vmem:[#allocation35_spill] sm:$0xff] }
  0xaa   : > { %248 = vst.msk [vmem:[#allocation2 + $0x124] sm:$0xf] %vm173_vm0, %v16178_v11  ;;  %v11158_v1 = vsel %vm2469_vm11, %v2498_v29, %v2499_v46  ;;  %v2504_v29 = vsel %vm2469_vm11, %v2501_v6, %v2503_v61  ;;  %v2511_v46 = vsel %vm2469_vm11, %v2508_v23, %v2510_v63  ;;  %v2517_v34 = vrot.slane %v16263_v3, 4  ;;  %v16267_v23 = vld [vmem:[#allocation13_spill] sm:$0xff]  ;;  %v16268_v3 = vld [vmem:[#allocation38_spill] sm:$0xff] }
  0xab   : > { %249 = vst.msk [vmem:[#allocation2 + $0x128] sm:$0xf] %vm173_vm0, %v16178_v11  ;;  %v2514_v6 = vsel %vm2469_vm11, %v2512_v7, %v2513_v12  ;;  %v2516_v61 = vsel %vm2469_vm11, %v2513_v12, %v2515_v48  ;;  %v2520_v31 = vrot.slane %v16265_v55, 4  ;;  %v2524_v63 = vrot.slane %v16267_v23, 4  ;;  %v16270_v55 = vld [vmem:[#allocation40_spill] sm:$0xff]  ;;  %v16272_v23 = vld [vmem:[#allocation41_spill] sm:$0xff] }
  0xac   : > { %250 = vst.msk [vmem:[#allocation2 + $0x12c] sm:$0x3] %vm177_vm1, %v16178_v11  ;;  %v2518_v53 = vsel %vm2469_vm11, %v2515_v48, %v2517_v34  ;;  %v2526_v42 = vrot.slane %v16268_v3, 4  ;;  %v2529_v4 = vrot.slane %v16270_v55, 4  ;;  %v2533_v18 = vrot.slane %v16272_v23, 4  ;;  %v16273_v3 = vld [vmem:[#allocation42_spill] sm:$0xff] }
  0xad   : > { %251 = vst.msk [vmem:[#allocation2 + $0x130] sm:$0xf] %vm173_vm0, %v16178_v11  ;;  %v2521_v7 = vsel %vm2469_vm11, %v2519_v9, %v2520_v31  ;;  %v2523_v12 = vsel %vm2469_vm11, %v2520_v31, %v2522_v54  ;;  %v2525_v48 = vsel %vm2469_vm11, %v2522_v54, %v2524_v63  ;;  %v2534_v21 = vrot.slane %v16273_v3, 4  ;;  %v16274_v55 = vld [vmem:[#allocation43_spill] sm:$0xff]  ;;  %v16276_v63 = vld [vmem:[#allocation44_spill] sm:$0xff]  ;;  %v16277_v23 = vld [vmem:[#allocation45_spill] sm:$0xff] }
  0xae   : > { %252 = vst.msk [vmem:[#allocation2 + $0x134] sm:$0xf] %vm173_vm0, %v16178_v11  ;;  %v2528_v34 = vsel %vm2469_vm11, %v2526_v42, %v2527_v26  ;;  %v2530_v9 = vsel %vm2469_vm11, %v2527_v26, %v2529_v4  ;;  %v2532_v31 = vsel %vm2469_vm11, %v2529_v4, %v2531_v17  ;;  %v2536_v37 = vrot.slane %v16274_v55, 4  ;;  %v16279_v4 = vld [vmem:[#allocation25_spill] sm:$0xff]  ;;  %v16280_v55 = vld [vmem:[#allocation16_spill] sm:$0xff] }
  0xaf   : > { %253 = vst.msk [vmem:[#allocation2 + $0x138] sm:$0xf] %vm173_vm0, %v16178_v11  ;;  %v2535_v54 = vsel %vm2469_vm11, %v2533_v18, %v2534_v21  ;;  %v2540_v42 = vrot.slane %v16276_v63, 4  ;;  %v2541_v3 = vrot.slane %v16277_v23, 4  ;;  %v2545_v0 = vrot.slane %v16279_v4, 4  ;;  %v16286_v4 = vld [vmem:[#allocation37_spill] sm:$0xff] }
  0xb0   : > { %254 = vst.msk [vmem:[#allocation2 + $0x13c] sm:$0x3] %vm177_vm1, %v16178_v11  ;;  %v2537_v17 = vsel %vm2469_vm11, %v2534_v21, %v2536_v37  ;;  %v2539_v26 = vsel %vm2469_vm11, %v2536_v37, %v2538_v52  ;;  %v16282_v40 = vmax.f32 %v16280_v55, %v16281_v13  ;;  %v16283_v21 = vld [vmem:[#allocation33_spill] sm:$0xff]  ;;  %v16285_v37 = vld [vmem:[#allocation18_spill] sm:$0xff] }
  0xb1   : > { %255 = vst.msk [vmem:[#allocation2 + $0x140] sm:$0xf] %vm173_vm0, %v16178_v11  ;;  %v2542_v24 = vsel %vm2469_vm11, %v2540_v42, %v2541_v3  ;;  %v2544_v63 = vsel %vm2469_vm11, %v2541_v3, %v2543_v38  ;;  %v16284_v23 = vmax.f32 %v16241_v32, %v16283_v21  ;;  %v16287_v22 = vmax.f32 %v16285_v37, %v16286_v4  ;;  %v16290_v32 = vld [vmem:[#allocation20_spill] sm:$0xff] }
  0xb2   : > { %256 = vst.msk [vmem:[#allocation2 + $0x144] sm:$0xf] %vm173_vm0, %v16178_v11  ;;  %v11226_v18 = vmax.f32 %v16282_v40, %v11134_v36  ;;  %v2546_v40 = vsel %vm2469_vm11, %v2543_v38, %v2545_v0  ;;  %v16288_v36 = vmax.f32 %v16246_v47, %v10935_v5  ;;  %v16297_v38 = vmax.f32 %v16249_v35, %v10947_v8 }
  0xb3   : > { %257 = vst.msk [vmem:[#allocation2 + $0x148] sm:$0xf] %vm173_vm0, %v16178_v11  ;;  %v11236_v52 = vmax.f32 %v16284_v23, %v11137_v33  ;;  %v11242_v13 = vmax.f32 %v16287_v22, %v11140_v45  ;;  %v16291_v33 = vld [vmem:[#allocation8_spill] sm:$0xff]  ;;  %v16294_v22 = vld [vmem:[#allocation9_spill] sm:$0xff]  ;;  %v16299_v47 = vmax.f32 %v16250_v44, %v10950_v16  ;;  %v16305_v35 = vmax.f32 %v16253_v49, %v10973_v60  ;;  %v16328_v23 = vld [vmem:[#allocation62_spill] sm:$0xff] }
  0xb4   : > { %258 = vst.msk [vmem:[#allocation2 + $0x14c] sm:$0x3] %vm177_vm1, %v16178_v11  ;;  %v11251_v42 = vmax.f32 %v16288_v36, %v11146_v56  ;;  %v16292_v3 = vmax.f32 %v16290_v32, %v16291_v33  ;;  %v16295_v45 = vmax.f32 %v16248_v62, %v16294_v22  ;;  %v11271_v5 = vmax.f32 %v16297_v38, %v11158_v1  ;;  %v16331_v36 = vld [vmem:[#allocation63_spill] sm:$0xff]  ;;  %v16339_v38 = vld [vmem:[#allocation65_spill] sm:$0xff] }
  0xb5   : > { %259 = vst.msk [vmem:[#allocation2 + $0x150] sm:$0xf] %vm173_vm0, %v16178_v11  ;;  %v11276_v56 = vmax.f32 %v16299_v47, %v2502_v58  ;;  %v11293_v8 = vmax.f32 %v16305_v35, %v2509_v20  ;;  %v16307_v16 = vmax.f32 %v16254_v41, %v10976_v43  ;;  %v16311_v49 = vmax.f32 %v10870_v59, %v10988_v15  ;;  %v16312_v43 = vld [vmem:[#allocation10_spill] sm:$0xff]  ;;  %v16321_v59 = vld [vmem:[#allocation49_spill] sm:$0xff]  ;;  %v16322_v15 = vld [vmem:[#allocation60_spill] sm:$0xff] }
  0xb6   : > { %260 = vst.msk [vmem:[#allocation2 + $0x154] sm:$0xf] %vm173_vm0, %v16178_v11  ;;  %v11257_v55 = vmax.f32 %v16292_v3, %v11149_v57  ;;  %v11263_v21 = vmax.f32 %v16295_v45, %v11152_v27  ;;  %v16301_v57 = vmax.f32 %v16251_v19, %v10953_v14  ;;  %v16303_v27 = vmax.f32 %v16252_v28, %v10965_v25  ;;  %v16335_v3 = vld [vmem:[#allocation64_spill] sm:$0xff] }
  0xb7   : > { %261 = vst.msk [vmem:[#allocation2 + $0x158] sm:$0xf] %vm173_vm0, %v16178_v11  ;;  %v11298_v44 = vmax.f32 %v16307_v16, %v2511_v46  ;;  %v16309_v14 = vmax.f32 %v10853_v30, %v10979_v51  ;;  %v16310_v28 = vmax.f32 %v10858_v39, %v10985_v2  ;;  %v11315_v60 = vmax.f32 %v16311_v49, %v2518_v53  ;;  %v16314_v30 = vld [vmem:[#allocation47_spill] sm:$0xff]  ;;  %v16315_v51 = vld [vmem:[#allocation58_spill] sm:$0xff]  ;;  %v16317_v39 = vld [vmem:[#allocation48_spill] sm:$0xff] }
  0xb8   : > { %262 = vst.msk [vmem:[#allocation2 + $0x15c] sm:$0x3] %vm177_vm1, %v16178_v11  ;;  %v11281_v62 = vmax.f32 %v16301_v57, %v2504_v29  ;;  %v11286_v0 = vmax.f32 %v16303_v27, %v2507_v10  ;;  %v16313_v41 = vmax.f32 %v10877_v50, %v16312_v43  ;;  %v16316_v58 = vmax.f32 %v16314_v30, %v16315_v51  ;;  %v16318_v2 = vld [vmem:[#allocation59_spill] sm:$0xff]  ;;  %v16324_v50 = vld [vmem:[#allocation50_spill] sm:$0xff] }
  0xb9   : > { %263 = vst.msk [vmem:[#allocation2 + $0x160] sm:$0xf] %vm173_vm0, %v16178_v11  ;;  %v11303_v19 = vmax.f32 %v16309_v14, %v2514_v6  ;;  %v11308_v25 = vmax.f32 %v16310_v28, %v2516_v61  ;;  %v16319_v10 = vmax.f32 %v16317_v39, %v16318_v2  ;;  %v16323_v46 = vmax.f32 %v16321_v59, %v16322_v15  ;;  %v16325_v61 = vld [vmem:[#allocation61_spill] sm:$0xff]  ;;  %v16343_v27 = vld [vmem:[#allocation66_spill] sm:$0xff]  ;;  %v16351_v43 = vld [vmem:[#allocation67_spill] sm:$0xff] }
  0xba   : > { %264 = vst.msk [vmem:[#allocation2 + $0x164] sm:$0xf] %vm173_vm0, %v16178_v11  ;;  %v11320_v1 = vmax.f32 %v16313_v41, %v2521_v7  ;;  %v11325_v29 = vmax.f32 %v16316_v58, %v2523_v12  ;;  %v16326_v53 = vmax.f32 %v16324_v50, %v16325_v61  ;;  %v16327_v12 = vld [vmem:[#allocation51_spill] sm:$0xff]  ;;  %v16347_v14 = vld [vmem:[#allocation17_spill] sm:$0xff]  ;;  %v3001_v51 = vmax.f32 %v11242_v13, %v11263_v21 }
  0xbb   : > { %265 = vst.msk [vmem:[#allocation2 + $0x168] sm:$0xf] %vm173_vm0, %v16178_v11  ;;  %v11330_v20 = vmax.f32 %v16319_v10, %v2525_v48  ;;  %v11337_v6 = vmax.f32 %v16323_v46, %v2528_v34  ;;  %v16329_v37 = vmax.f32 %v16327_v12, %v16328_v23  ;;  %v16330_v48 = vld [vmem:[#allocation52_spill] sm:$0xff]  ;;  %v16334_v34 = vld [vmem:[#allocation53_spill] sm:$0xff]  ;;  %v3003_v58 = vmax.f32 %v11257_v55, %v11276_v56 }
  0xbc   : > { %266 = vst.msk [vmem:[#allocation2 + $0x16c] sm:$0x3] %vm177_vm1, %v16178_v11  ;;  %v11342_v7 = vmax.f32 %v16326_v53, %v2530_v9  ;;  %v16332_v32 = vmax.f32 %v16330_v48, %v16331_v36  ;;  %v16336_v22 = vmax.f32 %v16334_v34, %v16335_v3  ;;  %v16338_v9 = vld [vmem:[#allocation54_spill] sm:$0xff]  ;;  %v3005_v39 = vmax.f32 %v11271_v5, %v11286_v0 }
  0xbd   : > { %267 = vst.msk [vmem:[#allocation2 + $0x170] sm:$0xf] %vm173_vm0, %v16178_v11  ;;  %v11347_v4 = vmax.f32 %v16329_v37, %v2532_v31  ;;  %v16340_v47 = vmax.f32 %v16338_v9, %v16339_v38  ;;  %v16342_v31 = vld [vmem:[#allocation55_spill] sm:$0xff]  ;;  %v3006_v2 = vmax.f32 %v11276_v56, %v11293_v8  ;;  %v3007_v10 = vmax.f32 %v11281_v62, %v11298_v44 }
  0xbe   : > { %268 = vst.msk [vmem:[#allocation2 + $0x174] sm:$0xf] %vm173_vm0, %v16178_v11  ;;  %v11352_v33 = vmax.f32 %v16332_v32, %v2535_v54  ;;  %v11359_v45 = vmax.f32 %v16336_v22, %v2537_v17  ;;  %v16344_v35 = vmax.f32 %v16342_v31, %v16343_v27  ;;  %v16346_v54 = vld [vmem:[#allocation56_spill] sm:$0xff]  ;;  %v16350_v17 = vld [vmem:[#allocation57_spill] sm:$0xff]  ;;  %v3008_v59 = vmax.f32 %v11286_v0, %v11303_v19 }
  0xbf   : > { %269 = vst.msk [vmem:[#allocation2 + $0x178] sm:$0xf] %vm173_vm0, %v16178_v11  ;;  %v11364_v57 = vmax.f32 %v16340_v47, %v2539_v26  ;;  %v16348_v28 = vmax.f32 %v16346_v54, %v16347_v14  ;;  %v16352_v41 = vmax.f32 %v16350_v17, %v16351_v43  ;;  %v2999_v26 = vmax.f32 %v11226_v18, %v11251_v42 }
  0xc0   : > { %16289 = vst [vmem:[#allocation19_spill] sm:$0xff] %v11251_v42  ;;  %v11369_v16 = vmax.f32 %v16344_v35, %v2542_v24  ;;  %v3000_v24 = vmax.f32 %v11236_v52, %v11257_v55  ;;  %v3009_v15 = vmax.f32 %v11293_v8, %v11308_v25  ;;  %v3010_v46 = vmax.f32 %v11298_v44, %v11315_v60 }
  0xc1   : > { %16293 = vst [vmem:[#allocation21_spill] sm:$0xff] %v11257_v55  ;;  %v11374_v49 = vmax.f32 %v16348_v28, %v2544_v63  ;;  %v11381_v30 = vmax.f32 %v16352_v41, %v2546_v40  ;;  %v3002_v63 = vmax.f32 %v11251_v42, %v11271_v5  ;;  %v3004_v40 = vmax.f32 %v11263_v21, %v11281_v62 }
  0xc2   : > { %16296 = vst [vmem:[#allocation22_spill] sm:$0xff] %v11263_v21  ;;  %v3011_v50 = vmax.f32 %v11303_v19, %v11320_v1  ;;  %v3012_v61 = vmax.f32 %v11308_v25, %v11325_v29  ;;  %v3013_v53 = vmax.f32 %v11315_v60, %v11330_v20  ;;  %v3218_v12 = vmax.f32 %v2999_v26, %v11271_v5 }
  0xc3   : > { %270 = vst.msk [vmem:[#allocation2 + $0x17c] sm:$0x3] %vm177_vm1, %v16178_v11  ;;  %v3219_v23 = vmax.f32 %v3000_v24, %v11276_v56  ;;  %v3220_v37 = vmax.f32 %v3001_v51, %v11281_v62  ;;  %v3221_v48 = vmax.f32 %v3002_v63, %v11286_v0  ;;  %v3222_v36 = vmax.f32 %v3003_v58, %v11293_v8 }
  0xc4   : > { %16298 = vst [vmem:[#allocation23_spill] sm:$0xff] %v11271_v5  ;;  %v3223_v32 = vmax.f32 %v3004_v40, %v11298_v44  ;;  %v3224_v34 = vmax.f32 %v3005_v39, %v11303_v19  ;;  %v3225_v3 = vmax.f32 %v3006_v2, %v11308_v25  ;;  %v3226_v22 = vmax.f32 %v3007_v10, %v11315_v60 }
  0xc5   : > { %16300 = vst [vmem:[#allocation24_spill] sm:$0xff] %v11276_v56  ;;  %v3227_v9 = vmax.f32 %v3008_v59, %v11320_v1  ;;  %v3228_v38 = vmax.f32 %v3009_v15, %v11325_v29  ;;  %v3229_v47 = vmax.f32 %v3010_v46, %v11330_v20  ;;  %v3230_v31 = vmax.f32 %v3011_v50, %v11337_v6 }
  0xc6   : > { %16302 = vst [vmem:[#allocation26_spill] sm:$0xff] %v11281_v62  ;;  %v3231_v27 = vmax.f32 %v3012_v61, %v11342_v7  ;;  %v3232_v35 = vmax.f32 %v3013_v53, %v11347_v4  ;;  %v3437_v54 = vmax.f32 %v3218_v12, %v11286_v0  ;;  %v3438_v14 = vmax.f32 %v3219_v23, %v11293_v8 }
  0xc7   : > { %16304 = vst [vmem:[#allocation27_spill] sm:$0xff] %v11286_v0  ;;  %v3439_v28 = vmax.f32 %v3220_v37, %v11298_v44  ;;  %v3440_v17 = vmax.f32 %v3221_v48, %v11303_v19  ;;  %v3441_v43 = vmax.f32 %v3222_v36, %v11308_v25  ;;  %v3442_v41 = vmax.f32 %v3223_v32, %v11315_v60 }
  0xc8   : > { %271 = vst.msk [vmem:[#allocation2 + $0x180] sm:$0xf] %vm173_vm0, %v16178_v11  ;;  %v3443_v26 = vmax.f32 %v3224_v34, %v11320_v1  ;;  %v3444_v24 = vmax.f32 %v3225_v3, %v11325_v29  ;;  %v3445_v51 = vmax.f32 %v3226_v22, %v11330_v20  ;;  %v3446_v63 = vmax.f32 %v3227_v9, %v11337_v6 }
  0xc9   : > { %16306 = vst [vmem:[#allocation28_spill] sm:$0xff] %v11293_v8  ;;  %v3447_v58 = vmax.f32 %v3228_v38, %v11342_v7  ;;  %v3448_v40 = vmax.f32 %v3229_v47, %v11347_v4  ;;  %v3449_v39 = vmax.f32 %v3230_v31, %v11352_v33  ;;  %v3450_v2 = vmax.f32 %v3231_v27, %v11359_v45 }
  0xca   : > { %16308 = vst [vmem:[#allocation4_spill] sm:$0xff] %v11298_v44  ;;  %v3451_v10 = vmax.f32 %v3232_v35, %v11364_v57  ;;  %v11466_v59 = vmax.f32 %v3437_v54, %v11303_v19  ;;  %v11469_v15 = vmax.f32 %v3438_v14, %v11308_v25  ;;  %v11472_v46 = vmax.f32 %v3439_v28, %v11315_v60 }
  0xcb   : > { %272 = vst.msk [vmem:[#allocation2 + $0x184] sm:$0xf] %vm173_vm0, %v16178_v11  ;;  %v11475_v50 = vmax.f32 %v3440_v17, %v11320_v1  ;;  %v11478_v61 = vmax.f32 %v3441_v43, %v11325_v29  ;;  %v11484_v53 = vmax.f32 %v3443_v26, %v11337_v6  ;;  %v11487_v19 = vmax.f32 %v3444_v24, %v11342_v7 }
  0xcc   : > { %16320 = vst [vmem:[#allocation5_spill] sm:$0xff] %v11330_v20  ;;  %v11490_v25 = vmax.f32 %v3445_v51, %v11347_v4  ;;  %v11493_v60 = vmax.f32 %v3446_v63, %v11352_v33  ;;  %v11496_v12 = vmax.f32 %v3447_v58, %v11359_v45  ;;  %v11499_v23 = vmax.f32 %v3448_v40, %v11364_v57 }
  0xcd   : > { %273 = vst.msk [vmem:[#allocation2 + $0x188] sm:$0xf] %vm173_vm0, %v16178_v11  ;;  %v11502_v37 = vmax.f32 %v3449_v39, %v11369_v16  ;;  %v11505_v48 = vmax.f32 %v3450_v2, %v11374_v49  ;;  %v11508_v36 = vmax.f32 %v3451_v10, %v11381_v30  ;;  %v4494_v32 = vrot.slane %v11466_v59, 1 }
  0xce   : > { %16333 = vst [vmem:[#allocation6_spill] sm:$0xff] %v11352_v33  ;;  %v4495_v34 = vrot.slane %v11469_v15, 1  ;;  %v4497_v3 = vrot.slane %v11472_v46, 1  ;;  %v4499_v22 = vrot.slane %v11475_v50, 1  ;;  %v4500_v9 = vrot.slane %v11478_v61, 1 }
  0xcf   : > { %274 = vst.msk [vmem:[#allocation2 + $0x18c] sm:$0x3] %vm177_vm1, %v16178_v11  ;;  %v4504_v31 = vrot.slane %v11484_v53, 1  ;;  %v4505_v27 = vrot.slane %v11487_v19, 1  ;;  %v4507_v35 = vrot.slane %v11490_v25, 1  ;;  %v4509_v17 = vrot.slane %v11493_v60, 1 }
  0xd0   : > { %16337 = vst [vmem:[#allocation7_spill] sm:$0xff] %v11359_v45  ;;  %v4496_v47 = vsel %vm870_vm6, %v4494_v32, %v4495_v34  ;;  %v4498_v54 = vsel %vm870_vm6, %v4495_v34, %v4497_v3  ;;  %v4501_v14 = vsel %vm870_vm6, %v4499_v22, %v4500_v9  ;;  %v4510_v26 = vrot.slane %v11496_v12, 1 }
  0xd1   : > { %16341 = vst [vmem:[#allocation11_spill] sm:$0xff] %v11364_v57  ;;  %v4506_v43 = vsel %vm870_vm6, %v4504_v31, %v4505_v27  ;;  %v4512_v24 = vrot.slane %v11499_v23, 1  ;;  %v4514_v51 = vrot.slane %v11502_v37, 1  ;;  %v4515_v63 = vrot.slane %v11505_v48, 1 }
  0xd2   : > { %16345 = vst [vmem:[#allocation29_spill] sm:$0xff] %v11369_v16  ;;  %v4517_v58 = vrot.slane %v11508_v36, 1  ;;  %v4682_v40 = vmax.f32 %v11466_v59, %v4496_v47  ;;  %v4511_v39 = vsel %vm870_vm6, %v4509_v17, %v4510_v26  ;;  %v4683_v10 = vmax.f32 %v11469_v15, %v4498_v54 }
  0xd3   : > { %16349 = vst [vmem:[#allocation30_spill] sm:$0xff] %v11374_v49  ;;  %v4513_v2 = vsel %vm870_vm6, %v4510_v26, %v4512_v24  ;;  %v4684_v32 = vmax.f32 %v11472_v46, %v4497_v3  ;;  %v4516_v34 = vsel %vm870_vm6, %v4514_v51, %v4515_v63  ;;  %v4688_v47 = vmax.f32 %v11484_v53, %v4506_v43 }
  0xd4   : > { %275 = vst.msk [vmem:[#allocation2 + $0x190] sm:$0xf] %vm173_vm0, %v16178_v11  ;;  %v4518_v22 = vsel %vm870_vm6, %v4515_v63, %v4517_v58  ;;  %v4690_v26 = vmax.f32 %v11490_v25, %v4507_v35  ;;  %v4691_v54 = vmax.f32 %v11493_v60, %v4511_v39  ;;  %v4692_v3 = vmax.f32 %v11496_v12, %v4513_v2 }
  0xd5   : > { %16353 = vst [vmem:[#allocation31_spill] sm:$0xff] %v11381_v30  ;;  %v4693_v51 = vmax.f32 %v11499_v23, %v4512_v24  ;;  %v4694_v63 = vmax.f32 %v11502_v37, %v4516_v34  ;;  %v4903_v43 = vrot.slane %v11469_v15, 2  ;;  %v4908_v39 = vrot.slane %v11478_v61, 2 }
  0xd6   : > { %276 = vst.msk [vmem:[#allocation2 + $0x194] sm:$0xf] %vm173_vm0, %v16178_v11  ;;  %v4912_v34 = vrot.slane %v11484_v53, 2  ;;  %v4917_v62 = vrot.slane %v11493_v60, 2  ;;  %v4920_v30 = vrot.slane %v11499_v23, 2  ;;  %v4922_v49 = vrot.slane %v11502_v37, 2 }
  0xd7   : > { %277 = vst.msk [vmem:[#allocation2 + $0x198] sm:$0xf] %vm173_vm0, %v16178_v11  ;;  %v4923_v16 = vrot.slane %v11505_v48, 2 }
  0xd8   : > { %278 = vst.msk [vmem:[#allocation2 + $0x19c] sm:$0x3] %vm177_vm1, %v16178_v11 }
  0xd9   : > { %279 = vst.msk [vmem:[#allocation2 + $0x1a0] sm:$0xf] %vm173_vm0, %v16178_v11 }
  0xda   : > { %280 = vst.msk [vmem:[#allocation2 + $0x1a4] sm:$0xf] %vm173_vm0, %v16178_v11 }
  0xdb   : > { %281 = vst.msk [vmem:[#allocation2 + $0x1a8] sm:$0xf] %vm173_vm0, %v16178_v11 }
  0xdc   : > { %282 = vst.msk [vmem:[#allocation2 + $0x1ac] sm:$0x3] %vm177_vm1, %v16178_v11 }
  0xdd   : > { %283 = vst.msk [vmem:[#allocation2 + $0x1b0] sm:$0xf] %vm173_vm0, %v16178_v11 }
  0xde   : > { %284 = vst.msk [vmem:[#allocation2 + $0x1b4] sm:$0xf] %vm173_vm0, %v16178_v11 }
  0xdf   : > { %285 = vst.msk [vmem:[#allocation2 + $0x1b8] sm:$0xf] %vm173_vm0, %v16178_v11 }
  0xe0   : > { %286 = vst.msk [vmem:[#allocation2 + $0x1bc] sm:$0x3] %vm177_vm1, %v16178_v11  ;;  %v11481_v11 = vmax.f32 %v3442_v41, %v11330_v20  ;;  %v4508_v41 = vsel %vm870_vm6, %v4505_v27, %v4507_v35  ;;  %v4907_v35 = vrot.slane %v11475_v50, 2 }
  0xe1   : > { %16354 = vst [vmem:[#allocation12_spill] sm:$0xff] %v11493_v60  ;;  %v4689_v17 = vmax.f32 %v11487_v19, %v4508_v41  ;;  %v4905_v41 = vrot.slane %v11472_v46, 2 }
  0xe2   : > { %16355 = vst [vmem:[#allocation34_spill] sm:$0xff] %v11496_v12  ;;  %v4502_v38 = vrot.slane %v11481_v11, 1  ;;  %v4910_v2 = vrot.slane %v11481_v11, 2  ;;  %v4909_v8 = vsel %vm1403_vm9, %v4907_v35, %v4908_v39 }
  0xe3   : > { %16356 = vst [vmem:[#allocation35_spill] sm:$0xff] %v11499_v23  ;;  %v4906_v44 = vsel %vm1403_vm9, %v4903_v43, %v4905_v41 }
  0xe4   : > { %16357 = vst [vmem:[#allocation36_spill] sm:$0xff] %v11502_v37  ;;  %v4503_v28 = vsel %vm870_vm6, %v4500_v9, %v4502_v38  ;;  %v4685_v9 = vmax.f32 %v11475_v50, %v4501_v14  ;;  %v4687_v27 = vmax.f32 %v11481_v11, %v4502_v38  ;;  %v4695_v14 = vmax.f32 %v11505_v48, %v4518_v22 }
  0xe5   : > { %16358 = vst [vmem:[#allocation13_spill] sm:$0xff] %v11505_v48  ;;  %v4686_v31 = vmax.f32 %v11478_v61, %v4503_v28  ;;  %v4696_v28 = vmax.f32 %v11508_v36, %v4517_v58  ;;  %v4902_v38 = vrot.slane %v11466_v59, 2  ;;  %v4913_v22 = vrot.slane %v11487_v19, 2 }
  0xe6   : > { %16359 = vst [vmem:[#allocation38_spill] sm:$0xff] %v11508_v36  ;;  %v4915_v58 = vrot.slane %v11490_v25, 2  ;;  %v4911_v0 = vsel %vm1403_vm9, %v4908_v39, %v4910_v2  ;;  %v11575_v55 = vmax.f32 %v4683_v10, %v4906_v44  ;;  %v11579_v57 = vmax.f32 %v4685_v9, %v4909_v8 }
  0xe7   : > { %v4904_v24 = vsel %vm1403_vm9, %v4902_v38, %v4903_v43  ;;  %v4914_v56 = vsel %vm1403_vm9, %v4912_v34, %v4913_v22  ;;  %v4918_v38 = vrot.slane %v11496_v12, 2  ;;  %v4925_v43 = vrot.slane %v11508_v36, 2 }
  0xe8   : > { %v4916_v5 = vsel %vm1403_vm9, %v4913_v22, %v4915_v58  ;;  %v11571_v21 = vmax.f32 %v4682_v40, %v4904_v24  ;;  %v5092_v34 = vmax.f32 %v4684_v32, %v4905_v41  ;;  %v4924_v22 = vsel %vm1403_vm9, %v4922_v49, %v4923_v16 }
  0xe9   : > { %v4919_v35 = vsel %vm1403_vm9, %v4917_v62, %v4918_v38  ;;  %v4921_v39 = vsel %vm1403_vm9, %v4918_v38, %v4920_v30  ;;  %v4926_v42 = vsel %vm1403_vm9, %v4923_v16, %v4925_v43  ;;  %v11581_v45 = vmax.f32 %v4686_v31, %v4911_v0 }
  0xea   : > { %v5095_v33 = vmax.f32 %v4687_v27, %v4910_v2  ;;  %v11583_v20 = vmax.f32 %v4688_v47, %v4914_v56  ;;  %v11585_v40 = vmax.f32 %v4689_v17, %v4916_v5  ;;  %v5098_v24 = vmax.f32 %v4690_v26, %v4915_v58 }
  0xeb   : > { %v11587_v62 = vmax.f32 %v4691_v54, %v4919_v35  ;;  %v11589_v38 = vmax.f32 %v4692_v3, %v4921_v39  ;;  %v5101_v44 = vmax.f32 %v4693_v51, %v4920_v30  ;;  %v11591_v10 = vmax.f32 %v4694_v63, %v4924_v22 }
  0xec   : > { %v11593_v49 = vmax.f32 %v4695_v14, %v4926_v42  ;;  %v5104_v16 = vmax.f32 %v4696_v28, %v4925_v43  ;;  %v5310_v8 = vrot.slane %v11466_v59, 3  ;;  %v5311_v0 = vrot.slane %v11469_v15, 3 }
  0xed   : > { %v5313_v56 = vrot.slane %v11472_v46, 3  ;;  %v5315_v5 = vrot.slane %v11475_v50, 3  ;;  %v5316_v32 = vrot.slane %v11478_v61, 3  ;;  %v5318_v9 = vrot.slane %v11481_v11, 3 }
  0xee   : > { %v5312_v31 = vsel %vm1936_vm10, %v5310_v8, %v5311_v0  ;;  %v5320_v30 = vrot.slane %v11484_v53, 3  ;;  %v5321_v42 = vrot.slane %v11487_v19, 3  ;;  %v5323_v27 = vrot.slane %v11490_v25, 3 }
  0xef   : > { %v5314_v47 = vsel %vm1936_vm10, %v5311_v0, %v5313_v56  ;;  %v5317_v17 = vsel %vm1936_vm10, %v5315_v5, %v5316_v32  ;;  %v5319_v26 = vsel %vm1936_vm10, %v5316_v32, %v5318_v9  ;;  %v5325_v54 = vrot.slane %v11493_v60, 3 }
  0xf0   : > { %v5322_v3 = vsel %vm1936_vm10, %v5320_v30, %v5321_v42  ;;  %v5324_v51 = vsel %vm1936_vm10, %v5321_v42, %v5323_v27  ;;  %v5326_v63 = vrot.slane %v11496_v12, 3  ;;  %v5328_v14 = vrot.slane %v11499_v23, 3 }
  0xf1   : > { %v5330_v28 = vrot.slane %v11502_v37, 3  ;;  %v5331_v41 = vrot.slane %v11505_v48, 3  ;;  %v5333_v2 = vrot.slane %v11508_v36, 3  ;;  %v5498_v58 = vmax.f32 %v11571_v21, %v5312_v31 }
  0xf2   : > { %v5327_v43 = vsel %vm1936_vm10, %v5325_v54, %v5326_v63  ;;  %v5329_v35 = vsel %vm1936_vm10, %v5326_v63, %v5328_v14  ;;  %v5499_v39 = vmax.f32 %v11575_v55, %v5314_v47  ;;  %v5500_v22 = vmax.f32 %v5092_v34, %v5313_v56 }
  0xf3   : > { %v5332_v8 = vsel %vm1936_vm10, %v5330_v28, %v5331_v41  ;;  %v5334_v0 = vsel %vm1936_vm10, %v5331_v41, %v5333_v2  ;;  %v5501_v5 = vmax.f32 %v11579_v57, %v5317_v17  ;;  %v5502_v32 = vmax.f32 %v11581_v45, %v5319_v26 }
  0xf4   : > { %v5503_v30 = vmax.f32 %v5095_v33, %v5318_v9  ;;  %v5504_v42 = vmax.f32 %v11583_v20, %v5322_v3  ;;  %v5505_v21 = vmax.f32 %v11585_v40, %v5324_v51  ;;  %v5506_v31 = vmax.f32 %v5098_v24, %v5323_v27 }
  0xf5   : > { %v5507_v54 = vmax.f32 %v11587_v62, %v5327_v43  ;;  %v5508_v63 = vmax.f32 %v11589_v38, %v5329_v35  ;;  %v5509_v55 = vmax.f32 %v5101_v44, %v5328_v14  ;;  %v5510_v34 = vmax.f32 %v11591_v10, %v5332_v8 }
  0xf6   : > { %v5511_v56 = vmax.f32 %v11593_v49, %v5334_v0  ;;  %v5512_v47 = vmax.f32 %v5104_v16, %v5333_v2  ;;  %v5718_v57 = vrot.slane %v11466_v59, 4  ;;  %v5719_v45 = vrot.slane %v11469_v15, 4 }
  0xf7   : > { %v5721_v33 = vrot.slane %v11472_v46, 4  ;;  %v5723_v20 = vrot.slane %v11475_v50, 4  ;;  %v5724_v40 = vrot.slane %v11478_v61, 4  ;;  %v5726_v24 = vrot.slane %v11481_v11, 4 }
  0xf8   : > { %v5720_v62 = vsel %vm2469_vm11, %v5718_v57, %v5719_v45  ;;  %v5728_v38 = vrot.slane %v11484_v53, 4  ;;  %v5729_v44 = vrot.slane %v11487_v19, 4  ;;  %v5731_v10 = vrot.slane %v11490_v25, 4 }
  0xf9   : > { %v5722_v59 = vsel %vm2469_vm11, %v5719_v45, %v5721_v33  ;;  %v5725_v15 = vsel %vm2469_vm11, %v5723_v20, %v5724_v40  ;;  %v5727_v46 = vsel %vm2469_vm11, %v5724_v40, %v5726_v24  ;;  %v5733_v50 = vrot.slane %v11493_v60, 4 }
  0xfa   : > { %v5730_v61 = vsel %vm2469_vm11, %v5728_v38, %v5729_v44  ;;  %v5732_v11 = vsel %vm2469_vm11, %v5729_v44, %v5731_v10  ;;  %v5734_v49 = vrot.slane %v11496_v12, 4  ;;  %v5736_v16 = vrot.slane %v11499_v23, 4 }
  0xfb   : > { %v5738_v9 = vrot.slane %v11502_v37, 4  ;;  %v5739_v27 = vrot.slane %v11505_v48, 4  ;;  %v5741_v17 = vrot.slane %v11508_v36, 4  ;;  %v11651_v26 = vmax.f32 %v5498_v58, %v5720_v62  ;;  %v8673_v62 = vld [vmem:[%s15817_s1] sm:$0x8] }
  0xfc   : > { %v5735_v3 = vsel %vm2469_vm11, %v5733_v50, %v5734_v49  ;;  %v5737_v51 = vsel %vm2469_vm11, %v5734_v49, %v5736_v16  ;;  %v11655_v14 = vmax.f32 %v5499_v39, %v5722_v59  ;;  %v11657_v28 = vmax.f32 %v5500_v22, %v5721_v33  ;;  %v3957_v39 = vld [vmem:[%s15817_s1] sm:$0x2]  ;;  %v533_v22 = vld [vmem:[%s15817_s1] sm:$0x1] }
  0xfd   : > { %v5740_v41 = vsel %vm2469_vm11, %v5738_v9, %v5739_v27  ;;  %v5742_v2 = vsel %vm2469_vm11, %v5739_v27, %v5741_v17  ;;  %v11661_v43 = vmax.f32 %v5501_v5, %v5725_v15  ;;  %v11663_v35 = vmax.f32 %v5502_v32, %v5727_v46 }
  0xfe   : > { %v11665_v8 = vmax.f32 %v5503_v30, %v5726_v24  ;;  %v11667_v58 = vmax.f32 %v5504_v42, %v5730_v61  ;;  %v11669_v0 = vmax.f32 %v5505_v21, %v5732_v11  ;;  %v11671_v57 = vmax.f32 %v5506_v31, %v5731_v10  ;;  %v297_v11 = vld [vmem:[%s10247_s19 + $0x28] sm:$0xf] }
  0xff   : > { %16360 = vst [vmem:[#allocation39_spill] sm:$0xff] %v11661_v43  ;;  %v11679_v5 = vmax.f32 %v5507_v54, %v5735_v3  ;;  %v11681_v32 = vmax.f32 %v5508_v63, %v5737_v51  ;;  %v11683_v30 = vmax.f32 %v5509_v55, %v5736_v16  ;;  %v11685_v42 = vmax.f32 %v5510_v34, %v5740_v41  ;;  %v9899_v34 = vld [vmem:[%s10247_s19] sm:$0xff] }
 0x100   : > { %16361 = vst [vmem:[#allocation40_spill] sm:$0xff] %v11663_v35  ;;  %v11687_v21 = vmax.f32 %v5511_v56, %v5742_v2  ;;  %v11689_v31 = vmax.f32 %v5512_v47, %v5741_v17  ;;  %v6113_v45 = vmax.f32 %v11651_v26, %v11661_v43  ;;  %v6114_v33 = vmax.f32 %v11655_v14, %v11663_v35  ;;  %v298_v17 = vld [vmem:[%s10247_s19 + $0x2c] sm:$0xf] }
 0x101   : > { %16362 = vst [vmem:[#allocation14_spill] sm:$0xff] %v11665_v8  ;;  %v6115_v54 = vmax.f32 %v11657_v28, %v11665_v8  ;;  %v4007_v20 = vunpack.c.l.b16 %v3957_v39  ;;  %v4249_v63 = vsel %vm4059_vm2, %v533_v22, 0  ;;  %v3734_v55 = vpack.c.bf16 %v11484_v53, %v11484_v53  ;;  %v299_v39 = vld [vmem:[%s10247_s19 + $0x30] sm:$0xf] }
 0x102   : > { %16363 = vst [vmem:[#allocation41_spill] sm:$0xff] %v11669_v0  ;;  %v6296_v56 = vmax.f32 %v6113_v45, %v11667_v58  ;;  %v6297_v47 = vmax.f32 %v6114_v33, %v11669_v0  ;;  %4258 = vmatpush.bf16.msra.mxu1 %v4249_v63  ;;  %v3735_v40 = vpack.c.bf16 %v11487_v19, %v11487_v19  ;;  %v16371_v19 = vmov 0 }
 0x103   : > { %16364 = vst [vmem:[#allocation42_spill] sm:$0xff] %v11671_v57  ;;  %v3736_v24 = vpack.c.bf16 %v11490_v25, %v11490_v25  ;;  %v6298_v38 = vmax.f32 %v6115_v54, %v11671_v57  ;;  %v4008_v53 = vpack.c.b16 %v4007_v20, %v4007_v20  ;;  %v16372_v19 = vsel %vm11713_vm15, 4294967295, %v16371_v19  ;;  %v300_v54 = vld [vmem:[%s10247_s19 + $0x34] sm:$0xf] }
 0x104   : > { %16365 = vst [vmem:[#allocation43_spill] sm:$0xff] %v11679_v5  ;;  %v6479_v44 = vmax.f32 %v6296_v56, %v11679_v5  ;;  %v6480_v10 = vmax.f32 %v6297_v47, %v11681_v32  ;;  %v9703_v25 = vrot.slane %v3734_v55, 10  ;;  %v3847_v59 = vrot.slane %v3735_v40, 6  ;;  %v9916_v47 = vld [vmem:[#allocation2] sm:$0xff]   ;;  %v536_v40 = vld [vmem:[#allocation2 + $0x8] sm:$0xf] }
 0x105   : > { %16366 = vst [vmem:[#allocation15_spill] sm:$0xff] %v11681_v32  ;;  %v6481_v15 = vmax.f32 %v6298_v38, %v11683_v30  ;;  %v4009_v46 = vrot.slane %v4008_v53, 1  ;;  %v3850_v50 = vrot.slane %v3736_v24, 6  ;;  %9799 = vmatmul.msk.bf16.vlgmr.msra.gmra.mxu1 %vm4010_vm12, %v9899_v34  ;;  %v8755_v61 = vunpack.c.l.b16 %v8673_v62 }
 0x106   : > { %16367 = vst [vmem:[#allocation44_spill] sm:$0xff] %v11683_v30  ;;  %v11721_v49 = vmax.f32 %v6479_v44, %v11685_v42  ;;  %v11724_v16 = vmax.f32 %v6480_v10, %v11687_v21  ;;  %v3848_v9 = vsel %vm11713_vm15, %v9703_v25, %v3847_v59  ;;  %v3849_v27 = vrot.slane %v3847_v59, 4  ;;  %v540_v44 = vld [vmem:[#allocation2 + $0x18] sm:$0xf] }
 0x107   : > { %16368 = vst [vmem:[#allocation45_spill] sm:$0xff] %v11685_v42  ;;  %v11730_v3 = vmax.f32 %v6481_v15, %v11689_v31  ;;  %v4061_v51 = vsel %vm4059_vm2, %v4009_v46, 0  ;;  %v3958_v41 = vunpack.c.l.b16 %v3848_v9  ;;  %v8756_v2 = vpack.c.b16 %v8755_v61, %v8755_v61  ;;  %v537_v46 = vld [vmem:[#allocation2 + $0xc] sm:$0x3]  ;;  %v541_v61 = vld [vmem:[#allocation2 + $0x1c] sm:$0x3] }
 0x108   : > { %16369 = vst [vmem:[#allocation46_spill] sm:$0xff] %v11687_v21  ;;  %v6722_v22 = vpack.c.bf16 %v11721_v49, %v11721_v49  ;;  %v6723_v45 = vpack.c.bf16 %v11724_v16, %v11724_v16  ;;  %4070 = vmatpush.bf16.msra.mxu0 %v4061_v51  ;;  %v3851_v33 = vsel %vm11713_vm15, %v3849_v27, %v3850_v50  ;;  %v379_v20 = vrot.slane %v297_v11, 5  ;;  %v10027_v50 = vld [vmem:[#allocation2 + $0x10] sm:$0xff]  }
 0x109   : > { %16370 = vst [vmem:[#allocation25_spill] sm:$0xff] %v11689_v31  ;;  %v6724_v63 = vpack.c.bf16 %v11730_v3, %v11730_v3  ;;  %v3959_v55 = vunpack.c.l.b16 %v3851_v33  ;;  %v8757_v34 = vrot.slane %v8756_v2, 3  ;;  %v381_v56 = vrot.slane %v298_v17, 5  ;;  %v581_v2 = vld [vmem:[#allocation2 + $0xbc] sm:$0x3] }
 0x10a   : > { %16373 = vst [vmem:[#allocation16_spill] sm:$0xff] %v16372_v19  ;;  %v9815_v24 = vrot.slane %v6722_v22, 9  ;;  %v6826_v62 = vrot.slane %v6723_v45, 5  ;;  %v380_v38 = vrot.slane %v379_v20, 4  ;;  %v384_v53 = vrot.slane %v299_v39, 5 }
 0x10b   : > { %16374 = vst [vmem:[#allocation32_spill] sm:$0xff] %v11721_v49  ;;  %v6829_v10 = vrot.slane %v6724_v63, 5  ;;  %v3990_v25 = vpack.c.b16 %v3959_v55, %v3958_v41  ;;  %v8807_v59 = vsel %vm4059_vm2, %v8757_v34, 0  ;;  %v383_v15 = vrot.slane %v381_v56, 4  ;;  %v585_v33 = vld [vmem:[#allocation2 + $0xcc] sm:$0x3] }
 0x10c   : > { %16375 = vst [vmem:[#allocation33_spill] sm:$0xff] %v11724_v16  ;;  %v6827_v9 = vsel %vm10295_vm5, %v9815_v24, %v6826_v62  ;;  %v6828_v27 = vrot.slane %v6826_v62, 4  ;;  %8816 = vmatpush.bf16.msra.mxu3 %v8807_v59  ;;  %v382_v17 = vsel %vm10295_vm5, %v380_v38, %v381_v56  ;;  %v385_v51 = vrot.slane %v384_v53, 4 }
 0x10d   : > { %16376 = vst [vmem:[#allocation18_spill] sm:$0xff] %v11730_v3  ;;  %v6937_v39 = vunpack.c.l.b16 %v6827_v9  ;;  %9719 = vmatmul.msk.bf16.vlgmr.msra.gmra.mxu0 %vm4010_vm12, %v3990_v25  ;;  %v386_v41 = vrot.slane %v300_v54, 5  ;;  %v11752_v22 = vunpack.c.l.bf16 %v9916_v47  ;;  %v11754_v45 = vunpack.c.h.bf16 %v9916_v47 }
 0x10e   : > { %500 = vst.msk [vmem:[#allocation2 + $0xb0] sm:$0x8] %vm483_vm7, %v379_v20  ;;  %v6830_v20 = vsel %vm10295_vm5, %v6828_v27, %v6829_v10  ;;  %v11759_v63 = vunpack.c.l.bf16 %v10027_v50  ;;  %v11761_v55 = vunpack.c.h.bf16 %v10027_v50  ;;  %v11763_v34 = vunpack.c.l.bf16 %v536_v40 }
 0x10f   : > { %503 = vst.msk [vmem:[#allocation2 + $0xc0] sm:$0x8] %vm483_vm7, %v384_v53  ;;  %v6938_v56 = vunpack.c.l.b16 %v6830_v20  ;;  %v387_v54 = vsel %vm10295_vm5, %v385_v51, %v386_v41  ;;  %v388_v24 = vrot.slane %v386_v41, 4  ;;  %v11767_v62 = vunpack.c.l.bf16 %v540_v44 }
 0x110   : > { %501 = vst.msk [vmem:[#allocation2 + $0xb4] sm:$0xf] %vm173_vm0, %v382_v17  ;;  %v11770_v47 = vunpack.c.l.bf16 %v537_v46  ;;  %v11772_v38 = vunpack.c.l.bf16 %v541_v61  ;;  %v11774_v53 = vunpack.c.l.bf16 %v581_v2  ;;  %v11776_v10 = vunpack.c.l.bf16 %v585_v33 }
 0x111   : > { %502 = vst.msk [vmem:[#allocation2 + $0xb8] sm:$0x7] %vm486_vm8, %v383_v15  ;;  %v6969_v25 = vpack.c.b16 %v6938_v56, %v6937_v39  ;;  %v871_v40 = vrot.slane %v11752_v22, 1  ;;  %v872_v59 = vrot.slane %v11754_v45, 1  ;;  %v874_v44 = vrot.slane %v11763_v34, 1 }
 0x112   : > { %504 = vst.msk [vmem:[#allocation2 + $0xc4] sm:$0xf] %vm173_vm0, %v387_v54  ;;  %v876_v15 = vrot.slane %v11770_v47, 1  ;;  %v878_v46 = vrot.slane %v11759_v63, 1  ;;  %v879_v50 = vrot.slane %v11761_v55, 1  ;;  %v881_v61 = vrot.slane %v11767_v62, 1 }
 0x113   : > { %505 = vst.msk [vmem:[#allocation2 + $0xc8] sm:$0x7] %vm486_vm8, %v388_v24  ;;  %9831 = vmatmul.msk.bf16.vlgmr.msra.gmra.mxu2 %vm4010_vm12, %v6969_v25  ;;  %v11788_v9 = vsel %vm870_vm6, %v871_v40, %v872_v59  ;;  %v11791_v27 = vsel %vm870_vm6, %v872_v59, %v874_v44  ;;  %v883_v17 = vrot.slane %v11772_v38, 1  ;;  %v953_v51 = vrot.slane %v11774_v53, 1 }
 0x114   : > { %v11796_v39 = vsel %vm870_vm6, %v874_v44, %v876_v15  ;;  %v11799_v41 = vsel %vm870_vm6, %v878_v46, %v879_v50  ;;  %v11802_v33 = vsel %vm870_vm6, %v879_v50, %v881_v61  ;;  %v960_v20 = vrot.slane %v11776_v10, 1 }
 0x115   : > { %v11810_v25 = vsel %vm870_vm6, %v881_v61, %v883_v17  ;;  %v1151_v40 = vmax.f32 %v11752_v22, %v11788_v9  ;;  %v1152_v44 = vmax.f32 %v11754_v45, %v11791_v27  ;;  %v1153_v15 = vmax.f32 %v11763_v34, %v11796_v39 }
 0x116   : > { %v1154_v46 = vmax.f32 %v11759_v63, %v11799_v41  ;;  %v1155_v17 = vmax.f32 %v11761_v55, %v11802_v33  ;;  %v1156_v9 = vmax.f32 %v11767_v62, %v11810_v25  ;;  %v1404_v41 = vrot.slane %v11752_v22, 2 }
 0x117   : > { %v10037_v2 = vld [vmem:[#allocation2 + $0xb0] sm:$0xff]   ;;  %v1405_v19 = vrot.slane %v11754_v45, 2  ;;  %v1407_v33 = vrot.slane %v11763_v34, 2  ;;  %v1416_v21 = vrot.slane %v11772_v38, 2  ;;  %v1493_v8 = vrot.slane %v11776_v10, 2 }
 0x118   : > { %v11805_v56 = vunpack.c.l.bf16 %v10037_v2  ;;  %v11807_v54 = vunpack.c.h.bf16 %v10037_v2  ;;  %v580_v24 = vld [vmem:[#allocation2 + $0xb8] sm:$0xf] }
 0x119   : > { %v11814_v59 = vunpack.c.l.bf16 %v580_v24  ;;  %v10038_v50 = vld [vmem:[#allocation2 + $0xc0] sm:$0xff]   ;;  %v1406_v16 = vsel %vm1403_vm9, %v1404_v41, %v1405_v19  ;;  %v1412_v41 = vrot.slane %v11761_v55, 2 }
 0x11a   : > { %v948_v2 = vrot.slane %v11805_v56, 1  ;;  %v949_v61 = vrot.slane %v11807_v54, 1  ;;  %v11828_v24 = vunpack.c.l.bf16 %v10038_v50  ;;  %v11830_v27 = vunpack.c.h.bf16 %v10038_v50  ;;  %v584_v36 = vld [vmem:[#allocation2 + $0xc8] sm:$0xf] }
 0x11b   : > { %v951_v39 = vrot.slane %v11814_v59, 1  ;;  %v11834_v48 = vunpack.c.l.bf16 %v584_v36  ;;  %v11876_v35 = vmax.f32 %v1151_v40, %v1406_v16 }
 0x11c   : > { %v950_v37 = vsel %vm870_vm6, %v948_v2, %v949_v61  ;;  %v955_v50 = vrot.slane %v11828_v24, 1  ;;  %v956_v23 = vrot.slane %v11830_v27, 1  ;;  %v1489_v30 = vrot.slane %v11830_v27, 2 }
 0x11d   : > { %v952_v11 = vsel %vm870_vm6, %v949_v61, %v951_v39  ;;  %v954_v25 = vsel %vm870_vm6, %v951_v39, %v953_v51  ;;  %v958_v12 = vrot.slane %v11834_v48, 1  ;;  %v1184_v60 = vmax.f32 %v11805_v56, %v950_v37 }
 0x11e   : > { %v1185_v36 = vmax.f32 %v11807_v54, %v952_v11  ;;  %v1186_v2 = vmax.f32 %v11814_v59, %v954_v25  ;;  %v957_v3 = vsel %vm870_vm6, %v955_v50, %v956_v23  ;;  %v1408_v61 = vsel %vm1403_vm9, %v1405_v19, %v1407_v33 }
 0x11f   : > { %v1409_v51 = vrot.slane %v11770_v47, 2  ;;  %v959_v39 = vsel %vm870_vm6, %v956_v23, %v958_v12  ;;  %v961_v49 = vsel %vm870_vm6, %v958_v12, %v960_v20  ;;  %v1187_v31 = vmax.f32 %v11828_v24, %v957_v3 }
 0x120   : > { %v1411_v37 = vrot.slane %v11759_v63, 2  ;;  %v1188_v11 = vmax.f32 %v11830_v27, %v959_v39  ;;  %v1189_v25 = vmax.f32 %v11834_v48, %v961_v49  ;;  %v1414_v19 = vrot.slane %v11767_v62, 2 }
 0x121   : > { %v1410_v50 = vsel %vm1403_vm9, %v1407_v33, %v1409_v51  ;;  %v1481_v23 = vrot.slane %v11805_v56, 2  ;;  %v1482_v12 = vrot.slane %v11807_v54, 2  ;;  %v1484_v20 = vrot.slane %v11814_v59, 2 }
 0x122   : > { %v1413_v3 = vsel %vm1403_vm9, %v1411_v37, %v1412_v41  ;;  %v1486_v39 = vrot.slane %v11774_v53, 2  ;;  %v1488_v49 = vrot.slane %v11828_v24, 2  ;;  %v1415_v33 = vsel %vm1403_vm9, %v1412_v41, %v1414_v19 }
 0x123   : > { %v1417_v51 = vsel %vm1403_vm9, %v1414_v19, %v1416_v21  ;;  %v1483_v42 = vsel %vm1403_vm9, %v1481_v23, %v1482_v12  ;;  %v1485_v32 = vsel %vm1403_vm9, %v1482_v12, %v1484_v20  ;;  %v1491_v37 = vrot.slane %v11834_v48, 2 }
 0x124   : > { %v1487_v5 = vsel %vm1403_vm9, %v1484_v20, %v1486_v39  ;;  %v1490_v57 = vsel %vm1403_vm9, %v1488_v49, %v1489_v30  ;;  %v11878_v0 = vmax.f32 %v1152_v44, %v1408_v61  ;;  %v11880_v41 = vmax.f32 %v1153_v15, %v1410_v50 }
 0x125   : > { %v1492_v21 = vsel %vm1403_vm9, %v1489_v30, %v1491_v37  ;;  %v1494_v19 = vsel %vm1403_vm9, %v1491_v37, %v1493_v8  ;;  %v11884_v23 = vmax.f32 %v1154_v46, %v1413_v3  ;;  %v11886_v12 = vmax.f32 %v1155_v17, %v1415_v33 }
 0x126   : > { %v11888_v20 = vmax.f32 %v1156_v9, %v1417_v51  ;;  %v11890_v39 = vmax.f32 %v1184_v60, %v1483_v42  ;;  %v11892_v43 = vmax.f32 %v1185_v36, %v1485_v32  ;;  %v11894_v16 = vmax.f32 %v1186_v2, %v1487_v5 }
 0x127   : > { %v11896_v40 = vmax.f32 %v1187_v31, %v1490_v57  ;;  %v11898_v44 = vmax.f32 %v1188_v11, %v1492_v21  ;;  %v11900_v15 = vmax.f32 %v1189_v25, %v1494_v19  ;;  %v1937_v8 = vrot.slane %v11752_v22, 3 }
 0x128   : > { %v1938_v30 = vrot.slane %v11754_v45, 3  ;;  %v1940_v46 = vrot.slane %v11763_v34, 3  ;;  %v1942_v17 = vrot.slane %v11770_v47, 3  ;;  %v1944_v60 = vrot.slane %v11759_v63, 3 }
 0x129   : > { %v1945_v32 = vrot.slane %v11761_v55, 3  ;;  %v1947_v5 = vrot.slane %v11767_v62, 3  ;;  %v1949_v57 = vrot.slane %v11772_v38, 3  ;;  %v2014_v42 = vrot.slane %v11805_v56, 3 }
 0x12a   : > { %v1939_v31 = vsel %vm1936_vm10, %v1937_v8, %v1938_v30  ;;  %v1941_v9 = vsel %vm1936_vm10, %v1938_v30, %v1940_v46  ;;  %v1943_v36 = vsel %vm1936_vm10, %v1940_v46, %v1942_v17  ;;  %v2015_v2 = vrot.slane %v11807_v54, 3 }
 0x12b   : > { %v1946_v61 = vsel %vm1936_vm10, %v1944_v60, %v1945_v32  ;;  %v1948_v11 = vsel %vm1936_vm10, %v1945_v32, %v1947_v5  ;;  %v1950_v25 = vsel %vm1936_vm10, %v1947_v5, %v1949_v57  ;;  %v2017_v50 = vrot.slane %v11814_v59, 3 }
 0x12c   : > { %v2016_v3 = vsel %vm1936_vm10, %v2014_v42, %v2015_v2  ;;  %v2019_v49 = vrot.slane %v11774_v53, 3  ;;  %v2021_v33 = vrot.slane %v11828_v24, 3  ;;  %v2022_v51 = vrot.slane %v11830_v27, 3 }
 0x12d   : > { %v2018_v37 = vsel %vm1936_vm10, %v2015_v2, %v2017_v50  ;;  %v2024_v21 = vrot.slane %v11834_v48, 3  ;;  %v2026_v19 = vrot.slane %v11776_v10, 3  ;;  %v2217_v8 = vmax.f32 %v11876_v35, %v1939_v31 }
 0x12e   : > { %v2020_v30 = vsel %vm1936_vm10, %v2017_v50, %v2019_v49  ;;  %v2023_v46 = vsel %vm1936_vm10, %v2021_v33, %v2022_v51  ;;  %v2218_v17 = vmax.f32 %v11878_v0, %v1941_v9  ;;  %v2219_v60 = vmax.f32 %v11880_v41, %v1943_v36 }
 0x12f   : > { %v2025_v32 = vsel %vm1936_vm10, %v2022_v51, %v2024_v21  ;;  %v2027_v5 = vsel %vm1936_vm10, %v2024_v21, %v2026_v19  ;;  %v2220_v57 = vmax.f32 %v11884_v23, %v1946_v61  ;;  %v2221_v42 = vmax.f32 %v11886_v12, %v1948_v11 }
 0x130   : > { %v2222_v2 = vmax.f32 %v11888_v20, %v1950_v25  ;;  %v2250_v35 = vmax.f32 %v11890_v39, %v2016_v3  ;;  %v2251_v31 = vmax.f32 %v11892_v43, %v2018_v37  ;;  %v2252_v50 = vmax.f32 %v11894_v16, %v2020_v30 }
 0x131   : > { %v2253_v0 = vmax.f32 %v11896_v40, %v2023_v46  ;;  %v2254_v41 = vmax.f32 %v11898_v44, %v2025_v32  ;;  %v2255_v9 = vmax.f32 %v11900_v15, %v2027_v5  ;;  %v2470_v36 = vrot.slane %v11752_v22, 4 }
 0x132   : > { %v2471_v23 = vrot.slane %v11754_v45, 4  ;;  %v2473_v12 = vrot.slane %v11763_v34, 4  ;;  %v2475_v20 = vrot.slane %v11770_v47, 4  ;;  %v2477_v39 = vrot.slane %v11759_v63, 4 }
 0x133   : > { %v2478_v43 = vrot.slane %v11761_v55, 4  ;;  %v2480_v16 = vrot.slane %v11767_v62, 4  ;;  %v2482_v40 = vrot.slane %v11772_v38, 4  ;;  %v2547_v44 = vrot.slane %v11805_v56, 4 }
 0x134   : > { %v2472_v15 = vsel %vm2469_vm11, %v2470_v36, %v2471_v23  ;;  %v2474_v22 = vsel %vm2469_vm11, %v2471_v23, %v2473_v12  ;;  %v2476_v45 = vsel %vm2469_vm11, %v2473_v12, %v2475_v20  ;;  %v2548_v34 = vrot.slane %v11807_v54, 4  ;;  %v16384_v12 = vld [vmem:[#allocation11_spill] sm:$0xff] }
 0x135   : > { %v2479_v47 = vsel %vm2469_vm11, %v2477_v39, %v2478_v43  ;;  %v2481_v63 = vsel %vm2469_vm11, %v2478_v43, %v2480_v16  ;;  %v2483_v55 = vsel %vm2469_vm11, %v2480_v16, %v2482_v40  ;;  %v2550_v62 = vrot.slane %v11814_v59, 4  ;;  %v16385_v16 = vld [vmem:[#allocation19_spill] sm:$0xff]  ;;  %v16386_v40 = vld [vmem:[#allocation21_spill] sm:$0xff] }
 0x136   : > { %v2549_v38 = vsel %vm2469_vm11, %v2547_v44, %v2548_v34  ;;  %v2552_v56 = vrot.slane %v11774_v53, 4  ;;  %v2554_v61 = vrot.slane %v11828_v24, 4  ;;  %v2555_v11 = vrot.slane %v11830_v27, 4 }
 0x137   : > { %v2551_v25 = vsel %vm2469_vm11, %v2548_v34, %v2550_v62  ;;  %v2557_v54 = vrot.slane %v11834_v48, 4  ;;  %v2559_v3 = vrot.slane %v11776_v10, 4  ;;  %v2750_v49 = vmax.f32 %v2217_v8, %v2472_v15  ;;  %v16387_v15 = vld [vmem:[#allocation22_spill] sm:$0xff]  ;;  %v16388_v34 = vld [vmem:[#allocation29_spill] sm:$0xff] }
 0x138   : > { %v2553_v33 = vsel %vm2469_vm11, %v2550_v62, %v2552_v56  ;;  %v2556_v51 = vsel %vm2469_vm11, %v2554_v61, %v2555_v11  ;;  %v2751_v59 = vmax.f32 %v2218_v17, %v2474_v22  ;;  %v2752_v37 = vmax.f32 %v2219_v60, %v2476_v45  ;;  %v16392_v61 = vld [vmem:[#allocation24_spill] sm:$0xff] }
 0x139   : > { %v2558_v21 = vsel %vm2469_vm11, %v2555_v11, %v2557_v54  ;;  %v2560_v53 = vsel %vm2469_vm11, %v2557_v54, %v2559_v3  ;;  %v2753_v24 = vmax.f32 %v2220_v57, %v2479_v47  ;;  %v2754_v19 = vmax.f32 %v2221_v42, %v2481_v63  ;;  %v16389_v47 = vld [vmem:[#allocation30_spill] sm:$0xff]  ;;  %v16390_v63 = vld [vmem:[#allocation31_spill] sm:$0xff] }
 0x13a   : > { %v2755_v27 = vmax.f32 %v2222_v2, %v2483_v55  ;;  %v11970_v30 = vmax.f32 %v2250_v35, %v2549_v38  ;;  %v11972_v46 = vmax.f32 %v2251_v31, %v2551_v25  ;;  %v11974_v48 = vmax.f32 %v2252_v50, %v2553_v33  ;;  %v16381_v31 = vld [vmem:[#allocation5_spill] sm:$0xff]  ;;  %v16391_v38 = vld [vmem:[#allocation23_spill] sm:$0xff]  ;;  %v16393_v25 = vld [vmem:[#allocation26_spill] sm:$0xff] }
 0x13b   : > { %v11976_v10 = vmax.f32 %v2253_v0, %v2556_v51  ;;  %v11978_v8 = vmax.f32 %v2254_v41, %v2558_v21  ;;  %v11980_v32 = vmax.f32 %v2255_v9, %v2560_v53  ;;  %v2993_v17 = vmax.f32 %v2750_v49, %v2753_v24  ;;  %v16382_v0 = vld [vmem:[#allocation6_spill] sm:$0xff]  ;;  %v16383_v9 = vld [vmem:[#allocation7_spill] sm:$0xff] }
 0x13c   : > { %v2994_v60 = vmax.f32 %v2751_v59, %v2754_v19  ;;  %v2995_v5 = vmax.f32 %v2752_v37, %v2755_v27  ;;  %v2996_v36 = vmax.f32 %v2753_v24, %v11226_v18  ;;  %v2997_v57 = vmax.f32 %v2754_v19, %v11236_v52  ;;  %v16394_v19 = vld [vmem:[#allocation27_spill] sm:$0xff] }
 0x13d   : > { %16378 = vst [vmem:[#allocation37_spill] sm:$0xff] %v11976_v10  ;;  %v2998_v42 = vmax.f32 %v2755_v27, %v11242_v13  ;;  %v3014_v2 = vmax.f32 %v11320_v1, %v11337_v6  ;;  %v3015_v35 = vmax.f32 %v11325_v29, %v11342_v7  ;;  %v3016_v50 = vmax.f32 %v16381_v31, %v11347_v4 }
 0x13e   : > { %16379 = vst [vmem:[#allocation20_spill] sm:$0xff] %v11978_v8  ;;  %v3017_v41 = vmax.f32 %v11337_v6, %v16382_v0  ;;  %v3018_v23 = vmax.f32 %v11342_v7, %v16383_v9  ;;  %v3019_v20 = vmax.f32 %v11347_v4, %v16384_v12  ;;  %v3212_v39 = vmax.f32 %v2993_v17, %v11226_v18  ;;  %v16395_v17 = vld [vmem:[#allocation28_spill] sm:$0xff] }
 0x13f   : > { %16380 = vst [vmem:[#allocation8_spill] sm:$0xff] %v11980_v32  ;;  %v3213_v43 = vmax.f32 %v2994_v60, %v11236_v52  ;;  %v3214_v1 = vmax.f32 %v2995_v5, %v11242_v13  ;;  %v3215_v29 = vmax.f32 %v2996_v36, %v16385_v16  ;;  %v3216_v44 = vmax.f32 %v2997_v57, %v16386_v40  ;;  %v16396_v5 = vld [vmem:[#allocation4_spill] sm:$0xff] }
 0x140   : > { %v3217_v22 = vmax.f32 %v2998_v42, %v16387_v15  ;;  %v3233_v6 = vmax.f32 %v3014_v2, %v16382_v0  ;;  %v3234_v45 = vmax.f32 %v3015_v35, %v16383_v9  ;;  %v3235_v7 = vmax.f32 %v3016_v50, %v16384_v12 }
 0x141   : > { %v3236_v4 = vmax.f32 %v3017_v41, %v16388_v34  ;;  %v3237_v18 = vmax.f32 %v3018_v23, %v16389_v47  ;;  %v3238_v52 = vmax.f32 %v3019_v20, %v16390_v63  ;;  %v3431_v13 = vmax.f32 %v3212_v39, %v16385_v16 }
 0x142   : > { %v3432_v55 = vmax.f32 %v3213_v43, %v16386_v40  ;;  %v3433_v62 = vmax.f32 %v3214_v1, %v16387_v15  ;;  %v3434_v56 = vmax.f32 %v3215_v29, %v16391_v38  ;;  %v3435_v11 = vmax.f32 %v3216_v44, %v16392_v61 }
 0x143   : > { %v3436_v54 = vmax.f32 %v3217_v22, %v16393_v25  ;;  %v3452_v3 = vmax.f32 %v3233_v6, %v16388_v34  ;;  %v3453_v49 = vmax.f32 %v3234_v45, %v16389_v47  ;;  %v3454_v33 = vmax.f32 %v3235_v7, %v16390_v63 }
 0x144   : > { %v3455_v51 = vmax.f32 %v3236_v4, %v11970_v30  ;;  %v3456_v59 = vmax.f32 %v3237_v18, %v11972_v46  ;;  %v3457_v37 = vmax.f32 %v3238_v52, %v11974_v48  ;;  %v12022_v21 = vmax.f32 %v3431_v13, %v16391_v38 }
 0x145   : > { %v12025_v53 = vmax.f32 %v3432_v55, %v16392_v61  ;;  %v12028_v24 = vmax.f32 %v3433_v62, %v16393_v25  ;;  %v12031_v27 = vmax.f32 %v3434_v56, %v16394_v19  ;;  %v12034_v60 = vmax.f32 %v3435_v11, %v16395_v17 }
 0x146   : > { %v12037_v36 = vmax.f32 %v3436_v54, %v16396_v5  ;;  %v12040_v57 = vmax.f32 %v3452_v3, %v11970_v30  ;;  %v12043_v42 = vmax.f32 %v3453_v49, %v11972_v46  ;;  %v12046_v2 = vmax.f32 %v3454_v33, %v11974_v48 }
 0x147   : > { %v12049_v35 = vmax.f32 %v3455_v51, %v11976_v10  ;;  %v12052_v31 = vmax.f32 %v3456_v59, %v11978_v8  ;;  %v12055_v50 = vmax.f32 %v3457_v37, %v11980_v32  ;;  %v4484_v41 = vrot.slane %v12022_v21, 1 }
 0x148   : > { %16397 = vst [vmem:[#allocation9_spill] sm:$0xff] %v12040_v57  ;;  %v4485_v23 = vrot.slane %v12025_v53, 1  ;;  %v4487_v20 = vrot.slane %v12028_v24, 1  ;;  %v4489_v39 = vrot.slane %v12031_v27, 1  ;;  %v4490_v43 = vrot.slane %v12034_v60, 1 }
 0x149   : > { %16398 = vst [vmem:[#allocation10_spill] sm:$0xff] %v12043_v42  ;;  %v4492_v1 = vrot.slane %v12037_v36, 1  ;;  %v4519_v16 = vrot.slane %v12040_v57, 1  ;;  %v4520_v29 = vrot.slane %v12043_v42, 1  ;;  %v4522_v40 = vrot.slane %v12046_v2, 1 }
 0x14a   : > { %16399 = vst [vmem:[#allocation47_spill] sm:$0xff] %v12046_v2  ;;  %v4486_v44 = vsel %vm870_vm6, %v4484_v41, %v4485_v23  ;;  %v4488_v15 = vsel %vm870_vm6, %v4485_v23, %v4487_v20  ;;  %v4491_v22 = vsel %vm870_vm6, %v4489_v39, %v4490_v43  ;;  %v4524_v6 = vrot.slane %v12049_v35, 1 }
 0x14b   : > { %16400 = vst [vmem:[#allocation58_spill] sm:$0xff] %v12049_v35  ;;  %v4493_v45 = vsel %vm870_vm6, %v4490_v43, %v4492_v1  ;;  %v4521_v7 = vsel %vm870_vm6, %v4519_v16, %v4520_v29  ;;  %v4523_v4 = vsel %vm870_vm6, %v4520_v29, %v4522_v40  ;;  %v4525_v18 = vrot.slane %v12052_v31, 1 }
 0x14c   : > { %16401 = vst [vmem:[#allocation48_spill] sm:$0xff] %v12052_v31  ;;  %v4527_v52 = vrot.slane %v12055_v50, 1  ;;  %v4676_v13 = vmax.f32 %v12022_v21, %v4486_v44  ;;  %v4677_v55 = vmax.f32 %v12025_v53, %v4488_v15  ;;  %v4678_v62 = vmax.f32 %v12028_v24, %v4487_v20 }
 0x14d   : > { %16402 = vst [vmem:[#allocation59_spill] sm:$0xff] %v12055_v50  ;;  %v4526_v38 = vsel %vm870_vm6, %v4524_v6, %v4525_v18  ;;  %v4679_v56 = vmax.f32 %v12031_v27, %v4491_v22  ;;  %v4680_v61 = vmax.f32 %v12034_v60, %v4493_v45  ;;  %v4681_v11 = vmax.f32 %v12037_v36, %v4492_v1 }
 0x14e   : > { %v4528_v25 = vsel %vm870_vm6, %v4525_v18, %v4527_v52  ;;  %v4697_v54 = vmax.f32 %v12040_v57, %v4521_v7  ;;  %v4698_v3 = vmax.f32 %v12043_v42, %v4523_v4  ;;  %v4699_v49 = vmax.f32 %v12046_v2, %v4522_v40 }
 0x14f   : > { %v4700_v33 = vmax.f32 %v12049_v35, %v4526_v38  ;;  %v4701_v51 = vmax.f32 %v12052_v31, %v4528_v25  ;;  %v4702_v59 = vmax.f32 %v12055_v50, %v4527_v52  ;;  %v4892_v37 = vrot.slane %v12022_v21, 2 }
 0x150   : > { %v4893_v19 = vrot.slane %v12025_v53, 2  ;;  %v4895_v17 = vrot.slane %v12028_v24, 2  ;;  %v4897_v5 = vrot.slane %v12031_v27, 2  ;;  %v4898_v41 = vrot.slane %v12034_v60, 2 }
 0x151   : > { %v4900_v23 = vrot.slane %v12037_v36, 2  ;;  %v4927_v20 = vrot.slane %v12040_v57, 2  ;;  %v4928_v39 = vrot.slane %v12043_v42, 2  ;;  %v4930_v43 = vrot.slane %v12046_v2, 2 }
 0x152   : > { %v4894_v1 = vsel %vm1403_vm9, %v4892_v37, %v4893_v19  ;;  %v4896_v16 = vsel %vm1403_vm9, %v4893_v19, %v4895_v17  ;;  %v4899_v29 = vsel %vm1403_vm9, %v4897_v5, %v4898_v41  ;;  %v4932_v40 = vrot.slane %v12049_v35, 2 }
 0x153   : > { %v4901_v44 = vsel %vm1403_vm9, %v4898_v41, %v4900_v23  ;;  %v4929_v15 = vsel %vm1403_vm9, %v4927_v20, %v4928_v39  ;;  %v4931_v22 = vsel %vm1403_vm9, %v4928_v39, %v4930_v43  ;;  %v4933_v6 = vrot.slane %v12052_v31, 2 }
 0x154   : > { %v4935_v45 = vrot.slane %v12055_v50, 2  ;;  %v12107_v7 = vmax.f32 %v4676_v13, %v4894_v1  ;;  %v12109_v4 = vmax.f32 %v4677_v55, %v4896_v16  ;;  %v5086_v18 = vmax.f32 %v4678_v62, %v4895_v17 }
 0x155   : > { %v4934_v52 = vsel %vm1403_vm9, %v4932_v40, %v4933_v6  ;;  %v12112_v38 = vmax.f32 %v4679_v56, %v4899_v29  ;;  %v12114_v25 = vmax.f32 %v4680_v61, %v4901_v44  ;;  %v5089_v37 = vmax.f32 %v4681_v11, %v4900_v23 }
 0x156   : > { %v4936_v19 = vsel %vm1403_vm9, %v4933_v6, %v4935_v45  ;;  %v12117_v5 = vmax.f32 %v4697_v54, %v4929_v15  ;;  %v12119_v41 = vmax.f32 %v4698_v3, %v4931_v22  ;;  %v5107_v20 = vmax.f32 %v4699_v49, %v4930_v43 }
 0x157   : > { %v12121_v39 = vmax.f32 %v4700_v33, %v4934_v52  ;;  %v12123_v13 = vmax.f32 %v4701_v51, %v4936_v19  ;;  %v5110_v55 = vmax.f32 %v4702_v59, %v4935_v45  ;;  %v5300_v62 = vrot.slane %v12022_v21, 3 }
 0x158   : > { %v5301_v56 = vrot.slane %v12025_v53, 3  ;;  %v5303_v61 = vrot.slane %v12028_v24, 3  ;;  %v5305_v11 = vrot.slane %v12031_v27, 3  ;;  %v5306_v17 = vrot.slane %v12034_v60, 3 }
 0x159   : > { %v5308_v54 = vrot.slane %v12037_v36, 3  ;;  %v5335_v3 = vrot.slane %v12040_v57, 3  ;;  %v5336_v49 = vrot.slane %v12043_v42, 3  ;;  %v5338_v33 = vrot.slane %v12046_v2, 3 }
 0x15a   : > { %v5302_v51 = vsel %vm1936_vm10, %v5300_v62, %v5301_v56  ;;  %v5304_v59 = vsel %vm1936_vm10, %v5301_v56, %v5303_v61  ;;  %v5307_v23 = vsel %vm1936_vm10, %v5305_v11, %v5306_v17  ;;  %v5340_v43 = vrot.slane %v12049_v35, 3 }
 0x15b   : > { %v5309_v1 = vsel %vm1936_vm10, %v5306_v17, %v5308_v54  ;;  %v5337_v16 = vsel %vm1936_vm10, %v5335_v3, %v5336_v49  ;;  %v5339_v29 = vsel %vm1936_vm10, %v5336_v49, %v5338_v33  ;;  %v5341_v40 = vrot.slane %v12052_v31, 3 }
 0x15c   : > { %v5343_v44 = vrot.slane %v12055_v50, 3  ;;  %v5492_v15 = vmax.f32 %v12107_v7, %v5302_v51  ;;  %v5493_v22 = vmax.f32 %v12109_v4, %v5304_v59  ;;  %v5494_v6 = vmax.f32 %v5086_v18, %v5303_v61 }
 0x15d   : > { %v5342_v45 = vsel %vm1936_vm10, %v5340_v43, %v5341_v40  ;;  %v5495_v52 = vmax.f32 %v12112_v38, %v5307_v23  ;;  %v5496_v19 = vmax.f32 %v12114_v25, %v5309_v1  ;;  %v5497_v62 = vmax.f32 %v5089_v37, %v5308_v54 }
 0x15e   : > { %v5344_v56 = vsel %vm1936_vm10, %v5341_v40, %v5343_v44  ;;  %v5513_v11 = vmax.f32 %v12117_v5, %v5337_v16  ;;  %v5514_v17 = vmax.f32 %v12119_v41, %v5339_v29  ;;  %v5515_v3 = vmax.f32 %v5107_v20, %v5338_v33 }
 0x15f   : > { %v5516_v49 = vmax.f32 %v12121_v39, %v5342_v45  ;;  %v5517_v7 = vmax.f32 %v12123_v13, %v5344_v56  ;;  %v5518_v4 = vmax.f32 %v5110_v55, %v5343_v44  ;;  %v5708_v18 = vrot.slane %v12022_v21, 4 }
 0x160   : > { %v5709_v61 = vrot.slane %v12025_v53, 4  ;;  %v5711_v38 = vrot.slane %v12028_v24, 4  ;;  %v5713_v25 = vrot.slane %v12031_v27, 4  ;;  %v5714_v37 = vrot.slane %v12034_v60, 4 }
 0x161   : > { %v5716_v5 = vrot.slane %v12037_v36, 4  ;;  %v5743_v41 = vrot.slane %v12040_v57, 4  ;;  %v5744_v20 = vrot.slane %v12043_v42, 4  ;;  %v5746_v39 = vrot.slane %v12046_v2, 4 }
 0x162   : > { %v5710_v13 = vsel %vm2469_vm11, %v5708_v18, %v5709_v61  ;;  %v5712_v21 = vsel %vm2469_vm11, %v5709_v61, %v5711_v38  ;;  %v5715_v53 = vsel %vm2469_vm11, %v5713_v25, %v5714_v37  ;;  %v5748_v24 = vrot.slane %v12049_v35, 4  ;;  %v16411_v25 = vld [vmem:[#allocation42_spill] sm:$0xff] }
 0x163   : > { %v5717_v27 = vsel %vm2469_vm11, %v5714_v37, %v5716_v5  ;;  %v5745_v60 = vsel %vm2469_vm11, %v5743_v41, %v5744_v20  ;;  %v5747_v36 = vsel %vm2469_vm11, %v5744_v20, %v5746_v39  ;;  %v5749_v55 = vrot.slane %v12052_v31, 4  ;;  %v16414_v41 = vld [vmem:[#allocation15_spill] sm:$0xff] }
 0x164   : > { %v5751_v54 = vrot.slane %v12055_v50, 4  ;;  %v5900_v33 = vmax.f32 %v5492_v15, %v5710_v13  ;;  %v5901_v51 = vmax.f32 %v5493_v22, %v5712_v21  ;;  %v5902_v59 = vmax.f32 %v5494_v6, %v5711_v38  ;;  %v16410_v38 = vld [vmem:[#allocation40_spill] sm:$0xff] }
 0x165   : > { %v5750_v23 = vsel %vm2469_vm11, %v5748_v24, %v5749_v55  ;;  %v5903_v43 = vmax.f32 %v5495_v52, %v5715_v53  ;;  %v5904_v1 = vmax.f32 %v5496_v19, %v5717_v27  ;;  %v5905_v16 = vmax.f32 %v5497_v62, %v5716_v5 }
 0x166   : > { %v5752_v29 = vsel %vm2469_vm11, %v5749_v55, %v5751_v54  ;;  %v12173_v40 = vmax.f32 %v5513_v11, %v5745_v60  ;;  %v12175_v44 = vmax.f32 %v5514_v17, %v5747_v36  ;;  %v12177_v45 = vmax.f32 %v5515_v3, %v5746_v39  ;;  %v16408_v11 = vld [vmem:[#allocation39_spill] sm:$0xff]  ;;  %v16409_v3 = vld [vmem:[#allocation41_spill] sm:$0xff]  ;;  %v16415_v39 = vld [vmem:[#allocation44_spill] sm:$0xff] }
 0x167   : > { %v12179_v56 = vmax.f32 %v5516_v49, %v5750_v23  ;;  %v12181_v18 = vmax.f32 %v5517_v7, %v5752_v29  ;;  %v12183_v15 = vmax.f32 %v5518_v4, %v5751_v54  ;;  %v6107_v22 = vmax.f32 %v5900_v33, %v5903_v43  ;;  %v16412_v7 = vld [vmem:[#allocation14_spill] sm:$0xff]  ;;  %v16413_v4 = vld [vmem:[#allocation43_spill] sm:$0xff] }
 0x168   : > { %16403 = vst [vmem:[#allocation49_spill] sm:$0xff] %v12175_v44  ;;  %v6108_v6 = vmax.f32 %v5901_v51, %v5904_v1  ;;  %v6109_v61 = vmax.f32 %v5902_v59, %v5905_v16  ;;  %v6110_v52 = vmax.f32 %v5903_v43, %v11651_v26  ;;  %v6111_v19 = vmax.f32 %v5904_v1, %v11655_v14  ;;  %v16416_v51 = vld [vmem:[#allocation45_spill] sm:$0xff]  ;;  %v16417_v23 = vld [vmem:[#allocation46_spill] sm:$0xff] }
 0x169   : > { %16404 = vst [vmem:[#allocation60_spill] sm:$0xff] %v12177_v45  ;;  %v6112_v62 = vmax.f32 %v5905_v16, %v11657_v28  ;;  %v6116_v17 = vmax.f32 %v16408_v11, %v11667_v58  ;;  %v6117_v49 = vmax.f32 %v16410_v38, %v16409_v3  ;;  %v6118_v37 = vmax.f32 %v16412_v7, %v16411_v25  ;;  %v16418_v43 = vld [vmem:[#allocation25_spill] sm:$0xff] }
 0x16a   : > { %16405 = vst [vmem:[#allocation50_spill] sm:$0xff] %v12179_v56  ;;  %v6119_v5 = vmax.f32 %v11667_v58, %v16413_v4  ;;  %v6120_v20 = vmax.f32 %v16409_v3, %v16414_v41  ;;  %v6121_v13 = vmax.f32 %v16411_v25, %v16415_v39  ;;  %v6290_v21 = vmax.f32 %v6107_v22, %v11651_v26 }
 0x16b   : > { %16406 = vst [vmem:[#allocation61_spill] sm:$0xff] %v12181_v18  ;;  %v6291_v53 = vmax.f32 %v6108_v6, %v11655_v14  ;;  %v6292_v24 = vmax.f32 %v6109_v61, %v11657_v28  ;;  %v6293_v27 = vmax.f32 %v6110_v52, %v16408_v11  ;;  %v6294_v60 = vmax.f32 %v6111_v19, %v16410_v38 }
 0x16c   : > { %16407 = vst [vmem:[#allocation51_spill] sm:$0xff] %v12183_v15  ;;  %v6295_v36 = vmax.f32 %v6112_v62, %v16412_v7  ;;  %v6299_v55 = vmax.f32 %v6116_v17, %v16413_v4  ;;  %v6300_v54 = vmax.f32 %v6117_v49, %v16414_v41  ;;  %v6301_v33 = vmax.f32 %v6118_v37, %v16415_v39 }
 0x16d   : > { %v6302_v59 = vmax.f32 %v6119_v5, %v16416_v51  ;;  %v6303_v26 = vmax.f32 %v6120_v20, %v16417_v23  ;;  %v6304_v14 = vmax.f32 %v6121_v13, %v16418_v43  ;;  %v6473_v28 = vmax.f32 %v6290_v21, %v16408_v11 }
 0x16e   : > { %v6474_v1 = vmax.f32 %v6291_v53, %v16410_v38  ;;  %v6475_v16 = vmax.f32 %v6292_v24, %v16412_v7  ;;  %v6476_v29 = vmax.f32 %v6293_v27, %v11667_v58  ;;  %v6477_v22 = vmax.f32 %v6294_v60, %v16409_v3 }
 0x16f   : > { %v6478_v6 = vmax.f32 %v6295_v36, %v16411_v25  ;;  %v6482_v61 = vmax.f32 %v6299_v55, %v16416_v51  ;;  %v6483_v52 = vmax.f32 %v6300_v54, %v16417_v23  ;;  %v6484_v19 = vmax.f32 %v6301_v33, %v16418_v43  ;;  %v16419_v33 = vld [vmem:[#allocation32_spill] sm:$0xff] }
 0x170   : > { %v6485_v62 = vmax.f32 %v6302_v59, %v12173_v40  ;;  %v6486_v11 = vmax.f32 %v6303_v26, %v12175_v44  ;;  %v6487_v17 = vmax.f32 %v6304_v14, %v12177_v45  ;;  %v12225_v38 = vmax.f32 %v6473_v28, %v11667_v58  ;;  %v16420_v26 = vld [vmem:[#allocation33_spill] sm:$0xff]  ;;  %v16421_v28 = vld [vmem:[#allocation18_spill] sm:$0xff] }
 0x171   : > { %v12228_v49 = vmax.f32 %v6474_v1, %v16409_v3  ;;  %v12231_v7 = vmax.f32 %v6475_v16, %v16411_v25  ;;  %v12234_v37 = vmax.f32 %v6476_v29, %v16413_v4  ;;  %v12237_v5 = vmax.f32 %v6477_v22, %v16414_v41 }
 0x172   : > { %v12240_v20 = vmax.f32 %v6478_v6, %v16415_v39  ;;  %v12243_v13 = vmax.f32 %v6482_v61, %v12173_v40  ;;  %v12246_v58 = vmax.f32 %v6483_v52, %v12175_v44  ;;  %v12249_v3 = vmax.f32 %v6484_v19, %v12177_v45 }
 0x173   : > { %v12252_v25 = vmax.f32 %v6485_v62, %v12179_v56  ;;  %v12255_v21 = vmax.f32 %v6486_v11, %v12181_v18  ;;  %v12258_v53 = vmax.f32 %v6487_v17, %v12183_v15  ;;  %v7281_v24 = vrot.slane %v12225_v38, 1 }
 0x174   : > { %v7282_v27 = vrot.slane %v12228_v49, 1  ;;  %v7284_v60 = vrot.slane %v12231_v7, 1  ;;  %v7286_v36 = vrot.slane %v12234_v37, 1  ;;  %v7287_v55 = vrot.slane %v12237_v5, 1 }
 0x175   : > { %v7289_v54 = vrot.slane %v12240_v20, 1  ;;  %v7291_v59 = vrot.slane %v16419_v33, 1  ;;  %v7292_v14 = vrot.slane %v16420_v26, 1  ;;  %v7294_v1 = vrot.slane %v16421_v28, 1 }
 0x176   : > { %v7283_v16 = vsel %vm870_vm6, %v7281_v24, %v7282_v27  ;;  %v7285_v29 = vsel %vm870_vm6, %v7282_v27, %v7284_v60  ;;  %v7288_v22 = vsel %vm870_vm6, %v7286_v36, %v7287_v55  ;;  %v7296_v6 = vrot.slane %v12243_v13, 1 }
 0x177   : > { %v7290_v61 = vsel %vm870_vm6, %v7287_v55, %v7289_v54  ;;  %v7293_v52 = vsel %vm870_vm6, %v7291_v59, %v7292_v14  ;;  %v7295_v19 = vsel %vm870_vm6, %v7292_v14, %v7294_v1  ;;  %v7297_v62 = vrot.slane %v12246_v58, 1 }
 0x178   : > { %v7299_v11 = vrot.slane %v12249_v3, 1  ;;  %v7301_v17 = vrot.slane %v12252_v25, 1  ;;  %v7302_v24 = vrot.slane %v12255_v21, 1  ;;  %v7304_v27 = vrot.slane %v12258_v53, 1 }
 0x179   : > { %v7298_v60 = vsel %vm870_vm6, %v7296_v6, %v7297_v62  ;;  %v7421_v36 = vmax.f32 %v12225_v38, %v7283_v16  ;;  %v7422_v55 = vmax.f32 %v12228_v49, %v7285_v29  ;;  %v7423_v54 = vmax.f32 %v12234_v37, %v7288_v22 }
 0x17a   : > { %v7300_v59 = vsel %vm870_vm6, %v7297_v62, %v7299_v11  ;;  %v7303_v14 = vsel %vm870_vm6, %v7301_v17, %v7302_v24  ;;  %v7305_v1 = vsel %vm870_vm6, %v7302_v24, %v7304_v27  ;;  %v7424_v50 = vmax.f32 %v12237_v5, %v7290_v61 }
 0x17b   : > { %v7425_v31 = vmax.f32 %v16419_v33, %v7293_v52  ;;  %v7426_v35 = vmax.f32 %v16420_v26, %v7295_v19  ;;  %v7427_v6 = vmax.f32 %v12243_v13, %v7298_v60  ;;  %v7428_v16 = vmax.f32 %v12246_v58, %v7300_v59 }
 0x17c   : > { %v7429_v29 = vmax.f32 %v12252_v25, %v7303_v14  ;;  %v7430_v22 = vmax.f32 %v12255_v21, %v7305_v1  ;;  %v7541_v62 = vrot.slane %v12225_v38, 2  ;;  %v7542_v11 = vrot.slane %v12228_v49, 2 }
 0x17d   : > { %v7544_v17 = vrot.slane %v12231_v7, 2  ;;  %v7546_v61 = vrot.slane %v12234_v37, 2  ;;  %v7547_v52 = vrot.slane %v12237_v5, 2  ;;  %v7549_v19 = vrot.slane %v12240_v20, 2 }
 0x17e   : > { %v7543_v24 = vsel %vm1403_vm9, %v7541_v62, %v7542_v11  ;;  %v7551_v27 = vrot.slane %v16419_v33, 2  ;;  %v7552_v60 = vrot.slane %v16420_v26, 2  ;;  %v7554_v59 = vrot.slane %v16421_v28, 2 }
 0x17f   : > { %v7545_v14 = vsel %vm1403_vm9, %v7542_v11, %v7544_v17  ;;  %v7548_v1 = vsel %vm1403_vm9, %v7546_v61, %v7547_v52  ;;  %v7550_v2 = vsel %vm1403_vm9, %v7547_v52, %v7549_v19  ;;  %v7556_v42 = vrot.slane %v12243_v13, 2 }
 0x180   : > { %v7553_v57 = vsel %vm1403_vm9, %v7551_v27, %v7552_v60  ;;  %v7555_v15 = vsel %vm1403_vm9, %v7552_v60, %v7554_v59  ;;  %v7557_v62 = vrot.slane %v12246_v58, 2  ;;  %v7559_v18 = vrot.slane %v12249_v3, 2 }
 0x181   : > { %v7561_v56 = vrot.slane %v12252_v25, 2  ;;  %v7562_v32 = vrot.slane %v12255_v21, 2  ;;  %v7564_v11 = vrot.slane %v12258_v53, 2  ;;  %v12316_v17 = vmax.f32 %v7421_v36, %v7543_v24 }
 0x182   : > { %v7558_v61 = vsel %vm1403_vm9, %v7556_v42, %v7557_v62  ;;  %v7560_v52 = vsel %vm1403_vm9, %v7557_v62, %v7559_v18  ;;  %v12320_v19 = vmax.f32 %v7422_v55, %v7545_v14  ;;  %v12322_v27 = vmax.f32 %v7423_v54, %v7548_v1 }
 0x183   : > { %v7563_v60 = vsel %vm1403_vm9, %v7561_v56, %v7562_v32  ;;  %v7565_v59 = vsel %vm1403_vm9, %v7562_v32, %v7564_v11  ;;  %v12326_v8 = vmax.f32 %v7424_v50, %v7550_v2  ;;  %v12328_v10 = vmax.f32 %v7425_v31, %v7553_v57  ;;  %v9900_v2 = vld [vmem:[%s10247_s19 + $0x8] sm:$0xff] }
 0x184   : > { %v12330_v45 = vmax.f32 %v7426_v35, %v7555_v15  ;;  %v12332_v36 = vmax.f32 %v7427_v6, %v7558_v61  ;;  %v12334_v42 = vmax.f32 %v7428_v16, %v7560_v52  ;;  %v12336_v24 = vmax.f32 %v7429_v29, %v7563_v60  ;;  %9800 = vmatmul.msk.bf16.gmra.mxu1 %vm4010_vm12, %v9900_v2 }
 0x185   : > { %v12338_v18 = vmax.f32 %v7430_v22, %v7565_v59  ;;  %v7801_v55 = vrot.slane %v12225_v38, 3  ;;  %v7802_v56 = vrot.slane %v12228_v49, 3  ;;  %v7804_v32 = vrot.slane %v12231_v7, 3 }
 0x186   : > { %v7806_v57 = vrot.slane %v12234_v37, 3  ;;  %v7807_v35 = vrot.slane %v12237_v5, 3  ;;  %v7809_v31 = vrot.slane %v12240_v20, 3  ;;  %v7811_v50 = vrot.slane %v16419_v33, 3 }
 0x187   : > { %v7803_v15 = vsel %vm1936_vm10, %v7801_v55, %v7802_v56  ;;  %v7805_v54 = vsel %vm1936_vm10, %v7802_v56, %v7804_v32  ;;  %v7812_v6 = vrot.slane %v16420_v26, 3  ;;  %v7814_v16 = vrot.slane %v16421_v28, 3 }
 0x188   : > { %v7808_v29 = vsel %vm1936_vm10, %v7806_v57, %v7807_v35  ;;  %v7810_v22 = vsel %vm1936_vm10, %v7807_v35, %v7809_v31  ;;  %v7816_v14 = vrot.slane %v12243_v13, 3  ;;  %v7817_v1 = vrot.slane %v12246_v58, 3 }
 0x189   : > { %v7813_v62 = vsel %vm1936_vm10, %v7811_v50, %v7812_v6  ;;  %v7815_v11 = vsel %vm1936_vm10, %v7812_v6, %v7814_v16  ;;  %v7819_v61 = vrot.slane %v12249_v3, 3  ;;  %v7821_v52 = vrot.slane %v12252_v25, 3 }
 0x18a   : > { %v7818_v60 = vsel %vm1936_vm10, %v7816_v14, %v7817_v1  ;;  %v7822_v59 = vrot.slane %v12255_v21, 3  ;;  %v7824_v55 = vrot.slane %v12258_v53, 3  ;;  %v7941_v56 = vmax.f32 %v12316_v17, %v7803_v15 }
 0x18b   : > { %v7820_v32 = vsel %vm1936_vm10, %v7817_v1, %v7819_v61  ;;  %v7942_v2 = vmax.f32 %v12320_v19, %v7805_v54  ;;  %v7943_v57 = vmax.f32 %v12322_v27, %v7808_v29  ;;  %v7944_v35 = vmax.f32 %v12326_v8, %v7810_v22 }
 0x18c   : > { %v7823_v31 = vsel %vm1936_vm10, %v7821_v52, %v7822_v59  ;;  %v7825_v50 = vsel %vm1936_vm10, %v7822_v59, %v7824_v55  ;;  %v7945_v6 = vmax.f32 %v12328_v10, %v7813_v62  ;;  %v7946_v16 = vmax.f32 %v12330_v45, %v7815_v11 }
 0x18d   : > { %v7947_v14 = vmax.f32 %v12332_v36, %v7818_v60  ;;  %v7948_v17 = vmax.f32 %v12334_v42, %v7820_v32  ;;  %v7949_v15 = vmax.f32 %v12336_v24, %v7823_v31  ;;  %v7950_v19 = vmax.f32 %v12338_v18, %v7825_v50 }
 0x18e   : > { %v8061_v27 = vrot.slane %v12225_v38, 4  ;;  %v8062_v8 = vrot.slane %v12228_v49, 4  ;;  %v8064_v54 = vrot.slane %v12231_v7, 4  ;;  %v8066_v29 = vrot.slane %v12234_v37, 4 }
 0x18f   : > { %v8067_v10 = vrot.slane %v12237_v5, 4  ;;  %v8069_v45 = vrot.slane %v12240_v20, 4  ;;  %v8071_v36 = vrot.slane %v16419_v33, 4  ;;  %v8072_v42 = vrot.slane %v16420_v26, 4 }
 0x190   : > { %v8063_v24 = vsel %vm2469_vm11, %v8061_v27, %v8062_v8  ;;  %v8065_v18 = vsel %vm2469_vm11, %v8062_v8, %v8064_v54  ;;  %v8074_v38 = vrot.slane %v16421_v28, 4  ;;  %v8076_v49 = vrot.slane %v12243_v13, 4 }
 0x191   : > { %v8068_v7 = vsel %vm2469_vm11, %v8066_v29, %v8067_v10  ;;  %v8070_v37 = vsel %vm2469_vm11, %v8067_v10, %v8069_v45  ;;  %v8073_v5 = vsel %vm2469_vm11, %v8071_v36, %v8072_v42  ;;  %v8077_v20 = vrot.slane %v12246_v58, 4  ;;  %v16426_v10 = vld [vmem:[#allocation35_spill] sm:$0xff]  ;;  %v301_v36 = vld [vmem:[%s10247_s19 + $0x38] sm:$0xf] }
 0x192   : > { %v8075_v33 = vsel %vm2469_vm11, %v8072_v42, %v8074_v38  ;;  %v8079_v26 = vrot.slane %v12249_v3, 4  ;;  %v8081_v22 = vrot.slane %v12252_v25, 4  ;;  %v8082_v1 = vrot.slane %v12255_v21, 4 }
 0x193   : > { %v8078_v28 = vsel %vm2469_vm11, %v8076_v49, %v8077_v20  ;;  %v8084_v62 = vrot.slane %v12258_v53, 4  ;;  %v8201_v11 = vmax.f32 %v7941_v56, %v8063_v24  ;;  %v8202_v61 = vmax.f32 %v7942_v2, %v8065_v18 }
 0x194   : > { %v8080_v52 = vsel %vm2469_vm11, %v8077_v20, %v8079_v26  ;;  %v8083_v60 = vsel %vm2469_vm11, %v8081_v22, %v8082_v1  ;;  %v12401_v59 = vmax.f32 %v7943_v57, %v8068_v7  ;;  %v12403_v55 = vmax.f32 %v7944_v35, %v8070_v37 }
 0x195   : > { %v8085_v32 = vsel %vm2469_vm11, %v8082_v1, %v8084_v62  ;;  %v12406_v31 = vmax.f32 %v7945_v6, %v8073_v5  ;;  %v12408_v50 = vmax.f32 %v7946_v16, %v8075_v33  ;;  %v12410_v27 = vmax.f32 %v7947_v14, %v8078_v28  ;;  %v302_v33 = vld [vmem:[%s10247_s19 + $0x3c] sm:$0xf] }
 0x196   : > { %v12412_v8 = vmax.f32 %v7948_v17, %v8080_v52  ;;  %v12414_v56 = vmax.f32 %v7949_v15, %v8083_v60  ;;  %v12416_v2 = vmax.f32 %v7950_v19, %v8085_v32  ;;  %v8315_v57 = vmax.f32 %v8201_v11, %v12401_v59  ;;  %v16424_v17 = vld [vmem:[#allocation12_spill] sm:$0xff]  ;;  %v16425_v19 = vld [vmem:[#allocation34_spill] sm:$0xff] }
 0x197   : > { %v8316_v35 = vmax.f32 %v8202_v61, %v12403_v55  ;;  %v6725_v54 = vpack.c.bf16 %v12243_v13, %v12243_v13  ;;  %v6726_v6 = vpack.c.bf16 %v12246_v58, %v12246_v58  ;;  %v6727_v16 = vpack.c.bf16 %v12249_v3, %v12249_v3 }
 0x198   : > { %16422 = vst [vmem:[#allocation62_spill] sm:$0xff] %v12412_v8  ;;  %v8413_v14 = vmax.f32 %v8315_v57, %v12406_v31  ;;  %v3737_v15 = vpack.c.bf16 %v16424_v17, %v16424_v17  ;;  %v3738_v29 = vpack.c.bf16 %v16425_v19, %v16425_v19  ;;  %v3739_v45 = vpack.c.bf16 %v16426_v10, %v16426_v10 }
 0x199   : > { %16423 = vst [vmem:[#allocation52_spill] sm:$0xff] %v12416_v2  ;;  %v8414_v13 = vmax.f32 %v8316_v35, %v12408_v50  ;;  %v9816_v42 = vrot.slane %v6725_v54, 9  ;;  %v6833_v58 = vrot.slane %v6726_v6, 5  ;;  %v6836_v24 = vrot.slane %v6727_v16, 5 }
 0x19a   : > { %v8511_v3 = vmax.f32 %v8413_v14, %v12410_v27  ;;  %v9704_v18 = vrot.slane %v3737_v15, 10  ;;  %v3854_v38 = vrot.slane %v3738_v29, 6  ;;  %v3857_v49 = vrot.slane %v3739_v45, 6  ;;  %v589_v45 = vld [vmem:[#allocation2 + $0xdc] sm:$0x3] }
 0x19b   : > { %v8512_v7 = vmax.f32 %v8414_v13, %v12412_v8  ;;  %v6834_v5 = vsel %vm10295_vm5, %v9816_v42, %v6833_v58  ;;  %v6835_v20 = vrot.slane %v6833_v58, 4  ;;  %v389_v26 = vrot.slane %v301_v36, 5  ;;  %v303_v42 = vld [vmem:[%s10247_s19 + $0x40] sm:$0xf] }
 0x19c   : > { %v8609_v22 = vmax.f32 %v8511_v3, %v12414_v56  ;;  %v6939_v1 = vunpack.c.l.b16 %v6834_v5  ;;  %v3855_v62 = vsel %vm11713_vm15, %v9704_v18, %v3854_v38  ;;  %v3856_v11 = vrot.slane %v3854_v38, 4 }
 0x19d   : > { %v8610_v61 = vmax.f32 %v8512_v7, %v12416_v2  ;;  %v6837_v52 = vsel %vm10295_vm5, %v6835_v20, %v6836_v24  ;;  %v3960_v60 = vunpack.c.l.b16 %v3855_v62  ;;  %v390_v32 = vrot.slane %v389_v26, 4  ;;  %506 = vst.msk [vmem:[#allocation2 + $0xd0] sm:$0x8] %vm483_vm7, %v389_v26  ;;  %v304_v24 = vld [vmem:[%s10247_s19 + $0x44] sm:$0xf]  ;;  %v16429_v26 = vld [vmem:[#allocation60_spill] sm:$0xff] }
 0x19e   : > { %v8641_v57 = vpack.c.bf16 %v8609_v22, %v8609_v22  ;;  %v6940_v35 = vunpack.c.l.b16 %v6837_v52  ;;  %v3858_v54 = vsel %vm11713_vm15, %v3856_v11, %v3857_v49  ;;  %v391_v6 = vrot.slane %v302_v33, 5  ;;  %v593_v52 = vld [vmem:[#allocation2 + $0xec] sm:$0x3] }
 0x19f   : > { %v8642_v16 = vpack.c.bf16 %v8610_v61, %v8610_v61  ;;  %v3961_v14 = vunpack.c.l.b16 %v3858_v54  ;;  %v3020_v17 = vmax.f32 %v16382_v0, %v16388_v34  ;;  %v3021_v58 = vmax.f32 %v16383_v9, %v16389_v47  ;;  %v16431_v54 = vld [vmem:[#allocation20_spill] sm:$0xff] }
 0x1a0   : > { %v8706_v15 = vunpack.c.l.b16 %v8641_v57  ;;  %v6970_v19 = vpack.c.b16 %v6940_v35, %v6939_v1  ;;  %v392_v29 = vsel %vm10295_vm5, %v390_v32, %v391_v6  ;;  %v393_v10 = vrot.slane %v391_v6, 4  ;;  %v16430_v57 = vld [vmem:[#allocation37_spill] sm:$0xff] }
 0x1a1   : > { %v8707_v36 = vunpack.c.l.b16 %v8642_v16  ;;  %v3991_v13 = vpack.c.b16 %v3961_v14, %v3960_v60  ;;  %507 = vst.msk [vmem:[#allocation2 + $0xd4] sm:$0xf] %vm173_vm0, %v392_v29  ;;  %v3022_v0 = vmax.f32 %v16384_v12, %v16390_v63  ;;  %v12463_v18 = vunpack.c.l.bf16 %v589_v45 }
 0x1a2   : > { %9832 = vmatmul.msk.bf16.gmra.mxu2 %vm4010_vm12, %v6970_v19  ;;  %508 = vst.msk [vmem:[#allocation2 + $0xd8] sm:$0x7] %vm486_vm8, %v393_v10  ;;  %v6122_v38 = vmax.f32 %v16413_v4, %v16416_v51  ;;  %v6123_v49 = vmax.f32 %v16414_v41, %v16417_v23  ;;  %v12470_v7 = vmax.f32 %v3020_v17, %v11970_v30  ;;  %v394_v5 = vrot.slane %v303_v42, 5  ;;  %v16432_v19 = vld [vmem:[#allocation8_spill] sm:$0xff]  ;;  %v16433_v10 = vld [vmem:[#allocation50_spill] sm:$0xff] }
 0x1a3   : > { %v8738_v3 = vpack.c.b16 %v8707_v36, %v8706_v15  ;;  %9720 = vmatmul.msk.bf16.gmra.mxu0 %vm4010_vm12, %v3991_v13  ;;  %v12473_v9 = vmax.f32 %v3021_v58, %v11972_v46  ;;  %v6124_v12 = vmax.f32 %v16415_v39, %v16418_v43  ;;  %v12479_v20 = vmax.f32 %v3022_v0, %v11974_v48  ;;  %v16434_v13 = vld [vmem:[#allocation61_spill] sm:$0xff]  ;;  %v16435_v58 = vld [vmem:[#allocation51_spill] sm:$0xff] }
 0x1a4   : > { %v12482_v4 = vmax.f32 %v6122_v38, %v12173_v40  ;;  %v396_v33 = vrot.slane %v304_v24, 5  ;;  %v12485_v41 = vmax.f32 %v6123_v49, %v12175_v44  ;;  %v395_v1 = vrot.slane %v394_v5, 4  ;;  %509 = vst.msk [vmem:[#allocation2 + $0xe0] sm:$0x8] %vm483_vm7, %v394_v5 }
 0x1a5   : > { %9847 = vmatmul.msk.bf16.vlgmr.msra.gmra.mxu3 %vm4010_vm12, %v8738_v3  ;;  %v12488_v22 = vmax.f32 %v6124_v12, %v16429_v26  ;;  %v967_v39 = vrot.slane %v12463_v18, 1  ;;  %v1500_v62 = vrot.slane %v12463_v18, 2  ;;  %v2033_v11 = vrot.slane %v12463_v18, 3 }
 0x1a6   : > { %v398_v61 = vrot.slane %v396_v33, 4  ;;  %v2566_v32 = vrot.slane %v12463_v18, 4  ;;  %v3458_v35 = vmax.f32 %v12470_v7, %v16430_v57  ;;  %v397_v16 = vsel %vm10295_vm5, %v395_v1, %v396_v33 }
 0x1a7   : > { %v3460_v29 = vmax.f32 %v12479_v20, %v16432_v19  ;;  %510 = vst.msk [vmem:[#allocation2 + $0xe4] sm:$0xf] %vm173_vm0, %v397_v16  ;;  %v12511_v24 = vunpack.c.l.bf16 %v593_v52 }
 0x1a8   : > { %v10039_v60 = vld [vmem:[#allocation2 + $0xd0] sm:$0xff]   ;;  %511 = vst.msk [vmem:[#allocation2 + $0xe8] sm:$0x7] %vm486_vm8, %v398_v61 }
 0x1a9   : > { %v9969_v14 = vunpack.c.l.bf16 %v10039_v60  ;;  %v9970_v17 = vunpack.c.h.bf16 %v10039_v60  ;;  %v588_v15 = vld [vmem:[#allocation2 + $0xd8] sm:$0xf] }
 0x1aa   : > { %v687_v36 = vunpack.c.l.bf16 %v588_v15 }
 0x1ab   : > { %v962_v3 = vrot.slane %v9969_v14, 1  ;;  %v963_v18 = vrot.slane %v9970_v17, 1  ;;  %v1495_v38 = vrot.slane %v9969_v14, 2  ;;  %v1496_v49 = vrot.slane %v9970_v17, 2 }
 0x1ac   : > { %v965_v7 = vrot.slane %v687_v36, 1  ;;  %v1498_v12 = vrot.slane %v687_v36, 2  ;;  %v2028_v5 = vrot.slane %v9969_v14, 3  ;;  %v2029_v20 = vrot.slane %v9970_v17, 3 }
 0x1ad   : > { %v964_v33 = vsel %vm870_vm6, %v962_v3, %v963_v18  ;;  %v1497_v1 = vsel %vm1403_vm9, %v1495_v38, %v1496_v49  ;;  %v2031_v60 = vrot.slane %v687_v36, 3  ;;  %v2561_v16 = vrot.slane %v9969_v14, 4 }
 0x1ae   : > { %v966_v15 = vsel %vm870_vm6, %v963_v18, %v965_v7  ;;  %v968_v61 = vsel %vm870_vm6, %v965_v7, %v967_v39  ;;  %v1190_v52 = vmax.f32 %v9969_v14, %v964_v33  ;;  %v1499_v42 = vsel %vm1403_vm9, %v1496_v49, %v1498_v12  ;;  %v10040_v44 = vld [vmem:[#allocation2 + $0xe0] sm:$0xff]  }
 0x1af   : > { %v1191_v45 = vmax.f32 %v9970_v17, %v966_v15  ;;  %v1192_v0 = vmax.f32 %v687_v36, %v968_v61  ;;  %v1501_v6 = vsel %vm1403_vm9, %v1498_v12, %v1500_v62  ;;  %v2030_v43 = vsel %vm1936_vm10, %v2028_v5, %v2029_v20  ;;  %v592_v12 = vld [vmem:[#allocation2 + $0xe8] sm:$0xf] }
 0x1b0   : > { %v1723_v26 = vmax.f32 %v1190_v52, %v1497_v1  ;;  %v2032_v3 = vsel %vm1936_vm10, %v2029_v20, %v2031_v60  ;;  %v2034_v38 = vsel %vm1936_vm10, %v2031_v60, %v2033_v11  ;;  %v2562_v23 = vrot.slane %v9970_v17, 4  ;;  %v9901_v52 = vld [vmem:[%s10247_s19 + $0x10] sm:$0xff] }
 0x1b1   : > { %v1724_v19 = vmax.f32 %v1191_v45, %v1499_v42  ;;  %v1725_v18 = vmax.f32 %v1192_v0, %v1501_v6  ;;  %v2564_v57 = vrot.slane %v687_v36, 4  ;;  %v8317_v39 = vmax.f32 %v12401_v59, %v12406_v31  ;;  %9801 = vmatmul.msk.bf16.gmra.mxu1 %vm4010_vm12, %v9901_v52 }
 0x1b2   : > { %v2256_v14 = vmax.f32 %v1723_v26, %v2030_v43  ;;  %v2563_v49 = vsel %vm2469_vm11, %v2561_v16, %v2562_v23  ;;  %v8318_v62 = vmax.f32 %v12403_v55, %v12408_v50  ;;  %v12527_v7 = vunpack.c.l.bf16 %v10040_v44 }
 0x1b3   : > { %v2257_v5 = vmax.f32 %v1724_v19, %v2032_v3  ;;  %v2258_v20 = vmax.f32 %v1725_v18, %v2034_v38  ;;  %v2565_v11 = vsel %vm2469_vm11, %v2562_v23, %v2564_v57  ;;  %v2567_v17 = vsel %vm2469_vm11, %v2564_v57, %v2566_v32 }
 0x1b4   : > { %v12531_v6 = vmax.f32 %v2256_v14, %v2563_v49  ;;  %v12534_v45 = vmax.f32 %v8317_v39, %v12410_v27  ;;  %v12537_v43 = vmax.f32 %v8318_v62, %v12412_v8  ;;  %v6729_v59 = vpack.c.bf16 %v12255_v21, %v12255_v21 }
 0x1b5   : > { %v12541_v55 = vmax.f32 %v2257_v5, %v2565_v11  ;;  %v12543_v26 = vmax.f32 %v2258_v20, %v2567_v17  ;;  %v12545_v19 = vunpack.c.h.bf16 %v10040_v44  ;;  %v12547_v23 = vunpack.c.l.bf16 %v592_v12 }
 0x1b6   : > { %v12550_v32 = vmax.f32 %v3458_v35, %v12531_v6  ;;  %v6728_v21 = vpack.c.bf16 %v12252_v25, %v12252_v25  ;;  %v16437_v44 = vmax.f32 %v12473_v9, %v16431_v54  ;;  %v6730_v35 = vpack.c.bf16 %v12258_v53, %v12258_v53 }
 0x1b7   : > { %v12565_v0 = vmax.f32 %v3460_v29, %v12543_v26  ;;  %v6840_v33 = vrot.slane %v6729_v59, 5 }
 0x1b8   : > { %16436 = vst [vmem:[#allocation63_spill] sm:$0xff] %v12550_v32  ;;  %v12562_v42 = vmax.f32 %v16437_v44, %v12541_v55  ;;  %v4529_v1 = vrot.slane %v12550_v32, 1  ;;  %v4937_v60 = vrot.slane %v12550_v32, 2  ;;  %v5345_v16 = vrot.slane %v12550_v32, 3 }
 0x1b9   : > { %16439 = vst [vmem:[#allocation64_spill] sm:$0xff] %v12565_v0  ;;  %v5753_v25 = vrot.slane %v12550_v32, 4  ;;  %v4532_v9 = vrot.slane %v12565_v0, 1  ;;  %v4940_v29 = vrot.slane %v12565_v0, 2  ;;  %v5348_v3 = vrot.slane %v12565_v0, 3 }
 0x1ba   : > { %16438 = vst [vmem:[#allocation53_spill] sm:$0xff] %v12562_v42  ;;  %v4530_v15 = vrot.slane %v12562_v42, 1  ;;  %v4938_v61 = vrot.slane %v12562_v42, 2  ;;  %v5346_v53 = vrot.slane %v12562_v42, 3  ;;  %v5754_v38 = vrot.slane %v12562_v42, 4 }
 0x1bb   : > { %v5756_v18 = vrot.slane %v12565_v0, 4  ;;  %v4705_v49 = vmax.f32 %v12565_v0, %v4532_v9  ;;  %v6842_v36 = vrot.slane %v6840_v33, 4  ;;  %v6843_v57 = vrot.slane %v6730_v35, 5  ;;  %v16441_v0 = vld [vmem:[#allocation13_spill] sm:$0xff] }
 0x1bc   : > { %v4531_v39 = vsel %vm870_vm6, %v4529_v1, %v4530_v15  ;;  %v4533_v14 = vsel %vm870_vm6, %v4530_v15, %v4532_v9  ;;  %v4939_v62 = vsel %vm1403_vm9, %v4937_v60, %v4938_v61  ;;  %v4941_v20 = vsel %vm1403_vm9, %v4938_v61, %v4940_v29 }
 0x1bd   : > { %v4703_v12 = vmax.f32 %v12550_v32, %v4531_v39  ;;  %v4704_v5 = vmax.f32 %v12562_v42, %v4533_v14  ;;  %v5347_v11 = vsel %vm1936_vm10, %v5345_v16, %v5346_v53  ;;  %v5113_v17 = vmax.f32 %v4705_v49, %v4940_v29  ;;  %v16440_v39 = vld [vmem:[#allocation36_spill] sm:$0xff] }
 0x1be   : > { %v5349_v59 = vsel %vm1936_vm10, %v5346_v53, %v5348_v3  ;;  %v5755_v44 = vsel %vm2469_vm11, %v5753_v25, %v5754_v38  ;;  %v5757_v1 = vsel %vm2469_vm11, %v5754_v38, %v5756_v18  ;;  %v9817_v60 = vrot.slane %v6728_v21, 9  ;;  %v16442_v25 = vld [vmem:[#allocation38_spill] sm:$0xff] }
 0x1bf   : > { %v5111_v15 = vmax.f32 %v4703_v12, %v4939_v62  ;;  %v5112_v9 = vmax.f32 %v4704_v5, %v4941_v20  ;;  %v5521_v52 = vmax.f32 %v5113_v17, %v5348_v3  ;;  %v3740_v14 = vpack.c.bf16 %v16440_v39, %v16440_v39 }
 0x1c0   : > { %v3741_v61 = vpack.c.bf16 %v16441_v0, %v16441_v0  ;;  %v6841_v53 = vsel %vm10295_vm5, %v9817_v60, %v6840_v33  ;;  %v3742_v38 = vpack.c.bf16 %v16442_v25, %v16442_v25  ;;  %v6844_v21 = vsel %vm10295_vm5, %v6842_v36, %v6843_v57 }
 0x1c1   : > { %v5519_v16 = vmax.f32 %v5111_v15, %v5347_v11  ;;  %v5520_v29 = vmax.f32 %v5112_v9, %v5349_v59  ;;  %v12602_v49 = vmax.f32 %v5521_v52, %v5756_v18  ;;  %v6941_v35 = vunpack.c.l.b16 %v6841_v53 }
 0x1c2   : > { %v9705_v3 = vrot.slane %v3740_v14, 10  ;;  %v6942_v0 = vunpack.c.l.b16 %v6844_v21  ;;  %v3861_v5 = vrot.slane %v3741_v61, 6  ;;  %v16443_v33 = vmax.f32 %v12488_v22, %v16435_v58 }
 0x1c3   : > { %v12606_v62 = vmax.f32 %v5519_v16, %v5755_v44  ;;  %v12608_v12 = vmax.f32 %v5520_v29, %v5757_v1  ;;  %v3864_v11 = vrot.slane %v3742_v38, 6  ;;  %v969_v18 = vrot.slane %v12527_v7, 1 }
 0x1c4   : > { %v12614_v20 = vmax.f32 %v16443_v33, %v12602_v49  ;;  %v970_v17 = vrot.slane %v12545_v19, 1  ;;  %v16444_v57 = vmax.f32 %v12482_v4, %v16433_v10  ;;  %v16445_v59 = vmax.f32 %v12485_v41, %v16434_v13 }
 0x1c5   : > { %v6971_v22 = vpack.c.b16 %v6942_v0, %v6941_v35  ;;  %v3862_v1 = vsel %vm11713_vm15, %v9705_v3, %v3861_v5  ;;  %v3863_v42 = vrot.slane %v3861_v5, 4 }
 0x1c6   : > { %v12622_v36 = vmax.f32 %v16444_v57, %v12606_v62  ;;  %v12628_v44 = vmax.f32 %v16445_v59, %v12608_v12  ;;  %v7309_v15 = vrot.slane %v12614_v20, 1  ;;  %v7569_v9 = vrot.slane %v12614_v20, 2 }
 0x1c7   : > { %v7829_v60 = vrot.slane %v12614_v20, 3  ;;  %v8089_v4 = vrot.slane %v12614_v20, 4  ;;  %9833 = vmatmul.msk.bf16.gmra.mxu2 %vm4010_vm12, %v6971_v22 }
 0x1c8   : > { %v7306_v52 = vrot.slane %v12622_v36, 1  ;;  %v7307_v39 = vrot.slane %v12628_v44, 1  ;;  %v7566_v41 = vrot.slane %v12622_v36, 2  ;;  %v7567_v14 = vrot.slane %v12628_v44, 2 }
 0x1c9   : > { %v7826_v61 = vrot.slane %v12622_v36, 3  ;;  %v7827_v16 = vrot.slane %v12628_v44, 3  ;;  %v8086_v29 = vrot.slane %v12622_v36, 4  ;;  %v8087_v53 = vrot.slane %v12628_v44, 4 }
 0x1ca   : > { %v7308_v25 = vsel %vm870_vm6, %v7306_v52, %v7307_v39  ;;  %v7310_v38 = vsel %vm870_vm6, %v7307_v39, %v7309_v15  ;;  %v7568_v21 = vsel %vm1403_vm9, %v7566_v41, %v7567_v14  ;;  %v7570_v35 = vsel %vm1403_vm9, %v7567_v14, %v7569_v9 }
 0x1cb   : > { %v7431_v3 = vmax.f32 %v12622_v36, %v7308_v25  ;;  %v7432_v0 = vmax.f32 %v12628_v44, %v7310_v38  ;;  %v7828_v33 = vsel %vm1936_vm10, %v7826_v61, %v7827_v16  ;;  %v7830_v57 = vsel %vm1936_vm10, %v7827_v16, %v7829_v60 }
 0x1cc   : > { %v8088_v59 = vsel %vm2469_vm11, %v8086_v29, %v8087_v53  ;;  %v8090_v22 = vsel %vm2469_vm11, %v8087_v53, %v8089_v4  ;;  %v3962_v52 = vunpack.c.l.b16 %v3862_v1  ;;  %v971_v39 = vsel %vm870_vm6, %v969_v18, %v970_v17 }
 0x1cd   : > { %v7691_v32 = vmax.f32 %v7431_v3, %v7568_v21  ;;  %v7692_v15 = vmax.f32 %v7432_v0, %v7570_v35  ;;  %v972_v9 = vrot.slane %v12547_v23, 1  ;;  %v3865_v41 = vsel %vm11713_vm15, %v3863_v42, %v3864_v11 }
 0x1ce   : > { %v974_v14 = vrot.slane %v12511_v24, 1  ;;  %v1193_v61 = vmax.f32 %v12527_v7, %v971_v39  ;;  %v1502_v60 = vrot.slane %v12527_v7, 2  ;;  %v3963_v4 = vunpack.c.l.b16 %v3865_v41 }
 0x1cf   : > { %v7951_v16 = vmax.f32 %v7691_v32, %v7828_v33  ;;  %v7952_v29 = vmax.f32 %v7692_v15, %v7830_v57  ;;  %v973_v5 = vsel %vm870_vm6, %v970_v17, %v972_v9  ;;  %v1503_v53 = vrot.slane %v12545_v19, 2 }
 0x1d0   : > { %v975_v1 = vsel %vm870_vm6, %v972_v9, %v974_v14  ;;  %v1194_v18 = vmax.f32 %v12545_v19, %v973_v5  ;;  %v1505_v25 = vrot.slane %v12547_v23, 2  ;;  %v3992_v38 = vpack.c.b16 %v3963_v4, %v3962_v52 }
 0x1d1   : > { %v12667_v42 = vmax.f32 %v7951_v16, %v8088_v59  ;;  %v12669_v11 = vmax.f32 %v7952_v29, %v8090_v22  ;;  %v1195_v21 = vmax.f32 %v12547_v23, %v975_v1  ;;  %v1504_v32 = vsel %vm1403_vm9, %v1502_v60, %v1503_v53 }
 0x1d2   : > { %v1506_v35 = vsel %vm1403_vm9, %v1503_v53, %v1505_v25  ;;  %v1507_v17 = vrot.slane %v12511_v24, 2  ;;  %v2035_v3 = vrot.slane %v12527_v7, 3  ;;  %v16447_v0 = vmax.f32 %v12534_v45, %v12414_v56  ;;  %9721 = vmatmul.msk.bf16.gmra.mxu0 %vm4010_vm12, %v3992_v38 }
 0x1d3   : > { %16446 = vst [vmem:[#allocation54_spill] sm:$0xff] %v12669_v11  ;;  %v16448_v57 = vmax.f32 %v12537_v43, %v12416_v2  ;;  %v1726_v22 = vmax.f32 %v1193_v61, %v1504_v32  ;;  %v1727_v52 = vmax.f32 %v1194_v18, %v1506_v35  ;;  %v2036_v39 = vrot.slane %v12545_v19, 3 }
 0x1d4   : > { %v8611_v33 = vmax.f32 %v16447_v0, %v12667_v42  ;;  %v1508_v15 = vsel %vm1403_vm9, %v1505_v25, %v1507_v17  ;;  %v2038_v9 = vrot.slane %v12547_v23, 3  ;;  %v2040_v41 = vrot.slane %v12511_v24, 3 }
 0x1d5   : > { %v8612_v59 = vmax.f32 %v16448_v57, %v12669_v11  ;;  %v1728_v60 = vmax.f32 %v1195_v21, %v1508_v15  ;;  %v2568_v16 = vrot.slane %v12527_v7, 4  ;;  %v2037_v43 = vsel %vm1936_vm10, %v2035_v3, %v2036_v39  ;;  %v16451_v15 = vld [vmem:[#allocation49_spill] sm:$0xff] }
 0x1d6   : > { %v8643_v14 = vpack.c.bf16 %v8611_v33, %v8611_v33  ;;  %v2039_v29 = vsel %vm1936_vm10, %v2036_v39, %v2038_v9  ;;  %v2041_v61 = vsel %vm1936_vm10, %v2038_v9, %v2040_v41  ;;  %v2569_v4 = vrot.slane %v12545_v19, 4  ;;  %v16452_v39 = vld [vmem:[#allocation46_spill] sm:$0xff]  ;;  %v16453_v41 = vld [vmem:[#allocation60_spill] sm:$0xff] }
 0x1d7   : > { %v8644_v45 = vpack.c.bf16 %v8612_v59, %v8612_v59  ;;  %v2259_v18 = vmax.f32 %v1726_v22, %v2037_v43  ;;  %v2260_v53 = vmax.f32 %v1727_v52, %v2039_v29  ;;  %v2261_v25 = vmax.f32 %v1728_v60, %v2041_v61  ;;  %v16450_v22 = vld [vmem:[#allocation8_spill] sm:$0xff] }
 0x1d8   : > { %v8708_v5 = vunpack.c.l.b16 %v8643_v14  ;;  %v2570_v38 = vsel %vm2469_vm11, %v2568_v16, %v2569_v4  ;;  %v2571_v32 = vrot.slane %v12547_v23, 4  ;;  %v2573_v21 = vrot.slane %v12511_v24, 4 }
 0x1d9   : > { %v8709_v1 = vunpack.c.l.b16 %v8644_v45  ;;  %v12697_v35 = vmax.f32 %v2259_v18, %v2570_v38  ;;  %v3023_v17 = vmax.f32 %v16388_v34, %v11970_v30  ;;  %v3024_v19 = vmax.f32 %v16389_v47, %v11972_v46  ;;  %v16449_v34 = vld [vmem:[#allocation37_spill] sm:$0xff] }
 0x1da   : > { %v2572_v3 = vsel %vm2469_vm11, %v2569_v4, %v2571_v32  ;;  %v2574_v0 = vsel %vm2469_vm11, %v2571_v32, %v2573_v21  ;;  %v3025_v33 = vmax.f32 %v16390_v63, %v11974_v48  ;;  %v6125_v23 = vmax.f32 %v16416_v51, %v12173_v40  ;;  %v16454_v63 = vld [vmem:[#allocation25_spill] sm:$0xff] }
 0x1db   : > { %v8739_v7 = vpack.c.b16 %v8709_v1, %v8708_v5  ;;  %v12710_v24 = vmax.f32 %v2260_v53, %v2572_v3  ;;  %v12712_v57 = vmax.f32 %v2261_v25, %v2574_v0  ;;  %v3242_v59 = vmax.f32 %v3023_v17, %v16449_v34 }
 0x1dc   : > { %v3243_v47 = vmax.f32 %v3024_v19, %v16431_v54  ;;  %v3244_v52 = vmax.f32 %v3025_v33, %v16450_v22  ;;  %v6126_v9 = vmax.f32 %v16452_v39, %v16451_v15  ;;  %v6127_v14 = vmax.f32 %v16454_v63, %v16453_v41 }
 0x1dd   : > { %9848 = vmatmul.msk.bf16.gmra.mxu3 %vm4010_vm12, %v8739_v7  ;;  %v12722_v51 = vmax.f32 %v6125_v23, %v16433_v10  ;;  %v3461_v45 = vmax.f32 %v3242_v59, %v12531_v6  ;;  %v8319_v16 = vmax.f32 %v12406_v31, %v12410_v27  ;;  %v8320_v43 = vmax.f32 %v12408_v50, %v12412_v8  ;;  %v9902_v23 = vld [vmem:[%s10247_s19 + $0x18] sm:$0xff] }
 0x1de   : > { %v3462_v60 = vmax.f32 %v3243_v47, %v12541_v55  ;;  %v3463_v29 = vmax.f32 %v3244_v52, %v12543_v26  ;;  %v6309_v61 = vmax.f32 %v6126_v9, %v16434_v13  ;;  %v6310_v4 = vmax.f32 %v6127_v14, %v16435_v58  ;;  %9802 = vmatmul.msk.bf16.gmra.mxu1 %vm4010_vm12, %v9902_v23 }
 0x1df   : > { %v12734_v5 = vmax.f32 %v3461_v45, %v12697_v35  ;;  %v6491_v18 = vmax.f32 %v12722_v51, %v12606_v62  ;;  %v12742_v31 = vmax.f32 %v8319_v16, %v12414_v56  ;;  %v12750_v38 = vmax.f32 %v8320_v43, %v12416_v2 }
 0x1e0   : > { %v12737_v1 = vmax.f32 %v3462_v60, %v12710_v24  ;;  %v12745_v50 = vmax.f32 %v3463_v29, %v12712_v57  ;;  %v6492_v53 = vmax.f32 %v6309_v61, %v12608_v12  ;;  %v6493_v25 = vmax.f32 %v6310_v4, %v12602_v49 }
 0x1e1   : > { %16455 = vst [vmem:[#allocation65_spill] sm:$0xff] %v12734_v5  ;;  %v4534_v32 = vrot.slane %v12734_v5, 1  ;;  %v4942_v7 = vrot.slane %v12734_v5, 2  ;;  %v5350_v0 = vrot.slane %v12734_v5, 3  ;;  %v5758_v39 = vrot.slane %v12734_v5, 4 }
 0x1e2   : > { %16456 = vst [vmem:[#allocation55_spill] sm:$0xff] %v12737_v1  ;;  %v4535_v21 = vrot.slane %v12737_v1, 1  ;;  %v4943_v17 = vrot.slane %v12737_v1, 2  ;;  %v4537_v19 = vrot.slane %v12745_v50, 1  ;;  %v4945_v3 = vrot.slane %v12745_v50, 2 }
 0x1e3   : > { %16457 = vst [vmem:[#allocation66_spill] sm:$0xff] %v12745_v50  ;;  %v5351_v33 = vrot.slane %v12737_v1, 3  ;;  %v5353_v52 = vrot.slane %v12745_v50, 3  ;;  %v5759_v16 = vrot.slane %v12737_v1, 4  ;;  %v6731_v43 = vpack.c.bf16 %v12622_v36, %v12622_v36 }
 0x1e4   : > { %v4536_v59 = vsel %vm870_vm6, %v4534_v32, %v4535_v21  ;;  %v4944_v47 = vsel %vm1403_vm9, %v4942_v7, %v4943_v17  ;;  %v4538_v9 = vsel %vm870_vm6, %v4535_v21, %v4537_v19  ;;  %v4708_v14 = vmax.f32 %v12745_v50, %v4537_v19 }
 0x1e5   : > { %v4706_v63 = vmax.f32 %v12734_v5, %v4536_v59  ;;  %v4946_v51 = vsel %vm1403_vm9, %v4943_v17, %v4945_v3  ;;  %v4707_v45 = vmax.f32 %v12737_v1, %v4538_v9  ;;  %v5352_v60 = vsel %vm1936_vm10, %v5350_v0, %v5351_v33  ;;  %v16458_v9 = vld [vmem:[#allocation9_spill] sm:$0xff]  ;;  %v305_v1 = vld [vmem:[%s10247_s19 + $0x48] sm:$0xf]  ;;  %v306_v5 = vld [vmem:[%s10247_s19 + $0x4c] sm:$0xf] }
 0x1e6   : > { %v5116_v61 = vmax.f32 %v4708_v14, %v4945_v3  ;;  %v5354_v4 = vsel %vm1936_vm10, %v5351_v33, %v5353_v52  ;;  %v5761_v32 = vrot.slane %v12745_v50, 4  ;;  %v5760_v7 = vsel %vm2469_vm11, %v5758_v39, %v5759_v16 }
 0x1e7   : > { %v5114_v29 = vmax.f32 %v4706_v63, %v4944_v47  ;;  %v5115_v21 = vmax.f32 %v4707_v45, %v4946_v51  ;;  %v6732_v19 = vpack.c.bf16 %v12628_v44, %v12628_v44  ;;  %v6733_v36 = vpack.c.bf16 %v12614_v20, %v12614_v20  ;;  %v16459_v45 = vld [vmem:[#allocation10_spill] sm:$0xff] }
 0x1e8   : > { %v5524_v23 = vmax.f32 %v5116_v61, %v5353_v52  ;;  %v5762_v59 = vsel %vm2469_vm11, %v5759_v16, %v5761_v32  ;;  %v9818_v33 = vrot.slane %v6731_v43, 9  ;;  %v3743_v63 = vpack.c.bf16 %v16458_v9, %v16458_v9 }
 0x1e9   : > { %v5522_v0 = vmax.f32 %v5114_v29, %v5352_v60  ;;  %v5523_v3 = vmax.f32 %v5115_v21, %v5354_v4  ;;  %v6847_v47 = vrot.slane %v6732_v19, 5  ;;  %v6850_v51 = vrot.slane %v6733_v36, 5  ;;  %v16462_v4 = vld [vmem:[#allocation47_spill] sm:$0xff] }
 0x1ea   : > { %v12789_v14 = vmax.f32 %v5524_v23, %v5761_v32  ;;  %v3744_v44 = vpack.c.bf16 %v16459_v45, %v16459_v45  ;;  %v3745_v32 = vpack.c.bf16 %v16462_v4, %v16462_v4  ;;  %v9706_v19 = vrot.slane %v3743_v63, 10 }
 0x1eb   : > { %v12787_v39 = vmax.f32 %v5522_v0, %v5760_v7  ;;  %v12793_v52 = vmax.f32 %v5523_v3, %v5762_v59  ;;  %v6848_v20 = vsel %vm10295_vm5, %v9818_v33, %v6847_v47  ;;  %v6849_v16 = vrot.slane %v6847_v47, 4 }
 0x1ec   : > { %v12803_v29 = vmax.f32 %v6493_v25, %v12789_v14  ;;  %v6943_v61 = vunpack.c.l.b16 %v6848_v20  ;;  %v3868_v0 = vrot.slane %v3744_v44, 6  ;;  %v3871_v50 = vrot.slane %v3745_v32, 6  ;;  %v597_v32 = vld [vmem:[#allocation2 + $0xfc] sm:$0x3] }
 0x1ed   : > { %v12800_v43 = vmax.f32 %v6491_v18, %v12787_v39  ;;  %v12808_v21 = vmax.f32 %v6492_v53, %v12793_v52  ;;  %v6851_v7 = vsel %vm10295_vm5, %v6849_v16, %v6850_v51 }
 0x1ee   : > { %16461 = vst [vmem:[#allocation17_spill] sm:$0xff] %v12803_v29  ;;  %v7314_v18 = vrot.slane %v12803_v29, 1  ;;  %v7574_v25 = vrot.slane %v12803_v29, 2  ;;  %v7834_v47 = vrot.slane %v12803_v29, 3  ;;  %v8094_v51 = vrot.slane %v12803_v29, 4 }
 0x1ef   : > { %16460 = vst [vmem:[#allocation56_spill] sm:$0xff] %v12800_v43  ;;  %v7311_v23 = vrot.slane %v12800_v43, 1  ;;  %v7571_v59 = vrot.slane %v12800_v43, 2  ;;  %v7312_v36 = vrot.slane %v12808_v21, 1  ;;  %v7572_v3 = vrot.slane %v12808_v21, 2 }
 0x1f0   : > { %16463 = vst [vmem:[#allocation57_spill] sm:$0xff] %v12808_v21  ;;  %v7831_v53 = vrot.slane %v12800_v43, 3  ;;  %v7832_v33 = vrot.slane %v12808_v21, 3  ;;  %v8091_v9 = vrot.slane %v12800_v43, 4  ;;  %v8092_v63 = vrot.slane %v12808_v21, 4 }
 0x1f1   : > { %v7313_v45 = vsel %vm870_vm6, %v7311_v23, %v7312_v36  ;;  %v7315_v44 = vsel %vm870_vm6, %v7312_v36, %v7314_v18  ;;  %v7573_v20 = vsel %vm1403_vm9, %v7571_v59, %v7572_v3  ;;  %v7575_v16 = vsel %vm1403_vm9, %v7572_v3, %v7574_v25 }
 0x1f2   : > { %v7433_v4 = vmax.f32 %v12800_v43, %v7313_v45  ;;  %v7434_v60 = vmax.f32 %v12808_v21, %v7315_v44  ;;  %v7833_v17 = vsel %vm1936_vm10, %v7831_v53, %v7832_v33  ;;  %v7835_v8 = vsel %vm1936_vm10, %v7832_v33, %v7834_v47 }
 0x1f3   : > { %v8093_v29 = vsel %vm2469_vm11, %v8091_v9, %v8092_v63  ;;  %v6944_v23 = vunpack.c.l.b16 %v6851_v7  ;;  %v3869_v18 = vsel %vm11713_vm15, %v9706_v19, %v3868_v0  ;;  %v8095_v25 = vsel %vm2469_vm11, %v8092_v63, %v8094_v51  ;;  %v307_v63 = vld [vmem:[%s10247_s19 + $0x50] sm:$0xf] }
 0x1f4   : > { %v7693_v59 = vmax.f32 %v7433_v4, %v7573_v20  ;;  %v7694_v36 = vmax.f32 %v7434_v60, %v7575_v16  ;;  %v3870_v3 = vrot.slane %v3868_v0, 4  ;;  %v3964_v44 = vunpack.c.l.b16 %v3869_v18  ;;  %v308_v4 = vld [vmem:[%s10247_s19 + $0x54] sm:$0xf] }
 0x1f5   : > { %v6972_v45 = vpack.c.b16 %v6944_v23, %v6943_v61  ;;  %v399_v43 = vrot.slane %v305_v1, 5  ;;  %v401_v53 = vrot.slane %v306_v5, 5  ;;  %v3026_v7 = vmax.f32 %v11970_v30, %v16449_v34 }
 0x1f6   : > { %v7953_v21 = vmax.f32 %v7693_v59, %v7833_v17  ;;  %v7954_v2 = vmax.f32 %v7694_v36, %v7835_v8  ;;  %v3872_v33 = vsel %vm11713_vm15, %v3870_v3, %v3871_v50  ;;  %v12848_v5 = vunpack.c.l.bf16 %v597_v32  ;;  %v601_v32 = vld [vmem:[#allocation2 + $0x10c] sm:$0x3] }
 0x1f7   : > { %9834 = vmatmul.msk.bf16.gmra.mxu2 %vm4010_vm12, %v6972_v45  ;;  %v3965_v19 = vunpack.c.l.b16 %v3872_v33  ;;  %v400_v60 = vrot.slane %v399_v43, 4  ;;  %v403_v47 = vrot.slane %v401_v53, 4  ;;  %512 = vst.msk [vmem:[#allocation2 + $0xf0] sm:$0x8] %vm483_vm7, %v399_v43  ;;  %v3027_v30 = vmax.f32 %v11972_v46, %v16431_v54 }
 0x1f8   : > { %v12844_v61 = vmax.f32 %v7953_v21, %v8093_v29  ;;  %v12846_v1 = vmax.f32 %v7954_v2, %v8095_v25  ;;  %v16465_v17 = vmax.f32 %v12742_v31, %v12667_v42  ;;  %v16466_v2 = vmax.f32 %v12750_v38, %v12669_v11 }
 0x1f9   : > { %v3993_v8 = vpack.c.b16 %v3965_v19, %v3964_v44  ;;  %v402_v50 = vsel %vm10295_vm5, %v400_v60, %v401_v53  ;;  %514 = vst.msk [vmem:[#allocation2 + $0xf8] sm:$0x7] %vm486_vm8, %v403_v47  ;;  %v3028_v21 = vmax.f32 %v11974_v48, %v16450_v22  ;;  %v12867_v0 = vmax.f32 %v3026_v7, %v12531_v6 }
 0x1fa   : > { %16464 = vst [vmem:[#allocation67_spill] sm:$0xff] %v12846_v1  ;;  %v8613_v43 = vmax.f32 %v16465_v17, %v12844_v61  ;;  %v8614_v29 = vmax.f32 %v16466_v2, %v12846_v1  ;;  %v12871_v46 = vmax.f32 %v3027_v30, %v12541_v55  ;;  %v6128_v31 = vmax.f32 %v12173_v40, %v16433_v10 }
 0x1fb   : > { %513 = vst.msk [vmem:[#allocation2 + $0xf4] sm:$0xf] %vm173_vm0, %v402_v50  ;;  %9722 = vmatmul.msk.bf16.gmra.mxu0 %vm4010_vm12, %v3993_v8  ;;  %v6129_v38 = vmax.f32 %v16451_v15, %v16434_v13  ;;  %v6130_v9 = vmax.f32 %v16453_v41, %v16435_v58  ;;  %v981_v20 = vrot.slane %v12848_v5, 1  ;;  %v12882_v16 = vmax.f32 %v3028_v21, %v12543_v26 }
 0x1fc   : > { %v8645_v51 = vpack.c.bf16 %v8613_v43, %v8613_v43  ;;  %v8646_v48 = vpack.c.bf16 %v8614_v29, %v8614_v29  ;;  %v1514_v23 = vrot.slane %v12848_v5, 2  ;;  %v12887_v18 = vmax.f32 %v6128_v31, %v12606_v62 }
 0x1fd   : > { %v12890_v40 = vmax.f32 %v6129_v38, %v12608_v12  ;;  %v12893_v15 = vmax.f32 %v6130_v9, %v12602_v49  ;;  %v2047_v36 = vrot.slane %v12848_v5, 3  ;;  %v404_v25 = vrot.slane %v307_v63, 5 }
 0x1fe   : > { %v8710_v41 = vunpack.c.l.b16 %v8645_v51  ;;  %v8711_v59 = vunpack.c.l.b16 %v8646_v48  ;;  %v2580_v3 = vrot.slane %v12848_v5, 4  ;;  %v406_v53 = vrot.slane %v308_v4, 5 }
 0x1ff   : > { %v3466_v19 = vmax.f32 %v12882_v16, %v12712_v57  ;;  %v405_v47 = vrot.slane %v404_v25, 4  ;;  %515 = vst.msk [vmem:[#allocation2 + $0x100] sm:$0x8] %vm483_vm7, %v404_v25  ;;  %v12913_v21 = vunpack.c.l.bf16 %v601_v32 }
 0x200   : > { %v8740_v33 = vpack.c.b16 %v8711_v59, %v8710_v41  ;;  %v596_v7 = vld [vmem:[#allocation2 + $0xf8] sm:$0xf]  ;;  %v408_v17 = vrot.slane %v406_v53, 4 }
 0x201   : > { %v693_v8 = vunpack.c.l.bf16 %v596_v7  ;;  %v407_v29 = vsel %vm10295_vm5, %v405_v47, %v406_v53 }
 0x202   : > { %v10041_v5 = vld [vmem:[#allocation2 + $0xf0] sm:$0xff]   ;;  %9849 = vmatmul.msk.bf16.gmra.mxu3 %vm4010_vm12, %v8740_v33  ;;  %516 = vst.msk [vmem:[#allocation2 + $0x104] sm:$0xf] %vm173_vm0, %v407_v29 }
 0x203   : > { %v9977_v43 = vunpack.c.l.bf16 %v10041_v5  ;;  %v9978_v2 = vunpack.c.h.bf16 %v10041_v5  ;;  %v979_v31 = vrot.slane %v693_v8, 1  ;;  %v1512_v38 = vrot.slane %v693_v8, 2  ;;  %517 = vst.msk [vmem:[#allocation2 + $0x108] sm:$0x7] %vm486_vm8, %v408_v17 }
 0x204   : > { %v2045_v9 = vrot.slane %v693_v8, 3  ;;  %v2578_v63 = vrot.slane %v693_v8, 4 }
 0x205   : > { %v976_v51 = vrot.slane %v9977_v43, 1  ;;  %v977_v48 = vrot.slane %v9978_v2, 1  ;;  %v1509_v16 = vrot.slane %v9977_v43, 2  ;;  %v1510_v4 = vrot.slane %v9978_v2, 2 }
 0x206   : > { %v982_v41 = vsel %vm870_vm6, %v979_v31, %v981_v20  ;;  %v1515_v59 = vsel %vm1403_vm9, %v1512_v38, %v1514_v23  ;;  %v2042_v25 = vrot.slane %v9977_v43, 3  ;;  %v2043_v53 = vrot.slane %v9978_v2, 3 }
 0x207   : > { %v978_v32 = vsel %vm870_vm6, %v976_v51, %v977_v48  ;;  %v980_v33 = vsel %vm870_vm6, %v977_v48, %v979_v31  ;;  %v1198_v7 = vmax.f32 %v693_v8, %v982_v41  ;;  %v1511_v47 = vsel %vm1403_vm9, %v1509_v16, %v1510_v4  ;;  %v16467_v16 = vld [vmem:[#allocation52_spill] sm:$0xff]  ;;  %v16468_v41 = vld [vmem:[#allocation62_spill] sm:$0xff] }
 0x208   : > { %v1196_v5 = vmax.f32 %v9977_v43, %v978_v32  ;;  %v1197_v29 = vmax.f32 %v9978_v2, %v980_v33  ;;  %v1513_v50 = vsel %vm1403_vm9, %v1510_v4, %v1512_v38  ;;  %v2044_v60 = vsel %vm1936_vm10, %v2042_v25, %v2043_v53 }
 0x209   : > { %v1731_v17 = vmax.f32 %v1198_v7, %v1515_v59  ;;  %v2046_v20 = vsel %vm1936_vm10, %v2043_v53, %v2045_v9  ;;  %v2048_v23 = vsel %vm1936_vm10, %v2045_v9, %v2047_v36  ;;  %v2575_v30 = vrot.slane %v9977_v43, 4  ;;  %v10042_v4 = vld [vmem:[#allocation2 + $0x100] sm:$0xff]   ;;  %v16472_v7 = vld [vmem:[#allocation56_spill] sm:$0xff] }
 0x20a   : > { %v1729_v44 = vmax.f32 %v1196_v5, %v1511_v47  ;;  %v1730_v45 = vmax.f32 %v1197_v29, %v1513_v50  ;;  %v2576_v51 = vrot.slane %v9978_v2, 4  ;;  %v2581_v31 = vsel %vm2469_vm11, %v2578_v63, %v2580_v3 }
 0x20b   : > { %v2264_v8 = vmax.f32 %v1731_v17, %v2048_v23  ;;  %v8321_v48 = vmax.f32 %v12410_v27, %v12414_v56  ;;  %v8322_v38 = vmax.f32 %v16468_v41, %v16467_v16  ;;  %v16470_v27 = vld [vmem:[#allocation57_spill] sm:$0xff]  ;;  %v6734_v47 = vpack.c.bf16 %v16472_v7, %v16472_v7 }
 0x20c   : > { %v2262_v25 = vmax.f32 %v1729_v44, %v2044_v60  ;;  %v2263_v53 = vmax.f32 %v1730_v45, %v2046_v20  ;;  %v2577_v36 = vsel %vm2469_vm11, %v2575_v30, %v2576_v51  ;;  %v2579_v43 = vsel %vm2469_vm11, %v2576_v51, %v2578_v63  ;;  %v16477_v20 = vld [vmem:[#allocation17_spill] sm:$0xff] }
 0x20d   : > { %v12934_v50 = vmax.f32 %v2264_v8, %v2581_v31  ;;  %v12937_v3 = vmax.f32 %v8321_v48, %v12667_v42  ;;  %v12940_v2 = vmax.f32 %v8322_v38, %v12669_v11  ;;  %v6735_v9 = vpack.c.bf16 %v16470_v27, %v16470_v27 }
 0x20e   : > { %v12944_v32 = vmax.f32 %v2262_v25, %v2577_v36  ;;  %v12946_v33 = vmax.f32 %v2263_v53, %v2579_v43  ;;  %v12948_v45 = vunpack.c.l.bf16 %v10042_v4  ;;  %v12950_v44 = vunpack.c.h.bf16 %v10042_v4  ;;  %v9903_v25 = vld [vmem:[%s10247_s19 + $0x20] sm:$0xff] }
 0x20f   : > { %16469 = vst [vmem:[#allocation5_spill] sm:$0xff] %v12934_v50  ;;  %v12953_v60 = vmax.f32 %v3466_v19, %v12934_v50  ;;  %v16473_v5 = vmax.f32 %v12867_v0, %v12697_v35  ;;  %v16475_v19 = vmax.f32 %v12871_v46, %v12710_v24  ;;  %v6736_v23 = vpack.c.bf16 %v16477_v20, %v16477_v20 }
 0x210   : > { %v6854_v51 = vrot.slane %v6735_v9, 5  ;;  %9803 = vmatmul.msk.bf16.gmra.mxu1 %vm4010_vm12, %v9903_v25 }
 0x211   : > { %16471 = vst [vmem:[#allocation6_spill] sm:$0xff] %v12953_v60  ;;  %v12965_v29 = vmax.f32 %v16473_v5, %v12944_v32  ;;  %v12971_v17 = vmax.f32 %v16475_v19, %v12946_v33  ;;  %v4542_v31 = vrot.slane %v12953_v60, 1  ;;  %v4950_v8 = vrot.slane %v12953_v60, 2 }
 0x212   : > { %v5358_v48 = vrot.slane %v12953_v60, 3  ;;  %v5766_v0 = vrot.slane %v12953_v60, 4  ;;  %v6856_v16 = vrot.slane %v6854_v51, 4  ;;  %v6857_v11 = vrot.slane %v6736_v23, 5 }
 0x213   : > { %16474 = vst [vmem:[#allocation7_spill] sm:$0xff] %v12965_v29  ;;  %v4539_v41 = vrot.slane %v12965_v29, 1  ;;  %v4540_v38 = vrot.slane %v12971_v17, 1  ;;  %v4947_v46 = vrot.slane %v12965_v29, 2  ;;  %v4948_v4 = vrot.slane %v12971_v17, 2 }
 0x214   : > { %16476 = vst [vmem:[#allocation11_spill] sm:$0xff] %v12971_v17  ;;  %v4711_v53 = vmax.f32 %v12953_v60, %v4542_v31  ;;  %v5355_v36 = vrot.slane %v12965_v29, 3  ;;  %v5356_v43 = vrot.slane %v12971_v17, 3  ;;  %v5763_v27 = vrot.slane %v12965_v29, 4 }
 0x215   : > { %v4541_v9 = vsel %vm870_vm6, %v4539_v41, %v4540_v38  ;;  %v4543_v7 = vsel %vm870_vm6, %v4540_v38, %v4542_v31  ;;  %v4949_v5 = vsel %vm1403_vm9, %v4947_v46, %v4948_v4  ;;  %v4951_v19 = vsel %vm1403_vm9, %v4948_v4, %v4950_v8 }
 0x216   : > { %v4709_v20 = vmax.f32 %v12965_v29, %v4541_v9  ;;  %v4710_v63 = vmax.f32 %v12971_v17, %v4543_v7  ;;  %v5119_v30 = vmax.f32 %v4711_v53, %v4950_v8  ;;  %v5357_v59 = vsel %vm1936_vm10, %v5355_v36, %v5356_v43  ;;  %v16478_v8 = vld [vmem:[#allocation58_spill] sm:$0xff] }
 0x217   : > { %v5359_v60 = vsel %vm1936_vm10, %v5356_v43, %v5358_v48  ;;  %v5764_v50 = vrot.slane %v12971_v17, 4  ;;  %v9819_v41 = vrot.slane %v6734_v47, 9  ;;  %v3746_v53 = vpack.c.bf16 %v16478_v8, %v16478_v8 }
 0x218   : > { %v5117_v31 = vmax.f32 %v4709_v20, %v4949_v5  ;;  %v5118_v38 = vmax.f32 %v4710_v63, %v4951_v19  ;;  %v5527_v46 = vmax.f32 %v5119_v30, %v5358_v48  ;;  %v6858_v47 = vsel %vm10295_vm5, %v6856_v16, %v6857_v11  ;;  %v600_v63 = vld [vmem:[#allocation2 + $0x108] sm:$0xf] }
 0x219   : > { %v5765_v4 = vsel %vm2469_vm11, %v5763_v27, %v5764_v50  ;;  %v5767_v25 = vsel %vm2469_vm11, %v5764_v50, %v5766_v0  ;;  %v6855_v9 = vsel %vm10295_vm5, %v9819_v41, %v6854_v51  ;;  %v6946_v23 = vunpack.c.l.b16 %v6858_v47  ;;  %v16479_v48 = vld [vmem:[#allocation48_spill] sm:$0xff]  ;;  %v16480_v50 = vld [vmem:[#allocation59_spill] sm:$0xff] }
 0x21a   : > { %v5525_v36 = vmax.f32 %v5117_v31, %v5357_v59  ;;  %v5526_v43 = vmax.f32 %v5118_v38, %v5359_v60  ;;  %v13004_v7 = vmax.f32 %v5527_v46, %v5766_v0  ;;  %v6945_v30 = vunpack.c.l.b16 %v6855_v9 }
 0x21b   : > { %v3747_v27 = vpack.c.bf16 %v16479_v48, %v16479_v48  ;;  %v3748_v5 = vpack.c.bf16 %v16480_v50, %v16480_v50  ;;  %v16481_v59 = vmax.f32 %v12893_v15, %v12789_v14  ;;  %v9707_v11 = vrot.slane %v3746_v53, 10 }
 0x21c   : > { %v13012_v51 = vmax.f32 %v5525_v36, %v5765_v4  ;;  %v13014_v19 = vmax.f32 %v5526_v43, %v5767_v25  ;;  %v6973_v16 = vpack.c.b16 %v6946_v23, %v6945_v30  ;;  %v13022_v41 = vunpack.c.l.bf16 %v600_v63 }
 0x21d   : > { %v13020_v60 = vmax.f32 %v16481_v59, %v13004_v7  ;;  %v3875_v0 = vrot.slane %v3747_v27, 6  ;;  %v3878_v20 = vrot.slane %v3748_v5, 6  ;;  %v16482_v31 = vmax.f32 %v12887_v18, %v12787_v39 }
 0x21e   : > { %v16483_v46 = vmax.f32 %v12890_v40, %v12793_v52  ;;  %9835 = vmatmul.msk.bf16.gmra.mxu2 %vm4010_vm12, %v6973_v16 }
 0x21f   : > { %v13028_v38 = vmax.f32 %v16482_v31, %v13012_v51  ;;  %v7319_v15 = vrot.slane %v13020_v60, 1  ;;  %v7579_v25 = vrot.slane %v13020_v60, 2  ;;  %v7839_v9 = vrot.slane %v13020_v60, 3 }
 0x220   : > { %v13034_v4 = vmax.f32 %v16483_v46, %v13014_v19  ;;  %v8099_v8 = vrot.slane %v13020_v60, 4  ;;  %v3876_v18 = vsel %vm11713_vm15, %v9707_v11, %v3875_v0  ;;  %v3877_v53 = vrot.slane %v3875_v0, 4 }
 0x221   : > { %v7316_v36 = vrot.slane %v13028_v38, 1  ;;  %v7576_v43 = vrot.slane %v13028_v38, 2  ;;  %v7836_v63 = vrot.slane %v13028_v38, 3  ;;  %v8096_v23 = vrot.slane %v13028_v38, 4 }
 0x222   : > { %v7317_v40 = vrot.slane %v13034_v4, 1  ;;  %v7577_v47 = vrot.slane %v13034_v4, 2  ;;  %v7837_v30 = vrot.slane %v13034_v4, 3  ;;  %v8097_v48 = vrot.slane %v13034_v4, 4 }
 0x224   : > { %v7318_v27 = vsel %vm870_vm6, %v7316_v36, %v7317_v40  ;;  %v7320_v50 = vsel %vm870_vm6, %v7317_v40, %v7319_v15  ;;  %v7578_v5 = vsel %vm1403_vm9, %v7576_v43, %v7577_v47  ;;  %v7580_v59 = vsel %vm1403_vm9, %v7577_v47, %v7579_v25 }
 0x225   : > { %v7435_v11 = vmax.f32 %v13028_v38, %v7318_v27  ;;  %v7436_v16 = vmax.f32 %v13034_v4, %v7320_v50  ;;  %v7838_v0 = vsel %vm1936_vm10, %v7836_v63, %v7837_v30  ;;  %v7840_v31 = vsel %vm1936_vm10, %v7837_v30, %v7839_v9 }
 0x226   : > { %v8098_v46 = vsel %vm2469_vm11, %v8096_v23, %v8097_v48  ;;  %v8100_v17 = vsel %vm2469_vm11, %v8097_v48, %v8099_v8  ;;  %v3879_v36 = vsel %vm11713_vm15, %v3877_v53, %v3878_v20  ;;  %v3966_v15 = vunpack.c.l.b16 %v3876_v18 }
 0x227   : > { %v7695_v40 = vmax.f32 %v7435_v11, %v7578_v5  ;;  %v7696_v43 = vmax.f32 %v7436_v16, %v7580_v59  ;;  %v3967_v29 = vunpack.c.l.b16 %v3879_v36  ;;  %v983_v25 = vrot.slane %v12948_v45, 1 }
 0x228   : > { %v984_v47 = vrot.slane %v12950_v44, 1  ;;  %v986_v27 = vrot.slane %v13022_v41, 1  ;;  %v1516_v63 = vrot.slane %v12948_v45, 2  ;;  %v1517_v9 = vrot.slane %v12950_v44, 2 }
 0x229   : > { %v7955_v30 = vmax.f32 %v7695_v40, %v7838_v0  ;;  %v7956_v23 = vmax.f32 %v7696_v43, %v7840_v31  ;;  %v3994_v8 = vpack.c.b16 %v3967_v29, %v3966_v15  ;;  %v1519_v48 = vrot.slane %v13022_v41, 2 }
 0x22a   : > { %v985_v20 = vsel %vm870_vm6, %v983_v25, %v984_v47  ;;  %v987_v18 = vsel %vm870_vm6, %v984_v47, %v986_v27  ;;  %v16484_v53 = vrot.slane %v12913_v21, 1  ;;  %v1518_v5 = vsel %vm1403_vm9, %v1516_v63, %v1517_v9 }
 0x22b   : > { %v13075_v59 = vmax.f32 %v7955_v30, %v8098_v46  ;;  %v13077_v11 = vmax.f32 %v7956_v23, %v8100_v17  ;;  %9723 = vmatmul.msk.bf16.gmra.mxu0 %vm4010_vm12, %v3994_v8  ;;  %v1199_v29 = vmax.f32 %v12948_v45, %v985_v20  ;;  %v1200_v16 = vmax.f32 %v12950_v44, %v987_v18 }
 0x22c   : > { %v989_v50 = vsel %vm870_vm6, %v986_v27, %v16484_v53  ;;  %v1520_v31 = vsel %vm1403_vm9, %v1517_v9, %v1519_v48  ;;  %v1521_v36 = vrot.slane %v12913_v21, 2  ;;  %v2049_v15 = vrot.slane %v12948_v45, 3 }
 0x22d   : > { %16485 = vst [vmem:[#allocation19_spill] sm:$0xff] %v13077_v11  ;;  %v1201_v0 = vmax.f32 %v13022_v41, %v989_v50  ;;  %v16486_v46 = vmax.f32 %v12937_v3, %v12844_v61  ;;  %v16487_v40 = vmax.f32 %v12940_v2, %v12846_v1  ;;  %v1732_v25 = vmax.f32 %v1199_v29, %v1518_v5 }
 0x22e   : > { %v1733_v47 = vmax.f32 %v1200_v16, %v1520_v31  ;;  %v1522_v27 = vsel %vm1403_vm9, %v1519_v48, %v1521_v36  ;;  %v2050_v63 = vrot.slane %v12950_v44, 3  ;;  %v2052_v9 = vrot.slane %v13022_v41, 3 }
 0x22f   : > { %v8615_v17 = vmax.f32 %v16486_v46, %v13075_v59  ;;  %v8616_v43 = vmax.f32 %v16487_v40, %v13077_v11  ;;  %v2054_v30 = vrot.slane %v12913_v21, 3  ;;  %v1734_v20 = vmax.f32 %v1201_v0, %v1522_v27 }
 0x230   : > { %v2582_v3 = vrot.slane %v12948_v45, 4  ;;  %v2051_v18 = vsel %vm1936_vm10, %v2049_v15, %v2050_v63  ;;  %v2053_v2 = vsel %vm1936_vm10, %v2050_v63, %v2052_v9  ;;  %v2583_v50 = vrot.slane %v12950_v44, 4 }
 0x231   : > { %v8647_v23 = vpack.c.bf16 %v8615_v17, %v8615_v17  ;;  %v8648_v8 = vpack.c.bf16 %v8616_v43, %v8616_v43  ;;  %v2055_v53 = vsel %vm1936_vm10, %v2052_v9, %v2054_v30  ;;  %v2265_v29 = vmax.f32 %v1732_v25, %v2051_v18  ;;  %v16490_v18 = vld [vmem:[#allocation5_spill] sm:$0xff] }
 0x232   : > { %v2266_v16 = vmax.f32 %v1733_v47, %v2053_v2  ;;  %v2267_v31 = vmax.f32 %v1734_v20, %v2055_v53  ;;  %v2584_v36 = vsel %vm2469_vm11, %v2582_v3, %v2583_v50  ;;  %v2585_v46 = vrot.slane %v13022_v41, 4  ;;  %v16489_v20 = vld [vmem:[#allocation52_spill] sm:$0xff] }
 0x233   : > { %v8712_v48 = vunpack.c.l.b16 %v8647_v23  ;;  %v8713_v5 = vunpack.c.l.b16 %v8648_v8  ;;  %v2587_v0 = vrot.slane %v12913_v21, 4  ;;  %v13106_v17 = vmax.f32 %v2265_v29, %v2584_v36  ;;  %v16488_v8 = vld [vmem:[#allocation54_spill] sm:$0xff] }
 0x234   : > { %v3029_v15 = vmax.f32 %v16449_v34, %v12531_v6  ;;  %v3030_v44 = vmax.f32 %v16431_v54, %v12541_v55  ;;  %v2586_v40 = vsel %vm2469_vm11, %v2583_v50, %v2585_v46  ;;  %v3031_v25 = vmax.f32 %v16450_v22, %v12543_v26 }
 0x235   : > { %v8741_v45 = vpack.c.b16 %v8713_v5, %v8712_v48  ;;  %v2588_v43 = vsel %vm2469_vm11, %v2585_v46, %v2587_v0  ;;  %v6131_v41 = vmax.f32 %v16433_v10, %v12606_v62  ;;  %v13119_v21 = vmax.f32 %v2266_v16, %v2586_v40 }
 0x236   : > { %v13121_v47 = vmax.f32 %v2267_v31, %v2588_v43  ;;  %v3248_v34 = vmax.f32 %v3029_v15, %v12697_v35  ;;  %v3249_v54 = vmax.f32 %v3030_v44, %v12710_v24  ;;  %v3250_v27 = vmax.f32 %v3031_v25, %v12712_v57  ;;  %v9904_v25 = vld [vmem:[%s10247_s19 + $0x28] sm:$0xff] }
 0x237   : > { %9850 = vmatmul.msk.bf16.gmra.mxu3 %vm4010_vm12, %v8741_v45  ;;  %v6132_v63 = vmax.f32 %v16434_v13, %v12608_v12  ;;  %v6133_v22 = vmax.f32 %v16435_v58, %v12602_v49  ;;  %v13131_v10 = vmax.f32 %v6131_v41, %v12787_v39  ;;  %v8323_v23 = vmax.f32 %v12414_v56, %v12667_v42 }
 0x238   : > { %v3467_v9 = vmax.f32 %v3248_v34, %v12944_v32  ;;  %v3468_v30 = vmax.f32 %v3249_v54, %v12946_v33  ;;  %v8324_v3 = vmax.f32 %v16489_v20, %v16488_v8  ;;  %v3469_v2 = vmax.f32 %v3250_v27, %v16490_v18  ;;  %9804 = vmatmul.msk.bf16.gmra.mxu1 %vm4010_vm12, %v9904_v25 }
 0x239   : > { %v6315_v13 = vmax.f32 %v6132_v63, %v12793_v52  ;;  %v6316_v53 = vmax.f32 %v6133_v22, %v12789_v14  ;;  %v6497_v48 = vmax.f32 %v13131_v10, %v13012_v51  ;;  %v13151_v56 = vmax.f32 %v8323_v23, %v12844_v61 }
 0x23a   : > { %v13143_v58 = vmax.f32 %v3467_v9, %v13106_v17  ;;  %v13146_v50 = vmax.f32 %v3468_v30, %v13119_v21  ;;  %v13154_v5 = vmax.f32 %v3469_v2, %v13121_v47  ;;  %v13159_v31 = vmax.f32 %v8324_v3, %v12846_v1 }
 0x23b   : > { %v6498_v29 = vmax.f32 %v6315_v13, %v13014_v19  ;;  %v6499_v16 = vmax.f32 %v6316_v53, %v13004_v7  ;;  %v6737_v3 = vpack.c.bf16 %v13028_v38, %v13028_v38  ;;  %v6739_v38 = vpack.c.bf16 %v13020_v60, %v13020_v60 }
 0x23c   : > { %16491 = vst [vmem:[#allocation21_spill] sm:$0xff] %v13143_v58  ;;  %v4544_v36 = vrot.slane %v13143_v58, 1  ;;  %v4545_v46 = vrot.slane %v13146_v50, 1  ;;  %v4952_v0 = vrot.slane %v13143_v58, 2  ;;  %v4953_v45 = vrot.slane %v13146_v50, 2 }
 0x23d   : > { %16492 = vst [vmem:[#allocation22_spill] sm:$0xff] %v13146_v50  ;;  %v4547_v15 = vrot.slane %v13154_v5, 1  ;;  %v4955_v44 = vrot.slane %v13154_v5, 2  ;;  %v5360_v40 = vrot.slane %v13143_v58, 3  ;;  %v5361_v43 = vrot.slane %v13146_v50, 3 }
 0x23e   : > { %16493 = vst [vmem:[#allocation29_spill] sm:$0xff] %v13154_v5  ;;  %v4546_v41 = vsel %vm870_vm6, %v4544_v36, %v4545_v46  ;;  %v4954_v34 = vsel %vm1403_vm9, %v4952_v0, %v4953_v45  ;;  %v5363_v54 = vrot.slane %v13154_v5, 3  ;;  %v5768_v27 = vrot.slane %v13143_v58, 4 }
 0x23f   : > { %v4548_v63 = vsel %vm870_vm6, %v4545_v46, %v4547_v15  ;;  %v4712_v22 = vmax.f32 %v13143_v58, %v4546_v41  ;;  %v4714_v10 = vmax.f32 %v13154_v5, %v4547_v15  ;;  %v4956_v9 = vsel %vm1403_vm9, %v4953_v45, %v4955_v44  ;;  %v310_v58 = vld [vmem:[%s10247_s19 + $0x5c] sm:$0xf] }
 0x240   : > { %v4713_v30 = vmax.f32 %v13146_v50, %v4548_v63  ;;  %v5362_v23 = vsel %vm1936_vm10, %v5360_v40, %v5361_v43  ;;  %v5769_v20 = vrot.slane %v13146_v50, 4  ;;  %v5364_v53 = vsel %vm1936_vm10, %v5361_v43, %v5363_v54  ;;  %v16494_v63 = vld [vmem:[#allocation63_spill] sm:$0xff]  ;;  %v309_v50 = vld [vmem:[%s10247_s19 + $0x58] sm:$0xf] }
 0x241   : > { %v5120_v2 = vmax.f32 %v4712_v22, %v4954_v34  ;;  %v5122_v13 = vmax.f32 %v4714_v10, %v4955_v44  ;;  %v5771_v36 = vrot.slane %v13154_v5, 4  ;;  %v6738_v15 = vpack.c.bf16 %v13034_v4, %v13034_v4 }
 0x242   : > { %v5121_v46 = vmax.f32 %v4713_v30, %v4956_v9  ;;  %v5770_v0 = vsel %vm2469_vm11, %v5768_v27, %v5769_v20  ;;  %v9820_v43 = vrot.slane %v6737_v3, 9  ;;  %v3749_v22 = vpack.c.bf16 %v16494_v63, %v16494_v63  ;;  %v16495_v30 = vld [vmem:[#allocation53_spill] sm:$0xff] }
 0x243   : > { %v5528_v40 = vmax.f32 %v5120_v2, %v5362_v23  ;;  %v5530_v25 = vmax.f32 %v5122_v13, %v5363_v54  ;;  %v5772_v41 = vsel %vm2469_vm11, %v5769_v20, %v5771_v36  ;;  %v6861_v34 = vrot.slane %v6738_v15, 5 }
 0x244   : > { %v5529_v44 = vmax.f32 %v5121_v46, %v5364_v53  ;;  %v6864_v9 = vrot.slane %v6739_v38, 5  ;;  %v3750_v4 = vpack.c.bf16 %v16495_v30, %v16495_v30  ;;  %v16498_v53 = vld [vmem:[#allocation64_spill] sm:$0xff]  ;;  %v9708_v15 = vrot.slane %v3749_v22, 10 }
 0x245   : > { %v13196_v27 = vmax.f32 %v5528_v40, %v5770_v0  ;;  %v13198_v10 = vmax.f32 %v5530_v25, %v5771_v36  ;;  %v6862_v60 = vsel %vm10295_vm5, %v9820_v43, %v6861_v34  ;;  %v6863_v20 = vrot.slane %v6861_v34, 4 }
 0x246   : > { %v13202_v54 = vmax.f32 %v5529_v44, %v5772_v41  ;;  %v6947_v13 = vunpack.c.l.b16 %v6862_v60  ;;  %v3751_v36 = vpack.c.bf16 %v16498_v53, %v16498_v53  ;;  %v3882_v40 = vrot.slane %v3750_v4, 6 }
 0x247   : > { %v13209_v3 = vmax.f32 %v6497_v48, %v13196_v27  ;;  %v13212_v2 = vmax.f32 %v6499_v16, %v13198_v10  ;;  %v6865_v0 = vsel %vm10295_vm5, %v6863_v20, %v6864_v9 }
 0x248   : > { %v13217_v46 = vmax.f32 %v6498_v29, %v13202_v54  ;;  %v3885_v5 = vrot.slane %v3751_v36, 6  ;;  %v605_v36 = vld [vmem:[#allocation2 + $0x11c] sm:$0x3] }
 0x249   : > { %16496 = vst [vmem:[#allocation30_spill] sm:$0xff] %v13209_v3  ;;  %v7321_v25 = vrot.slane %v13209_v3, 1  ;;  %v7324_v48 = vrot.slane %v13212_v2, 1  ;;  %v7581_v41 = vrot.slane %v13209_v3, 2  ;;  %v7584_v16 = vrot.slane %v13212_v2, 2 }
 0x24a   : > { %16497 = vst [vmem:[#allocation31_spill] sm:$0xff] %v13212_v2  ;;  %v7322_v38 = vrot.slane %v13217_v46, 1  ;;  %v7582_v44 = vrot.slane %v13217_v46, 2  ;;  %v7841_v29 = vrot.slane %v13209_v3, 3  ;;  %v7842_v43 = vrot.slane %v13217_v46, 3 }
 0x24b   : > { %16499 = vst [vmem:[#allocation23_spill] sm:$0xff] %v13217_v46  ;;  %v7844_v34 = vrot.slane %v13212_v2, 3  ;;  %v8101_v63 = vrot.slane %v13209_v3, 4  ;;  %v8102_v22 = vrot.slane %v13217_v46, 4  ;;  %v8104_v9 = vrot.slane %v13212_v2, 4 }
 0x24c   : > { %v7323_v30 = vsel %vm870_vm6, %v7321_v25, %v7322_v38  ;;  %v7325_v4 = vsel %vm870_vm6, %v7322_v38, %v7324_v48  ;;  %v7583_v60 = vsel %vm1403_vm9, %v7581_v41, %v7582_v44  ;;  %v7585_v20 = vsel %vm1403_vm9, %v7582_v44, %v7584_v16 }
 0x24d   : > { %v7437_v53 = vmax.f32 %v13209_v3, %v7323_v30  ;;  %v7438_v23 = vmax.f32 %v13217_v46, %v7325_v4  ;;  %v7843_v45 = vsel %vm1936_vm10, %v7841_v29, %v7842_v43  ;;  %v7845_v8 = vsel %vm1936_vm10, %v7842_v43, %v7844_v34 }
 0x24e   : > { %v8103_v2 = vsel %vm2469_vm11, %v8101_v63, %v8102_v22  ;;  %v6948_v25 = vunpack.c.l.b16 %v6865_v0  ;;  %v3883_v48 = vsel %vm11713_vm15, %v9708_v15, %v3882_v40  ;;  %v8105_v16 = vsel %vm2469_vm11, %v8102_v22, %v8104_v9  ;;  %v311_v22 = vld [vmem:[%s10247_s19 + $0x60] sm:$0xf] }
 0x24f   : > { %v7697_v41 = vmax.f32 %v7437_v53, %v7583_v60  ;;  %v7698_v38 = vmax.f32 %v7438_v23, %v7585_v20  ;;  %v3884_v44 = vrot.slane %v3882_v40, 4  ;;  %v3968_v4 = vunpack.c.l.b16 %v3883_v48  ;;  %v312_v53 = vld [vmem:[%s10247_s19 + $0x64] sm:$0xf] }
 0x250   : > { %v6974_v30 = vpack.c.b16 %v6948_v25, %v6947_v13  ;;  %v409_v3 = vrot.slane %v309_v50, 5  ;;  %v411_v29 = vrot.slane %v310_v58, 5  ;;  %v3032_v0 = vmax.f32 %v12531_v6, %v12697_v35 }
 0x251   : > { %v7957_v46 = vmax.f32 %v7697_v41, %v7843_v45  ;;  %v7958_v1 = vmax.f32 %v7698_v38, %v7845_v8  ;;  %v3886_v43 = vsel %vm11713_vm15, %v3884_v44, %v3885_v5  ;;  %v13257_v58 = vunpack.c.l.bf16 %v605_v36  ;;  %v609_v36 = vld [vmem:[#allocation2 + $0x12c] sm:$0x3] }
 0x252   : > { %9836 = vmatmul.msk.bf16.gmra.mxu2 %vm4010_vm12, %v6974_v30  ;;  %v3969_v15 = vunpack.c.l.b16 %v3886_v43  ;;  %v410_v23 = vrot.slane %v409_v3, 4  ;;  %v413_v34 = vrot.slane %v411_v29, 4  ;;  %518 = vst.msk [vmem:[#allocation2 + $0x110] sm:$0x8] %vm483_vm7, %v409_v3  ;;  %v3033_v6 = vmax.f32 %v12541_v55, %v12710_v24 }
 0x253   : > { %v13253_v13 = vmax.f32 %v7957_v46, %v8103_v2  ;;  %v13255_v50 = vmax.f32 %v7958_v1, %v8105_v16  ;;  %v16501_v45 = vmax.f32 %v13151_v56, %v13075_v59  ;;  %v16502_v1 = vmax.f32 %v13159_v31, %v13077_v11 }
 0x254   : > { %v3995_v8 = vpack.c.b16 %v3969_v15, %v3968_v4  ;;  %v412_v5 = vsel %vm10295_vm5, %v410_v23, %v411_v29  ;;  %520 = vst.msk [vmem:[#allocation2 + $0x118] sm:$0x7] %vm486_vm8, %v413_v34  ;;  %v3034_v46 = vmax.f32 %v12543_v26, %v12712_v57  ;;  %v13276_v40 = vmax.f32 %v3032_v0, %v12944_v32 }
 0x255   : > { %16500 = vst [vmem:[#allocation24_spill] sm:$0xff] %v13255_v50  ;;  %v8617_v3 = vmax.f32 %v16501_v45, %v13253_v13  ;;  %v8618_v2 = vmax.f32 %v16502_v1, %v13255_v50  ;;  %v13280_v55 = vmax.f32 %v3033_v6, %v12946_v33  ;;  %v6134_v56 = vmax.f32 %v12606_v62, %v12787_v39 }
 0x256   : > { %519 = vst.msk [vmem:[#allocation2 + $0x114] sm:$0xf] %vm173_vm0, %v412_v5  ;;  %9724 = vmatmul.msk.bf16.gmra.mxu0 %vm4010_vm12, %v3995_v8  ;;  %v6135_v31 = vmax.f32 %v12608_v12, %v12793_v52  ;;  %v6136_v63 = vmax.f32 %v12602_v49, %v12789_v14  ;;  %v995_v60 = vrot.slane %v13257_v58, 1  ;;  %v13291_v20 = vmax.f32 %v3034_v46, %v16490_v18 }
 0x257   : > { %v8649_v9 = vpack.c.bf16 %v8617_v3, %v8617_v3  ;;  %v8650_v26 = vpack.c.bf16 %v8618_v2, %v8618_v2  ;;  %v1528_v25 = vrot.slane %v13257_v58, 2  ;;  %v13296_v48 = vmax.f32 %v6134_v56, %v13012_v51 }
 0x258   : > { %v13299_v62 = vmax.f32 %v6135_v31, %v13014_v19  ;;  %v13302_v12 = vmax.f32 %v6136_v63, %v13004_v7  ;;  %v2061_v38 = vrot.slane %v13257_v58, 3  ;;  %v414_v16 = vrot.slane %v311_v22, 5 }
 0x259   : > { %v8714_v49 = vunpack.c.l.b16 %v8649_v9  ;;  %v8715_v41 = vunpack.c.l.b16 %v8650_v26  ;;  %v2594_v44 = vrot.slane %v13257_v58, 4  ;;  %v416_v29 = vrot.slane %v312_v53, 5 }
 0x25a   : > { %v3472_v15 = vmax.f32 %v13291_v20, %v13121_v47  ;;  %v415_v34 = vrot.slane %v414_v16, 4  ;;  %521 = vst.msk [vmem:[#allocation2 + $0x120] sm:$0x8] %vm483_vm7, %v414_v16  ;;  %v13322_v46 = vunpack.c.l.bf16 %v609_v36 }
 0x25b   : > { %v8742_v43 = vpack.c.b16 %v8715_v41, %v8714_v49  ;;  %v604_v0 = vld [vmem:[#allocation2 + $0x118] sm:$0xf]  ;;  %v418_v45 = vrot.slane %v416_v29, 4 }
 0x25c   : > { %v699_v8 = vunpack.c.l.bf16 %v604_v0  ;;  %v417_v2 = vsel %vm10295_vm5, %v415_v34, %v416_v29 }
 0x25d   : > { %v10043_v58 = vld [vmem:[#allocation2 + $0x110] sm:$0xff]   ;;  %9851 = vmatmul.msk.bf16.gmra.mxu3 %vm4010_vm12, %v8742_v43  ;;  %522 = vst.msk [vmem:[#allocation2 + $0x124] sm:$0xf] %vm173_vm0, %v417_v2 }
 0x25e   : > { %v9985_v3 = vunpack.c.l.bf16 %v10043_v58  ;;  %v9986_v1 = vunpack.c.h.bf16 %v10043_v58  ;;  %v993_v56 = vrot.slane %v699_v8, 1  ;;  %v1526_v31 = vrot.slane %v699_v8, 2  ;;  %523 = vst.msk [vmem:[#allocation2 + $0x128] sm:$0x7] %vm486_vm8, %v418_v45 }
 0x25f   : > { %v2059_v63 = vrot.slane %v699_v8, 3  ;;  %v2592_v22 = vrot.slane %v699_v8, 4 }
 0x260   : > { %v990_v9 = vrot.slane %v9985_v3, 1  ;;  %v991_v26 = vrot.slane %v9986_v1, 1  ;;  %v1523_v20 = vrot.slane %v9985_v3, 2  ;;  %v1524_v53 = vrot.slane %v9986_v1, 2 }
 0x261   : > { %v996_v49 = vsel %vm870_vm6, %v993_v56, %v995_v60  ;;  %v1529_v41 = vsel %vm1403_vm9, %v1526_v31, %v1528_v25  ;;  %v2056_v16 = vrot.slane %v9985_v3, 3  ;;  %v2057_v29 = vrot.slane %v9986_v1, 3 }
 0x262   : > { %v992_v36 = vsel %vm870_vm6, %v990_v9, %v991_v26  ;;  %v994_v43 = vsel %vm870_vm6, %v991_v26, %v993_v56  ;;  %v1204_v0 = vmax.f32 %v699_v8, %v996_v49  ;;  %v1525_v34 = vsel %vm1403_vm9, %v1523_v20, %v1524_v53  ;;  %v16503_v20 = vld [vmem:[#allocation67_spill] sm:$0xff]  ;;  %v16504_v49 = vld [vmem:[#allocation54_spill] sm:$0xff] }
 0x263   : > { %v1202_v58 = vmax.f32 %v9985_v3, %v992_v36  ;;  %v1203_v2 = vmax.f32 %v9986_v1, %v994_v43  ;;  %v1527_v5 = vsel %vm1403_vm9, %v1524_v53, %v1526_v31  ;;  %v2058_v23 = vsel %vm1936_vm10, %v2056_v16, %v2057_v29 }
 0x264   : > { %v1737_v45 = vmax.f32 %v1204_v0, %v1529_v41  ;;  %v2060_v60 = vsel %vm1936_vm10, %v2057_v29, %v2059_v63  ;;  %v2062_v25 = vsel %vm1936_vm10, %v2059_v63, %v2061_v38  ;;  %v2589_v6 = vrot.slane %v9985_v3, 4  ;;  %v10044_v53 = vld [vmem:[#allocation2 + $0x120] sm:$0xff]   ;;  %v16508_v0 = vld [vmem:[#allocation30_spill] sm:$0xff] }
 0x265   : > { %v1735_v4 = vmax.f32 %v1202_v58, %v1525_v34  ;;  %v1736_v30 = vmax.f32 %v1203_v2, %v1527_v5  ;;  %v2590_v9 = vrot.slane %v9986_v1, 4  ;;  %v2595_v56 = vsel %vm2469_vm11, %v2592_v22, %v2594_v44 }
 0x266   : > { %v2270_v8 = vmax.f32 %v1737_v45, %v2062_v25  ;;  %v8325_v26 = vmax.f32 %v12667_v42, %v12844_v61  ;;  %v8326_v31 = vmax.f32 %v16504_v49, %v16503_v20  ;;  %v16506_v42 = vld [vmem:[#allocation23_spill] sm:$0xff]  ;;  %v6740_v34 = vpack.c.bf16 %v16508_v0, %v16508_v0 }
 0x267   : > { %v2268_v16 = vmax.f32 %v1735_v4, %v2058_v23  ;;  %v2269_v29 = vmax.f32 %v1736_v30, %v2060_v60  ;;  %v2591_v38 = vsel %vm2469_vm11, %v2589_v6, %v2590_v9  ;;  %v2593_v3 = vsel %vm2469_vm11, %v2590_v9, %v2592_v22  ;;  %v16513_v60 = vld [vmem:[#allocation31_spill] sm:$0xff] }
 0x268   : > { %v13343_v5 = vmax.f32 %v2270_v8, %v2595_v56  ;;  %v13346_v44 = vmax.f32 %v8325_v26, %v13075_v59  ;;  %v13349_v1 = vmax.f32 %v8326_v31, %v13077_v11  ;;  %v6741_v63 = vpack.c.bf16 %v16506_v42, %v16506_v42 }
 0x269   : > { %v13353_v36 = vmax.f32 %v2268_v16, %v2591_v38  ;;  %v13355_v43 = vmax.f32 %v2269_v29, %v2593_v3  ;;  %v13357_v30 = vunpack.c.l.bf16 %v10044_v53  ;;  %v13359_v4 = vunpack.c.h.bf16 %v10044_v53  ;;  %v9905_v16 = vld [vmem:[%s10247_s19 + $0x30] sm:$0xff] }
 0x26a   : > { %16505 = vst [vmem:[#allocation26_spill] sm:$0xff] %v13343_v5  ;;  %v13362_v23 = vmax.f32 %v3472_v15, %v13343_v5  ;;  %v16509_v58 = vmax.f32 %v13276_v40, %v13106_v17  ;;  %v16511_v15 = vmax.f32 %v13280_v55, %v13119_v21  ;;  %v6742_v25 = vpack.c.bf16 %v16513_v60, %v16513_v60 }
 0x26b   : > { %v6868_v9 = vrot.slane %v6741_v63, 5  ;;  %9805 = vmatmul.msk.bf16.gmra.mxu1 %vm4010_vm12, %v9905_v16 }
 0x26c   : > { %16507 = vst [vmem:[#allocation27_spill] sm:$0xff] %v13362_v23  ;;  %v13374_v2 = vmax.f32 %v16509_v58, %v13353_v36  ;;  %v13380_v45 = vmax.f32 %v16511_v15, %v13355_v43  ;;  %v4552_v56 = vrot.slane %v13362_v23, 1  ;;  %v4960_v8 = vrot.slane %v13362_v23, 2 }
 0x26d   : > { %v5368_v26 = vrot.slane %v13362_v23, 3  ;;  %v5776_v40 = vrot.slane %v13362_v23, 4  ;;  %v6870_v20 = vrot.slane %v6868_v9, 4  ;;  %v6871_v11 = vrot.slane %v6742_v25, 5 }
 0x26e   : > { %16510 = vst [vmem:[#allocation28_spill] sm:$0xff] %v13374_v2  ;;  %v4549_v49 = vrot.slane %v13374_v2, 1  ;;  %v4550_v31 = vrot.slane %v13380_v45, 1  ;;  %v4957_v55 = vrot.slane %v13374_v2, 2  ;;  %v4958_v53 = vrot.slane %v13380_v45, 2 }
 0x26f   : > { %16512 = vst [vmem:[#allocation4_spill] sm:$0xff] %v13380_v45  ;;  %v4717_v29 = vmax.f32 %v13362_v23, %v4552_v56  ;;  %v5365_v38 = vrot.slane %v13374_v2, 3  ;;  %v5366_v3 = vrot.slane %v13380_v45, 3  ;;  %v5773_v42 = vrot.slane %v13374_v2, 4 }
 0x270   : > { %v4551_v63 = vsel %vm870_vm6, %v4549_v49, %v4550_v31  ;;  %v4553_v0 = vsel %vm870_vm6, %v4550_v31, %v4552_v56  ;;  %v4959_v58 = vsel %vm1403_vm9, %v4957_v55, %v4958_v53  ;;  %v4961_v15 = vsel %vm1403_vm9, %v4958_v53, %v4960_v8 }
 0x271   : > { %v4715_v60 = vmax.f32 %v13374_v2, %v4551_v63  ;;  %v4716_v22 = vmax.f32 %v13380_v45, %v4553_v0  ;;  %v5125_v6 = vmax.f32 %v4717_v29, %v4960_v8  ;;  %v5367_v41 = vsel %vm1936_vm10, %v5365_v38, %v5366_v3  ;;  %v16514_v8 = vld [vmem:[#allocation65_spill] sm:$0xff] }
 0x272   : > { %v5369_v23 = vsel %vm1936_vm10, %v5366_v3, %v5368_v26  ;;  %v5774_v5 = vrot.slane %v13380_v45, 4  ;;  %v9821_v49 = vrot.slane %v6740_v34, 9  ;;  %v3752_v29 = vpack.c.bf16 %v16514_v8, %v16514_v8 }
 0x273   : > { %v5123_v56 = vmax.f32 %v4715_v60, %v4959_v58  ;;  %v5124_v31 = vmax.f32 %v4716_v22, %v4961_v15  ;;  %v5533_v55 = vmax.f32 %v5125_v6, %v5368_v26  ;;  %v6872_v34 = vsel %vm10295_vm5, %v6870_v20, %v6871_v11  ;;  %v608_v22 = vld [vmem:[#allocation2 + $0x128] sm:$0xf]  ;;  %v16515_v26 = vld [vmem:[#allocation55_spill] sm:$0xff] }
 0x274   : > { %v5775_v53 = vsel %vm2469_vm11, %v5773_v42, %v5774_v5  ;;  %v5777_v16 = vsel %vm2469_vm11, %v5774_v5, %v5776_v40  ;;  %v6869_v63 = vsel %vm10295_vm5, %v9821_v49, %v6868_v9  ;;  %v6950_v25 = vunpack.c.l.b16 %v6872_v34  ;;  %v16516_v5 = vld [vmem:[#allocation66_spill] sm:$0xff] }
 0x275   : > { %v5531_v38 = vmax.f32 %v5123_v56, %v5367_v41  ;;  %v5532_v3 = vmax.f32 %v5124_v31, %v5369_v23  ;;  %v13413_v0 = vmax.f32 %v5533_v55, %v5776_v40  ;;  %v6949_v6 = vunpack.c.l.b16 %v6869_v63 }
 0x276   : > { %v3753_v42 = vpack.c.bf16 %v16515_v26, %v16515_v26  ;;  %v3754_v58 = vpack.c.bf16 %v16516_v5, %v16516_v5  ;;  %v16517_v41 = vmax.f32 %v13302_v12, %v13198_v10  ;;  %v9709_v11 = vrot.slane %v3752_v29, 10 }
 0x277   : > { %v13421_v9 = vmax.f32 %v5531_v38, %v5775_v53  ;;  %v13423_v15 = vmax.f32 %v5532_v3, %v5777_v16  ;;  %v6975_v20 = vpack.c.b16 %v6950_v25, %v6949_v6  ;;  %v13431_v49 = vunpack.c.l.bf16 %v608_v22 }
 0x278   : > { %v13429_v23 = vmax.f32 %v16517_v41, %v13413_v0  ;;  %v3889_v40 = vrot.slane %v3753_v42, 6  ;;  %v3892_v60 = vrot.slane %v3754_v58, 6  ;;  %v16518_v56 = vmax.f32 %v13296_v48, %v13196_v27 }
 0x279   : > { %v16519_v55 = vmax.f32 %v13299_v62, %v13202_v54  ;;  %9837 = vmatmul.msk.bf16.gmra.mxu2 %vm4010_vm12, %v6975_v20 }
 0x27a   : > { %v13437_v31 = vmax.f32 %v16518_v56, %v13421_v9  ;;  %v7329_v12 = vrot.slane %v13429_v23, 1  ;;  %v7589_v16 = vrot.slane %v13429_v23, 2  ;;  %v7849_v63 = vrot.slane %v13429_v23, 3 }
 0x27b   : > { %v13443_v53 = vmax.f32 %v16519_v55, %v13423_v15  ;;  %v8109_v8 = vrot.slane %v13429_v23, 4  ;;  %v3890_v48 = vsel %vm11713_vm15, %v9709_v11, %v3889_v40  ;;  %v3891_v29 = vrot.slane %v3889_v40, 4 }
 0x27c   : > { %v7326_v38 = vrot.slane %v13437_v31, 1  ;;  %v7586_v3 = vrot.slane %v13437_v31, 2  ;;  %v7846_v22 = vrot.slane %v13437_v31, 3  ;;  %v8106_v25 = vrot.slane %v13437_v31, 4 }
 0x27d   : > { %v7327_v62 = vrot.slane %v13443_v53, 1  ;;  %v7587_v34 = vrot.slane %v13443_v53, 2  ;;  %v7847_v6 = vrot.slane %v13443_v53, 3  ;;  %v8107_v26 = vrot.slane %v13443_v53, 4 }
 0x27f   : > { %v7328_v42 = vsel %vm870_vm6, %v7326_v38, %v7327_v62  ;;  %v7330_v5 = vsel %vm870_vm6, %v7327_v62, %v7329_v12  ;;  %v7588_v58 = vsel %vm1403_vm9, %v7586_v3, %v7587_v34  ;;  %v7590_v41 = vsel %vm1403_vm9, %v7587_v34, %v7589_v16 }
 0x280   : > { %v7439_v11 = vmax.f32 %v13437_v31, %v7328_v42  ;;  %v7440_v20 = vmax.f32 %v13443_v53, %v7330_v5  ;;  %v7848_v40 = vsel %vm1936_vm10, %v7846_v22, %v7847_v6  ;;  %v7850_v56 = vsel %vm1936_vm10, %v7847_v6, %v7849_v63 }
 0x281   : > { %v8108_v55 = vsel %vm2469_vm11, %v8106_v25, %v8107_v26  ;;  %v8110_v45 = vsel %vm2469_vm11, %v8107_v26, %v8109_v8  ;;  %v3893_v38 = vsel %vm11713_vm15, %v3891_v29, %v3892_v60  ;;  %v3970_v12 = vunpack.c.l.b16 %v3890_v48 }
 0x282   : > { %v7699_v62 = vmax.f32 %v7439_v11, %v7588_v58  ;;  %v7700_v3 = vmax.f32 %v7440_v20, %v7590_v41  ;;  %v3971_v2 = vunpack.c.l.b16 %v3893_v38  ;;  %v997_v16 = vrot.slane %v13357_v30, 1 }
 0x283   : > { %v998_v34 = vrot.slane %v13359_v4, 1  ;;  %v1000_v42 = vrot.slane %v13431_v49, 1  ;;  %v1530_v22 = vrot.slane %v13357_v30, 2  ;;  %v1531_v63 = vrot.slane %v13359_v4, 2 }
 0x284   : > { %v7959_v6 = vmax.f32 %v7699_v62, %v7848_v40  ;;  %v7960_v25 = vmax.f32 %v7700_v3, %v7850_v56  ;;  %v3996_v8 = vpack.c.b16 %v3971_v2, %v3970_v12  ;;  %v1533_v26 = vrot.slane %v13431_v49, 2 }
 0x285   : > { %v999_v60 = vsel %vm870_vm6, %v997_v16, %v998_v34  ;;  %v1001_v48 = vsel %vm870_vm6, %v998_v34, %v1000_v42  ;;  %v16520_v29 = vrot.slane %v13322_v46, 1  ;;  %v1532_v58 = vsel %vm1403_vm9, %v1530_v22, %v1531_v63 }
 0x286   : > { %v13484_v41 = vmax.f32 %v7959_v6, %v8108_v55  ;;  %v13486_v11 = vmax.f32 %v7960_v25, %v8110_v45  ;;  %9725 = vmatmul.msk.bf16.gmra.mxu0 %vm4010_vm12, %v3996_v8  ;;  %v1205_v2 = vmax.f32 %v13357_v30, %v999_v60  ;;  %v1206_v20 = vmax.f32 %v13359_v4, %v1001_v48 }
 0x287   : > { %v1003_v5 = vsel %vm870_vm6, %v1000_v42, %v16520_v29  ;;  %v1534_v56 = vsel %vm1403_vm9, %v1531_v63, %v1533_v26  ;;  %v1535_v38 = vrot.slane %v13322_v46, 2  ;;  %v2063_v12 = vrot.slane %v13357_v30, 3 }
 0x288   : > { %16521 = vst [vmem:[#allocation39_spill] sm:$0xff] %v13484_v41  ;;  %v1207_v40 = vmax.f32 %v13431_v49, %v1003_v5  ;;  %v16523_v55 = vmax.f32 %v13346_v44, %v13253_v13  ;;  %v16524_v62 = vmax.f32 %v13349_v1, %v13255_v50  ;;  %v1738_v16 = vmax.f32 %v1205_v2, %v1532_v58 }
 0x289   : > { %16522 = vst [vmem:[#allocation41_spill] sm:$0xff] %v13486_v11  ;;  %v1739_v34 = vmax.f32 %v1206_v20, %v1534_v56  ;;  %v1536_v42 = vsel %vm1403_vm9, %v1533_v26, %v1535_v38  ;;  %v2064_v22 = vrot.slane %v13359_v4, 3  ;;  %v2066_v63 = vrot.slane %v13431_v49, 3 }
 0x28a   : > { %v8619_v45 = vmax.f32 %v16523_v55, %v13484_v41  ;;  %v8620_v3 = vmax.f32 %v16524_v62, %v13486_v11  ;;  %v2068_v6 = vrot.slane %v13322_v46, 3  ;;  %v1740_v60 = vmax.f32 %v1207_v40, %v1536_v42 }
 0x28b   : > { %v2596_v44 = vrot.slane %v13357_v30, 4  ;;  %v2065_v48 = vsel %vm1936_vm10, %v2063_v12, %v2064_v22  ;;  %v2067_v1 = vsel %vm1936_vm10, %v2064_v22, %v2066_v63  ;;  %v2597_v5 = vrot.slane %v13359_v4, 4 }
 0x28c   : > { %v8651_v25 = vpack.c.bf16 %v8619_v45, %v8619_v45  ;;  %v8652_v8 = vpack.c.bf16 %v8620_v3, %v8620_v3  ;;  %v2069_v29 = vsel %vm1936_vm10, %v2066_v63, %v2068_v6  ;;  %v2271_v2 = vmax.f32 %v1738_v16, %v2065_v48  ;;  %v16527_v48 = vld [vmem:[#allocation26_spill] sm:$0xff] }
 0x28d   : > { %v2272_v20 = vmax.f32 %v1739_v34, %v2067_v1  ;;  %v2273_v56 = vmax.f32 %v1740_v60, %v2069_v29  ;;  %v2598_v38 = vsel %vm2469_vm11, %v2596_v44, %v2597_v5  ;;  %v2599_v55 = vrot.slane %v13431_v49, 4  ;;  %v16526_v60 = vld [vmem:[#allocation67_spill] sm:$0xff] }
 0x28e   : > { %v8716_v26 = vunpack.c.l.b16 %v8651_v25  ;;  %v8717_v58 = vunpack.c.l.b16 %v8652_v8  ;;  %v2601_v40 = vrot.slane %v13322_v46, 4  ;;  %v13515_v45 = vmax.f32 %v2271_v2, %v2598_v38  ;;  %v16525_v8 = vld [vmem:[#allocation19_spill] sm:$0xff] }
 0x28f   : > { %v3035_v12 = vmax.f32 %v12697_v35, %v12944_v32  ;;  %v3036_v4 = vmax.f32 %v12710_v24, %v12946_v33  ;;  %v2600_v62 = vsel %vm2469_vm11, %v2597_v5, %v2599_v55  ;;  %v3037_v16 = vmax.f32 %v12712_v57, %v16490_v18 }
 0x290   : > { %v8743_v30 = vpack.c.b16 %v8717_v58, %v8716_v26  ;;  %v2602_v3 = vsel %vm2469_vm11, %v2599_v55, %v2601_v40  ;;  %v6137_v49 = vmax.f32 %v12787_v39, %v13012_v51  ;;  %v13528_v46 = vmax.f32 %v2272_v20, %v2600_v62 }
 0x291   : > { %v13530_v34 = vmax.f32 %v2273_v56, %v2602_v3  ;;  %v3254_v35 = vmax.f32 %v3035_v12, %v13106_v17  ;;  %v3255_v24 = vmax.f32 %v3036_v4, %v13119_v21  ;;  %v3256_v42 = vmax.f32 %v3037_v16, %v13121_v47  ;;  %v9906_v3 = vld [vmem:[%s10247_s19 + $0x38] sm:$0xff] }
 0x292   : > { %9852 = vmatmul.msk.bf16.gmra.mxu3 %vm4010_vm12, %v8743_v30  ;;  %v6138_v22 = vmax.f32 %v12793_v52, %v13014_v19  ;;  %v6139_v57 = vmax.f32 %v12789_v14, %v13004_v7  ;;  %v6320_v39 = vmax.f32 %v6137_v49, %v13196_v27  ;;  %v8327_v25 = vmax.f32 %v12844_v61, %v13075_v59 }
 0x293   : > { %v3473_v63 = vmax.f32 %v3254_v35, %v13353_v36  ;;  %v3474_v6 = vmax.f32 %v3255_v24, %v13355_v43  ;;  %v8328_v44 = vmax.f32 %v16526_v60, %v16525_v8  ;;  %v3475_v1 = vmax.f32 %v3256_v42, %v16527_v48  ;;  %9806 = vmatmul.msk.bf16.gmra.mxu1 %vm4010_vm12, %v9906_v3 }
 0x294   : > { %v6321_v29 = vmax.f32 %v6138_v22, %v13202_v54  ;;  %v6322_v5 = vmax.f32 %v6139_v57, %v13198_v10  ;;  %v6503_v26 = vmax.f32 %v6320_v39, %v13421_v9  ;;  %v13561_v2 = vmax.f32 %v8327_v25, %v13253_v13 }
 0x295   : > { %v13549_v52 = vmax.f32 %v3473_v63, %v13515_v45  ;;  %v13552_v14 = vmax.f32 %v3474_v6, %v13528_v46  ;;  %v13557_v61 = vmax.f32 %v3475_v1, %v13530_v34  ;;  %v13564_v20 = vmax.f32 %v8328_v44, %v13255_v50 }
 0x296   : > { %v6504_v58 = vmax.f32 %v6321_v29, %v13423_v15  ;;  %v6743_v60 = vpack.c.bf16 %v13437_v31, %v13437_v31  ;;  %v6745_v31 = vpack.c.bf16 %v13429_v23, %v13429_v23 }
 0x297   : > { %16528 = vst [vmem:[#allocation40_spill] sm:$0xff] %v13549_v52  ;;  %v4554_v56 = vrot.slane %v13549_v52, 1  ;;  %v4555_v38 = vrot.slane %v13552_v14, 1  ;;  %v4962_v55 = vrot.slane %v13549_v52, 2  ;;  %v4963_v40 = vrot.slane %v13552_v14, 2 }
 0x298   : > { %16529 = vst [vmem:[#allocation42_spill] sm:$0xff] %v13552_v14  ;;  %v4557_v30 = vrot.slane %v13557_v61, 1  ;;  %v4965_v12 = vrot.slane %v13557_v61, 2  ;;  %v5370_v4 = vrot.slane %v13549_v52, 3  ;;  %v5371_v62 = vrot.slane %v13552_v14, 3 }
 0x299   : > { %16530 = vst [vmem:[#allocation14_spill] sm:$0xff] %v13557_v61  ;;  %v4556_v16 = vsel %vm870_vm6, %v4554_v56, %v4555_v38  ;;  %v4964_v49 = vsel %vm1403_vm9, %v4962_v55, %v4963_v40  ;;  %v5373_v35 = vrot.slane %v13557_v61, 3  ;;  %v5778_v24 = vrot.slane %v13549_v52, 4 }
 0x29a   : > { %v4558_v42 = vsel %vm870_vm6, %v4555_v38, %v4557_v30  ;;  %v4718_v22 = vmax.f32 %v13549_v52, %v4556_v16  ;;  %v4720_v57 = vmax.f32 %v13557_v61, %v4557_v30  ;;  %v4966_v39 = vsel %vm1403_vm9, %v4963_v40, %v4965_v12  ;;  %v314_v52 = vld [vmem:[%s10247_s19 + $0x6c] sm:$0xf] }
 0x29b   : > { %v4719_v63 = vmax.f32 %v13552_v14, %v4558_v42  ;;  %v5372_v6 = vsel %vm1936_vm10, %v5370_v4, %v5371_v62  ;;  %v5779_v25 = vrot.slane %v13552_v14, 4  ;;  %v5374_v29 = vsel %vm1936_vm10, %v5371_v62, %v5373_v35  ;;  %v16531_v42 = vld [vmem:[#allocation7_spill] sm:$0xff]  ;;  %v313_v14 = vld [vmem:[%s10247_s19 + $0x68] sm:$0xf] }
 0x29c   : > { %v5126_v44 = vmax.f32 %v4718_v22, %v4964_v49  ;;  %v5128_v1 = vmax.f32 %v4720_v57, %v4965_v12  ;;  %v5781_v56 = vrot.slane %v13557_v61, 4  ;;  %v6505_v40 = vmax.f32 %v6322_v5, %v13413_v0 }
 0x29d   : > { %v5127_v38 = vmax.f32 %v4719_v63, %v4966_v39  ;;  %v5780_v55 = vsel %vm2469_vm11, %v5778_v24, %v5779_v25  ;;  %v6744_v30 = vpack.c.bf16 %v13443_v53, %v13443_v53  ;;  %v9822_v49 = vrot.slane %v6743_v60, 9  ;;  %v16533_v39 = vld [vmem:[#allocation11_spill] sm:$0xff] }
 0x29e   : > { %v5534_v4 = vmax.f32 %v5126_v44, %v5372_v6  ;;  %v5536_v3 = vmax.f32 %v5128_v1, %v5373_v35  ;;  %v5782_v16 = vsel %vm2469_vm11, %v5779_v25, %v5781_v56  ;;  %v3755_v22 = vpack.c.bf16 %v16531_v42, %v16531_v42  ;;  %v16537_v1 = vld [vmem:[#allocation6_spill] sm:$0xff] }
 0x29f   : > { %v5535_v12 = vmax.f32 %v5127_v38, %v5374_v29  ;;  %v6875_v62 = vrot.slane %v6744_v30, 5  ;;  %v6878_v5 = vrot.slane %v6745_v31, 5  ;;  %v3756_v53 = vpack.c.bf16 %v16533_v39, %v16533_v39 }
 0x2a0   : > { %v13600_v57 = vmax.f32 %v5534_v4, %v5780_v55  ;;  %v13602_v24 = vmax.f32 %v5536_v3, %v5781_v56  ;;  %v3757_v29 = vpack.c.bf16 %v16537_v1, %v16537_v1  ;;  %v9710_v55 = vrot.slane %v3755_v22, 10 }
 0x2a1   : > { %v13606_v35 = vmax.f32 %v5535_v12, %v5782_v16  ;;  %v6876_v23 = vsel %vm10295_vm5, %v9822_v49, %v6875_v62  ;;  %v6877_v6 = vrot.slane %v6875_v62, 4  ;;  %v3896_v30 = vrot.slane %v3756_v53, 6 }
 0x2a2   : > { %16532 = vst [vmem:[#allocation43_spill] sm:$0xff] %v13602_v24  ;;  %v13613_v25 = vmax.f32 %v6503_v26, %v13600_v57  ;;  %v13616_v60 = vmax.f32 %v6505_v40, %v13602_v24  ;;  %v6951_v44 = vunpack.c.l.b16 %v6876_v23  ;;  %v3899_v61 = vrot.slane %v3757_v29, 6 }
 0x2a3   : > { %16534 = vst [vmem:[#allocation15_spill] sm:$0xff] %v13606_v35  ;;  %v13621_v56 = vmax.f32 %v6504_v58, %v13606_v35  ;;  %v6879_v38 = vsel %vm10295_vm5, %v6877_v6, %v6878_v5 }
 0x2a4   : > { %16535 = vst [vmem:[#allocation44_spill] sm:$0xff] %v13613_v25  ;;  %v7331_v4 = vrot.slane %v13613_v25, 1  ;;  %v7334_v26 = vrot.slane %v13616_v60, 1  ;;  %v7591_v3 = vrot.slane %v13613_v25, 2  ;;  %v7594_v40 = vrot.slane %v13616_v60, 2 }
 0x2a5   : > { %16536 = vst [vmem:[#allocation45_spill] sm:$0xff] %v13616_v60  ;;  %v7332_v16 = vrot.slane %v13621_v56, 1  ;;  %v7592_v31 = vrot.slane %v13621_v56, 2  ;;  %v7851_v58 = vrot.slane %v13613_v25, 3  ;;  %v7852_v12 = vrot.slane %v13621_v56, 3 }
 0x2a6   : > { %16538 = vst [vmem:[#allocation32_spill] sm:$0xff] %v13621_v56  ;;  %v7854_v49 = vrot.slane %v13616_v60, 3  ;;  %v8111_v62 = vrot.slane %v13613_v25, 4  ;;  %v8112_v42 = vrot.slane %v13621_v56, 4  ;;  %v8114_v22 = vrot.slane %v13616_v60, 4 }
 0x2a7   : > { %v7333_v5 = vsel %vm870_vm6, %v7331_v4, %v7332_v16  ;;  %v7335_v39 = vsel %vm870_vm6, %v7332_v16, %v7334_v26  ;;  %v7593_v53 = vsel %vm1403_vm9, %v7591_v3, %v7592_v31  ;;  %v7595_v23 = vsel %vm1403_vm9, %v7592_v31, %v7594_v40 }
 0x2a8   : > { %v7441_v6 = vmax.f32 %v13613_v25, %v7333_v5  ;;  %v7442_v1 = vmax.f32 %v13621_v56, %v7335_v39  ;;  %v7853_v63 = vsel %vm1936_vm10, %v7851_v58, %v7852_v12  ;;  %v7855_v24 = vsel %vm1936_vm10, %v7852_v12, %v7854_v49  ;;  %v613_v49 = vld [vmem:[#allocation2 + $0x13c] sm:$0x3] }
 0x2a9   : > { %v8113_v60 = vsel %vm2469_vm11, %v8111_v62, %v8112_v42  ;;  %v6952_v4 = vunpack.c.l.b16 %v6879_v38  ;;  %v3897_v26 = vsel %vm11713_vm15, %v9710_v55, %v3896_v30  ;;  %v8115_v40 = vsel %vm2469_vm11, %v8112_v42, %v8114_v22  ;;  %v315_v42 = vld [vmem:[%s10247_s19 + $0x70] sm:$0xf] }
 0x2aa   : > { %v7701_v3 = vmax.f32 %v7441_v6, %v7593_v53  ;;  %v7702_v16 = vmax.f32 %v7442_v1, %v7595_v23  ;;  %v3898_v31 = vrot.slane %v3896_v30, 4  ;;  %v3972_v39 = vunpack.c.l.b16 %v3897_v26  ;;  %v316_v1 = vld [vmem:[%s10247_s19 + $0x74] sm:$0xf] }
 0x2ab   : > { %v6976_v5 = vpack.c.b16 %v6952_v4, %v6951_v44  ;;  %v419_v25 = vrot.slane %v313_v14, 5  ;;  %v421_v58 = vrot.slane %v314_v52, 5  ;;  %v8524_v12 = vmax.f32 %v13564_v20, %v13486_v11 }
 0x2ac   : > { %v7961_v29 = vmax.f32 %v7701_v3, %v7853_v63  ;;  %v7962_v56 = vmax.f32 %v7702_v16, %v7855_v24  ;;  %v3900_v38 = vsel %vm11713_vm15, %v3898_v31, %v3899_v61  ;;  %v3038_v52 = vmax.f32 %v12944_v32, %v13106_v17 }
 0x2ad   : > { %9838 = vmatmul.msk.bf16.gmra.mxu2 %vm4010_vm12, %v6976_v5  ;;  %v3973_v55 = vunpack.c.l.b16 %v3900_v38  ;;  %v420_v62 = vrot.slane %v419_v25, 4  ;;  %v423_v53 = vrot.slane %v421_v58, 4  ;;  %524 = vst.msk [vmem:[#allocation2 + $0x130] sm:$0x8] %vm483_vm7, %v419_v25  ;;  %v13666_v63 = vunpack.c.l.bf16 %v613_v49 }
 0x2ae   : > { %v13659_v14 = vmax.f32 %v7961_v29, %v8113_v60  ;;  %v13661_v24 = vmax.f32 %v7962_v56, %v8115_v40  ;;  %v3039_v25 = vmax.f32 %v12946_v33, %v13119_v21  ;;  %v16541_v32 = vmax.f32 %v13561_v2, %v13484_v41 }
 0x2af   : > { %v3997_v20 = vpack.c.b16 %v3973_v55, %v3972_v39  ;;  %v422_v61 = vsel %vm10295_vm5, %v420_v62, %v421_v58  ;;  %526 = vst.msk [vmem:[#allocation2 + $0x138] sm:$0x7] %vm486_vm8, %v423_v53  ;;  %v3040_v56 = vmax.f32 %v16490_v18, %v13121_v47  ;;  %v13680_v30 = vmax.f32 %v3038_v52, %v13353_v36 }
 0x2b0   : > { %16539 = vst [vmem:[#allocation33_spill] sm:$0xff] %v13659_v14  ;;  %v8621_v60 = vmax.f32 %v16541_v32, %v13659_v14  ;;  %v8622_v44 = vmax.f32 %v8524_v12, %v13661_v24  ;;  %v6140_v33 = vmax.f32 %v13012_v51, %v13196_v27  ;;  %v13686_v2 = vmax.f32 %v3039_v25, %v13355_v43 }
 0x2b1   : > { %16540 = vst [vmem:[#allocation18_spill] sm:$0xff] %v13661_v24  ;;  %9726 = vmatmul.msk.bf16.gmra.mxu0 %vm4010_vm12, %v3997_v20  ;;  %v6141_v6 = vmax.f32 %v13014_v19, %v13202_v54  ;;  %v1009_v18 = vrot.slane %v13666_v63, 1  ;;  %v1542_v4 = vrot.slane %v13666_v63, 2  ;;  %v13694_v26 = vmax.f32 %v3040_v56, %v16527_v48 }
 0x2b2   : > { %525 = vst.msk [vmem:[#allocation2 + $0x134] sm:$0xf] %vm173_vm0, %v422_v61  ;;  %v8653_v22 = vpack.c.bf16 %v8621_v60, %v8621_v60  ;;  %v8654_v23 = vpack.c.bf16 %v8622_v44, %v8622_v44  ;;  %v6142_v51 = vmax.f32 %v13004_v7, %v13198_v10  ;;  %v13699_v40 = vmax.f32 %v6140_v33, %v13421_v9 }
 0x2b3   : > { %v424_v31 = vrot.slane %v315_v42, 5  ;;  %v2075_v5 = vrot.slane %v13666_v63, 3  ;;  %v2608_v19 = vrot.slane %v13666_v63, 4  ;;  %v426_v58 = vrot.slane %v316_v1, 5 }
 0x2b4   : > { %v8718_v3 = vunpack.c.l.b16 %v8653_v22  ;;  %v8719_v16 = vunpack.c.l.b16 %v8654_v23  ;;  %v13708_v7 = vmax.f32 %v6141_v6, %v13423_v15  ;;  %v3478_v53 = vmax.f32 %v13694_v26, %v13530_v34 }
 0x2b5   : > { %v425_v49 = vrot.slane %v424_v31, 4  ;;  %527 = vst.msk [vmem:[#allocation2 + $0x140] sm:$0x8] %vm483_vm7, %v424_v31  ;;  %v13714_v52 = vmax.f32 %v6142_v51, %v13413_v0  ;;  %v428_v20 = vrot.slane %v426_v58, 4 }
 0x2b6   : > { %v8744_v29 = vpack.c.b16 %v8719_v16, %v8718_v3  ;;  %v612_v12 = vld [vmem:[#allocation2 + $0x138] sm:$0xf] }
 0x2b7   : > { %v705_v62 = vunpack.c.l.bf16 %v612_v12  ;;  %v427_v32 = vsel %vm10295_vm5, %v425_v49, %v426_v58  ;;  %529 = vst.msk [vmem:[#allocation2 + $0x148] sm:$0x7] %vm486_vm8, %v428_v20 }
 0x2b8   : > { %9853 = vmatmul.msk.bf16.gmra.mxu3 %vm4010_vm12, %v8744_v29  ;;  %528 = vst.msk [vmem:[#allocation2 + $0x144] sm:$0xf] %vm173_vm0, %v427_v32 }
 0x2b9   : > { %v10045_v55 = vld [vmem:[#allocation2 + $0x130] sm:$0xff]   ;;  %v1007_v60 = vrot.slane %v705_v62, 1  ;;  %v1540_v44 = vrot.slane %v705_v62, 2  ;;  %v2073_v56 = vrot.slane %v705_v62, 3  ;;  %v2606_v33 = vrot.slane %v705_v62, 4 }
 0x2ba   : > { %v9993_v61 = vunpack.c.l.bf16 %v10045_v55  ;;  %v9994_v63 = vunpack.c.h.bf16 %v10045_v55 }
 0x2bb   : > { %v1010_v1 = vsel %vm870_vm6, %v1007_v60, %v1009_v18  ;;  %v1543_v26 = vsel %vm1403_vm9, %v1540_v44, %v1542_v4  ;;  %v2076_v4 = vsel %vm1936_vm10, %v2073_v56, %v2075_v5 }
 0x2bc   : > { %v1004_v42 = vrot.slane %v9993_v61, 1  ;;  %v1005_v22 = vrot.slane %v9994_v63, 1  ;;  %v1537_v23 = vrot.slane %v9993_v61, 2  ;;  %v1538_v6 = vrot.slane %v9994_v63, 2 }
 0x2bd   : > { %v2070_v51 = vrot.slane %v9993_v61, 3  ;;  %v2071_v3 = vrot.slane %v9994_v63, 3  ;;  %v1210_v58 = vmax.f32 %v705_v62, %v1010_v1  ;;  %v2603_v25 = vrot.slane %v9993_v61, 4  ;;  %v617_v62 = vld [vmem:[#allocation2 + $0x14c] sm:$0x3] }
 0x2be   : > { %v1006_v16 = vsel %vm870_vm6, %v1004_v42, %v1005_v22  ;;  %v1008_v31 = vsel %vm870_vm6, %v1005_v22, %v1007_v60  ;;  %v1539_v29 = vsel %vm1403_vm9, %v1537_v23, %v1538_v6  ;;  %v1541_v55 = vsel %vm1403_vm9, %v1538_v6, %v1540_v44 }
 0x2bf   : > { %v1208_v12 = vmax.f32 %v9993_v61, %v1006_v16  ;;  %v1209_v49 = vmax.f32 %v9994_v63, %v1008_v31  ;;  %v2072_v32 = vsel %vm1936_vm10, %v2070_v51, %v2071_v3  ;;  %v1743_v20 = vmax.f32 %v1210_v58, %v1543_v26 }
 0x2c0   : > { %v2074_v18 = vsel %vm1936_vm10, %v2071_v3, %v2073_v56  ;;  %v2604_v42 = vrot.slane %v9994_v63, 4  ;;  %v2609_v60 = vsel %vm2469_vm11, %v2606_v33, %v2608_v19  ;;  %v8329_v44 = vmax.f32 %v13075_v59, %v13253_v13  ;;  %v10046_v63 = vld [vmem:[#allocation2 + $0x140] sm:$0xff]   ;;  %v16543_v3 = vld [vmem:[#allocation32_spill] sm:$0xff] }
 0x2c1   : > { %v1741_v38 = vmax.f32 %v1208_v12, %v1539_v29  ;;  %v1742_v39 = vmax.f32 %v1209_v49, %v1541_v55  ;;  %v2276_v22 = vmax.f32 %v1743_v20, %v2076_v4  ;;  %v8330_v6 = vmax.f32 %v16525_v8, %v13255_v50  ;;  %v16542_v19 = vld [vmem:[#allocation43_spill] sm:$0xff] }
 0x2c2   : > { %v2605_v5 = vsel %vm2469_vm11, %v2603_v25, %v2604_v42  ;;  %v2607_v61 = vsel %vm2469_vm11, %v2604_v42, %v2606_v33  ;;  %v6508_v51 = vmax.f32 %v13714_v52, %v16542_v19  ;;  %v6747_v16 = vpack.c.bf16 %v16543_v3, %v16543_v3  ;;  %v16545_v33 = vld [vmem:[#allocation44_spill] sm:$0xff] }
 0x2c3   : > { %v2274_v1 = vmax.f32 %v1741_v38, %v2072_v32  ;;  %v2275_v26 = vmax.f32 %v1742_v39, %v2074_v18  ;;  %v13741_v56 = vmax.f32 %v2276_v22, %v2609_v60  ;;  %v13747_v31 = vunpack.c.l.bf16 %v617_v62  ;;  %v16550_v32 = vld [vmem:[#allocation45_spill] sm:$0xff] }
 0x2c4   : > { %v13754_v39 = vmax.f32 %v8329_v44, %v13484_v41  ;;  %v13757_v38 = vmax.f32 %v8330_v6, %v13486_v11  ;;  %v6746_v52 = vpack.c.bf16 %v16545_v33, %v16545_v33  ;;  %v13764_v58 = vunpack.c.l.bf16 %v10046_v63  ;;  %v9907_v6 = vld [vmem:[%s10247_s19 + $0x40] sm:$0xff] }
 0x2c5   : > { %v13749_v59 = vmax.f32 %v2274_v1, %v2605_v5  ;;  %v13751_v8 = vmax.f32 %v2275_v26, %v2607_v61  ;;  %v13760_v25 = vmax.f32 %v3478_v53, %v13741_v56  ;;  %v13766_v29 = vunpack.c.h.bf16 %v10046_v63  ;;  %9807 = vmatmul.msk.bf16.gmra.mxu1 %vm4010_vm12, %v9907_v6 }
 0x2c6   : > { %v16546_v12 = vmax.f32 %v13680_v30, %v13515_v45  ;;  %v16548_v55 = vmax.f32 %v13686_v2, %v13528_v46  ;;  %v6748_v20 = vpack.c.bf16 %v16550_v32, %v16550_v32  ;;  %v6882_v18 = vrot.slane %v6747_v16, 5 }
 0x2c7   : > { %16544 = vst [vmem:[#allocation12_spill] sm:$0xff] %v13760_v25  ;;  %v4562_v4 = vrot.slane %v13760_v25, 1  ;;  %v4970_v42 = vrot.slane %v13760_v25, 2  ;;  %v5378_v60 = vrot.slane %v13760_v25, 3  ;;  %v5786_v30 = vrot.slane %v13760_v25, 4 }
 0x2c8   : > { %v13772_v49 = vmax.f32 %v16546_v12, %v13749_v59  ;;  %v13778_v53 = vmax.f32 %v16548_v55, %v13751_v8  ;;  %v6884_v50 = vrot.slane %v6882_v18, 4  ;;  %v6885_v11 = vrot.slane %v6748_v20, 5 }
 0x2c9   : > { %v4723_v1 = vmax.f32 %v13760_v25, %v4562_v4 }
 0x2ca   : > { %16547 = vst [vmem:[#allocation34_spill] sm:$0xff] %v13772_v49  ;;  %v4559_v62 = vrot.slane %v13772_v49, 1  ;;  %v4560_v22 = vrot.slane %v13778_v53, 1  ;;  %v4967_v2 = vrot.slane %v13772_v49, 2  ;;  %v4968_v44 = vrot.slane %v13778_v53, 2 }
 0x2cb   : > { %16549 = vst [vmem:[#allocation35_spill] sm:$0xff] %v13778_v53  ;;  %v5375_v26 = vrot.slane %v13772_v49, 3  ;;  %v5376_v5 = vrot.slane %v13778_v53, 3  ;;  %v5783_v61 = vrot.slane %v13772_v49, 4  ;;  %v5131_v32 = vmax.f32 %v4723_v1, %v4970_v42 }
 0x2cc   : > { %v4561_v63 = vsel %vm870_vm6, %v4559_v62, %v4560_v22  ;;  %v4563_v3 = vsel %vm870_vm6, %v4560_v22, %v4562_v4  ;;  %v4969_v16 = vsel %vm1403_vm9, %v4967_v2, %v4968_v44  ;;  %v4971_v33 = vsel %vm1403_vm9, %v4968_v44, %v4970_v42 }
 0x2cd   : > { %v4721_v12 = vmax.f32 %v13772_v49, %v4561_v63  ;;  %v4722_v55 = vmax.f32 %v13778_v53, %v4563_v3  ;;  %v5377_v23 = vsel %vm1936_vm10, %v5375_v26, %v5376_v5  ;;  %v5379_v25 = vsel %vm1936_vm10, %v5376_v5, %v5378_v60  ;;  %v16552_v3 = vld [vmem:[#allocation21_spill] sm:$0xff] }
 0x2ce   : > { %v5784_v19 = vrot.slane %v13778_v53, 4  ;;  %v9823_v62 = vrot.slane %v6746_v52, 9  ;;  %v5539_v2 = vmax.f32 %v5131_v32, %v5378_v60  ;;  %v6886_v52 = vsel %vm10295_vm5, %v6884_v50, %v6885_v11 }
 0x2cf   : > { %v5129_v4 = vmax.f32 %v4721_v12, %v4969_v16  ;;  %v5130_v22 = vmax.f32 %v4722_v55, %v4971_v33  ;;  %v16555_v55 = vld [vmem:[#allocation29_spill] sm:$0xff] }
 0x2d0   : > { %v5785_v44 = vsel %vm2469_vm11, %v5783_v61, %v5784_v19  ;;  %v5787_v6 = vsel %vm2469_vm11, %v5784_v19, %v5786_v30  ;;  %v6883_v42 = vsel %vm10295_vm5, %v9823_v62, %v6882_v18  ;;  %v13811_v5 = vmax.f32 %v5539_v2, %v5786_v30  ;;  %v4260_v18 = vpop.f32.mrf.mxu1  ;;  %v16554_v30 = vld [vmem:[#allocation22_spill] sm:$0xff] }
 0x2d1   : > { %v5537_v1 = vmax.f32 %v5129_v4, %v5377_v23  ;;  %v5538_v26 = vmax.f32 %v5130_v22, %v5379_v25  ;;  %v6953_v60 = vunpack.c.l.b16 %v6883_v42  ;;  %v6954_v61 = vunpack.c.l.b16 %v6886_v52  ;;  %v4072_v25 = vpop.f32.mrf.mxu0 }
 0x2d2   : > { %16551 = vst [vmem:[#allocation20_spill] sm:$0xff] %v13811_v5  ;;  %v3758_v19 = vpack.c.bf16 %v16552_v3, %v16552_v3  ;;  %v13824_v23 = vmax.f32 %v6508_v51, %v13811_v5  ;;  %v3759_v50 = vpack.c.bf16 %v16554_v30, %v16554_v30  ;;  %v13828_v12 = vadd.f32 %v4260_v18, %v4072_v25 }
 0x2d3   : > { %v13819_v16 = vmax.f32 %v5537_v1, %v5785_v44  ;;  %v13821_v33 = vmax.f32 %v5538_v26, %v5787_v6  ;;  %v6977_v11 = vpack.c.b16 %v6954_v61, %v6953_v60  ;;  %v3760_v32 = vpack.c.bf16 %v16555_v55, %v16555_v55 }
 0x2d4   : > { %v9711_v62 = vrot.slane %v3758_v19, 10  ;;  %v16556_v4 = vmax.f32 %v13699_v40, %v13600_v57  ;;  %v16557_v51 = vmax.f32 %v13708_v7, %v13606_v35  ;;  %v7339_v44 = vrot.slane %v13824_v23, 1 }
 0x2d5   : > { %16553 = vst [vmem:[#allocation50_spill] sm:$0xff] %v13821_v33  ;;  %v7599_v6 = vrot.slane %v13824_v23, 2  ;;  %v7859_v42 = vrot.slane %v13824_v23, 3  ;;  %v8119_v1 = vrot.slane %v13824_v23, 4  ;;  %9839 = vmatmul.msk.bf16.gmra.mxu2 %vm4010_vm12, %v6977_v11  ;;  %v3903_v26 = vrot.slane %v3759_v50, 6 }
 0x2d6   : > { %v13836_v22 = vmax.f32 %v16556_v4, %v13819_v16  ;;  %v13842_v2 = vmax.f32 %v16557_v51, %v13821_v33  ;;  %v3906_v40 = vrot.slane %v3760_v32, 6  ;;  %v616_v32 = vld [vmem:[#allocation2 + $0x148] sm:$0xf] }
 0x2d8   : > { %v7336_v52 = vrot.slane %v13836_v22, 1  ;;  %v7337_v60 = vrot.slane %v13842_v2, 1  ;;  %v7596_v7 = vrot.slane %v13836_v22, 2  ;;  %v7597_v61 = vrot.slane %v13842_v2, 2 }
 0x2d9   : > { %v7856_v3 = vrot.slane %v13836_v22, 3  ;;  %v7857_v19 = vrot.slane %v13842_v2, 3  ;;  %v8116_v25 = vrot.slane %v13836_v22, 4  ;;  %v8117_v18 = vrot.slane %v13842_v2, 4 }
 0x2da   : > { %v7338_v30 = vsel %vm870_vm6, %v7336_v52, %v7337_v60  ;;  %v7340_v50 = vsel %vm870_vm6, %v7337_v60, %v7339_v44  ;;  %v7598_v11 = vsel %vm1403_vm9, %v7596_v7, %v7597_v61  ;;  %v7600_v55 = vsel %vm1403_vm9, %v7597_v61, %v7599_v6 }
 0x2db   : > { %v7443_v4 = vmax.f32 %v13836_v22, %v7338_v30  ;;  %v7444_v51 = vmax.f32 %v13842_v2, %v7340_v50  ;;  %v7858_v20 = vsel %vm1936_vm10, %v7856_v3, %v7857_v19  ;;  %v7860_v63 = vsel %vm1936_vm10, %v7857_v19, %v7859_v42 }
 0x2dc   : > { %v8118_v53 = vsel %vm2469_vm11, %v8116_v25, %v8117_v18  ;;  %v8120_v49 = vsel %vm2469_vm11, %v8117_v18, %v8119_v1  ;;  %v3904_v44 = vsel %vm11713_vm15, %v9711_v62, %v3903_v26  ;;  %v3905_v52 = vrot.slane %v3903_v26, 4 }
 0x2dd   : > { %v7703_v60 = vmax.f32 %v7443_v4, %v7598_v11  ;;  %v7704_v7 = vmax.f32 %v7444_v51, %v7600_v55  ;;  %v3974_v6 = vunpack.c.l.b16 %v3904_v44  ;;  %v13869_v61 = vunpack.c.l.bf16 %v616_v32 }
 0x2de   : > { %v3907_v30 = vsel %vm11713_vm15, %v3905_v52, %v3906_v40  ;;  %v1011_v3 = vrot.slane %v13764_v58, 1  ;;  %v1012_v42 = vrot.slane %v13766_v29, 1  ;;  %v1016_v19 = vrot.slane %v13747_v31, 1 }
 0x2df   : > { %v7963_v25 = vmax.f32 %v7703_v60, %v7858_v20  ;;  %v7964_v1 = vmax.f32 %v7704_v7, %v7860_v63  ;;  %v3975_v18 = vunpack.c.l.b16 %v3907_v30  ;;  %v1014_v62 = vrot.slane %v13869_v61, 1 }
 0x2e0   : > { %v1013_v26 = vsel %vm870_vm6, %v1011_v3, %v1012_v42  ;;  %v1544_v50 = vrot.slane %v13764_v58, 2  ;;  %v1545_v11 = vrot.slane %v13766_v29, 2  ;;  %v1547_v55 = vrot.slane %v13869_v61, 2 }
 0x2e1   : > { %v13881_v40 = vmax.f32 %v7963_v25, %v8118_v53  ;;  %v13883_v32 = vmax.f32 %v7964_v1, %v8120_v49  ;;  %v3998_v4 = vpack.c.b16 %v3975_v18, %v3974_v6  ;;  %v1015_v51 = vsel %vm870_vm6, %v1012_v42, %v1014_v62 }
 0x2e2   : > { %v1017_v63 = vsel %vm870_vm6, %v1014_v62, %v1016_v19  ;;  %v1211_v20 = vmax.f32 %v13764_v58, %v1013_v26  ;;  %v1212_v44 = vmax.f32 %v13766_v29, %v1015_v51  ;;  %v1546_v52 = vsel %vm1403_vm9, %v1544_v50, %v1545_v11 }
 0x2e3   : > { %16558 = vst [vmem:[#allocation61_spill] sm:$0xff] %v13883_v32  ;;  %v16559_v60 = vmax.f32 %v13754_v39, %v13659_v14  ;;  %v16560_v49 = vmax.f32 %v13757_v38, %v13661_v24  ;;  %9727 = vmatmul.msk.bf16.gmra.mxu0 %vm4010_vm12, %v3998_v4  ;;  %v1213_v6 = vmax.f32 %v13869_v61, %v1017_v63  ;;  %v1549_v3 = vrot.slane %v13747_v31, 2 }
 0x2e4   : > { %v1548_v30 = vsel %vm1403_vm9, %v1545_v11, %v1547_v55  ;;  %v1744_v42 = vmax.f32 %v1211_v20, %v1546_v52  ;;  %v2077_v25 = vrot.slane %v13764_v58, 3  ;;  %v2078_v18 = vrot.slane %v13766_v29, 3 }
 0x2e5   : > { %v8623_v7 = vmax.f32 %v16559_v60, %v13881_v40  ;;  %v8624_v53 = vmax.f32 %v16560_v49, %v13883_v32  ;;  %v1745_v19 = vmax.f32 %v1212_v44, %v1548_v30  ;;  %v2080_v62 = vrot.slane %v13869_v61, 3 }
 0x2e6   : > { %v1550_v38 = vsel %vm1403_vm9, %v1547_v55, %v1549_v3  ;;  %v2082_v26 = vrot.slane %v13747_v31, 3  ;;  %v2610_v50 = vrot.slane %v13764_v58, 4  ;;  %v2611_v11 = vrot.slane %v13766_v29, 4 }
 0x2e7   : > { %v8655_v1 = vpack.c.bf16 %v8623_v7, %v8623_v7  ;;  %v8656_v39 = vpack.c.bf16 %v8624_v53, %v8624_v53  ;;  %v1746_v63 = vmax.f32 %v1213_v6, %v1550_v38  ;;  %v2079_v20 = vsel %vm1936_vm10, %v2077_v25, %v2078_v18  ;;  %v4074_v25 = vpop.f32.mrf.mxu0 }
 0x2e8   : > { %v2081_v44 = vsel %vm1936_vm10, %v2078_v18, %v2080_v62  ;;  %v2083_v52 = vsel %vm1936_vm10, %v2080_v62, %v2082_v26  ;;  %v2277_v60 = vmax.f32 %v1744_v42, %v2079_v20  ;;  %v2612_v7 = vsel %vm2469_vm11, %v2610_v50, %v2611_v11  ;;  %v16561_v20 = vld [vmem:[#allocation41_spill] sm:$0xff] }
 0x2e9   : > { %v8720_v4 = vunpack.c.l.b16 %v8655_v1  ;;  %v8721_v51 = vunpack.c.l.b16 %v8656_v39  ;;  %v2278_v55 = vmax.f32 %v1745_v19, %v2081_v44  ;;  %v2279_v53 = vmax.f32 %v1746_v63, %v2083_v52  ;;  %v4262_v1 = vpop.f32.mrf.mxu1  ;;  %v16562_v44 = vld [vmem:[#allocation24_spill] sm:$0xff] }
 0x2ea   : > { %v2613_v30 = vrot.slane %v13869_v61, 4  ;;  %v2615_v58 = vrot.slane %v13747_v31, 4  ;;  %v13915_v29 = vmax.f32 %v2277_v60, %v2612_v7  ;;  %v3041_v6 = vmax.f32 %v13106_v17, %v13353_v36 }
 0x2eb   : > { %v8745_v49 = vpack.c.b16 %v8721_v51, %v8720_v4  ;;  %v3042_v3 = vmax.f32 %v13119_v21, %v13355_v43  ;;  %v3043_v19 = vmax.f32 %v13121_v47, %v16527_v48  ;;  %v6143_v61 = vmax.f32 %v13196_v27, %v13421_v9 }
 0x2ec   : > { %v2614_v42 = vsel %vm2469_vm11, %v2611_v11, %v2613_v30  ;;  %v6144_v31 = vmax.f32 %v13202_v54, %v13423_v15  ;;  %v2616_v17 = vsel %vm2469_vm11, %v2613_v30, %v2615_v58  ;;  %v3260_v21 = vmax.f32 %v3041_v6, %v13515_v45  ;;  %v7049_v54 = vpop.f32.mrf.mxu2 }
 0x2ed   : > { %9854 = vmatmul.msk.bf16.gmra.mxu3 %vm4010_vm12, %v8745_v49  ;;  %v13930_v39 = vmax.f32 %v2278_v55, %v2614_v42  ;;  %v3261_v18 = vmax.f32 %v3042_v3, %v13528_v46  ;;  %v13934_v62 = vmax.f32 %v2279_v53, %v2616_v17  ;;  %v3262_v47 = vmax.f32 %v3043_v19, %v13530_v34  ;;  %v16565_v49 = vld [vmem:[#allocation43_spill] sm:$0xff] }
 0x2ee   : > { %v6145_v27 = vmax.f32 %v13198_v10, %v13413_v0  ;;  %v13940_v38 = vmax.f32 %v6143_v61, %v13600_v57  ;;  %v3479_v26 = vmax.f32 %v3260_v21, %v13749_v59  ;;  %v13945_v11 = vmax.f32 %v6144_v31, %v13606_v35 }
 0x2ef   : > { %v3480_v50 = vmax.f32 %v3261_v18, %v13751_v8  ;;  %v8331_v4 = vmax.f32 %v13253_v13, %v13484_v41  ;;  %v7129_v51 = vadd.f32 %v7049_v54, %v13828_v12  ;;  %v13950_v63 = vadd.f32 %v4262_v1, %v4074_v25 }
 0x2f0   : > { %v3481_v10 = vmax.f32 %v3262_v47, %v13741_v56  ;;  %v8332_v52 = vmax.f32 %v16562_v44, %v16561_v20  ;;  %v13956_v60 = vmax.f32 %v3479_v26, %v13915_v29  ;;  %v6328_v55 = vmax.f32 %v6145_v27, %v16565_v49 }
 0x2f1   : > { %v13959_v7 = vmax.f32 %v3480_v50, %v13930_v39  ;;  %v6509_v13 = vmax.f32 %v13940_v38, %v13819_v16  ;;  %v6510_v53 = vmax.f32 %v13945_v11, %v13821_v33  ;;  %v13970_v30 = vmax.f32 %v8331_v4, %v13659_v14 }
 0x2f2   : > { %16563 = vst [vmem:[#allocation51_spill] sm:$0xff] %v13956_v60  ;;  %v13965_v12 = vmax.f32 %v3481_v10, %v13934_v62  ;;  %v13973_v58 = vmax.f32 %v8332_v52, %v13661_v24  ;;  %v4564_v6 = vrot.slane %v13956_v60, 1  ;;  %v4972_v42 = vrot.slane %v13956_v60, 2  ;;  %v8818_v10 = vpop.f32.mrf.mxu3 }
 0x2f3   : > { %16564 = vst [vmem:[#allocation36_spill] sm:$0xff] %v13959_v7  ;;  %v4565_v3 = vrot.slane %v13959_v7, 1  ;;  %v4973_v19 = vrot.slane %v13959_v7, 2  ;;  %v5380_v25 = vrot.slane %v13956_v60, 3  ;;  %v5381_v1 = vrot.slane %v13959_v7, 3 }
 0x2f4   : > { %16566 = vst [vmem:[#allocation13_spill] sm:$0xff] %v13965_v12  ;;  %v4567_v61 = vrot.slane %v13965_v12, 1  ;;  %v4975_v31 = vrot.slane %v13965_v12, 2  ;;  %v5383_v18 = vrot.slane %v13965_v12, 3  ;;  %v5788_v47 = vrot.slane %v13956_v60, 4 }
 0x2f5   : > { %v4566_v17 = vsel %vm870_vm6, %v4564_v6, %v4565_v3  ;;  %v4974_v21 = vsel %vm1403_vm9, %v4972_v42, %v4973_v19  ;;  %v5382_v11 = vsel %vm1936_vm10, %v5380_v25, %v5381_v1  ;;  %v5789_v4 = vrot.slane %v13959_v7, 4 }
 0x2f6   : > { %v4568_v27 = vsel %vm870_vm6, %v4565_v3, %v4567_v61  ;;  %v4724_v38 = vmax.f32 %v13956_v60, %v4566_v17  ;;  %v4726_v54 = vmax.f32 %v13965_v12, %v4567_v61  ;;  %v4976_v26 = vsel %vm1403_vm9, %v4973_v19, %v4975_v31  ;;  %v14001_v19 = vld [vmem:[%s15818_s2] ss:$0 sm:$0xff] }
 0x2f7   : > { %v4725_v50 = vmax.f32 %v13959_v7, %v4568_v27  ;;  %v6749_v44 = vpack.c.bf16 %v13836_v22, %v13836_v22  ;;  %v5384_v3 = vsel %vm1936_vm10, %v5381_v1, %v5383_v18  ;;  %v5791_v42 = vrot.slane %v13965_v12, 4 }
 0x2f8   : > { %v5132_v52 = vmax.f32 %v4724_v38, %v4974_v21  ;;  %v5134_v6 = vmax.f32 %v4726_v54, %v4975_v31  ;;  %v5790_v25 = vsel %vm2469_vm11, %v5788_v47, %v5789_v4  ;;  %v6511_v17 = vmax.f32 %v6328_v55, %v13811_v5 }
 0x2f9   : > { %v5133_v61 = vmax.f32 %v4725_v50, %v4976_v26  ;;  %v5792_v1 = vsel %vm2469_vm11, %v5789_v4, %v5791_v42  ;;  %v8898_v27 = vadd.f32 %v8818_v10, %v7129_v51  ;;  %v6750_v54 = vpack.c.bf16 %v13842_v2, %v13842_v2  ;;  %v16570_v2 = vld [vmem:[#allocation28_spill] sm:$0xff] }
 0x2fa   : > { %v5540_v21 = vmax.f32 %v5132_v52, %v5382_v11  ;;  %v5542_v31 = vmax.f32 %v5134_v6, %v5383_v18  ;;  %v6751_v26 = vpack.c.bf16 %v13824_v23, %v13824_v23  ;;  %v9824_v50 = vrot.slane %v6749_v44, 9  ;;  %v9908_v11 = vld [vmem:[%s10247_s19 + $0x48] sm:$0xff] }
 0x2fb   : > { %v5541_v38 = vmax.f32 %v5133_v61, %v5384_v3  ;;  %v14019_v18 = vadd.f32 %v14001_v19, %v8898_v27  ;;  %v6889_v4 = vrot.slane %v6750_v54, 5  ;;  %v3761_v52 = vpack.c.bf16 %v16570_v2, %v16570_v2  ;;  %v16573_v3 = vld [vmem:[#allocation4_spill] sm:$0xff]  ;;  %9808 = vmatmul.msk.bf16.gmra.mxu1 %vm4010_vm12, %v9908_v11  ;;  %v7051_v11 = vpop.f32.mrf.mxu2 }
 0x2fc   : > { %v14012_v12 = vmax.f32 %v5540_v21, %v5790_v25  ;;  %v14014_v47 = vmax.f32 %v5542_v31, %v5791_v42  ;;  %v6892_v10 = vrot.slane %v6751_v26, 5  ;;  %v3762_v42 = vpack.c.bf16 %v16573_v3, %v16573_v3  ;;  %v16575_v31 = vld [vmem:[#allocation27_spill] sm:$0xff] }
 0x2fd   : > { %16568 = vst [vmem:[#allocation37_spill] sm:$0xff] %v14019_v18  ;;  %v14022_v51 = vmax.f32 %v5541_v38, %v5792_v1  ;;  %v9863_v6 = vmul.f32 -1.442695, %v14019_v18  ;;  %v6890_v25 = vsel %vm10295_vm5, %v9824_v50, %v6889_v4  ;;  %v6891_v21 = vrot.slane %v6889_v4, 4 }
 0x2fe   : > { %16567 = vst [vmem:[#allocation38_spill] sm:$0xff] %v14014_v47  ;;  %v14027_v23 = vmax.f32 %v6509_v13, %v14012_v12  ;;  %v14030_v44 = vmax.f32 %v6511_v17, %v14014_v47  ;;  %v3763_v13 = vpack.c.bf16 %v16575_v31, %v16575_v31  ;;  %v7130_v14 = vadd.f32 %v7051_v11, %v13950_v63  ;;  %v4077_v47 = vpop.f32.mrf.mxu0 }
 0x2ff   : > { %16569 = vst [vmem:[#allocation8_spill] sm:$0xff] %v14022_v51  ;;  %v14037_v61 = vmax.f32 %v6510_v53, %v14022_v51  ;;  %v4265_v51 = vpop.f32.mrf.mxu1  ;;  %10064 = vpow2.f32 %v9863_v6  ;;  %v9712_v63 = vrot.slane %v3761_v52, 10  ;;  %v318_v6 = vld [vmem:[%s10247_s19 + $0x7c] sm:$0xf] }
 0x300   : > { %16571 = vst [vmem:[#allocation49_spill] sm:$0xff] %v14027_v23  ;;  %v7341_v17 = vrot.slane %v14027_v23, 1  ;;  %v7344_v1 = vrot.slane %v14030_v44, 1  ;;  %v7601_v27 = vrot.slane %v14027_v23, 2  ;;  %v7604_v38 = vrot.slane %v14030_v44, 2 }
 0x301   : > { %16572 = vst [vmem:[#allocation46_spill] sm:$0xff] %v14030_v44  ;;  %v7342_v54 = vrot.slane %v14037_v61, 1  ;;  %v7602_v53 = vrot.slane %v14037_v61, 2  ;;  %v7861_v26 = vrot.slane %v14027_v23, 3  ;;  %v7862_v50 = vrot.slane %v14037_v61, 3 }
 0x302   : > { %16574 = vst [vmem:[#allocation60_spill] sm:$0xff] %v14037_v61  ;;  %v7864_v4 = vrot.slane %v14030_v44, 3  ;;  %v8121_v2 = vrot.slane %v14027_v23, 4  ;;  %v8122_v3 = vrot.slane %v14037_v61, 4  ;;  %v8124_v31 = vrot.slane %v14030_v44, 4 }
 0x303   : > { %v7343_v55 = vsel %vm870_vm6, %v7341_v17, %v7342_v54  ;;  %v7345_v22 = vsel %vm870_vm6, %v7342_v54, %v7344_v1  ;;  %v7603_v7 = vsel %vm1403_vm9, %v7601_v27, %v7602_v53  ;;  %v7605_v60 = vsel %vm1403_vm9, %v7602_v53, %v7604_v38  ;;  %v8820_v27 = vpop.f32.mrf.mxu3 }
 0x304   : > { %v7445_v20 = vmax.f32 %v14027_v23, %v7343_v55  ;;  %v7446_v24 = vmax.f32 %v14037_v61, %v7345_v22  ;;  %v7863_v41 = vsel %vm1936_vm10, %v7861_v26, %v7862_v50  ;;  %v7865_v44 = vsel %vm1936_vm10, %v7862_v50, %v7864_v4  ;;  %v317_v23 = vld [vmem:[%s10247_s19 + $0x78] sm:$0xf] }
 0x305   : > { %v8123_v17 = vsel %vm2469_vm11, %v8121_v2, %v8122_v3  ;;  %v6893_v1 = vsel %vm10295_vm5, %v6891_v21, %v6892_v10  ;;  %v6955_v22 = vunpack.c.l.b16 %v6890_v25  ;;  %v8125_v53 = vsel %vm2469_vm11, %v8122_v3, %v8124_v31 }
 0x306   : > { %v7705_v55 = vmax.f32 %v7445_v20, %v7603_v7  ;;  %v7706_v38 = vmax.f32 %v7446_v24, %v7605_v60  ;;  %v6956_v54 = vunpack.c.l.b16 %v6893_v1  ;;  %v3910_v26 = vrot.slane %v3762_v42, 6  ;;  %v10065_v60 = vpop.eup %10064 }
 0x307   : > { %v3913_v11 = vrot.slane %v3763_v13, 6  ;;  %v8899_v2 = vadd.f32 %v8820_v27, %v7130_v14  ;;  %v429_v7 = vrot.slane %v317_v23, 5  ;;  %v431_v52 = vrot.slane %v318_v6, 5 }
 0x308   : > { %v7965_v61 = vmax.f32 %v7705_v55, %v7863_v41  ;;  %v7966_v50 = vmax.f32 %v7706_v38, %v7865_v44  ;;  %v6978_v4 = vpack.c.b16 %v6956_v54, %v6955_v22  ;;  %v3911_v18 = vsel %vm11713_vm15, %v9712_v63, %v3910_v26  ;;  %v621_v44 = vld [vmem:[#allocation2 + $0x15c] sm:$0x3]  ;;  %v4267_v38 = vpop.f32.mrf.mxu1  ;;  %v7054_v63 = vpop.f32.mrf.mxu2 }
 0x309   : > { %v3912_v10 = vrot.slane %v3910_v26, 4  ;;  %v14078_v20 = vadd.f32 %v14001_v19, %v8899_v2  ;;  %v3976_v14 = vunpack.c.l.b16 %v3911_v18  ;;  %v16576_v42 = vmax.f32 %v13970_v30, %v13881_v40  ;;  %530 = vst.msk [vmem:[#allocation2 + $0x150] sm:$0x8] %vm483_vm7, %v429_v7  ;;  %v4079_v30 = vpop.f32.mrf.mxu0 }
 0x30a   : > { %v14072_v21 = vmax.f32 %v7965_v61, %v8123_v17  ;;  %v14074_v24 = vmax.f32 %v7966_v50, %v8125_v53  ;;  %9840 = vmatmul.msk.bf16.gmra.mxu2 %vm4010_vm12, %v6978_v4  ;;  %v16577_v25 = vmax.f32 %v13973_v58, %v13883_v32  ;;  %v14090_v3 = vadd.f32 1.0, %v10065_v60 }
 0x30b   : > { %v3914_v41 = vsel %vm11713_vm15, %v3912_v10, %v3913_v11  ;;  %v4266_v17 = vadd.f32 %v4265_v51, %v4077_v47  ;;  %v9864_v1 = vmul.f32 -1.442695, %v14078_v20  ;;  %v430_v18 = vrot.slane %v429_v7, 4 }
 0x30c   : > { %v8625_v61 = vmax.f32 %v16576_v42, %v14072_v21  ;;  %v8626_v13 = vmax.f32 %v16577_v25, %v14074_v24  ;;  %v3977_v31 = vunpack.c.l.b16 %v3914_v41  ;;  %v433_v23 = vrot.slane %v431_v52, 4 }
 0x30d   : > { %10066 = vrcp.f32 %v14090_v3  ;;  %v14095_v22 = vunpack.c.l.bf16 %v621_v44  ;;  %v9105_v58 = vand.u32 2147483648, %v14090_v3  ;;  %v3044_v47 = vmax.f32 %v13353_v36, %v13515_v45 }
 0x30e   : > { %v8657_v27 = vpack.c.bf16 %v8625_v61, %v8625_v61  ;;  %v8658_v55 = vpack.c.bf16 %v8626_v13, %v8626_v13  ;;  %v3999_v54 = vpack.c.b16 %v3977_v31, %v3976_v14  ;;  %10068 = vpow2.f32 %v9864_v1  ;;  %532 = vst.msk [vmem:[#allocation2 + $0x158] sm:$0x7] %vm486_vm8, %v433_v23 }
 0x30f   : > { %v432_v26 = vsel %vm10295_vm5, %v430_v18, %v431_v52  ;;  %v9103_v11 = vand.u32 2147483647, %v14090_v3  ;;  %v14104_v50 = vadd.f32 %v7054_v63, %v4266_v17  ;;  %v14107_v4 = vadd.f32 %v4267_v38, %v4079_v30  ;;  %v14122_v52 = vld [vmem:[#allocation2 + $0x160] sm:$0xff]  }
 0x310   : > { %v8722_v51 = vunpack.c.l.b16 %v8657_v27  ;;  %v8723_v53 = vunpack.c.l.b16 %v8658_v55  ;;  %9728 = vmatmul.msk.bf16.gmra.mxu0 %vm4010_vm12, %v3999_v54  ;;  %531 = vst.msk [vmem:[#allocation2 + $0x154] sm:$0xf] %vm173_vm0, %v432_v26  ;;  %v1023_v6 = vrot.slane %v14095_v22, 1  ;;  %v3045_v36 = vmax.f32 %v13355_v43, %v13528_v46 }
 0x311   : > { %v3046_v10 = vmax.f32 %v16527_v48, %v13530_v34  ;;  %vm9099_vm1 = vweird.f32 %v14090_v3  ;;  %v9106_v60 = vor.u32 1.1754944e-38, %v9105_v58  ;;  %v1556_v41 = vrot.slane %v14095_v22, 2 }
 0x312   : > { %v8746_v2 = vpack.c.b16 %v8723_v53, %v8722_v51  ;;  %v14118_v14 = vmax.f32 %v3044_v47, %v13749_v59  ;;  %v6146_v7 = vmax.f32 %v13421_v9, %v13600_v57  ;;  %v14126_v43 = vmax.f32 %v3045_v36, %v13751_v8 }
 0x313   : > { %v10067_v44 = vpop.eup %10066  ;;  %v14129_v48 = vmax.f32 %v3046_v10, %v13741_v56  ;;  %v6147_v42 = vmax.f32 %v13423_v15, %v13606_v35  ;;  %v6148_v61 = vmax.f32 %v13413_v0, %v16565_v49  ;;  %vm14136_vm0 = vcmp.eq.f32.partialorder %v9103_v11, 8.507059e+37 }
 0x314   : > { %9855 = vmatmul.msk.bf16.gmra.mxu3 %vm4010_vm12, %v8746_v2  ;;  %v10069_v25 = vpop.eup %10068  ;;  %v9095_v9 = vmul.f32 %v10067_v44, %v14090_v3  ;;  %v2089_v31 = vrot.slane %v14095_v22, 3  ;;  %v14143_v1 = vmax.f32 %v6146_v7, %v13819_v16  ;;  %vm9100_vm2 = vweird.f32 %v10067_v44 }
 0x315   : > { %v14145_v15 = vadd.f32 1.0, %v10069_v25  ;;  %v620_v18 = vld [vmem:[#allocation2 + $0x158] sm:$0xf]  ;;  %v14150_v23 = vunpack.c.l.bf16 %v14122_v52  ;;  %v14160_v54 = vmax.f32 %v6147_v42, %v13821_v33  ;;  %v14163_v47 = vmax.f32 %v6148_v61, %v13811_v5  ;;  %vm9101_vm4 = vmor %vm9099_vm1, %vm9100_vm2 }
 0x316   : > { %v9096_v27 = vsub.f32 1.0, %v9095_v9  ;;  %v14152_v55 = vunpack.c.l.bf16 %v620_v18 }
 0x317   : > { %10070 = vrcp.f32 %v14145_v15  ;;  %v10047_v58 = vld [vmem:[#allocation2 + $0x150] sm:$0xff]   ;;  %v9118_v2 = vand.u32 2147483647, %v14145_v15  ;;  %v9120_v36 = vand.u32 2147483648, %v14145_v15  ;;  %vm9114_vm7 = vweird.f32 %v14145_v15 }
 0x318   : > { %v9097_v53 = vmul.f32 %v10067_v44, %v9096_v27  ;;  %v10001_v63 = vunpack.c.l.bf16 %v10047_v58  ;;  %v10002_v26 = vunpack.c.h.bf16 %v10047_v58  ;;  %v1021_v11 = vrot.slane %v14152_v55, 1 }
 0x319   : > { %v1554_v10 = vrot.slane %v14152_v55, 2  ;;  %v2087_v7 = vrot.slane %v14152_v55, 3  ;;  %vm14192_vm13 = vcmp.eq.f32.partialorder %v9118_v2, 8.507059e+37 }
 0x31a   : > { %v9098_v42 = vadd.f32 %v10067_v44, %v9097_v53  ;;  %v1018_v61 = vrot.slane %v10001_v63, 1  ;;  %v1019_v25 = vrot.slane %v10002_v26, 1  ;;  %v1024_v9 = vsel %vm870_vm6, %v1021_v11, %v1023_v6 }
 0x31b   : > { %v1216_v18 = vmax.f32 %v14152_v55, %v1024_v9  ;;  %v1551_v27 = vrot.slane %v10001_v63, 2  ;;  %v1552_v58 = vrot.slane %v10002_v26, 2  ;;  %v1557_v51 = vsel %vm1403_vm9, %v1554_v10, %v1556_v41 }
 0x31c   : > { %v9102_v38 = vsel %vm9101_vm4, %v10067_v44, %v9098_v42  ;;  %v1020_v30 = vsel %vm870_vm6, %v1018_v61, %v1019_v25  ;;  %v1022_v53 = vsel %vm870_vm6, %v1019_v25, %v1021_v11  ;;  %v2084_v0 = vrot.slane %v10001_v63, 3  ;;  %v16580_v42 = vld [vmem:[#allocation37_spill] sm:$0xff] }
 0x31d   : > { %v10071_v17 = vpop.eup %10070  ;;  %v9107_v3 = vsel %vm14136_vm0, %v9106_v60, %v9102_v38  ;;  %v1214_v6 = vmax.f32 %v10001_v63, %v1020_v30  ;;  %v1215_v41 = vmax.f32 %v10002_v26, %v1022_v53  ;;  %v1553_v44 = vsel %vm1403_vm9, %v1551_v27, %v1552_v58 }
 0x31e   : > { %v9574_v9 = vmul.f32 %v9107_v3, %v16580_v42  ;;  %v9110_v61 = vmul.f32 %v10071_v17, %v14145_v15  ;;  %vm9115_vm8 = vweird.f32 %v10071_v17  ;;  %v1555_v25 = vsel %vm1403_vm9, %v1552_v58, %v1554_v10 }
 0x31f   : > { %v1747_v49 = vmax.f32 %v1214_v6, %v1553_v44  ;;  %v1748_v5 = vmax.f32 %v1215_v41, %v1555_v25  ;;  %v1749_v13 = vmax.f32 %v1216_v18, %v1557_v51  ;;  %v2085_v35 = vrot.slane %v10002_v26, 3  ;;  %vm9116_vm14 = vmor %vm9114_vm7, %vm9115_vm8 }
 0x320   : > { %9607 = vst.msk [vmem:[%s14185_s4] sm:$0xff] %vm9606_vm3, %v9574_v9  ;;  %v9111_v60 = vsub.f32 1.0, %v9110_v61  ;;  %v2090_v30 = vsel %vm1936_vm10, %v2087_v7, %v2089_v31  ;;  %v2617_v38 = vrot.slane %v10001_v63, 4  ;;  %v2618_v27 = vrot.slane %v10002_v26, 4  ;;  %v16584_v63 = vld [vmem:[#allocation8_spill] sm:$0xff]  ;;  %v16588_v9 = vld [vmem:[#allocation18_spill] sm:$0xff] }
 0x321   : > { %v2086_v53 = vsel %vm1936_vm10, %v2084_v0, %v2085_v35  ;;  %v2088_v2 = vsel %vm1936_vm10, %v2085_v35, %v2087_v7  ;;  %v2282_v3 = vmax.f32 %v1749_v13, %v2090_v30  ;;  %v2620_v42 = vrot.slane %v14152_v55, 4  ;;  %v16589_v61 = vld [vmem:[#allocation41_spill] sm:$0xff] }
 0x322   : > { %v9112_v33 = vmul.f32 %v10071_v17, %v9111_v60  ;;  %v2280_v10 = vmax.f32 %v1747_v49, %v2086_v53  ;;  %v2281_v58 = vmax.f32 %v1748_v5, %v2088_v2  ;;  %v2619_v51 = vsel %vm2469_vm11, %v2617_v38, %v2618_v27  ;;  %v16585_v5 = vld [vmem:[#allocation38_spill] sm:$0xff] }
 0x323   : > { %v9121_v18 = vor.u32 1.1754944e-38, %v9120_v36  ;;  %v2621_v6 = vsel %vm2469_vm11, %v2618_v27, %v2620_v42  ;;  %v16583_v41 = vrot.slane %v14095_v22, 4  ;;  %v6513_v0 = vmax.f32 %v14160_v54, %v16584_v63  ;;  %v16586_v22 = vld [vmem:[#allocation33_spill] sm:$0xff]  ;;  %v16587_v36 = vld [vmem:[#allocation39_spill] sm:$0xff] }
 0x324   : > { %v9113_v26 = vadd.f32 %v10071_v17, %v9112_v33  ;;  %v14210_v35 = vmax.f32 %v2280_v10, %v2619_v51  ;;  %v14212_v7 = vmax.f32 %v2281_v58, %v2621_v6  ;;  %v6514_v49 = vmax.f32 %v14163_v47, %v16585_v5  ;;  %v16590_v33 = vld [vmem:[#allocation49_spill] sm:$0xff] }
 0x325   : > { %v2623_v31 = vsel %vm2469_vm11, %v2620_v42, %v16583_v41  ;;  %v8333_v44 = vmax.f32 %v16587_v36, %v16586_v22  ;;  %v8334_v25 = vmax.f32 %v16589_v61, %v16588_v9  ;;  %v6752_v13 = vpack.c.bf16 %v16590_v33, %v16590_v33  ;;  %v624_v9 = vld [vmem:[#allocation2 + $0x168] sm:$0xf] }
 0x326   : > { %v14214_v55 = vmax.f32 %v2282_v3, %v2623_v31  ;;  %v9117_v60 = vsel %vm9116_vm14, %v10071_v17, %v9113_v26  ;;  %v16591_v30 = vmax.f32 %v14118_v14, %v13915_v29  ;;  %v16593_v47 = vmax.f32 %v14126_v43, %v13930_v39  ;;  %v16597_v3 = vld [vmem:[#allocation60_spill] sm:$0xff] }
 0x327   : > { %v16595_v27 = vmax.f32 %v14129_v48, %v13934_v62  ;;  %v9122_v17 = vsel %vm14192_vm13, %v9121_v18, %v9117_v60  ;;  %v14248_v14 = vmax.f32 %v8333_v44, %v13881_v40  ;;  %v14251_v2 = vmax.f32 %v8334_v25, %v13883_v32  ;;  %v625_v32 = vld [vmem:[#allocation2 + $0x16c] sm:$0x3] }
 0x328   : > { %v14231_v15 = vmax.f32 %v16591_v30, %v14210_v35  ;;  %v14237_v38 = vmax.f32 %v16593_v47, %v14212_v7  ;;  %v6753_v43 = vpack.c.bf16 %v16597_v3, %v16597_v3  ;;  %v9575_v42 = vmul.f32 %v9122_v17, %v14078_v20 }
 0x329   : > { %v14243_v53 = vmax.f32 %v16595_v27, %v14214_v55 }
 0x32a   : > { %16592 = vst [vmem:[#allocation25_spill] sm:$0xff] %v14231_v15  ;;  %v4569_v10 = vrot.slane %v14231_v15, 1  ;;  %v4570_v48 = vrot.slane %v14237_v38, 1  ;;  %v4977_v11 = vrot.slane %v14231_v15, 2  ;;  %v4978_v51 = vrot.slane %v14237_v38, 2 }
 0x32b   : > { %16594 = vst [vmem:[#allocation9_spill] sm:$0xff] %v14237_v38  ;;  %v4572_v58 = vrot.slane %v14243_v53, 1  ;;  %v4980_v18 = vrot.slane %v14243_v53, 2  ;;  %v5385_v6 = vrot.slane %v14231_v15, 3  ;;  %v5386_v26 = vrot.slane %v14237_v38, 3 }
 0x32c   : > { %16596 = vst [vmem:[#allocation10_spill] sm:$0xff] %v14243_v53  ;;  %v4571_v41 = vsel %vm870_vm6, %v4569_v10, %v4570_v48  ;;  %v4979_v61 = vsel %vm1403_vm9, %v4977_v11, %v4978_v51  ;;  %v5388_v30 = vrot.slane %v14243_v53, 3  ;;  %v5793_v47 = vrot.slane %v14231_v15, 4  ;;  %v8823_v10 = vpop.f32.mrf.mxu3 }
 0x32d   : > { %9608 = vst.msk [vmem:[%s14185_s4 + $0x8] sm:$0xff] %vm9606_vm3, %v9575_v42  ;;  %v4573_v20 = vsel %vm870_vm6, %v4570_v48, %v4572_v58  ;;  %v4729_v31 = vmax.f32 %v14243_v53, %v4572_v58  ;;  %v4727_v36 = vmax.f32 %v14231_v15, %v4571_v41  ;;  %v4981_v25 = vsel %vm1403_vm9, %v4978_v51, %v4980_v18  ;;  %v7056_v51 = vpop.f32.mrf.mxu2 }
 0x32e   : > { %v4728_v44 = vmax.f32 %v14237_v38, %v4573_v20  ;;  %v5387_v60 = vsel %vm1936_vm10, %v5385_v6, %v5386_v26  ;;  %v5794_v3 = vrot.slane %v14237_v38, 4  ;;  %v5796_v42 = vrot.slane %v14243_v53, 4  ;;  %v16604_v53 = vld [vmem:[#allocation42_spill] sm:$0xff] }
 0x32f   : > { %v5137_v33 = vmax.f32 %v4729_v31, %v4980_v18  ;;  %v5135_v27 = vmax.f32 %v4727_v36, %v4979_v61  ;;  %v5389_v48 = vsel %vm1936_vm10, %v5386_v26, %v5388_v30  ;;  %v16598_v18 = vld [vmem:[#allocation46_spill] sm:$0xff]  ;;  %v8900_v26 = vadd.f32 %v8823_v10, %v14104_v50 }
 0x330   : > { %v5136_v17 = vmax.f32 %v4728_v44, %v4981_v25  ;;  %v6754_v6 = vpack.c.bf16 %v16598_v18, %v16598_v18  ;;  %v5795_v31 = vsel %vm2469_vm11, %v5793_v47, %v5794_v3  ;;  %v5797_v36 = vsel %vm2469_vm11, %v5794_v3, %v5796_v42 }
 0x331   : > { %v5545_v58 = vmax.f32 %v5137_v33, %v5388_v30  ;;  %v5543_v41 = vmax.f32 %v5135_v27, %v5387_v60  ;;  %v9825_v25 = vrot.slane %v6752_v13, 9  ;;  %v9909_v33 = vld [vmem:[%s10247_s19 + $0x50] sm:$0xff]  ;;  %v7132_v60 = vadd.f32 %v7056_v51, %v14107_v4 }
 0x332   : > { %v5544_v20 = vmax.f32 %v5136_v17, %v5389_v48  ;;  %v6896_v27 = vrot.slane %v6753_v43, 5  ;;  %v14300_v17 = vadd.f32 %v14001_v19, %v8900_v26  ;;  %v6899_v3 = vrot.slane %v6754_v6, 5  ;;  %9809 = vmatmul.msk.bf16.gmra.mxu1 %vm4010_vm12, %v9909_v33 }
 0x333   : > { %v14285_v44 = vmax.f32 %v5545_v58, %v5796_v42  ;;  %v14291_v30 = vmax.f32 %v5543_v41, %v5795_v31  ;;  %v16600_v42 = vld [vmem:[#allocation40_spill] sm:$0xff]  ;;  %v16601_v50 = vmax.f32 %v14143_v1, %v14012_v12  ;;  %v3765_v38 = vpack.c.bf16 %v16604_v53, %v16604_v53 }
 0x334   : > { %v14293_v11 = vmax.f32 %v5544_v20, %v5797_v36  ;;  %v3764_v48 = vpack.c.bf16 %v16600_v42, %v16600_v42  ;;  %v6898_v43 = vrot.slane %v6896_v27, 4 }
 0x335   : > { %v14297_v47 = vmax.f32 %v6514_v49, %v14285_v44  ;;  %v14309_v13 = vmax.f32 %v16601_v50, %v14291_v30  ;;  %v6897_v49 = vsel %vm10295_vm5, %v9825_v25, %v6896_v27 }
 0x336   : > { %v14315_v4 = vmax.f32 %v6513_v0, %v14293_v11 }
 0x337   : > { %16599 = vst [vmem:[#allocation47_spill] sm:$0xff] %v14297_v47  ;;  %v7349_v10 = vrot.slane %v14297_v47, 1  ;;  %v7609_v58 = vrot.slane %v14297_v47, 2  ;;  %v7869_v51 = vrot.slane %v14297_v47, 3  ;;  %v8129_v1 = vrot.slane %v14297_v47, 4 }
 0x338   : > { %16602 = vst [vmem:[#allocation62_spill] sm:$0xff] %v14309_v13  ;;  %v7346_v18 = vrot.slane %v14309_v13, 1  ;;  %v7347_v6 = vrot.slane %v14315_v4, 1  ;;  %v7606_v54 = vrot.slane %v14309_v13, 2  ;;  %v7607_v0 = vrot.slane %v14315_v4, 2 }
 0x339   : > { %16603 = vst [vmem:[#allocation57_spill] sm:$0xff] %v14315_v4  ;;  %v7866_v41 = vrot.slane %v14309_v13, 3  ;;  %v7867_v20 = vrot.slane %v14315_v4, 3  ;;  %v8126_v31 = vrot.slane %v14309_v13, 4  ;;  %v8127_v36 = vrot.slane %v14315_v4, 4 }
 0x33a   : > { %v7348_v26 = vsel %vm870_vm6, %v7346_v18, %v7347_v6  ;;  %v7350_v25 = vsel %vm870_vm6, %v7347_v6, %v7349_v10  ;;  %v7608_v33 = vsel %vm1403_vm9, %v7606_v54, %v7607_v0  ;;  %v7610_v27 = vsel %vm1403_vm9, %v7607_v0, %v7609_v58 }
 0x33b   : > { %v7447_v42 = vmax.f32 %v14309_v13, %v7348_v26  ;;  %v7448_v50 = vmax.f32 %v14315_v4, %v7350_v25  ;;  %v7868_v61 = vsel %vm1936_vm10, %v7866_v41, %v7867_v20  ;;  %v7870_v15 = vsel %vm1936_vm10, %v7867_v20, %v7869_v51  ;;  %v8825_v26 = vpop.f32.mrf.mxu3  ;;  %v16605_v41 = vld [vmem:[#allocation14_spill] sm:$0xff] }
 0x33c   : > { %v8128_v47 = vsel %vm2469_vm11, %v8126_v31, %v8127_v36  ;;  %v9865_v18 = vmul.f32 -1.442695, %v14300_v17  ;;  %v6900_v10 = vsel %vm10295_vm5, %v6898_v43, %v6899_v3  ;;  %v6957_v54 = vunpack.c.l.b16 %v6897_v49 }
 0x33d   : > { %v7707_v6 = vmax.f32 %v7447_v42, %v7608_v33  ;;  %v7708_v58 = vmax.f32 %v7448_v50, %v7610_v27  ;;  %v6958_v0 = vunpack.c.l.b16 %v6900_v10  ;;  %v8130_v25 = vsel %vm2469_vm11, %v8127_v36, %v8129_v1 }
 0x33e   : > { %10072 = vpow2.f32 %v9865_v18  ;;  %v3766_v53 = vpack.c.bf16 %v16605_v41, %v16605_v41  ;;  %v9713_v4 = vrot.slane %v3764_v48, 10  ;;  %v3917_v13 = vrot.slane %v3765_v38, 6 }
 0x33f   : > { %v7967_v51 = vmax.f32 %v7707_v6, %v7868_v61  ;;  %v7968_v20 = vmax.f32 %v7708_v58, %v7870_v15  ;;  %v6979_v31 = vpack.c.b16 %v6958_v0, %v6957_v54  ;;  %v8901_v3 = vadd.f32 %v8825_v26, %v7132_v60  ;;  %v4082_v58 = vpop.f32.mrf.mxu0  ;;  %v4270_v54 = vpop.f32.mrf.mxu1 }
 0x340   : > { %v3920_v37 = vrot.slane %v3766_v53, 6  ;;  %v14349_v43 = vunpack.c.h.bf16 %v14122_v52  ;;  %v3918_v48 = vsel %vm11713_vm15, %v9713_v4, %v3917_v13  ;;  %v3919_v61 = vrot.slane %v3917_v13, 4 }
 0x341   : > { %v14351_v49 = vmax.f32 %v7967_v51, %v8128_v47  ;;  %v14353_v33 = vmax.f32 %v7968_v20, %v8130_v25  ;;  %9841 = vmatmul.msk.bf16.gmra.mxu2 %vm4010_vm12, %v6979_v31  ;;  %v3978_v15 = vunpack.c.l.b16 %v3918_v48  ;;  %v14359_v38 = vadd.f32 %v14001_v19, %v8901_v3 }
 0x342   : > { %v14361_v1 = vunpack.c.l.bf16 %v624_v9  ;;  %v14363_v60 = vunpack.c.l.bf16 %v625_v32  ;;  %v16607_v52 = vmax.f32 %v14248_v14, %v14072_v21  ;;  %v16608_v36 = vmax.f32 %v14251_v2, %v14074_v24 }
 0x343   : > { %16606 = vst [vmem:[#allocation56_spill] sm:$0xff] %v14353_v33  ;;  %v3921_v13 = vsel %vm11713_vm15, %v3919_v61, %v3920_v37  ;;  %v1025_v4 = vrot.slane %v14150_v23, 1  ;;  %v9866_v32 = vmul.f32 -1.442695, %v14359_v38  ;;  %v1026_v50 = vrot.slane %v14349_v43, 1 }
 0x344   : > { %v8627_v47 = vmax.f32 %v16607_v52, %v14351_v49  ;;  %v8628_v27 = vmax.f32 %v16608_v36, %v14353_v33  ;;  %v10073_v42 = vpop.eup %10072  ;;  %v3979_v9 = vunpack.c.l.b16 %v3921_v13  ;;  %v1028_v18 = vrot.slane %v14361_v1, 1  ;;  %v7059_v52 = vpop.f32.mrf.mxu2 }
 0x345   : > { %v14379_v6 = vadd.f32 1.0, %v10073_v42  ;;  %v1030_v2 = vrot.slane %v14363_v60, 1  ;;  %10074 = vpow2.f32 %v9866_v32  ;;  %v1027_v37 = vsel %vm870_vm6, %v1025_v4, %v1026_v50 }
 0x346   : > { %v8659_v14 = vpack.c.bf16 %v8627_v47, %v8627_v47  ;;  %v8660_v10 = vpack.c.bf16 %v8628_v27, %v8628_v27  ;;  %v4000_v0 = vpack.c.b16 %v3979_v9, %v3978_v15  ;;  %v1029_v26 = vsel %vm870_vm6, %v1026_v50, %v1028_v18 }
 0x347   : > { %10076 = vrcp.f32 %v14379_v6  ;;  %v4271_v53 = vadd.f32 %v4270_v54, %v4082_v58  ;;  %v9133_v51 = vand.u32 2147483647, %v14379_v6  ;;  %v1031_v20 = vsel %vm870_vm6, %v1028_v18, %v1030_v2 }
 0x348   : > { %v8724_v25 = vunpack.c.l.b16 %v8659_v14  ;;  %v8725_v41 = vunpack.c.l.b16 %v8660_v10  ;;  %9729 = vmatmul.msk.bf16.gmra.mxu0 %vm4010_vm12, %v4000_v0  ;;  %v1217_v3 = vmax.f32 %v14150_v23, %v1027_v37  ;;  %v1218_v48 = vmax.f32 %v14349_v43, %v1029_v26 }
 0x349   : > { %v1558_v61 = vrot.slane %v14150_v23, 2  ;;  %v9135_v15 = vand.u32 2147483648, %v14379_v6  ;;  %v1219_v47 = vmax.f32 %v14361_v1, %v1031_v20  ;;  %v1559_v36 = vrot.slane %v14349_v43, 2 }
 0x34a   : > { %v8747_v31 = vpack.c.b16 %v8725_v41, %v8724_v25  ;;  %v1561_v27 = vrot.slane %v14361_v1, 2  ;;  %v14396_v13 = vadd.f32 %v7059_v52, %v4271_v53  ;;  %v1563_v4 = vrot.slane %v14363_v60, 2 }
 0x34b   : > { %v2091_v42 = vrot.slane %v14150_v23, 3  ;;  %v2092_v9 = vrot.slane %v14349_v43, 3  ;;  %v10075_v32 = vpop.eup %10074  ;;  %vm9129_vm1 = vweird.f32 %v14379_v6  ;;  %v1560_v50 = vsel %vm1403_vm9, %v1558_v61, %v1559_v36 }
 0x34c   : > { %9856 = vmatmul.msk.bf16.gmra.mxu3 %vm4010_vm12, %v8747_v31  ;;  %v1562_v18 = vsel %vm1403_vm9, %v1559_v36, %v1561_v27  ;;  %v2094_v14 = vrot.slane %v14361_v1, 3  ;;  %v2096_v10 = vrot.slane %v14363_v60, 3  ;;  %v14406_v58 = vadd.f32 1.0, %v10075_v32 }
 0x34d   : > { %v10077_v2 = vpop.eup %10076  ;;  %v1564_v54 = vsel %vm1403_vm9, %v1561_v27, %v1563_v4  ;;  %v1750_v0 = vmax.f32 %v1217_v3, %v1560_v50  ;;  %v1751_v37 = vmax.f32 %v1218_v48, %v1562_v18  ;;  %vm14410_vm0 = vcmp.eq.f32.partialorder %v9133_v51, 8.507059e+37 }
 0x34e   : > { %v9125_v26 = vmul.f32 %v10077_v2, %v14379_v6  ;;  %v9136_v41 = vor.u32 1.1754944e-38, %v9135_v15  ;;  %v1752_v53 = vmax.f32 %v1219_v47, %v1564_v54  ;;  %v2093_v20 = vsel %vm1936_vm10, %v2091_v42, %v2092_v9 }
 0x34f   : > { %vm9130_vm2 = vweird.f32 %v10077_v2  ;;  %10078 = vrcp.f32 %v14406_v58  ;;  %v9150_v31 = vand.u32 2147483648, %v14406_v58  ;;  %v2624_v61 = vrot.slane %v14150_v23, 4 }
 0x350   : > { %v9126_v52 = vsub.f32 1.0, %v9125_v26  ;;  %v9148_v3 = vand.u32 2147483647, %v14406_v58  ;;  %v2095_v48 = vsel %vm1936_vm10, %v2092_v9, %v2094_v14  ;;  %v2097_v51 = vsel %vm1936_vm10, %v2094_v14, %v2096_v10  ;;  %vm9131_vm7 = vmor %vm9129_vm1, %vm9130_vm2 }
 0x351   : > { %v14421_v36 = vor.u32 1.1754944e-38, %v9150_v31  ;;  %v2283_v15 = vmax.f32 %v1750_v0, %v2093_v20  ;;  %v2284_v47 = vmax.f32 %v1751_v37, %v2095_v48  ;;  %v2285_v27 = vmax.f32 %v1752_v53, %v2097_v51 }
 0x352   : > { %v9127_v4 = vmul.f32 %v10077_v2, %v9126_v52  ;;  %v2625_v42 = vrot.slane %v14349_v43, 4  ;;  %v2627_v32 = vrot.slane %v14361_v1, 4  ;;  %v2629_v50 = vrot.slane %v14363_v60, 4  ;;  %v16614_v52 = vld [vmem:[#allocation15_spill] sm:$0xff] }
 0x353   : > { %v3047_v23 = vmax.f32 %v13515_v45, %v13749_v59  ;;  %v3048_v9 = vmax.f32 %v13528_v46, %v13751_v8  ;;  %v3049_v18 = vmax.f32 %v13530_v34, %v13741_v56  ;;  %v6149_v14 = vmax.f32 %v13600_v57, %v13819_v16 }
 0x354   : > { %v9128_v10 = vadd.f32 %v10077_v2, %v9127_v4  ;;  %vm9144_vm4 = vweird.f32 %v14406_v58  ;;  %v2626_v43 = vsel %vm2469_vm11, %v2624_v61, %v2625_v42  ;;  %v2628_v1 = vsel %vm2469_vm11, %v2625_v42, %v2627_v32  ;;  %v16613_v61 = vld [vmem:[#allocation50_spill] sm:$0xff] }
 0x355   : > { %v2630_v60 = vsel %vm2469_vm11, %v2627_v32, %v2629_v50  ;;  %v10079_v54 = vpop.eup %10078  ;;  %v14441_v45 = vmax.f32 %v2283_v15, %v2626_v43  ;;  %v14443_v46 = vmax.f32 %v2284_v47, %v2628_v1  ;;  %v3266_v57 = vmax.f32 %v3047_v23, %v13915_v29  ;;  %v16615_v15 = vld [vmem:[#allocation20_spill] sm:$0xff]  ;;  %v16616_v47 = vld [vmem:[#allocation43_spill] sm:$0xff] }
 0x356   : > { %v14445_v34 = vmax.f32 %v2285_v27, %v2630_v60  ;;  %v9132_v0 = vsel %vm9131_vm7, %v10077_v2, %v9128_v10  ;;  %v9140_v37 = vmul.f32 %v10079_v54, %v14406_v58  ;;  %vm9145_vm8 = vweird.f32 %v10079_v54 }
 0x357   : > { %vm14449_vm13 = vcmp.eq.f32.partialorder %v9148_v3, 8.507059e+37  ;;  %v3267_v6 = vmax.f32 %v3048_v9, %v13930_v39  ;;  %v9137_v53 = vsel %vm14410_vm0, %v9136_v41, %v9132_v0  ;;  %v3268_v20 = vmax.f32 %v3049_v18, %v13934_v62  ;;  %vm9146_vm14 = vmor %vm9144_vm4, %vm9145_vm8 }
 0x358   : > { %v3485_v31 = vmax.f32 %v3266_v57, %v14210_v35  ;;  %v6150_v2 = vmax.f32 %v16614_v52, %v16613_v61  ;;  %v9576_v48 = vmul.f32 %v9137_v53, %v14300_v17  ;;  %v9141_v51 = vsub.f32 1.0, %v9140_v37 }
 0x359   : > { %v3486_v3 = vmax.f32 %v3267_v6, %v14212_v7  ;;  %v6151_v27 = vmax.f32 %v16616_v47, %v16615_v15  ;;  %v3487_v4 = vmax.f32 %v3268_v20, %v14214_v55  ;;  %v14469_v41 = vmax.f32 %v6149_v14, %v14012_v12 }
 0x35a   : > { %v14466_v25 = vmax.f32 %v3485_v31, %v14441_v45  ;;  %v14472_v42 = vmax.f32 %v6150_v2, %v16584_v63  ;;  %9609 = vst.msk [vmem:[%s14185_s4 + $0x10] sm:$0xff] %vm9606_vm3, %v9576_v48  ;;  %v9142_v17 = vmul.f32 %v10079_v54, %v9141_v51  ;;  %v8335_v23 = vmax.f32 %v16586_v22, %v13881_v40  ;;  %v4084_v2 = vpop.f32.mrf.mxu0  ;;  %v4272_v48 = vpop.f32.mrf.mxu1 }
 0x35b   : > { %v14477_v32 = vmax.f32 %v3486_v3, %v14443_v46  ;;  %v6334_v50 = vmax.f32 %v6151_v27, %v16585_v5  ;;  %v14483_v9 = vmax.f32 %v3487_v4, %v14445_v34 }
 0x35c   : > { %16617 = vst [vmem:[#allocation17_spill] sm:$0xff] %v14466_v25  ;;  %v4574_v18 = vrot.slane %v14466_v25, 1  ;;  %v4982_v14 = vrot.slane %v14466_v25, 2  ;;  %v5390_v10 = vrot.slane %v14466_v25, 3  ;;  %v9143_v43 = vadd.f32 %v10079_v54, %v9142_v17 }
 0x35d   : > { %16618 = vst [vmem:[#allocation58_spill] sm:$0xff] %v14477_v32  ;;  %v4575_v1 = vrot.slane %v14477_v32, 1  ;;  %v4983_v60 = vrot.slane %v14477_v32, 2  ;;  %v5391_v57 = vrot.slane %v14477_v32, 3  ;;  %v4577_v22 = vrot.slane %v14483_v9, 1 }
 0x35e   : > { %16619 = vst [vmem:[#allocation48_spill] sm:$0xff] %v14483_v9  ;;  %v4985_v0 = vrot.slane %v14483_v9, 2  ;;  %v5393_v37 = vrot.slane %v14483_v9, 3  ;;  %v5798_v6 = vrot.slane %v14466_v25, 4  ;;  %v9147_v53 = vsel %vm9146_vm14, %v10079_v54, %v9143_v43 }
 0x35f   : > { %v4576_v20 = vsel %vm870_vm6, %v4574_v18, %v4575_v1  ;;  %v4984_v31 = vsel %vm1403_vm9, %v4982_v14, %v4983_v60  ;;  %v5392_v52 = vsel %vm1936_vm10, %v5390_v10, %v5391_v57  ;;  %v9152_v58 = vsel %vm14449_vm13, %v14421_v36, %v9147_v53 }
 0x360   : > { %v4578_v51 = vsel %vm870_vm6, %v4575_v1, %v4577_v22  ;;  %v4730_v3 = vmax.f32 %v14466_v25, %v4576_v20  ;;  %v4732_v47 = vmax.f32 %v14483_v9, %v4577_v22  ;;  %v9577_v54 = vmul.f32 %v9152_v58, %v14359_v38  ;;  %v8828_v22 = vpop.f32.mrf.mxu3  ;;  %v7061_v20 = vpop.f32.mrf.mxu2 }
 0x361   : > { %v4731_v27 = vmax.f32 %v14477_v32, %v4578_v51  ;;  %v4986_v4 = vsel %vm1403_vm9, %v4983_v60, %v4985_v0  ;;  %v5394_v17 = vsel %vm1936_vm10, %v5391_v57, %v5393_v37  ;;  %v5799_v36 = vrot.slane %v14477_v32, 4 }
 0x362   : > { %v5138_v18 = vmax.f32 %v4730_v3, %v4984_v31  ;;  %v5140_v14 = vmax.f32 %v4732_v47, %v4985_v0  ;;  %v5801_v26 = vrot.slane %v14483_v9, 4  ;;  %9610 = vst.msk [vmem:[%s14185_s4 + $0x18] sm:$0xff] %vm9606_vm3, %v9577_v54  ;;  %v4273_v10 = vadd.f32 %v4272_v48, %v4084_v2  ;;  %v16620_v2 = vld [vmem:[#allocation61_spill] sm:$0xff]  ;;  %v16621_v48 = vld [vmem:[#allocation18_spill] sm:$0xff]  ;;  %v4087_v9 = vpop.f32.mrf.mxu0  ;;  %v4275_v32 = vpop.f32.mrf.mxu1 }
 0x363   : > { %v5139_v43 = vmax.f32 %v4731_v27, %v4986_v4  ;;  %v6515_v1 = vmax.f32 %v14469_v41, %v14291_v30  ;;  %v6517_v38 = vmax.f32 %v6334_v50, %v14285_v44  ;;  %v5800_v57 = vsel %vm2469_vm11, %v5798_v6, %v5799_v36  ;;  %v16622_v6 = vld [vmem:[#allocation62_spill] sm:$0xff]  ;;  %v16623_v4 = vld [vmem:[#allocation57_spill] sm:$0xff] }
 0x364   : > { %v5546_v60 = vmax.f32 %v5138_v18, %v5392_v52  ;;  %v5548_v53 = vmax.f32 %v5140_v14, %v5393_v37  ;;  %v5802_v0 = vsel %vm2469_vm11, %v5799_v36, %v5801_v26  ;;  %v6516_v58 = vmax.f32 %v14472_v42, %v14293_v11  ;;  %v9910_v47 = vld [vmem:[%s10247_s19 + $0x58] sm:$0xff] }
 0x365   : > { %v5547_v31 = vmax.f32 %v5139_v43, %v5394_v17  ;;  %v8336_v51 = vmax.f32 %v16621_v48, %v16620_v2  ;;  %v14525_v41 = vmax.f32 %v8335_v23, %v14072_v21  ;;  %v8902_v37 = vadd.f32 %v8828_v22, %v14396_v13  ;;  %9810 = vmatmul.msk.bf16.gmra.mxu1 %vm4010_vm12, %v9910_v47 }
 0x366   : > { %v14527_v3 = vmax.f32 %v5546_v60, %v5800_v57  ;;  %v14529_v50 = vmax.f32 %v5548_v53, %v5801_v26  ;;  %v6755_v52 = vpack.c.bf16 %v16622_v6, %v16622_v6  ;;  %v7134_v27 = vadd.f32 %v7061_v20, %v4273_v10  ;;  %v16627_v26 = vld [vmem:[#allocation47_spill] sm:$0xff] }
 0x367   : > { %v14535_v54 = vmax.f32 %v5547_v31, %v5802_v0  ;;  %v14538_v42 = vmax.f32 %v8336_v51, %v14074_v24  ;;  %v6756_v23 = vpack.c.bf16 %v16623_v4, %v16623_v4  ;;  %v8531_v13 = vmax.f32 %v14525_v41, %v14351_v49 }
 0x368   : > { %v14543_v17 = vmax.f32 %v6515_v1, %v14527_v3  ;;  %v14546_v18 = vmax.f32 %v6517_v38, %v14529_v50  ;;  %v14551_v14 = vadd.f32 %v14001_v19, %v8902_v37  ;;  %v6757_v10 = vpack.c.bf16 %v16627_v26, %v16627_v26 }
 0x369   : > { %v14555_v36 = vmax.f32 %v6516_v58, %v14535_v54  ;;  %v9826_v43 = vrot.slane %v6755_v52, 9  ;;  %v6903_v1 = vrot.slane %v6756_v23, 5  ;;  %v8532_v26 = vmax.f32 %v14538_v42, %v14353_v33  ;;  %v16629_v42 = vld [vmem:[#allocation34_spill] sm:$0xff]  ;;  %v16630_v33 = vld [vmem:[#allocation35_spill] sm:$0xff] }
 0x36a   : > { %16624 = vst [vmem:[#allocation59_spill] sm:$0xff] %v14543_v17  ;;  %v7351_v22 = vrot.slane %v14543_v17, 1  ;;  %v7354_v38 = vrot.slane %v14546_v18, 1  ;;  %v7611_v60 = vrot.slane %v14543_v17, 2  ;;  %v7614_v53 = vrot.slane %v14546_v18, 2 }
 0x36b   : > { %16625 = vst [vmem:[#allocation52_spill] sm:$0xff] %v14546_v18  ;;  %v7352_v19 = vrot.slane %v14555_v36, 1  ;;  %v7612_v57 = vrot.slane %v14555_v36, 2  ;;  %v7871_v0 = vrot.slane %v14543_v17, 3  ;;  %v7872_v20 = vrot.slane %v14555_v36, 3 }
 0x36c   : > { %16626 = vst [vmem:[#allocation5_spill] sm:$0xff] %v14555_v36  ;;  %v7874_v31 = vrot.slane %v14546_v18, 3  ;;  %v8131_v58 = vrot.slane %v14543_v17, 4  ;;  %v8132_v48 = vrot.slane %v14555_v36, 4  ;;  %v8134_v51 = vrot.slane %v14546_v18, 4 }
 0x36d   : > { %v7353_v41 = vsel %vm870_vm6, %v7351_v22, %v7352_v19  ;;  %v7355_v37 = vsel %vm870_vm6, %v7352_v19, %v7354_v38  ;;  %v7613_v6 = vsel %vm1403_vm9, %v7611_v60, %v7612_v57  ;;  %v7615_v52 = vsel %vm1403_vm9, %v7612_v57, %v7614_v53 }
 0x36e   : > { %v7449_v47 = vmax.f32 %v14543_v17, %v7353_v41  ;;  %v7450_v4 = vmax.f32 %v14555_v36, %v7355_v37  ;;  %v7873_v23 = vsel %vm1936_vm10, %v7871_v0, %v7872_v20  ;;  %v7875_v25 = vsel %vm1936_vm10, %v7872_v20, %v7874_v31  ;;  %v8830_v17 = vpop.f32.mrf.mxu3 }
 0x36f   : > { %v8133_v22 = vsel %vm2469_vm11, %v8131_v58, %v8132_v48  ;;  %v9867_v38 = vmul.f32 -1.442695, %v14551_v14  ;;  %v6904_v53 = vsel %vm10295_vm5, %v9826_v43, %v6903_v1  ;;  %v6905_v41 = vrot.slane %v6903_v1, 4  ;;  %v16631_v1 = vld [vmem:[#allocation12_spill] sm:$0xff] }
 0x370   : > { %v7709_v19 = vmax.f32 %v7449_v47, %v7613_v6  ;;  %v7710_v57 = vmax.f32 %v7450_v4, %v7615_v52  ;;  %v6906_v37 = vrot.slane %v6757_v10, 5  ;;  %v8135_v0 = vsel %vm2469_vm11, %v8132_v48, %v8134_v51  ;;  %v10049_v6 = vld [vmem:[#allocation2 + $0x170] sm:$0xff]  }
 0x371   : > { %10080 = vpow2.f32 %v9867_v38  ;;  %v6959_v18 = vunpack.c.l.b16 %v6904_v53  ;;  %v3767_v36 = vpack.c.bf16 %v16629_v42, %v16629_v42  ;;  %v3768_v43 = vpack.c.bf16 %v16630_v33, %v16630_v33 }
 0x372   : > { %v7969_v20 = vmax.f32 %v7709_v19, %v7873_v23  ;;  %v7970_v31 = vmax.f32 %v7710_v57, %v7875_v25  ;;  %v6907_v58 = vsel %vm10295_vm5, %v6905_v41, %v6906_v37  ;;  %v3769_v10 = vpack.c.bf16 %v16631_v1, %v16631_v1  ;;  %v628_v23 = vld [vmem:[#allocation2 + $0x178] sm:$0xf] }
 0x373   : > { %v6960_v52 = vunpack.c.l.b16 %v6907_v58  ;;  %v9714_v48 = vrot.slane %v3767_v36, 10  ;;  %v3924_v4 = vrot.slane %v3768_v43, 6  ;;  %v8903_v38 = vadd.f32 %v8830_v17, %v7134_v27  ;;  %v4277_v58 = vpop.f32.mrf.mxu1 }
 0x374   : > { %v14594_v51 = vmax.f32 %v7969_v20, %v8133_v22  ;;  %v14596_v47 = vmax.f32 %v7970_v31, %v8135_v0  ;;  %v4276_v53 = vadd.f32 %v4275_v32, %v4087_v9  ;;  %v3927_v19 = vrot.slane %v3769_v10, 6  ;;  %v629_v22 = vld [vmem:[#allocation2 + $0x17c] sm:$0x3]  ;;  %v14608_v32 = vld [vmem:[%s15818_s2] ss:$0 sm:$0xff]  ;;  %v4089_v31 = vpop.f32.mrf.mxu0 }
 0x375   : > { %v6980_v25 = vpack.c.b16 %v6960_v52, %v6959_v18  ;;  %v14598_v57 = vunpack.c.l.bf16 %v10049_v6  ;;  %v3925_v37 = vsel %vm11713_vm15, %v9714_v48, %v3924_v4  ;;  %v3926_v36 = vrot.slane %v3924_v4, 4  ;;  %16633 = vst [vmem:[#allocation53_spill] sm:$0xff] %v14608_v32 }
 0x376   : > { %16632 = vst [vmem:[#allocation63_spill] sm:$0xff] %v14596_v47  ;;  %v8629_v33 = vmax.f32 %v8531_v13, %v14594_v51  ;;  %v8630_v41 = vmax.f32 %v8532_v26, %v14596_v47  ;;  %v3980_v0 = vunpack.c.l.b16 %v3925_v37  ;;  %v14611_v9 = vadd.f32 %v14608_v32, %v8903_v38 }
 0x377   : > { %v10081_v42 = vpop.eup %10080  ;;  %9842 = vmatmul.msk.bf16.gmra.mxu2 %vm4010_vm12, %v6980_v25  ;;  %v14613_v27 = vunpack.c.h.bf16 %v10049_v6  ;;  %v14615_v17 = vunpack.c.l.bf16 %v628_v23  ;;  %v3928_v20 = vsel %vm11713_vm15, %v3926_v36, %v3927_v19  ;;  %v14622_v1 = vunpack.c.l.bf16 %v629_v22  ;;  %v7064_v6 = vpop.f32.mrf.mxu2 }
 0x378   : > { %v8661_v18 = vpack.c.bf16 %v8629_v33, %v8629_v33  ;;  %v8662_v13 = vpack.c.bf16 %v8630_v41, %v8630_v41  ;;  %v14617_v26 = vadd.f32 1.0, %v10081_v42  ;;  %v3981_v43 = vunpack.c.l.b16 %v3928_v20 }
 0x379   : > { %v9868_v52 = vmul.f32 -1.442695, %v14611_v9  ;;  %v1032_v4 = vrot.slane %v14598_v57, 1  ;;  %v14626_v38 = vadd.f32 %v7064_v6, %v4276_v53  ;;  %v14628_v25 = vadd.f32 %v4277_v58, %v4089_v31 }
 0x37a   : > { %v8726_v10 = vunpack.c.l.b16 %v8661_v18  ;;  %v8727_v48 = vunpack.c.l.b16 %v8662_v13  ;;  %10082 = vrcp.f32 %v14617_v26  ;;  %v4001_v23 = vpack.c.b16 %v3981_v43, %v3980_v0 }
 0x37b   : > { %10084 = vpow2.f32 %v9868_v52  ;;  %v1033_v33 = vrot.slane %v14613_v27, 1  ;;  %v1035_v41 = vrot.slane %v14615_v17, 1  ;;  %v1037_v37 = vrot.slane %v14622_v1, 1 }
 0x37c   : > { %v8748_v19 = vpack.c.b16 %v8727_v48, %v8726_v10  ;;  %v9163_v36 = vand.u32 2147483647, %v14617_v26  ;;  %v9165_v22 = vand.u32 2147483648, %v14617_v26  ;;  %9730 = vmatmul.msk.bf16.gmra.mxu0 %vm4010_vm12, %v4001_v23  ;;  %v1565_v53 = vrot.slane %v14598_v57, 2 }
 0x37d   : > { %v1566_v42 = vrot.slane %v14613_v27, 2  ;;  %v1034_v0 = vsel %vm870_vm6, %v1032_v4, %v1033_v33  ;;  %v1036_v18 = vsel %vm870_vm6, %v1033_v33, %v1035_v41  ;;  %v1038_v13 = vsel %vm870_vm6, %v1035_v41, %v1037_v37 }
 0x37e   : > { %9857 = vmatmul.msk.bf16.gmra.mxu3 %vm4010_vm12, %v8748_v19  ;;  %v1568_v20 = vrot.slane %v14615_v17, 2  ;;  %v1220_v31 = vmax.f32 %v14598_v57, %v1034_v0  ;;  %v1221_v58 = vmax.f32 %v14613_v27, %v1036_v18  ;;  %v1222_v43 = vmax.f32 %v14615_v17, %v1038_v13 }
 0x37f   : > { %v1567_v52 = vsel %vm1403_vm9, %v1565_v53, %v1566_v42  ;;  %v1570_v6 = vrot.slane %v14622_v1, 2  ;;  %v2098_v4 = vrot.slane %v14598_v57, 3  ;;  %v2099_v23 = vrot.slane %v14613_v27, 3 }
 0x380   : > { %v10083_v10 = vpop.eup %10082  ;;  %v1569_v48 = vsel %vm1403_vm9, %v1566_v42, %v1568_v20  ;;  %vm9159_vm1 = vweird.f32 %v14617_v26  ;;  %v1753_v41 = vmax.f32 %v1220_v31, %v1567_v52  ;;  %v2101_v42 = vrot.slane %v14615_v17, 3 }
 0x381   : > { %v10085_v19 = vpop.eup %10084  ;;  %v9155_v33 = vmul.f32 %v10083_v10, %v14617_v26  ;;  %v1754_v37 = vmax.f32 %v1221_v58, %v1569_v48  ;;  %v1571_v53 = vsel %vm1403_vm9, %v1568_v20, %v1570_v6  ;;  %v2100_v18 = vsel %vm1936_vm10, %v2098_v4, %v2099_v23 }
 0x382   : > { %v14653_v0 = vadd.f32 1.0, %v10085_v19  ;;  %vm14658_vm0 = vcmp.eq.f32.partialorder %v9163_v36, 8.507059e+37  ;;  %v1755_v60 = vmax.f32 %v1222_v43, %v1571_v53  ;;  %v2103_v32 = vrot.slane %v14622_v1, 3 }
 0x383   : > { %v9156_v13 = vsub.f32 1.0, %v9155_v33  ;;  %vm9160_vm2 = vweird.f32 %v10083_v10  ;;  %v9166_v47 = vor.u32 1.1754944e-38, %v9165_v22  ;;  %v2286_v31 = vmax.f32 %v1753_v41, %v2100_v18 }
 0x384   : > { %10086 = vrcp.f32 %v14653_v0  ;;  %v2102_v20 = vsel %vm1936_vm10, %v2099_v23, %v2101_v42  ;;  %v2104_v52 = vsel %vm1936_vm10, %v2101_v42, %v2103_v32  ;;  %v2631_v48 = vrot.slane %v14598_v57, 4  ;;  %vm9161_vm4 = vmor %vm9159_vm1, %vm9160_vm2 }
 0x385   : > { %v9157_v58 = vmul.f32 %v10083_v10, %v9156_v13  ;;  %v9178_v36 = vand.u32 2147483647, %v14653_v0  ;;  %v9180_v6 = vand.u32 2147483648, %v14653_v0  ;;  %v2287_v4 = vmax.f32 %v1754_v37, %v2102_v20 }
 0x386   : > { %v2288_v43 = vmax.f32 %v1755_v60, %v2104_v52  ;;  %v2632_v33 = vrot.slane %v14613_v27, 4  ;;  %v2634_v22 = vrot.slane %v14615_v17, 4  ;;  %v2636_v41 = vrot.slane %v14622_v1, 4 }
 0x387   : > { %v9158_v19 = vadd.f32 %v10083_v10, %v9157_v58  ;;  %v3050_v57 = vmax.f32 %v13749_v59, %v13915_v29  ;;  %v3051_v32 = vmax.f32 %v13751_v8, %v13930_v39  ;;  %v3052_v60 = vmax.f32 %v13741_v56, %v13934_v62 }
 0x388   : > { %v6152_v27 = vmax.f32 %v13819_v16, %v14012_v12  ;;  %vm9174_vm7 = vweird.f32 %v14653_v0  ;;  %v2633_v17 = vsel %vm2469_vm11, %v2631_v48, %v2632_v33  ;;  %v2635_v26 = vsel %vm2469_vm11, %v2632_v33, %v2634_v22 }
 0x389   : > { %v9162_v23 = vsel %vm9161_vm4, %v10083_v10, %v9158_v19  ;;  %v2637_v1 = vsel %vm2469_vm11, %v2634_v22, %v2636_v41  ;;  %v9181_v37 = vor.u32 1.1754944e-38, %v9180_v6  ;;  %v14689_v53 = vmax.f32 %v2286_v31, %v2633_v17 }
 0x38a   : > { %v10087_v59 = vpop.eup %10086  ;;  %v9167_v8 = vsel %vm14658_vm0, %v9166_v47, %v9162_v23  ;;  %v14691_v56 = vmax.f32 %v2287_v4, %v2635_v26  ;;  %vm14695_vm8 = vcmp.eq.f32.partialorder %v9178_v36, 8.507059e+37  ;;  %v14699_v42 = vmax.f32 %v2288_v43, %v2637_v1 }
 0x38b   : > { %v9578_v16 = vmul.f32 %v9167_v8, %v14551_v14  ;;  %v9170_v10 = vmul.f32 %v10087_v59, %v14653_v0  ;;  %v3269_v13 = vmax.f32 %v3050_v57, %v14210_v35  ;;  %v3270_v28 = vmax.f32 %v3051_v32, %v14212_v7 }
 0x38c   : > { %v3271_v47 = vmax.f32 %v3052_v60, %v14214_v55  ;;  %v6153_v31 = vmax.f32 %v16613_v61, %v16584_v63  ;;  %v6154_v14 = vmax.f32 %v16615_v15, %v16585_v5  ;;  %vm9175_vm13 = vweird.f32 %v10087_v59 }
 0x38d   : > { %9611 = vst.msk [vmem:[%s14185_s4 + $0x20] sm:$0xff] %vm9606_vm3, %v9578_v16  ;;  %v9171_v58 = vsub.f32 1.0, %v9170_v10  ;;  %v3488_v20 = vmax.f32 %v3269_v13, %v14441_v45  ;;  %v14712_v52 = vmax.f32 %v6152_v27, %v14291_v30  ;;  %v3489_v48 = vmax.f32 %v3270_v28, %v14443_v46  ;;  %vm9176_vm14 = vmor %vm9174_vm7, %vm9175_vm13 }
 0x38e   : > { %v3490_v36 = vmax.f32 %v3271_v47, %v14445_v34  ;;  %v14717_v6 = vmax.f32 %v6153_v31, %v14293_v11  ;;  %v8337_v61 = vmax.f32 %v13881_v40, %v14072_v21  ;;  %v6337_v43 = vmax.f32 %v6154_v14, %v14285_v44 }
 0x38f   : > { %v9172_v15 = vmul.f32 %v10087_v59, %v9171_v58  ;;  %v14722_v4 = vmax.f32 %v3488_v20, %v14689_v53  ;;  %v6518_v19 = vmax.f32 %v14712_v52, %v14527_v3  ;;  %v14728_v33 = vmax.f32 %v3489_v48, %v14691_v56 }
 0x390   : > { %v14731_v22 = vmax.f32 %v3490_v36, %v14699_v42  ;;  %v6519_v41 = vmax.f32 %v14717_v6, %v14535_v54  ;;  %v8338_v40 = vmax.f32 %v16620_v2, %v14074_v24 }
 0x391   : > { %16638 = vst [vmem:[#allocation64_spill] sm:$0xff] %v14722_v4  ;;  %v9173_v57 = vadd.f32 %v10087_v59, %v9172_v15  ;;  %v4579_v32 = vrot.slane %v14722_v4, 1  ;;  %v4987_v60 = vrot.slane %v14722_v4, 2  ;;  %v5395_v27 = vrot.slane %v14722_v4, 3  ;;  %v7066_v15 = vpop.f32.mrf.mxu2 }
 0x392   : > { %16639 = vst [vmem:[#allocation54_spill] sm:$0xff] %v14728_v33  ;;  %v4580_v23 = vrot.slane %v14728_v33, 1  ;;  %v4582_v17 = vrot.slane %v14731_v22, 1  ;;  %v4988_v26 = vrot.slane %v14728_v33, 2  ;;  %v4990_v1 = vrot.slane %v14731_v22, 2 }
 0x393   : > { %16640 = vst [vmem:[#allocation23_spill] sm:$0xff] %v14731_v22  ;;  %v9177_v2 = vsel %vm9176_vm14, %v10087_v59, %v9173_v57  ;;  %v5396_v8 = vrot.slane %v14728_v33, 3  ;;  %v5398_v16 = vrot.slane %v14731_v22, 3  ;;  %v5803_v10 = vrot.slane %v14722_v4, 4  ;;  %v8833_v57 = vpop.f32.mrf.mxu3 }
 0x394   : > { %v9182_v0 = vsel %vm14695_vm8, %v9181_v37, %v9177_v2  ;;  %v4581_v13 = vsel %vm870_vm6, %v4579_v32, %v4580_v23  ;;  %v4583_v28 = vsel %vm870_vm6, %v4580_v23, %v4582_v17  ;;  %v4735_v47 = vmax.f32 %v14731_v22, %v4582_v17 }
 0x395   : > { %v9579_v31 = vmul.f32 %v9182_v0, %v14611_v9  ;;  %v4733_v59 = vmax.f32 %v14722_v4, %v4581_v13  ;;  %v4734_v14 = vmax.f32 %v14728_v33, %v4583_v28  ;;  %v4989_v58 = vsel %vm1403_vm9, %v4987_v60, %v4988_v26  ;;  %v4092_v13 = vpop.f32.mrf.mxu0 }
 0x396   : > { %v4991_v20 = vsel %vm1403_vm9, %v4988_v26, %v4990_v1  ;;  %v5143_v52 = vmax.f32 %v4735_v47, %v4990_v1  ;;  %v5397_v18 = vsel %vm1936_vm10, %v5395_v27, %v5396_v8  ;;  %v5399_v37 = vsel %vm1936_vm10, %v5396_v8, %v5398_v16  ;;  %v16641_v27 = vld [vmem:[#allocation56_spill] sm:$0xff]  ;;  %v16643_v47 = vld [vmem:[#allocation59_spill] sm:$0xff] }
 0x397   : > { %9612 = vst.msk [vmem:[%s14185_s4 + $0x28] sm:$0xff] %vm9606_vm3, %v9579_v31  ;;  %v5141_v48 = vmax.f32 %v4733_v59, %v4989_v58  ;;  %v5142_v36 = vmax.f32 %v4734_v14, %v4991_v20  ;;  %v5804_v6 = vrot.slane %v14728_v33, 4  ;;  %v5806_v9 = vrot.slane %v14731_v22, 4  ;;  %v16646_v58 = vld [vmem:[#allocation63_spill] sm:$0xff]  ;;  %v4280_v22 = vpop.f32.mrf.mxu1 }
 0x398   : > { %v5551_v32 = vmax.f32 %v5143_v52, %v5398_v16  ;;  %v6520_v60 = vmax.f32 %v6337_v43, %v14529_v50  ;;  %v14768_v23 = vmax.f32 %v8337_v61, %v14351_v49  ;;  %v14771_v17 = vmax.f32 %v8338_v40, %v16641_v27  ;;  %v9911_v61 = vld [vmem:[%s10247_s19 + $0x60] sm:$0xff] }
 0x399   : > { %v5549_v26 = vmax.f32 %v5141_v48, %v5397_v18  ;;  %v5550_v1 = vmax.f32 %v5142_v36, %v5399_v37  ;;  %v5805_v2 = vsel %vm2469_vm11, %v5803_v10, %v5804_v6  ;;  %v5807_v8 = vsel %vm2469_vm11, %v5804_v6, %v5806_v9  ;;  %v16644_v10 = vld [vmem:[#allocation5_spill] sm:$0xff]  ;;  %9811 = vmatmul.msk.bf16.gmra.mxu1 %vm4010_vm12, %v9911_v61  ;;  %v16651_v33 = vld [vmem:[#allocation51_spill] sm:$0xff] }
 0x39a   : > { %v14775_v0 = vmax.f32 %v5551_v32, %v5806_v9  ;;  %v7136_v16 = vadd.f32 %v7066_v15, %v14628_v25  ;;  %v8904_v43 = vadd.f32 %v8833_v57, %v14626_v38  ;;  %v6758_v31 = vpack.c.bf16 %v16643_v47, %v16643_v47  ;;  %v16647_v25 = vld [vmem:[#allocation53_spill] sm:$0xff]  ;;  %v16648_v38 = vld [vmem:[#allocation52_spill] sm:$0xff] }
 0x39b   : > { %v14782_v28 = vmax.f32 %v5549_v26, %v5805_v2  ;;  %v14784_v40 = vmax.f32 %v5550_v1, %v5807_v8  ;;  %v6759_v59 = vpack.c.bf16 %v16644_v10, %v16644_v10  ;;  %v8534_v20 = vmax.f32 %v14771_v17, %v16646_v58  ;;  %v8835_v58 = vpop.f32.mrf.mxu3 }
 0x39c   : > { %v14791_v14 = vmax.f32 %v6520_v60, %v14775_v0  ;;  %v14796_v52 = vadd.f32 %v16647_v25, %v8904_v43  ;;  %v6760_v18 = vpack.c.bf16 %v16648_v38, %v16648_v38  ;;  %v9827_v36 = vrot.slane %v6758_v31, 9 }
 0x39d   : > { %16642 = vst [vmem:[#allocation30_spill] sm:$0xff] %v14784_v40  ;;  %v14802_v37 = vmax.f32 %v6518_v19, %v14782_v28  ;;  %v14805_v48 = vmax.f32 %v6519_v41, %v14784_v40  ;;  %v6910_v6 = vrot.slane %v6759_v59, 5  ;;  %v3770_v4 = vpack.c.bf16 %v16651_v33, %v16651_v33  ;;  %v16654_v40 = vld [vmem:[#allocation13_spill] sm:$0xff] }
 0x39e   : > { %16645 = vst [vmem:[#allocation31_spill] sm:$0xff] %v14791_v14  ;;  %v7359_v9 = vrot.slane %v14791_v14, 1  ;;  %v7619_v15 = vrot.slane %v14791_v14, 2  ;;  %v7879_v57 = vrot.slane %v14791_v14, 3  ;;  %v8139_v32 = vrot.slane %v14791_v14, 4 }
 0x39f   : > { %16649 = vst [vmem:[#allocation65_spill] sm:$0xff] %v14802_v37  ;;  %v7356_v60 = vrot.slane %v14802_v37, 1  ;;  %v7357_v17 = vrot.slane %v14805_v48, 1  ;;  %v7616_v19 = vrot.slane %v14802_v37, 2  ;;  %v7617_v26 = vrot.slane %v14805_v48, 2 }
 0x3a0   : > { %16650 = vst [vmem:[#allocation55_spill] sm:$0xff] %v14805_v48  ;;  %v7876_v41 = vrot.slane %v14802_v37, 3  ;;  %v7877_v1 = vrot.slane %v14805_v48, 3  ;;  %v8136_v2 = vrot.slane %v14802_v37, 4  ;;  %v8137_v8 = vrot.slane %v14805_v48, 4 }
 0x3a1   : > { %v7358_v43 = vsel %vm870_vm6, %v7356_v60, %v7357_v17  ;;  %v7360_v61 = vsel %vm870_vm6, %v7357_v17, %v7359_v9  ;;  %v7618_v47 = vsel %vm1403_vm9, %v7616_v19, %v7617_v26  ;;  %v7620_v31 = vsel %vm1403_vm9, %v7617_v26, %v7619_v15 }
 0x3a2   : > { %v7451_v10 = vmax.f32 %v14802_v37, %v7358_v43  ;;  %v7452_v59 = vmax.f32 %v14805_v48, %v7360_v61  ;;  %v7878_v38 = vsel %vm1936_vm10, %v7876_v41, %v7877_v1  ;;  %v7880_v14 = vsel %vm1936_vm10, %v7877_v1, %v7879_v57  ;;  %v16653_v37 = vld [vmem:[#allocation36_spill] sm:$0xff] }
 0x3a3   : > { %v8138_v60 = vsel %vm2469_vm11, %v8136_v2, %v8137_v8  ;;  %v9869_v9 = vmul.f32 -1.442695, %v14796_v52  ;;  %v6911_v15 = vsel %vm10295_vm5, %v9827_v36, %v6910_v6  ;;  %v6912_v43 = vrot.slane %v6910_v6, 4 }
 0x3a4   : > { %v7711_v19 = vmax.f32 %v7451_v10, %v7618_v47  ;;  %v7712_v26 = vmax.f32 %v7452_v59, %v7620_v31  ;;  %v6913_v61 = vrot.slane %v6760_v18, 5  ;;  %v8140_v41 = vsel %vm2469_vm11, %v8137_v8, %v8139_v32  ;;  %v10050_v59 = vld [vmem:[#allocation2 + $0x180] sm:$0xff]  }
 0x3a5   : > { %10088 = vpow2.f32 %v9869_v9  ;;  %v6961_v48 = vunpack.c.l.b16 %v6911_v15  ;;  %v3771_v33 = vpack.c.bf16 %v16653_v37, %v16653_v37  ;;  %v3772_v36 = vpack.c.bf16 %v16654_v40, %v16654_v40  ;;  %v632_v37 = vld [vmem:[#allocation2 + $0x188] sm:$0xf] }
 0x3a6   : > { %v7971_v57 = vmax.f32 %v7711_v19, %v7878_v38  ;;  %v7972_v1 = vmax.f32 %v7712_v26, %v7880_v14  ;;  %v6914_v2 = vsel %vm10295_vm5, %v6912_v43, %v6913_v61  ;;  %v9715_v31 = vrot.slane %v3770_v4, 10 }
 0x3a7   : > { %v6962_v47 = vunpack.c.l.b16 %v6914_v2  ;;  %v3931_v6 = vrot.slane %v3771_v33, 6  ;;  %v3934_v8 = vrot.slane %v3772_v36, 6  ;;  %v8905_v10 = vadd.f32 %v8835_v58, %v7136_v16  ;;  %v633_v16 = vld [vmem:[#allocation2 + $0x18c] sm:$0x3] }
 0x3a8   : > { %v14840_v18 = vmax.f32 %v7971_v57, %v8138_v60  ;;  %v14842_v32 = vmax.f32 %v7972_v1, %v8140_v41  ;;  %v4281_v38 = vadd.f32 %v4280_v22, %v4092_v13  ;;  %v16657_v40 = vmax.f32 %v14768_v23, %v14594_v51  ;;  %v4094_v57 = vpop.f32.mrf.mxu0  ;;  %v4282_v1 = vpop.f32.mrf.mxu1 }
 0x3a9   : > { %v6981_v9 = vpack.c.b16 %v6962_v47, %v6961_v48  ;;  %v3932_v15 = vsel %vm11713_vm15, %v9715_v31, %v3931_v6  ;;  %v3933_v19 = vrot.slane %v3931_v6, 4  ;;  %v14852_v43 = vadd.f32 %v16647_v25, %v8905_v10  ;;  %v7069_v10 = vpop.f32.mrf.mxu2 }
 0x3aa   : > { %16655 = vst [vmem:[#allocation66_spill] sm:$0xff] %v14842_v32  ;;  %v8631_v4 = vmax.f32 %v16657_v40, %v14840_v18  ;;  %v8632_v60 = vmax.f32 %v8534_v20, %v14842_v32  ;;  %v3982_v26 = vunpack.c.l.b16 %v3932_v15  ;;  %v14857_v13 = vunpack.c.l.bf16 %v10050_v59 }
 0x3ab   : > { %v10089_v58 = vpop.eup %10088  ;;  %9843 = vmatmul.msk.bf16.gmra.mxu2 %vm4010_vm12, %v6981_v9  ;;  %v3935_v22 = vsel %vm11713_vm15, %v3933_v19, %v3934_v8  ;;  %v14859_v48 = vunpack.c.h.bf16 %v10050_v59  ;;  %v14861_v61 = vunpack.c.l.bf16 %v632_v37  ;;  %v9870_v2 = vmul.f32 -1.442695, %v14852_v43 }
 0x3ac   : > { %v8663_v23 = vpack.c.bf16 %v8631_v4, %v8631_v4  ;;  %v8664_v41 = vpack.c.bf16 %v8632_v60, %v8632_v60  ;;  %v14863_v20 = vadd.f32 1.0, %v10089_v58  ;;  %v3983_v33 = vunpack.c.l.b16 %v3935_v22 }
 0x3ad   : > { %v14866_v36 = vunpack.c.l.bf16 %v633_v16  ;;  %v1039_v47 = vrot.slane %v14857_v13, 1  ;;  %v1040_v31 = vrot.slane %v14859_v48, 1  ;;  %v14871_v59 = vadd.f32 %v7069_v10, %v4281_v38 }
 0x3ae   : > { %v8728_v6 = vunpack.c.l.b16 %v8663_v23  ;;  %v8729_v8 = vunpack.c.l.b16 %v8664_v41  ;;  %10090 = vrcp.f32 %v14863_v20  ;;  %v4002_v37 = vpack.c.b16 %v3983_v33, %v3982_v26 }
 0x3af   : > { %10092 = vpow2.f32 %v9870_v2  ;;  %v14873_v9 = vadd.f32 %v4282_v1, %v4094_v57  ;;  %v1041_v19 = vsel %vm870_vm6, %v1039_v47, %v1040_v31  ;;  %v1042_v40 = vrot.slane %v14861_v61, 1 }
 0x3b0   : > { %v8749_v15 = vpack.c.b16 %v8729_v8, %v8728_v6  ;;  %v1044_v4 = vrot.slane %v14866_v36, 1  ;;  %v9193_v60 = vand.u32 2147483647, %v14863_v20  ;;  %v9195_v16 = vand.u32 2147483648, %v14863_v20  ;;  %9731 = vmatmul.msk.bf16.gmra.mxu0 %vm4010_vm12, %v4002_v37 }
 0x3b1   : > { %v1223_v38 = vmax.f32 %v14857_v13, %v1041_v19  ;;  %v1572_v26 = vrot.slane %v14857_v13, 2  ;;  %v1043_v58 = vsel %vm870_vm6, %v1040_v31, %v1042_v40  ;;  %v1573_v23 = vrot.slane %v14859_v48, 2 }
 0x3b2   : > { %9858 = vmatmul.msk.bf16.gmra.mxu3 %vm4010_vm12, %v8749_v15  ;;  %v1045_v22 = vsel %vm870_vm6, %v1042_v40, %v1044_v4  ;;  %v1575_v41 = vrot.slane %v14861_v61, 2  ;;  %v1224_v33 = vmax.f32 %v14859_v48, %v1043_v58  ;;  %v1577_v1 = vrot.slane %v14866_v36, 2 }
 0x3b3   : > { %v1225_v57 = vmax.f32 %v14861_v61, %v1045_v22  ;;  %v2105_v2 = vrot.slane %v14857_v13, 3  ;;  %v1574_v6 = vsel %vm1403_vm9, %v1572_v26, %v1573_v23  ;;  %v2106_v31 = vrot.slane %v14859_v48, 3 }
 0x3b4   : > { %v10091_v47 = vpop.eup %10090  ;;  %v1576_v8 = vsel %vm1403_vm9, %v1573_v23, %v1575_v41  ;;  %v2108_v10 = vrot.slane %v14861_v61, 3  ;;  %vm9189_vm1 = vweird.f32 %v14863_v20  ;;  %v1578_v19 = vsel %vm1403_vm9, %v1575_v41, %v1577_v1 }
 0x3b5   : > { %v10093_v37 = vpop.eup %10092  ;;  %v9185_v15 = vmul.f32 %v10091_v47, %v14863_v20  ;;  %v1756_v40 = vmax.f32 %v1223_v38, %v1574_v6  ;;  %v1757_v58 = vmax.f32 %v1224_v33, %v1576_v8  ;;  %v1758_v22 = vmax.f32 %v1225_v57, %v1578_v19 }
 0x3b6   : > { %v14899_v4 = vadd.f32 1.0, %v10093_v37  ;;  %v2107_v26 = vsel %vm1936_vm10, %v2105_v2, %v2106_v31  ;;  %vm14902_vm0 = vcmp.eq.f32.partialorder %v9193_v60, 8.507059e+37  ;;  %v2109_v17 = vsel %vm1936_vm10, %v2106_v31, %v2108_v10 }
 0x3b7   : > { %v9186_v14 = vsub.f32 1.0, %v9185_v15  ;;  %v2110_v25 = vrot.slane %v14866_v36, 3  ;;  %vm9190_vm2 = vweird.f32 %v10091_v47  ;;  %v9196_v32 = vor.u32 1.1754944e-38, %v9195_v16 }
 0x3b8   : > { %10094 = vrcp.f32 %v14899_v4  ;;  %v9210_v38 = vand.u32 2147483648, %v14899_v4  ;;  %v2289_v57 = vmax.f32 %v1756_v40, %v2107_v26  ;;  %v2638_v1 = vrot.slane %v14857_v13, 4  ;;  %vm9191_vm4 = vmor %vm9189_vm1, %vm9190_vm2 }
 0x3b9   : > { %v9187_v41 = vmul.f32 %v10091_v47, %v9186_v14  ;;  %v2111_v33 = vsel %vm1936_vm10, %v2108_v10, %v2110_v25  ;;  %v9208_v60 = vand.u32 2147483647, %v14899_v4  ;;  %v2290_v2 = vmax.f32 %v1757_v58, %v2109_v17 }
 0x3ba   : > { %v2291_v6 = vmax.f32 %v1758_v22, %v2111_v33  ;;  %v2639_v8 = vrot.slane %v14859_v48, 4  ;;  %v2641_v37 = vrot.slane %v14861_v61, 4  ;;  %v2643_v16 = vrot.slane %v14866_v36, 4 }
 0x3bb   : > { %v9188_v31 = vadd.f32 %v10091_v47, %v9187_v41  ;;  %v3053_v15 = vmax.f32 %v13915_v29, %v14210_v35  ;;  %v9211_v25 = vor.u32 1.1754944e-38, %v9210_v38  ;;  %v3054_v17 = vmax.f32 %v13930_v39, %v14212_v7 }
 0x3bc   : > { %v2640_v14 = vsel %vm2469_vm11, %v2638_v1, %v2639_v8  ;;  %v3055_v13 = vmax.f32 %v13934_v62, %v14214_v55  ;;  %vm9204_vm7 = vweird.f32 %v14899_v4  ;;  %v2642_v61 = vsel %vm2469_vm11, %v2639_v8, %v2641_v37 }
 0x3bd   : > { %v9192_v48 = vsel %vm9191_vm4, %v10091_v47, %v9188_v31  ;;  %v2644_v29 = vsel %vm2469_vm11, %v2641_v37, %v2643_v16  ;;  %v6155_v20 = vmax.f32 %v14012_v12, %v14291_v30  ;;  %v14933_v19 = vmax.f32 %v2289_v57, %v2640_v14 }
 0x3be   : > { %v10095_v36 = vpop.eup %10094  ;;  %v9197_v10 = vsel %vm14902_vm0, %v9196_v32, %v9192_v48  ;;  %v14935_v39 = vmax.f32 %v2290_v2, %v2642_v61  ;;  %v3272_v62 = vmax.f32 %v3053_v15, %v14441_v45  ;;  %vm14940_vm8 = vcmp.eq.f32.partialorder %v9208_v60, 8.507059e+37 }
 0x3bf   : > { %v9580_v47 = vmul.f32 %v9197_v10, %v14796_v52  ;;  %v9200_v40 = vmul.f32 %v10095_v36, %v14899_v4  ;;  %v14944_v22 = vmax.f32 %v2291_v6, %v2644_v29  ;;  %v3273_v12 = vmax.f32 %v3054_v17, %v14443_v46 }
 0x3c0   : > { %v3274_v32 = vmax.f32 %v3055_v13, %v14445_v34  ;;  %v3491_v26 = vmax.f32 %v3272_v62, %v14689_v53  ;;  %v6156_v23 = vmax.f32 %v16584_v63, %v14293_v11  ;;  %v6157_v52 = vmax.f32 %v16585_v5, %v14285_v44 }
 0x3c1   : > { %9613 = vst.msk [vmem:[%s14185_s4 + $0x30] sm:$0xff] %vm9606_vm3, %v9580_v47  ;;  %v9201_v38 = vsub.f32 1.0, %v9200_v40  ;;  %vm9205_vm13 = vweird.f32 %v10095_v36  ;;  %v3492_v41 = vmax.f32 %v3273_v12, %v14691_v56  ;;  %v14957_v33 = vmax.f32 %v6155_v20, %v14527_v3 }
 0x3c2   : > { %v3493_v57 = vmax.f32 %v3274_v32, %v14699_v42  ;;  %v3710_v1 = vmax.f32 %v3491_v26, %v14933_v19  ;;  %v14962_v60 = vmax.f32 %v6156_v23, %v14535_v54  ;;  %v8339_v63 = vmax.f32 %v14072_v21, %v14351_v49  ;;  %vm9206_vm14 = vmor %vm9204_vm7, %vm9205_vm13 }
 0x3c3   : > { %v9202_v5 = vmul.f32 %v10095_v36, %v9201_v38  ;;  %v3711_v2 = vmax.f32 %v3492_v41, %v14935_v39  ;;  %v6340_v6 = vmax.f32 %v6157_v52, %v14529_v50  ;;  %v8340_v8 = vmax.f32 %v14074_v24, %v16641_v27 }
 0x3c4   : > { %v3712_v31 = vmax.f32 %v3493_v57, %v14944_v22  ;;  %v4584_v37 = vrot.slane %v3710_v1, 1  ;;  %v4992_v16 = vrot.slane %v3710_v1, 2  ;;  %v5400_v15 = vrot.slane %v3710_v1, 3 }
 0x3c5   : > { %v9203_v14 = vadd.f32 %v10095_v36, %v9202_v5  ;;  %v4585_v17 = vrot.slane %v3711_v2, 1  ;;  %v4993_v13 = vrot.slane %v3711_v2, 2  ;;  %v5401_v48 = vrot.slane %v3711_v2, 3 }
 0x3c6   : > { %v4587_v21 = vrot.slane %v3712_v31, 1  ;;  %v4995_v61 = vrot.slane %v3712_v31, 2  ;;  %v5403_v29 = vrot.slane %v3712_v31, 3  ;;  %v5808_v20 = vrot.slane %v3710_v1, 4 }
 0x3c7   : > { %v9207_v10 = vsel %vm9206_vm14, %v10095_v36, %v9203_v14  ;;  %v4586_v24 = vsel %vm870_vm6, %v4584_v37, %v4585_v17  ;;  %v4994_v62 = vsel %vm1403_vm9, %v4992_v16, %v4993_v13  ;;  %v5402_v47 = vsel %vm1936_vm10, %v5400_v15, %v5401_v48 }
 0x3c8   : > { %v9212_v40 = vsel %vm14940_vm8, %v9211_v25, %v9207_v10  ;;  %v4588_v12 = vsel %vm870_vm6, %v4585_v17, %v4587_v21  ;;  %v4736_v32 = vmax.f32 %v3710_v1, %v4586_v24  ;;  %v4738_v4 = vmax.f32 %v3712_v31, %v4587_v21  ;;  %v8838_v1 = vpop.f32.mrf.mxu3  ;;  %v16663_v21 = vld [vmem:[#allocation63_spill] sm:$0xff]  ;;  %v9912_v24 = vld [vmem:[%s10247_s19 + $0x68] sm:$0xff] }
 0x3c9   : > { %v9581_v26 = vmul.f32 %v9212_v40, %v14852_v43  ;;  %v4737_v23 = vmax.f32 %v3711_v2, %v4588_v12  ;;  %v4996_v52 = vsel %vm1403_vm9, %v4993_v13, %v4995_v61  ;;  %v5404_v36 = vsel %vm1936_vm10, %v5401_v48, %v5403_v29  ;;  %v16662_v13 = vld [vmem:[#allocation30_spill] sm:$0xff]  ;;  %v16668_v40 = vld [vmem:[#allocation31_spill] sm:$0xff]  ;;  %9812 = vmatmul.msk.bf16.gmra.mxu1 %vm4010_vm12, %v9912_v24 }
 0x3ca   : > { %v5144_v38 = vmax.f32 %v4736_v32, %v4994_v62  ;;  %v5146_v41 = vmax.f32 %v4738_v4, %v4995_v61  ;;  %v5809_v57 = vrot.slane %v3711_v2, 4  ;;  %v5811_v5 = vrot.slane %v3712_v31, 4  ;;  %v7071_v31 = vpop.f32.mrf.mxu2 }
 0x3cb   : > { %9614 = vst.msk [vmem:[%s14185_s4 + $0x38] sm:$0xff] %vm9606_vm3, %v9581_v26  ;;  %v5145_v37 = vmax.f32 %v4737_v23, %v4996_v52  ;;  %v6521_v25 = vmax.f32 %v14957_v33, %v14782_v28  ;;  %v6523_v58 = vmax.f32 %v6340_v6, %v14775_v0  ;;  %v14989_v43 = vmax.f32 %v8339_v63, %v14594_v51  ;;  %v16672_v23 = vld [vmem:[#allocation53_spill] sm:$0xff] }
 0x3cc   : > { %v5552_v16 = vmax.f32 %v5144_v38, %v5402_v47  ;;  %v5554_v15 = vmax.f32 %v5146_v41, %v5403_v29  ;;  %v5810_v14 = vsel %vm2469_vm11, %v5808_v20, %v5809_v57  ;;  %v5812_v2 = vsel %vm2469_vm11, %v5809_v57, %v5811_v5  ;;  %v16665_v20 = vld [vmem:[#allocation65_spill] sm:$0xff]  ;;  %v16667_v47 = vld [vmem:[#allocation55_spill] sm:$0xff] }
 0x3cd   : > { %v5553_v17 = vmax.f32 %v5145_v37, %v5404_v36  ;;  %v6522_v48 = vmax.f32 %v14962_v60, %v16662_v13  ;;  %v14996_v33 = vmax.f32 %v8340_v8, %v16663_v21  ;;  %v8906_v29 = vadd.f32 %v8838_v1, %v14871_v59  ;;  %v16671_v59 = vld [vmem:[#allocation66_spill] sm:$0xff] }
 0x3ce   : > { %v15000_v63 = vmax.f32 %v5552_v16, %v5810_v14  ;;  %v15002_v61 = vmax.f32 %v5554_v15, %v5811_v5  ;;  %v6761_v10 = vpack.c.bf16 %v16665_v20, %v16665_v20  ;;  %v7138_v60 = vadd.f32 %v7071_v31, %v14873_v9 }
 0x3cf   : > { %v15008_v62 = vmax.f32 %v5553_v17, %v5812_v2  ;;  %v6762_v8 = vpack.c.bf16 %v16667_v47, %v16667_v47  ;;  %v6763_v12 = vpack.c.bf16 %v16668_v40, %v16668_v40  ;;  %v8536_v26 = vmax.f32 %v14996_v33, %v16671_v59  ;;  %v4285_v40 = vpop.f32.mrf.mxu1 }
 0x3d0   : > { %16664 = vst [vmem:[#allocation19_spill] sm:$0xff] %v15002_v61  ;;  %v15016_v32 = vmax.f32 %v6521_v25, %v15000_v63  ;;  %v15019_v4 = vmax.f32 %v6523_v58, %v15002_v61  ;;  %v15024_v52 = vadd.f32 %v16672_v23, %v8906_v29  ;;  %v9828_v36 = vrot.slane %v6761_v10, 9 }
 0x3d1   : > { %16666 = vst [vmem:[#allocation67_spill] sm:$0xff] %v15008_v62  ;;  %v15028_v9 = vmax.f32 %v6522_v48, %v15008_v62  ;;  %v6917_v38 = vrot.slane %v6762_v8, 5  ;;  %v6920_v41 = vrot.slane %v6763_v12, 5  ;;  %v4097_v8 = vpop.f32.mrf.mxu0  ;;  %v16674_v12 = vld [vmem:[#allocation25_spill] sm:$0xff] }
 0x3d2   : > { %16669 = vst [vmem:[#allocation26_spill] sm:$0xff] %v15016_v32  ;;  %v7361_v57 = vrot.slane %v15016_v32, 1  ;;  %v7364_v5 = vrot.slane %v15019_v4, 1  ;;  %v7621_v37 = vrot.slane %v15016_v32, 2  ;;  %v7624_v25 = vrot.slane %v15019_v4, 2 }
 0x3d3   : > { %16670 = vst [vmem:[#allocation7_spill] sm:$0xff] %v15019_v4  ;;  %v7362_v58 = vrot.slane %v15028_v9, 1  ;;  %v7622_v1 = vrot.slane %v15028_v9, 2  ;;  %v7881_v16 = vrot.slane %v15016_v32, 3  ;;  %v7882_v15 = vrot.slane %v15028_v9, 3 }
 0x3d4   : > { %16673 = vst [vmem:[#allocation11_spill] sm:$0xff] %v15028_v9  ;;  %v7884_v14 = vrot.slane %v15019_v4, 3  ;;  %v8141_v2 = vrot.slane %v15016_v32, 4  ;;  %v8142_v31 = vrot.slane %v15028_v9, 4  ;;  %v8144_v17 = vrot.slane %v15019_v4, 4 }
 0x3d5   : > { %v7363_v48 = vsel %vm870_vm6, %v7361_v57, %v7362_v58  ;;  %v7365_v33 = vsel %vm870_vm6, %v7362_v58, %v7364_v5  ;;  %v7623_v29 = vsel %vm1403_vm9, %v7621_v37, %v7622_v1  ;;  %v7625_v20 = vsel %vm1403_vm9, %v7622_v1, %v7624_v25 }
 0x3d6   : > { %v7453_v10 = vmax.f32 %v15016_v32, %v7363_v48  ;;  %v7454_v24 = vmax.f32 %v15028_v9, %v7365_v33  ;;  %v7883_v47 = vsel %vm1936_vm10, %v7881_v16, %v7882_v15  ;;  %v3773_v6 = vpack.c.bf16 %v16674_v12, %v16674_v12  ;;  %v16676_v9 = vld [vmem:[#allocation9_spill] sm:$0xff]  ;;  %v16677_v12 = vld [vmem:[#allocation10_spill] sm:$0xff] }
 0x3d7   : > { %v7885_v4 = vsel %vm1936_vm10, %v7882_v15, %v7884_v14  ;;  %v8143_v57 = vsel %vm2469_vm11, %v8141_v2, %v8142_v31  ;;  %v9871_v5 = vmul.f32 -1.442695, %v15024_v52  ;;  %v6918_v25 = vsel %vm10295_vm5, %v9828_v36, %v6917_v38  ;;  %v8840_v14 = vpop.f32.mrf.mxu3 }
 0x3d8   : > { %v7713_v58 = vmax.f32 %v7453_v10, %v7623_v29  ;;  %v7714_v1 = vmax.f32 %v7454_v24, %v7625_v20  ;;  %v8145_v48 = vsel %vm2469_vm11, %v8142_v31, %v8144_v17  ;;  %v6919_v33 = vrot.slane %v6917_v38, 4  ;;  %v10051_v29 = vld [vmem:[#allocation2 + $0x190] sm:$0xff]  }
 0x3d9   : > { %10096 = vpow2.f32 %v9871_v5  ;;  %v6963_v16 = vunpack.c.l.b16 %v6918_v25  ;;  %v3774_v32 = vpack.c.bf16 %v16676_v9, %v16676_v9  ;;  %v3775_v15 = vpack.c.bf16 %v16677_v12, %v16677_v12  ;;  %v636_v5 = vld [vmem:[#allocation2 + $0x198] sm:$0xf]  ;;  %v637_v25 = vld [vmem:[#allocation2 + $0x19c] sm:$0x3] }
 0x3da   : > { %v7973_v2 = vmax.f32 %v7713_v58, %v7883_v47  ;;  %v7974_v59 = vmax.f32 %v7714_v1, %v7885_v4  ;;  %v6921_v62 = vsel %vm10295_vm5, %v6919_v33, %v6920_v41  ;;  %v9716_v36 = vrot.slane %v3773_v6, 10 }
 0x3db   : > { %v6964_v20 = vunpack.c.l.b16 %v6921_v62  ;;  %v3938_v10 = vrot.slane %v3774_v32, 6  ;;  %v3941_v31 = vrot.slane %v3775_v15, 6  ;;  %v4286_v24 = vadd.f32 %v4285_v40, %v4097_v8 }
 0x3dc   : > { %v15063_v38 = vmax.f32 %v7973_v2, %v8143_v57  ;;  %v15065_v17 = vmax.f32 %v7974_v59, %v8145_v48  ;;  %v8907_v9 = vadd.f32 %v8840_v14, %v7138_v60  ;;  %v15069_v58 = vunpack.c.l.bf16 %v10051_v29 }
 0x3dd   : > { %v6982_v12 = vpack.c.b16 %v6964_v20, %v6963_v16  ;;  %v3939_v4 = vsel %vm11713_vm15, %v9716_v36, %v3938_v10  ;;  %v3940_v47 = vrot.slane %v3938_v10, 4  ;;  %v16680_v6 = vmax.f32 %v14989_v43, %v14840_v18  ;;  %v4099_v16 = vpop.f32.mrf.mxu0  ;;  %v7074_v10 = vpop.f32.mrf.mxu2 }
 0x3de   : > { %16678 = vst [vmem:[#allocation6_spill] sm:$0xff] %v15065_v17  ;;  %v8634_v32 = vmax.f32 %v8536_v26, %v15065_v17  ;;  %v3984_v59 = vunpack.c.l.b16 %v3939_v4  ;;  %v15077_v41 = vadd.f32 %v16672_v23, %v8907_v9  ;;  %v15082_v40 = vunpack.c.h.bf16 %v10051_v29  ;;  %v4287_v23 = vpop.f32.mrf.mxu1 }
 0x3df   : > { %v8633_v62 = vmax.f32 %v16680_v6, %v15063_v38  ;;  %v10097_v60 = vpop.eup %10096  ;;  %9844 = vmatmul.msk.bf16.gmra.mxu2 %vm4010_vm12, %v6982_v12  ;;  %v3942_v8 = vsel %vm11713_vm15, %v3940_v47, %v3941_v31  ;;  %v15084_v57 = vunpack.c.l.bf16 %v636_v5  ;;  %v15086_v1 = vunpack.c.l.bf16 %v637_v25 }
 0x3e0   : > { %v8666_v48 = vpack.c.bf16 %v8634_v32, %v8634_v32  ;;  %v15088_v33 = vadd.f32 1.0, %v10097_v60  ;;  %v3985_v26 = vunpack.c.l.b16 %v3942_v8  ;;  %v9872_v15 = vmul.f32 -1.442695, %v15077_v41 }
 0x3e1   : > { %v8665_v43 = vpack.c.bf16 %v8633_v62, %v8633_v62  ;;  %v1046_v14 = vrot.slane %v15069_v58, 1  ;;  %v1047_v2 = vrot.slane %v15082_v40, 1  ;;  %v1049_v36 = vrot.slane %v15084_v57, 1 }
 0x3e2   : > { %v8731_v20 = vunpack.c.l.b16 %v8666_v48  ;;  %10098 = vrcp.f32 %v15088_v33  ;;  %v15095_v31 = vadd.f32 %v7074_v10, %v4286_v24  ;;  %v4003_v9 = vpack.c.b16 %v3985_v26, %v3984_v59 }
 0x3e3   : > { %v8730_v29 = vunpack.c.l.b16 %v8665_v43  ;;  %10100 = vpow2.f32 %v9872_v15  ;;  %v15097_v5 = vadd.f32 %v4287_v23, %v4099_v16  ;;  %v1048_v12 = vsel %vm870_vm6, %v1046_v14, %v1047_v2 }
 0x3e4   : > { %v1050_v4 = vsel %vm870_vm6, %v1047_v2, %v1049_v36  ;;  %v1051_v47 = vrot.slane %v15086_v1, 1  ;;  %v9223_v6 = vand.u32 2147483647, %v15088_v33  ;;  %v9225_v62 = vand.u32 2147483648, %v15088_v33  ;;  %9732 = vmatmul.msk.bf16.gmra.mxu0 %vm4010_vm12, %v4003_v9 }
 0x3e5   : > { %v8750_v25 = vpack.c.b16 %v8731_v20, %v8730_v29  ;;  %v1226_v24 = vmax.f32 %v15069_v58, %v1048_v12  ;;  %v1227_v32 = vmax.f32 %v15082_v40, %v1050_v4  ;;  %v1579_v60 = vrot.slane %v15069_v58, 2 }
 0x3e6   : > { %v1052_v59 = vsel %vm870_vm6, %v1049_v36, %v1051_v47  ;;  %v1580_v8 = vrot.slane %v15082_v40, 2  ;;  %v1582_v43 = vrot.slane %v15084_v57, 2  ;;  %v1584_v26 = vrot.slane %v15086_v1, 2 }
 0x3e7   : > { %9859 = vmatmul.msk.bf16.gmra.mxu3 %vm4010_vm12, %v8750_v25  ;;  %v1228_v48 = vmax.f32 %v15084_v57, %v1052_v59  ;;  %v2112_v16 = vrot.slane %v15069_v58, 3  ;;  %v2113_v23 = vrot.slane %v15082_v40, 3  ;;  %v2115_v36 = vrot.slane %v15084_v57, 3 }
 0x3e8   : > { %v10099_v15 = vpop.eup %10098  ;;  %v1581_v14 = vsel %vm1403_vm9, %v1579_v60, %v1580_v8  ;;  %v1583_v2 = vsel %vm1403_vm9, %v1580_v8, %v1582_v43  ;;  %v2117_v29 = vrot.slane %v15086_v1, 3  ;;  %vm9219_vm1 = vweird.f32 %v15088_v33 }
 0x3e9   : > { %v10101_v20 = vpop.eup %10100  ;;  %v9215_v10 = vmul.f32 %v10099_v15, %v15088_v33  ;;  %v1585_v9 = vsel %vm1403_vm9, %v1582_v43, %v1584_v26  ;;  %v1759_v25 = vmax.f32 %v1226_v24, %v1581_v14  ;;  %v1760_v4 = vmax.f32 %v1227_v32, %v1583_v2 }
 0x3ea   : > { %v15123_v12 = vadd.f32 1.0, %v10101_v20  ;;  %v1761_v47 = vmax.f32 %v1228_v48, %v1585_v9  ;;  %v2114_v59 = vsel %vm1936_vm10, %v2112_v16, %v2113_v23  ;;  %vm15126_vm0 = vcmp.eq.f32.partialorder %v9223_v6, 8.507059e+37 }
 0x3eb   : > { %v9216_v60 = vsub.f32 1.0, %v9215_v10  ;;  %v2116_v61 = vsel %vm1936_vm10, %v2113_v23, %v2115_v36  ;;  %v2118_v17 = vsel %vm1936_vm10, %v2115_v36, %v2117_v29  ;;  %vm9220_vm2 = vweird.f32 %v10099_v15 }
 0x3ec   : > { %v9226_v37 = vor.u32 1.1754944e-38, %v9225_v62  ;;  %10102 = vrcp.f32 %v15123_v12  ;;  %v9240_v24 = vand.u32 2147483648, %v15123_v12  ;;  %v9238_v32 = vand.u32 2147483647, %v15123_v12  ;;  %vm9221_vm4 = vmor %vm9219_vm1, %vm9220_vm2 }
 0x3ed   : > { %v9217_v43 = vmul.f32 %v10099_v15, %v9216_v60  ;;  %v2292_v48 = vmax.f32 %v1759_v25, %v2114_v59  ;;  %v2645_v26 = vrot.slane %v15069_v58, 4  ;;  %v2293_v6 = vmax.f32 %v1760_v4, %v2116_v61 }
 0x3ee   : > { %v2294_v16 = vmax.f32 %v1761_v47, %v2118_v17  ;;  %v2646_v14 = vrot.slane %v15082_v40, 4  ;;  %v2648_v23 = vrot.slane %v15084_v57, 4  ;;  %v2650_v36 = vrot.slane %v15086_v1, 4 }
 0x3ef   : > { %v9218_v2 = vadd.f32 %v10099_v15, %v9217_v43  ;;  %v3056_v62 = vmax.f32 %v14210_v35, %v14441_v45  ;;  %v3057_v29 = vmax.f32 %v14212_v7, %v14443_v46  ;;  %v9241_v58 = vor.u32 1.1754944e-38, %v9240_v24 }
 0x3f0   : > { %v2647_v61 = vsel %vm2469_vm11, %v2645_v26, %v2646_v14  ;;  %v2649_v17 = vsel %vm2469_vm11, %v2646_v14, %v2648_v23  ;;  %v3058_v40 = vmax.f32 %v14214_v55, %v14445_v34  ;;  %vm9234_vm7 = vweird.f32 %v15123_v12 }
 0x3f1   : > { %v9222_v57 = vsel %vm9221_vm4, %v10099_v15, %v9218_v2  ;;  %v2651_v35 = vsel %vm2469_vm11, %v2648_v23, %v2650_v36  ;;  %v15152_v1 = vmax.f32 %v2292_v48, %v2647_v61  ;;  %v6158_v7 = vmax.f32 %v14291_v30, %v14527_v3 }
 0x3f2   : > { %v10103_v33 = vpop.eup %10102  ;;  %v9227_v20 = vsel %vm15126_vm0, %v9226_v37, %v9222_v57  ;;  %v15158_v10 = vmax.f32 %v2293_v6, %v2649_v17  ;;  %v3275_v9 = vmax.f32 %v3056_v62, %v14689_v53  ;;  %v3276_v55 = vmax.f32 %v3057_v29, %v14691_v56 }
 0x3f3   : > { %v9582_v15 = vmul.f32 %v9227_v20, %v15024_v52  ;;  %v9230_v25 = vmul.f32 %v10103_v33, %v15123_v12  ;;  %vm15164_vm8 = vcmp.eq.f32.partialorder %v9238_v32, 8.507059e+37  ;;  %v15168_v47 = vmax.f32 %v2294_v16, %v2651_v35 }
 0x3f4   : > { %v3277_v30 = vmax.f32 %v3058_v40, %v14699_v42  ;;  %v3494_v37 = vmax.f32 %v3275_v9, %v14933_v19  ;;  %v3495_v59 = vmax.f32 %v3276_v55, %v14935_v39  ;;  %v6159_v60 = vmax.f32 %v14293_v11, %v14535_v54 }
 0x3f5   : > { %v6160_v52 = vmax.f32 %v14285_v44, %v14529_v50  ;;  %9615 = vst.msk [vmem:[%s14185_s4 + $0x40] sm:$0xff] %vm9606_vm3, %v9582_v15  ;;  %v9231_v8 = vsub.f32 1.0, %v9230_v25  ;;  %vm9235_vm13 = vweird.f32 %v10103_v33  ;;  %v6341_v43 = vmax.f32 %v6158_v7, %v14782_v28 }
 0x3f6   : > { %v3496_v24 = vmax.f32 %v3277_v30, %v14944_v22  ;;  %v3713_v32 = vmax.f32 %v3494_v37, %v15152_v1  ;;  %v3714_v48 = vmax.f32 %v3495_v59, %v15158_v10  ;;  %v6342_v26 = vmax.f32 %v6159_v60, %v16662_v13  ;;  %vm9236_vm14 = vmor %vm9234_vm7, %vm9235_vm13 }
 0x3f7   : > { %v8341_v11 = vmax.f32 %v14351_v49, %v14594_v51  ;;  %v9232_v6 = vmul.f32 %v10103_v33, %v9231_v8  ;;  %v6343_v16 = vmax.f32 %v6160_v52, %v14775_v0  ;;  %v8342_v14 = vmax.f32 %v16641_v27, %v16663_v21 }
 0x3f8   : > { %v3715_v44 = vmax.f32 %v3496_v24, %v15168_v47  ;;  %v4589_v23 = vrot.slane %v3713_v32, 1  ;;  %v4590_v2 = vrot.slane %v3714_v48, 1  ;;  %v4997_v36 = vrot.slane %v3713_v32, 2 }
 0x3f9   : > { %v4998_v62 = vrot.slane %v3714_v48, 2  ;;  %v9233_v29 = vadd.f32 %v10103_v33, %v9232_v6  ;;  %v5405_v40 = vrot.slane %v3713_v32, 3  ;;  %v5406_v35 = vrot.slane %v3714_v48, 3 }
 0x3fa   : > { %v4592_v61 = vrot.slane %v3715_v44, 1  ;;  %v5000_v17 = vrot.slane %v3715_v44, 2  ;;  %v4591_v49 = vsel %vm870_vm6, %v4589_v23, %v4590_v2  ;;  %v5408_v7 = vrot.slane %v3715_v44, 3 }
 0x3fb   : > { %v4999_v57 = vsel %vm1403_vm9, %v4997_v36, %v4998_v62  ;;  %v9237_v20 = vsel %vm9236_vm14, %v10103_v33, %v9233_v29  ;;  %v4739_v9 = vmax.f32 %v3713_v32, %v4591_v49  ;;  %v5407_v12 = vsel %vm1936_vm10, %v5405_v40, %v5406_v35 }
 0x3fc   : > { %v4593_v27 = vsel %vm870_vm6, %v4590_v2, %v4592_v61  ;;  %v4741_v55 = vmax.f32 %v3715_v44, %v4592_v61  ;;  %v9242_v15 = vsel %vm15164_vm8, %v9241_v58, %v9237_v20  ;;  %v5001_v30 = vsel %vm1403_vm9, %v4998_v62, %v5000_v17  ;;  %v16685_v2 = vld [vmem:[#allocation19_spill] sm:$0xff]  ;;  %v8843_v62 = vpop.f32.mrf.mxu3  ;;  %v16688_v20 = vld [vmem:[#allocation26_spill] sm:$0xff] }
 0x3fd   : > { %v4740_v25 = vmax.f32 %v3714_v48, %v4593_v27  ;;  %v9583_v37 = vmul.f32 %v9242_v15, %v15077_v41  ;;  %v5147_v59 = vmax.f32 %v4739_v9, %v4999_v57  ;;  %v5409_v52 = vsel %vm1936_vm10, %v5406_v35, %v5408_v7  ;;  %v9913_v57 = vld [vmem:[%s10247_s19 + $0x70] sm:$0xff] }
 0x3fe   : > { %v5149_v60 = vmax.f32 %v4741_v55, %v5000_v17  ;;  %v5813_v8 = vrot.slane %v3713_v32, 4  ;;  %v5814_v24 = vrot.slane %v3714_v48, 4  ;;  %v5816_v6 = vrot.slane %v3715_v44, 4  ;;  %v16686_v17 = vld [vmem:[#allocation67_spill] sm:$0xff]  ;;  %v7076_v32 = vpop.f32.mrf.mxu2  ;;  %9813 = vmatmul.msk.bf16.gmra.mxu1 %vm4010_vm12, %v9913_v57 }
 0x3ff   : > { %v5148_v33 = vmax.f32 %v4740_v25, %v5001_v30  ;;  %9616 = vst.msk [vmem:[%s14185_s4 + $0x48] sm:$0xff] %vm9606_vm3, %v9583_v37  ;;  %v5555_v4 = vmax.f32 %v5147_v59, %v5407_v12  ;;  %v6524_v23 = vmax.f32 %v6341_v43, %v15000_v63  ;;  %v6526_v36 = vmax.f32 %v6343_v16, %v16685_v2  ;;  %v16687_v16 = vld [vmem:[#allocation66_spill] sm:$0xff]  ;;  %v16691_v55 = vld [vmem:[#allocation11_spill] sm:$0xff] }
 0x400   : > { %v5557_v58 = vmax.f32 %v5149_v60, %v5408_v7  ;;  %v5815_v41 = vsel %vm2469_vm11, %v5813_v8, %v5814_v24  ;;  %v5817_v61 = vsel %vm2469_vm11, %v5814_v24, %v5816_v6  ;;  %v6525_v40 = vmax.f32 %v6342_v26, %v16686_v17  ;;  %v16694_v30 = vld [vmem:[#allocation7_spill] sm:$0xff] }
 0x401   : > { %v5556_v29 = vmax.f32 %v5148_v33, %v5409_v52  ;;  %v15209_v48 = vmax.f32 %v5555_v4, %v5815_v41  ;;  %v15214_v49 = vmax.f32 %v8341_v11, %v14840_v18  ;;  %v15220_v35 = vmax.f32 %v8342_v14, %v16687_v16 }
 0x402   : > { %v15211_v44 = vmax.f32 %v5557_v58, %v5816_v6  ;;  %v8908_v7 = vadd.f32 %v8843_v62, %v15095_v31  ;;  %v6764_v27 = vpack.c.bf16 %v16688_v20, %v16688_v20  ;;  %v7140_v11 = vadd.f32 %v7076_v32, %v15097_v5  ;;  %v15241_v31 = vld [vmem:[%s15818_s2] ss:$0 sm:$0xff] }
 0x403   : > { %v15217_v43 = vmax.f32 %v5556_v29, %v5817_v61  ;;  %v15226_v26 = vmax.f32 %v6524_v23, %v15209_v48  ;;  %v6765_v15 = vpack.c.bf16 %v16691_v55, %v16691_v55  ;;  %16693 = vst [vmem:[#allocation21_spill] sm:$0xff] %v15241_v31  ;;  %v6766_v12 = vpack.c.bf16 %v16694_v30, %v16694_v30 }
 0x404   : > { %v15229_v9 = vmax.f32 %v6526_v36, %v15211_v44  ;;  %v15244_v25 = vadd.f32 %v15241_v31, %v8908_v7  ;;  %v9829_v5 = vrot.slane %v6764_v27, 9  ;;  %v8537_v7 = vmax.f32 %v15214_v49, %v15063_v38 }
 0x405   : > { %16689 = vst [vmem:[#allocation32_spill] sm:$0xff] %v15226_v26  ;;  %v15236_v14 = vmax.f32 %v6525_v40, %v15217_v43  ;;  %v7366_v37 = vrot.slane %v15226_v26, 1  ;;  %v7626_v60 = vrot.slane %v15226_v26, 2  ;;  %v7886_v24 = vrot.slane %v15226_v26, 3 }
 0x406   : > { %16690 = vst [vmem:[#allocation44_spill] sm:$0xff] %v15229_v9  ;;  %v7369_v59 = vrot.slane %v15229_v9, 1  ;;  %v7629_v52 = vrot.slane %v15229_v9, 2  ;;  %v7889_v4 = vrot.slane %v15229_v9, 3  ;;  %v8146_v58 = vrot.slane %v15226_v26, 4 }
 0x407   : > { %16692 = vst [vmem:[#allocation45_spill] sm:$0xff] %v15236_v14  ;;  %v7367_v33 = vrot.slane %v15236_v14, 1  ;;  %v7627_v8 = vrot.slane %v15236_v14, 2  ;;  %v7887_v6 = vrot.slane %v15236_v14, 3  ;;  %v8147_v23 = vrot.slane %v15236_v14, 4 }
 0x408   : > { %v8149_v36 = vrot.slane %v15229_v9, 4  ;;  %v9873_v55 = vmul.f32 -1.442695, %v15244_v25  ;;  %v6924_v30 = vrot.slane %v6765_v15, 5 }
 0x409   : > { %v7368_v62 = vsel %vm870_vm6, %v7366_v37, %v7367_v33  ;;  %v7370_v29 = vsel %vm870_vm6, %v7367_v33, %v7369_v59  ;;  %v7628_v41 = vsel %vm1403_vm9, %v7626_v60, %v7627_v8  ;;  %v7630_v61 = vsel %vm1403_vm9, %v7627_v8, %v7629_v52 }
 0x40a   : > { %v7455_v40 = vmax.f32 %v15226_v26, %v7368_v62  ;;  %v7456_v32 = vmax.f32 %v15236_v14, %v7370_v29  ;;  %v7888_v57 = vsel %vm1936_vm10, %v7886_v24, %v7887_v6  ;;  %v7890_v20 = vsel %vm1936_vm10, %v7887_v6, %v7889_v4  ;;  %v16696_v62 = vld [vmem:[#allocation17_spill] sm:$0xff]  ;;  %v8845_v29 = vpop.f32.mrf.mxu3 }
 0x40b   : > { %v8148_v27 = vsel %vm2469_vm11, %v8146_v58, %v8147_v23  ;;  %v8150_v60 = vsel %vm2469_vm11, %v8147_v23, %v8149_v36  ;;  %v6927_v52 = vrot.slane %v6766_v12, 5  ;;  %10104 = vpow2.f32 %v9873_v55  ;;  %v16697_v58 = vld [vmem:[#allocation6_spill] sm:$0xff] }
 0x40c   : > { %v7715_v37 = vmax.f32 %v7455_v40, %v7628_v41  ;;  %v7716_v59 = vmax.f32 %v7456_v32, %v7630_v61  ;;  %v6925_v8 = vsel %vm10295_vm5, %v9829_v5, %v6924_v30  ;;  %v6926_v24 = vrot.slane %v6924_v30, 4  ;;  %v10052_v41 = vld [vmem:[#allocation2 + $0x1a0] sm:$0xff]   ;;  %v16698_v12 = vld [vmem:[#allocation58_spill] sm:$0xff]  ;;  %v16699_v61 = vld [vmem:[#allocation48_spill] sm:$0xff] }
 0x40d   : > { %v3776_v49 = vpack.c.bf16 %v16696_v62, %v16696_v62  ;;  %v8538_v9 = vmax.f32 %v15220_v35, %v16697_v58  ;;  %v6965_v15 = vunpack.c.l.b16 %v6925_v8  ;;  %v3777_v36 = vpack.c.bf16 %v16698_v12, %v16698_v12  ;;  %v4102_v62 = vpop.f32.mrf.mxu0  ;;  %v4290_v12 = vpop.f32.mrf.mxu1 }
 0x40e   : > { %v7975_v6 = vmax.f32 %v7715_v37, %v7888_v57  ;;  %v7976_v4 = vmax.f32 %v7716_v59, %v7890_v20  ;;  %v6928_v23 = vsel %vm10295_vm5, %v6926_v24, %v6927_v52  ;;  %v3778_v5 = vpack.c.bf16 %v16699_v61, %v16699_v61  ;;  %v640_v59 = vld [vmem:[#allocation2 + $0x1a8] sm:$0xf] }
 0x40f   : > { %v9717_v40 = vrot.slane %v3776_v49, 10  ;;  %v6966_v57 = vunpack.c.l.b16 %v6928_v23  ;;  %v8909_v20 = vadd.f32 %v8845_v29, %v7140_v11  ;;  %v3945_v30 = vrot.slane %v3777_v36, 6 }
 0x410   : > { %v15285_v32 = vmax.f32 %v7975_v6, %v8148_v27  ;;  %v15287_v55 = vmax.f32 %v7976_v4, %v8150_v60  ;;  %v3948_v35 = vrot.slane %v3778_v5, 6  ;;  %v15289_v37 = vunpack.c.l.bf16 %v10052_v41  ;;  %v641_v27 = vld [vmem:[#allocation2 + $0x1ac] sm:$0x3] }
 0x411   : > { %v6983_v24 = vpack.c.b16 %v6966_v57, %v6965_v15  ;;  %v15294_v49 = vadd.f32 %v15241_v31, %v8909_v20  ;;  %v10105_v60 = vpop.eup %10104  ;;  %v4291_v6 = vadd.f32 %v4290_v12, %v4102_v62  ;;  %v3946_v11 = vsel %vm11713_vm15, %v9717_v40, %v3945_v30 }
 0x412   : > { %16700 = vst [vmem:[#allocation22_spill] sm:$0xff] %v15287_v55  ;;  %v8635_v52 = vmax.f32 %v8537_v7, %v15285_v32  ;;  %v8636_v8 = vmax.f32 %v8538_v9, %v15287_v55  ;;  %v3947_v29 = vrot.slane %v3945_v30, 4  ;;  %v15298_v23 = vunpack.c.h.bf16 %v10052_v41  ;;  %v7079_v41 = vpop.f32.mrf.mxu2 }
 0x413   : > { %v15300_v7 = vadd.f32 1.0, %v10105_v60  ;;  %9845 = vmatmul.msk.bf16.gmra.mxu2 %vm4010_vm12, %v6983_v24  ;;  %v15303_v9 = vunpack.c.l.bf16 %v640_v59  ;;  %v3986_v5 = vunpack.c.l.b16 %v3946_v11  ;;  %v9874_v57 = vmul.f32 -1.442695, %v15294_v49 }
 0x414   : > { %v8667_v36 = vpack.c.bf16 %v8635_v52, %v8635_v52  ;;  %v8668_v61 = vpack.c.bf16 %v8636_v8, %v8636_v8  ;;  %v3949_v15 = vsel %vm11713_vm15, %v3947_v29, %v3948_v35  ;;  %v15308_v20 = vunpack.c.l.bf16 %v641_v27 }
 0x415   : > { %10106 = vrcp.f32 %v15300_v7  ;;  %v1053_v52 = vrot.slane %v15289_v37, 1  ;;  %v15312_v8 = vadd.f32 %v7079_v41, %v4291_v6  ;;  %v3987_v24 = vunpack.c.l.b16 %v3949_v15 }
 0x416   : > { %v8732_v40 = vunpack.c.l.b16 %v8667_v36  ;;  %v8733_v30 = vunpack.c.l.b16 %v8668_v61  ;;  %10108 = vpow2.f32 %v9874_v57  ;;  %v1054_v62 = vrot.slane %v15298_v23, 1 }
 0x417   : > { %v1056_v35 = vrot.slane %v15303_v9, 1  ;;  %v1058_v12 = vrot.slane %v15308_v20, 1  ;;  %v9253_v27 = vand.u32 2147483647, %v15300_v7  ;;  %v9255_v60 = vand.u32 2147483648, %v15300_v7 }
 0x418   : > { %v8751_v59 = vpack.c.b16 %v8733_v30, %v8732_v40  ;;  %v4004_v11 = vpack.c.b16 %v3987_v24, %v3986_v5  ;;  %v1586_v29 = vrot.slane %v15289_v37, 2  ;;  %v1055_v6 = vsel %vm870_vm6, %v1053_v52, %v1054_v62 }
 0x419   : > { %v1057_v36 = vsel %vm870_vm6, %v1054_v62, %v1056_v35  ;;  %v1059_v61 = vsel %vm870_vm6, %v1056_v35, %v1058_v12  ;;  %v1587_v15 = vrot.slane %v15298_v23, 2  ;;  %v1229_v57 = vmax.f32 %v15289_v37, %v1055_v6 }
 0x41a   : > { %9860 = vmatmul.msk.bf16.gmra.mxu3 %vm4010_vm12, %v8751_v59  ;;  %9733 = vmatmul.msk.bf16.gmra.mxu0 %vm4010_vm12, %v4004_v11  ;;  %v1230_v40 = vmax.f32 %v15298_v23, %v1057_v36  ;;  %v1231_v5 = vmax.f32 %v15303_v9, %v1059_v61  ;;  %v1589_v30 = vrot.slane %v15303_v9, 2  ;;  %v1591_v52 = vrot.slane %v15308_v20, 2 }
 0x41b   : > { %v10107_v41 = vpop.eup %10106  ;;  %v1588_v24 = vsel %vm1403_vm9, %v1586_v29, %v1587_v15  ;;  %v2119_v59 = vrot.slane %v15289_v37, 3  ;;  %v2120_v62 = vrot.slane %v15298_v23, 3  ;;  %vm9249_vm1 = vweird.f32 %v15300_v7 }
 0x41c   : > { %v10109_v35 = vpop.eup %10108  ;;  %v9245_v12 = vmul.f32 %v10107_v41, %v15300_v7  ;;  %v1590_v11 = vsel %vm1403_vm9, %v1587_v15, %v1589_v30  ;;  %v1762_v6 = vmax.f32 %v1229_v57, %v1588_v24  ;;  %v1592_v61 = vsel %vm1403_vm9, %v1589_v30, %v1591_v52 }
 0x41d   : > { %v15337_v36 = vadd.f32 1.0, %v10109_v35  ;;  %v1763_v4 = vmax.f32 %v1230_v40, %v1590_v11  ;;  %v2121_v29 = vsel %vm1936_vm10, %v2119_v59, %v2120_v62  ;;  %v1764_v31 = vmax.f32 %v1231_v5, %v1592_v61 }
 0x41e   : > { %v9246_v33 = vsub.f32 1.0, %v9245_v12  ;;  %v2122_v14 = vrot.slane %v15303_v9, 3  ;;  %v2124_v55 = vrot.slane %v15308_v20, 3  ;;  %vm9250_vm0 = vweird.f32 %v10107_v41 }
 0x41f   : > { %vm15343_vm2 = vcmp.eq.f32.partialorder %v9253_v27, 8.507059e+37  ;;  %v9256_v15 = vor.u32 1.1754944e-38, %v9255_v60  ;;  %10110 = vrcp.f32 %v15337_v36  ;;  %v9268_v30 = vand.u32 2147483647, %v15337_v36  ;;  %vm9251_vm4 = vmor %vm9249_vm1, %vm9250_vm0 }
 0x420   : > { %v9247_v57 = vmul.f32 %v10107_v41, %v9246_v33  ;;  %v2123_v40 = vsel %vm1936_vm10, %v2120_v62, %v2122_v14  ;;  %v2125_v24 = vsel %vm1936_vm10, %v2122_v14, %v2124_v55  ;;  %v9270_v5 = vand.u32 2147483648, %v15337_v36 }
 0x421   : > { %v2295_v52 = vmax.f32 %v1762_v6, %v2121_v29  ;;  %v2296_v59 = vmax.f32 %v1763_v4, %v2123_v40  ;;  %v2297_v35 = vmax.f32 %v1764_v31, %v2125_v24  ;;  %v2652_v27 = vrot.slane %v15289_v37, 4  ;;  %v4104_v6 = vpop.f32.mrf.mxu0 }
 0x422   : > { %v9248_v12 = vadd.f32 %v10107_v41, %v9247_v57  ;;  %v2653_v11 = vrot.slane %v15298_v23, 4  ;;  %v2655_v60 = vrot.slane %v15303_v9, 4  ;;  %v2657_v33 = vrot.slane %v15308_v20, 4 }
 0x423   : > { %v3059_v14 = vmax.f32 %v14441_v45, %v14689_v53  ;;  %v3060_v55 = vmax.f32 %v14443_v46, %v14691_v56  ;;  %v3061_v31 = vmax.f32 %v14445_v34, %v14699_v42  ;;  %vm9264_vm7 = vweird.f32 %v15337_v36 }
 0x424   : > { %v9252_v37 = vsel %vm9251_vm4, %v10107_v41, %v9248_v12  ;;  %v2654_v4 = vsel %vm2469_vm11, %v2652_v27, %v2653_v11  ;;  %v2656_v23 = vsel %vm2469_vm11, %v2653_v11, %v2655_v60  ;;  %v6161_v7 = vmax.f32 %v14527_v3, %v14782_v28 }
 0x425   : > { %v10111_v9 = vpop.eup %10110  ;;  %v9257_v45 = vsel %vm15343_vm2, %v9256_v15, %v9252_v37  ;;  %v9271_v20 = vor.u32 1.1754944e-38, %v9270_v5  ;;  %v2658_v46 = vsel %vm2469_vm11, %v2655_v60, %v2657_v33  ;;  %v15373_v62 = vmax.f32 %v2295_v52, %v2654_v4 }
 0x426   : > { %v9584_v34 = vmul.f32 %v9257_v45, %v15244_v25  ;;  %v9260_v41 = vmul.f32 %v10111_v9, %v15337_v36  ;;  %vm15377_vm8 = vcmp.eq.f32.partialorder %v9268_v30, 8.507059e+37  ;;  %v15381_v61 = vmax.f32 %v2296_v59, %v2656_v23 }
 0x427   : > { %v15383_v3 = vmax.f32 %v2297_v35, %v2658_v46  ;;  %v3278_v26 = vmax.f32 %v3059_v14, %v14933_v19  ;;  %v3279_v29 = vmax.f32 %v3060_v55, %v14935_v39  ;;  %v3280_v15 = vmax.f32 %v3061_v31, %v14944_v22 }
 0x428   : > { %v6162_v57 = vmax.f32 %v14535_v54, %v16662_v13  ;;  %9617 = vst.msk [vmem:[%s14185_s4 + $0x50] sm:$0xff] %vm9606_vm3, %v9584_v34  ;;  %v9261_v25 = vsub.f32 1.0, %v9260_v41  ;;  %v6163_v30 = vmax.f32 %v14529_v50, %v14775_v0  ;;  %v15395_v40 = vmax.f32 %v6161_v7, %v15000_v63 }
 0x429   : > { %v8343_v24 = vmax.f32 %v14594_v51, %v14840_v18  ;;  %vm9265_vm13 = vweird.f32 %v10111_v9  ;;  %v3497_v5 = vmax.f32 %v3278_v26, %v15152_v1  ;;  %v3498_v52 = vmax.f32 %v3279_v29, %v15158_v10 }
 0x42a   : > { %v3499_v59 = vmax.f32 %v3280_v15, %v15168_v47  ;;  %v9262_v54 = vmul.f32 %v10111_v9, %v9261_v25  ;;  %v15403_v35 = vmax.f32 %v6162_v57, %v16686_v17  ;;  %v6346_v12 = vmax.f32 %v6163_v30, %v16685_v2  ;;  %vm9266_vm14 = vmor %vm9264_vm7, %vm9265_vm13 }
 0x42b   : > { %v8344_v50 = vmax.f32 %v16663_v21, %v16687_v16  ;;  %v3716_v27 = vmax.f32 %v3497_v5, %v15373_v62  ;;  %v3717_v51 = vmax.f32 %v3498_v52, %v15381_v61  ;;  %v6527_v60 = vmax.f32 %v15395_v40, %v15209_v48 }
 0x42c   : > { %v3718_v11 = vmax.f32 %v3499_v59, %v15383_v3  ;;  %v9263_v33 = vadd.f32 %v10111_v9, %v9262_v54  ;;  %v6529_v14 = vmax.f32 %v6346_v12, %v15211_v44  ;;  %v15415_v55 = vmax.f32 %v8343_v24, %v15063_v38 }
 0x42d   : > { %v15418_v31 = vmax.f32 %v8344_v50, %v16697_v58  ;;  %v4594_v21 = vrot.slane %v3716_v27, 1  ;;  %v4595_v37 = vrot.slane %v3717_v51, 1  ;;  %v5002_v23 = vrot.slane %v3716_v27, 2 }
 0x42e   : > { %v4597_v4 = vrot.slane %v3718_v11, 1  ;;  %v9267_v7 = vsel %vm9266_vm14, %v10111_v9, %v9263_v33  ;;  %v5003_v45 = vrot.slane %v3717_v51, 2  ;;  %v5005_v46 = vrot.slane %v3718_v11, 2 }
 0x42f   : > { %v5410_v34 = vrot.slane %v3716_v27, 3  ;;  %v9272_v41 = vsel %vm15377_vm8, %v9271_v20, %v9267_v7  ;;  %v4596_v26 = vsel %vm870_vm6, %v4594_v21, %v4595_v37  ;;  %v5411_v24 = vrot.slane %v3717_v51, 3  ;;  %v4292_v20 = vpop.f32.mrf.mxu1 }
 0x430   : > { %v4598_v29 = vsel %vm870_vm6, %v4595_v37, %v4597_v4  ;;  %v4744_v15 = vmax.f32 %v3718_v11, %v4597_v4  ;;  %v9585_v36 = vmul.f32 %v9272_v41, %v15294_v49  ;;  %v4742_v57 = vmax.f32 %v3716_v27, %v4596_v26  ;;  %v8848_v37 = vpop.f32.mrf.mxu3 }
 0x431   : > { %v4743_v25 = vmax.f32 %v3717_v51, %v4598_v29  ;;  %v5004_v30 = vsel %vm1403_vm9, %v5002_v23, %v5003_v45  ;;  %v5006_v9 = vsel %vm1403_vm9, %v5003_v45, %v5005_v46  ;;  %v5413_v5 = vrot.slane %v3718_v11, 3 }
 0x432   : > { %v5152_v40 = vmax.f32 %v4744_v15, %v5005_v46  ;;  %9618 = vst.msk [vmem:[%s14185_s4 + $0x58] sm:$0xff] %vm9606_vm3, %v9585_v36  ;;  %v5150_v52 = vmax.f32 %v4742_v57, %v5004_v30  ;;  %v5818_v54 = vrot.slane %v3716_v27, 4  ;;  %v5819_v12 = vrot.slane %v3717_v51, 4  ;;  %v9914_v51 = vld [vmem:[%s10247_s19 + $0x78] sm:$0xff]  ;;  %v16706_v15 = vld [vmem:[#allocation32_spill] sm:$0xff]  ;;  %v16708_v30 = vld [vmem:[#allocation45_spill] sm:$0xff]  ;;  %v7081_v27 = vpop.f32.mrf.mxu2 }
 0x433   : > { %v5151_v59 = vmax.f32 %v4743_v25, %v5006_v9  ;;  %v5412_v49 = vsel %vm1936_vm10, %v5410_v34, %v5411_v24  ;;  %v5414_v50 = vsel %vm1936_vm10, %v5411_v24, %v5413_v5  ;;  %v5821_v21 = vrot.slane %v3718_v11, 4  ;;  %v16707_v57 = vld [vmem:[#allocation22_spill] sm:$0xff]  ;;  %9814 = vmatmul.msk.bf16.gmra.mxu1 %vm4010_vm12, %v9914_v51 }
 0x434   : > { %v5560_v33 = vmax.f32 %v5152_v40, %v5413_v5  ;;  %v5558_v4 = vmax.f32 %v5150_v52, %v5412_v49  ;;  %v5820_v7 = vsel %vm2469_vm11, %v5818_v54, %v5819_v12  ;;  %v6528_v45 = vmax.f32 %v15403_v35, %v15217_v43  ;;  %v16709_v40 = vld [vmem:[#allocation44_spill] sm:$0xff] }
 0x435   : > { %v5559_v23 = vmax.f32 %v5151_v59, %v5414_v50  ;;  %v4293_v46 = vadd.f32 %v4292_v20, %v4104_v6  ;;  %v5822_v41 = vsel %vm2469_vm11, %v5819_v12, %v5821_v21  ;;  %v8910_v29 = vadd.f32 %v8848_v37, %v15312_v8  ;;  %v16710_v6 = vld [vmem:[#allocation21_spill] sm:$0xff] }
 0x436   : > { %v15438_v26 = vmax.f32 %v5560_v33, %v5821_v21  ;;  %v15443_v34 = vmax.f32 %v5558_v4, %v5820_v7  ;;  %v6767_v36 = vpack.c.bf16 %v16706_v15, %v16706_v15  ;;  %v8540_v25 = vmax.f32 %v15418_v31, %v16707_v57 }
 0x437   : > { %v15445_v11 = vmax.f32 %v5559_v23, %v5822_v41  ;;  %v6768_v9 = vpack.c.bf16 %v16708_v30, %v16708_v30  ;;  %v6769_v24 = vpack.c.bf16 %v16709_v40, %v16709_v40  ;;  %v15461_v20 = vadd.f32 %v16710_v6, %v8910_v29 }
 0x438   : > { %v6712_v35 = vmax.f32 %v6529_v14, %v15438_v26  ;;  %v6710_v5 = vmax.f32 %v6527_v60, %v15443_v34  ;;  %v9830_v52 = vrot.slane %v6767_v36, 9  ;;  %v16711_v36 = vld [vmem:[#allocation64_spill] sm:$0xff] }
 0x439   : > { %v6711_v8 = vmax.f32 %v6528_v45, %v15445_v11  ;;  %v6931_v57 = vrot.slane %v6768_v9, 5 }
 0x43a   : > { %v7374_v14 = vrot.slane %v6712_v35, 1  ;;  %v7634_v59 = vrot.slane %v6712_v35, 2  ;;  %v7894_v54 = vrot.slane %v6712_v35, 3  ;;  %v8154_v31 = vrot.slane %v6712_v35, 4 }
 0x43b   : > { %v7371_v12 = vrot.slane %v6710_v5, 1  ;;  %v7372_v49 = vrot.slane %v6711_v8, 1  ;;  %v7631_v50 = vrot.slane %v6710_v5, 2  ;;  %v7632_v33 = vrot.slane %v6711_v8, 2 }
 0x43c   : > { %v7891_v21 = vrot.slane %v6710_v5, 3  ;;  %v7892_v37 = vrot.slane %v6711_v8, 3  ;;  %v8151_v4 = vrot.slane %v6710_v5, 4  ;;  %v8152_v23 = vrot.slane %v6711_v8, 4 }
 0x43d   : > { %v7373_v60 = vsel %vm870_vm6, %v7371_v12, %v7372_v49  ;;  %v7375_v7 = vsel %vm870_vm6, %v7372_v49, %v7374_v14  ;;  %v7633_v45 = vsel %vm1403_vm9, %v7631_v50, %v7632_v33  ;;  %v7635_v41 = vsel %vm1403_vm9, %v7632_v33, %v7634_v59 }
 0x43e   : > { %v7457_v51 = vmax.f32 %v6710_v5, %v7373_v60  ;;  %v7458_v29 = vmax.f32 %v6711_v8, %v7375_v7  ;;  %v7893_v15 = vsel %vm1936_vm10, %v7891_v21, %v7892_v37  ;;  %v3779_v35 = vpack.c.bf16 %v16711_v36, %v16711_v36  ;;  %v16713_v21 = vld [vmem:[#allocation54_spill] sm:$0xff] }
 0x43f   : > { %v7895_v30 = vsel %vm1936_vm10, %v7892_v37, %v7894_v54  ;;  %v8153_v40 = vsel %vm2469_vm11, %v8151_v4, %v8152_v23  ;;  %v9875_v12 = vmul.f32 -1.442695, %v15461_v20  ;;  %v8155_v50 = vsel %vm2469_vm11, %v8152_v23, %v8154_v31  ;;  %v8850_v54 = vpop.f32.mrf.mxu3 }
 0x440   : > { %v7717_v14 = vmax.f32 %v7457_v51, %v7633_v45  ;;  %v7718_v49 = vmax.f32 %v7458_v29, %v7635_v41  ;;  %v6934_v59 = vrot.slane %v6769_v24, 5  ;;  %v6932_v8 = vsel %vm10295_vm5, %v9830_v52, %v6931_v57  ;;  %v16714_v45 = vld [vmem:[#allocation23_spill] sm:$0xff]  ;;  %v10053_v29 = vld [vmem:[#allocation2 + $0x1b0] sm:$0xff]  }
 0x441   : > { %10112 = vpow2.f32 %v9875_v12  ;;  %v6933_v33 = vrot.slane %v6931_v57, 4  ;;  %v3780_v60 = vpack.c.bf16 %v16713_v21, %v16713_v21  ;;  %v7142_v7 = vadd.f32 %v7081_v27, %v4293_v46 }
 0x442   : > { %v7977_v37 = vmax.f32 %v7717_v14, %v7893_v15  ;;  %v7978_v4 = vmax.f32 %v7718_v49, %v7895_v30  ;;  %v6967_v36 = vunpack.c.l.b16 %v6932_v8  ;;  %v3781_v31 = vpack.c.bf16 %v16714_v45, %v16714_v45 }
 0x443   : > { %v6935_v9 = vsel %vm10295_vm5, %v6933_v33, %v6934_v59  ;;  %v9718_v24 = vrot.slane %v3779_v35, 10  ;;  %v3952_v23 = vrot.slane %v3780_v60, 6  ;;  %v8911_v51 = vadd.f32 %v8850_v54, %v7142_v7  ;;  %v644_v59 = vld [vmem:[#allocation2 + $0x1b8] sm:$0xf] }
 0x444   : > { %v15482_v41 = vmax.f32 %v7977_v37, %v8153_v40  ;;  %v15484_v52 = vmax.f32 %v7978_v4, %v8155_v50  ;;  %v6968_v57 = vunpack.c.l.b16 %v6935_v9  ;;  %v3955_v27 = vrot.slane %v3781_v31, 6  ;;  %v645_v50 = vld [vmem:[#allocation2 + $0x1bc] sm:$0x3]  ;;  %v4107_v31 = vpop.f32.mrf.mxu0 }
 0x445   : > { %v3953_v15 = vsel %vm11713_vm15, %v9718_v24, %v3952_v23  ;;  %v3954_v46 = vrot.slane %v3952_v23, 4  ;;  %v16718_v30 = vmax.f32 %v15415_v55, %v15285_v32  ;;  %v15496_v33 = vadd.f32 %v16710_v6, %v8911_v51  ;;  %v4295_v24 = vpop.f32.mrf.mxu1 }
 0x446   : > { %16715 = vst [vmem:[#allocation29_spill] sm:$0xff] %v15482_v41  ;;  %v8638_v35 = vmax.f32 %v8540_v25, %v15484_v52  ;;  %v6984_v49 = vpack.c.b16 %v6968_v57, %v6967_v36  ;;  %v3988_v40 = vunpack.c.l.b16 %v3953_v15  ;;  %v15498_v21 = vunpack.c.l.bf16 %v10053_v29 }
 0x447   : > { %16716 = vst [vmem:[#allocation24_spill] sm:$0xff] %v15484_v52  ;;  %v8637_v14 = vmax.f32 %v16718_v30, %v15482_v41  ;;  %v10113_v5 = vpop.eup %10112  ;;  %v3956_v8 = vsel %vm11713_vm15, %v3954_v46, %v3955_v27  ;;  %v15500_v60 = vunpack.c.h.bf16 %v10053_v29  ;;  %v9876_v4 = vmul.f32 -1.442695, %v15496_v33 }
 0x448   : > { %v8670_v55 = vpack.c.bf16 %v8638_v35, %v8638_v35  ;;  %v15502_v37 = vadd.f32 1.0, %v10113_v5  ;;  %9846 = vmatmul.msk.bf16.gmra.mxu2 %vm4010_vm12, %v6984_v49  ;;  %v3989_v25 = vunpack.c.l.b16 %v3956_v8  ;;  %v15506_v7 = vunpack.c.l.bf16 %v644_v59 }
 0x449   : > { %v8669_v54 = vpack.c.bf16 %v8637_v14, %v8637_v14  ;;  %v15508_v36 = vunpack.c.l.bf16 %v645_v50  ;;  %v1060_v23 = vrot.slane %v15498_v21, 1  ;;  %v4296_v57 = vadd.f32 %v4295_v24, %v4107_v31 }
 0x44a   : > { %v8735_v45 = vunpack.c.l.b16 %v8670_v55  ;;  %10114 = vrcp.f32 %v15502_v37  ;;  %v4005_v51 = vpack.c.b16 %v3989_v25, %v3988_v40  ;;  %v1061_v12 = vrot.slane %v15500_v60, 1 }
 0x44b   : > { %v8734_v9 = vunpack.c.l.b16 %v8669_v54  ;;  %10116 = vpow2.f32 %v9876_v4  ;;  %v1063_v15 = vrot.slane %v15506_v7, 1  ;;  %v1065_v46 = vrot.slane %v15508_v36, 1  ;;  %v7084_v4 = vpop.f32.mrf.mxu2 }
 0x44c   : > { %v9283_v27 = vand.u32 2147483647, %v15502_v37  ;;  %v9285_v30 = vand.u32 2147483648, %v15502_v37  ;;  %9734 = vmatmul.msk.bf16.gmra.mxu0 %vm4010_vm12, %v4005_v51  ;;  %v1593_v14 = vrot.slane %v15498_v21, 2  ;;  %v1594_v35 = vrot.slane %v15500_v60, 2 }
 0x44d   : > { %v8752_v29 = vpack.c.b16 %v8735_v45, %v8734_v9  ;;  %v1062_v49 = vsel %vm870_vm6, %v1060_v23, %v1061_v12  ;;  %v1064_v40 = vsel %vm870_vm6, %v1061_v12, %v1063_v15  ;;  %v1066_v59 = vsel %vm870_vm6, %v1063_v15, %v1065_v46 }
 0x44e   : > { %v1596_v50 = vrot.slane %v15506_v7, 2  ;;  %v1232_v5 = vmax.f32 %v15498_v21, %v1062_v49  ;;  %v1233_v8 = vmax.f32 %v15500_v60, %v1064_v40  ;;  %v1234_v54 = vmax.f32 %v15506_v7, %v1066_v59 }
 0x44f   : > { %9861 = vmatmul.msk.bf16.gmra.mxu3 %vm4010_vm12, %v8752_v29  ;;  %v1595_v55 = vsel %vm1403_vm9, %v1593_v14, %v1594_v35  ;;  %v1598_v45 = vrot.slane %v15508_v36, 2  ;;  %v2126_v31 = vrot.slane %v15498_v21, 3  ;;  %v2127_v24 = vrot.slane %v15500_v60, 3 }
 0x450   : > { %v10115_v25 = vpop.eup %10114  ;;  %v1597_v9 = vsel %vm1403_vm9, %v1594_v35, %v1596_v50  ;;  %vm9279_vm5 = vweird.f32 %v15502_v37  ;;  %v15535_v29 = vadd.f32 %v7084_v4, %v4296_v57  ;;  %v1765_v12 = vmax.f32 %v1232_v5, %v1595_v55 }
 0x451   : > { %v10117_v23 = vpop.eup %10116  ;;  %v9275_v51 = vmul.f32 %v10115_v25, %v15502_v37  ;;  %v1599_v46 = vsel %vm1403_vm9, %v1596_v50, %v1598_v45  ;;  %v1766_v14 = vmax.f32 %v1233_v8, %v1597_v9  ;;  %v2129_v35 = vrot.slane %v15506_v7, 3 }
 0x452   : > { %v15537_v15 = vadd.f32 1.0, %v10117_v23  ;;  %v1767_v40 = vmax.f32 %v1234_v54, %v1599_v46  ;;  %v2128_v59 = vsel %vm1936_vm10, %v2126_v31, %v2127_v24  ;;  %v2131_v52 = vrot.slane %v15508_v36, 3 }
 0x453   : > { %v9276_v49 = vsub.f32 1.0, %v9275_v51  ;;  %vm9280_vm15 = vweird.f32 %v10115_v25  ;;  %vm15543_vm1 = vcmp.eq.f32.partialorder %v9283_v27, 8.507059e+37  ;;  %v9286_v57 = vor.u32 1.1754944e-38, %v9285_v30 }
 0x454   : > { %10118 = vrcp.f32 %v15537_v15  ;;  %v2130_v50 = vsel %vm1936_vm10, %v2127_v24, %v2129_v35  ;;  %v2132_v8 = vsel %vm1936_vm10, %v2129_v35, %v2131_v52  ;;  %v2659_v55 = vrot.slane %v15498_v21, 4  ;;  %vm9281_vm0 = vmor %vm9279_vm5, %vm9280_vm15 }
 0x455   : > { %v9277_v5 = vmul.f32 %v10115_v25, %v9276_v49  ;;  %v9298_v54 = vand.u32 2147483647, %v15537_v15  ;;  %v2298_v4 = vmax.f32 %v1765_v12, %v2128_v59  ;;  %v2299_v9 = vmax.f32 %v1766_v14, %v2130_v50 }
 0x456   : > { %v2300_v45 = vmax.f32 %v1767_v40, %v2132_v8  ;;  %v2660_v27 = vrot.slane %v15500_v60, 4  ;;  %v2662_v23 = vrot.slane %v15506_v7, 4  ;;  %v2664_v30 = vrot.slane %v15508_v36, 4 }
 0x457   : > { %v9278_v31 = vadd.f32 %v10115_v25, %v9277_v5  ;;  %v9300_v52 = vand.u32 2147483648, %v15537_v15  ;;  %v3062_v21 = vmax.f32 %v14689_v53, %v14933_v19  ;;  %v3063_v24 = vmax.f32 %v14691_v56, %v14935_v39 }
 0x458   : > { %v3064_v51 = vmax.f32 %v14699_v42, %v14944_v22  ;;  %v2661_v7 = vsel %vm2469_vm11, %v2659_v55, %v2660_v27  ;;  %v2663_v36 = vsel %vm2469_vm11, %v2660_v27, %v2662_v23  ;;  %v2665_v37 = vsel %vm2469_vm11, %v2662_v23, %v2664_v30 }
 0x459   : > { %v9282_v60 = vsel %vm9281_vm0, %v10115_v25, %v9278_v31  ;;  %v2831_v14 = vmax.f32 %v2298_v4, %v2661_v7  ;;  %v2832_v53 = vmax.f32 %v2299_v9, %v2663_v36  ;;  %v6164_v56 = vmax.f32 %v14782_v28, %v15000_v63 }
 0x45a   : > { %v10119_v12 = vpop.eup %10118  ;;  %v9287_v46 = vsel %vm15543_vm1, %v9286_v57, %v9282_v60  ;;  %v2833_v39 = vmax.f32 %v2300_v45, %v2665_v37  ;;  %v3281_v22 = vmax.f32 %v3062_v21, %v15152_v1  ;;  %v3282_v25 = vmax.f32 %v3063_v24, %v15158_v10  ;;  %v15599_v45 = vpop.f32.mrf.mxu2 }
 0x45b   : > { %v9586_v19 = vmul.f32 %v9287_v46, %v15461_v20  ;;  %v9290_v42 = vmul.f32 %v10119_v12, %v15537_v15  ;;  %v3283_v35 = vmax.f32 %v3064_v51, %v15168_v47  ;;  %v6165_v41 = vmax.f32 %v16662_v13, %v16686_v17  ;;  %v4109_v20 = vpop.f32.mrf.mxu0 }
 0x45c   : > { %v6166_v49 = vmax.f32 %v14775_v0, %v16685_v2  ;;  %vm9294_vm2 = vweird.f32 %v15537_v15  ;;  %vm15584_vm4 = vcmp.eq.f32.partialorder %v9298_v54, 8.507059e+37  ;;  %v3500_v1 = vmax.f32 %v3281_v22, %v15373_v62  ;;  %v4297_v0 = vpop.f32.mrf.mxu1 }
 0x45d   : > { %9619 = vst.msk [vmem:[%s14185_s4 + $0x60] sm:$0xff] %vm9606_vm3, %v9586_v19  ;;  %v9291_v28 = vsub.f32 1.0, %v9290_v42  ;;  %vm9295_vm7 = vweird.f32 %v10119_v12  ;;  %v9301_v10 = vor.u32 1.1754944e-38, %v9300_v52  ;;  %v3501_v47 = vmax.f32 %v3282_v25, %v15381_v61 }
 0x45e   : > { %v3502_v13 = vmax.f32 %v3283_v35, %v15383_v3  ;;  %v3719_v2 = vmax.f32 %v3500_v1, %v2831_v14  ;;  %v6347_v40 = vmax.f32 %v6164_v56, %v15209_v48  ;;  %v8345_v59 = vmax.f32 %v14840_v18, %v15063_v38  ;;  %vm9296_vm8 = vmor %vm9294_vm2, %vm9295_vm7 }
 0x45f   : > { %v9292_v17 = vmul.f32 %v10119_v12, %v9291_v28  ;;  %v3720_v57 = vmax.f32 %v3501_v47, %v2832_v53  ;;  %v6348_v50 = vmax.f32 %v6165_v41, %v15217_v43  ;;  %v6349_v62 = vmax.f32 %v6166_v49, %v15211_v44  ;;  %v8853_v44 = vpop.f32.mrf.mxu3 }
 0x460   : > { %v3721_v5 = vmax.f32 %v3502_v13, %v2833_v39  ;;  %v4599_v55 = vrot.slane %v3719_v2, 1  ;;  %v5007_v61 = vrot.slane %v3719_v2, 2  ;;  %v5415_v54 = vrot.slane %v3719_v2, 3 }
 0x461   : > { %v9293_v8 = vadd.f32 %v10119_v12, %v9292_v17  ;;  %v4600_v3 = vrot.slane %v3720_v57, 1  ;;  %v5008_v48 = vrot.slane %v3720_v57, 2  ;;  %v5416_v38 = vrot.slane %v3720_v57, 3 }
 0x462   : > { %v4602_v4 = vrot.slane %v3721_v5, 1  ;;  %v5010_v9 = vrot.slane %v3721_v5, 2  ;;  %v5418_v43 = vrot.slane %v3721_v5, 3  ;;  %v5823_v31 = vrot.slane %v3719_v2, 4  ;;  %v7089_v47 = vpop.f32.mrf.mxu2 }
 0x463   : > { %v9297_v18 = vsel %vm9296_vm8, %v10119_v12, %v9293_v8  ;;  %v4601_v23 = vsel %vm870_vm6, %v4599_v55, %v4600_v3  ;;  %v5009_v51 = vsel %vm1403_vm9, %v5007_v61, %v5008_v48  ;;  %v5417_v36 = vsel %vm1936_vm10, %v5415_v54, %v5416_v38  ;;  %v4112_v41 = vpop.f32.mrf.mxu0 }
 0x464   : > { %v9302_v27 = vsel %vm15584_vm4, %v9301_v10, %v9297_v18  ;;  %v4603_v15 = vsel %vm870_vm6, %v4600_v3, %v4602_v4  ;;  %v4747_v30 = vmax.f32 %v3721_v5, %v4602_v4  ;;  %v4745_v21 = vmax.f32 %v3719_v2, %v4601_v23  ;;  %v4300_v49 = vpop.f32.mrf.mxu1 }
 0x465   : > { %v9587_v52 = vmul.f32 %v9302_v27, %v15496_v33  ;;  %v4746_v24 = vmax.f32 %v3720_v57, %v4603_v15  ;;  %v5011_v60 = vsel %vm1403_vm9, %v5008_v48, %v5010_v9  ;;  %v5419_v37 = vsel %vm1936_vm10, %v5416_v38, %v5418_v43 }
 0x466   : > { %v5155_v7 = vmax.f32 %v4747_v30, %v5010_v9  ;;  %v5153_v12 = vmax.f32 %v4745_v21, %v5009_v51  ;;  %v5824_v14 = vrot.slane %v3720_v57, 4  ;;  %v5826_v53 = vrot.slane %v3721_v5, 4  ;;  %v16724_v51 = vld [vmem:[#allocation29_spill] sm:$0xff] }
 0x467   : > { %9620 = vst.msk [vmem:[%s14185_s4 + $0x68] sm:$0xff] %vm9606_vm3, %v9587_v52  ;;  %v5154_v46 = vmax.f32 %v4746_v24, %v5011_v60  ;;  %v6530_v33 = vmax.f32 %v6347_v40, %v15443_v34  ;;  %v6531_v19 = vmax.f32 %v6348_v50, %v15445_v11  ;;  %v6532_v42 = vmax.f32 %v6349_v62, %v15438_v26  ;;  %v8855_v57 = vpop.f32.mrf.mxu3 }
 0x468   : > { %v5563_v56 = vmax.f32 %v5155_v7, %v5418_v43  ;;  %v5561_v39 = vmax.f32 %v5153_v12, %v5417_v36  ;;  %v5825_v25 = vsel %vm2469_vm11, %v5823_v31, %v5824_v14  ;;  %v5827_v35 = vsel %vm2469_vm11, %v5824_v14, %v5826_v53  ;;  %v16723_v43 = vld [vmem:[#allocation22_spill] sm:$0xff] }
 0x469   : > { %v5562_v22 = vmax.f32 %v5154_v46, %v5419_v37  ;;  %v8912_v63 = vadd.f32 %v8853_v44, %v15535_v29  ;;  %v4298_v13 = vadd.f32 %v4297_v0, %v4109_v20  ;;  %v8346_v11 = vmax.f32 %v16687_v16, %v16697_v58 }
 0x46a   : > { %v5971_v28 = vmax.f32 %v5563_v56, %v5826_v53  ;;  %v5969_v1 = vmax.f32 %v5561_v39, %v5825_v25  ;;  %v8443_v2 = vmax.f32 %v8345_v59, %v15285_v32  ;;  %v4301_v30 = vadd.f32 %v4300_v49, %v4112_v41  ;;  %v7091_v52 = vpop.f32.mrf.mxu2  ;;  %v16725_v53 = vld [vmem:[#allocation24_spill] sm:$0xff] }
 0x46b   : > { %v5970_v10 = vmax.f32 %v5562_v22, %v5827_v35  ;;  %v15622_v40 = vadd.f32 %v16710_v6, %v8912_v63  ;;  %v4114_v48 = vpop.f32.mrf.mxu0  ;;  %v8444_v31 = vmax.f32 %v8346_v11, %v16723_v43  ;;  %v7144_v44 = vadd.f32 %v15599_v45, %v4298_v13 }
 0x46c   : > { %v6715_v34 = vmax.f32 %v6532_v42, %v5971_v28  ;;  %v6713_v26 = vmax.f32 %v6530_v33, %v5969_v1  ;;  %v4302_v9 = vpop.f32.mrf.mxu1  ;;  %v8541_v60 = vmax.f32 %v8443_v2, %v16724_v51  ;;  %v7145_v12 = vadd.f32 %v7089_v47, %v4301_v30 }
 0x46d   : > { %v6714_v17 = vmax.f32 %v6531_v19, %v5970_v10  ;;  %v9877_v15 = vmul.f32 -1.442695, %v15622_v40  ;;  %v8913_v7 = vadd.f32 %v8855_v57, %v7144_v44  ;;  %v8542_v56 = vmax.f32 %v8444_v31, %v16725_v53 }
 0x46e   : > { %v7379_v5 = vrot.slane %v6715_v34, 1  ;;  %v7639_v50 = vrot.slane %v6715_v34, 2  ;;  %v7899_v62 = vrot.slane %v6715_v34, 3  ;;  %v8159_v29 = vrot.slane %v6715_v34, 4 }
 0x46f   : > { %v7376_v8 = vrot.slane %v6713_v26, 1  ;;  %v7377_v55 = vrot.slane %v6714_v17, 1  ;;  %v7636_v61 = vrot.slane %v6713_v26, 2  ;;  %v7637_v20 = vrot.slane %v6714_v17, 2  ;;  %v8858_v45 = vpop.f32.mrf.mxu3 }
 0x470   : > { %v7896_v0 = vrot.slane %v6713_v26, 3  ;;  %v7897_v54 = vrot.slane %v6714_v17, 3  ;;  %v8156_v3 = vrot.slane %v6713_v26, 4  ;;  %v8157_v16 = vrot.slane %v6714_v17, 4 }
 0x471   : > { %v7378_v58 = vsel %vm870_vm6, %v7376_v8, %v7377_v55  ;;  %v7380_v32 = vsel %vm870_vm6, %v7377_v55, %v7379_v5  ;;  %v7638_v59 = vsel %vm1403_vm9, %v7636_v61, %v7637_v20  ;;  %v7640_v4 = vsel %vm1403_vm9, %v7637_v20, %v7639_v50  ;;  %v15650_v8 = vld [vmem:[%s15818_s2] ss:$0 sm:$0xff] }
 0x472   : > { %v7459_v18 = vmax.f32 %v6713_v26, %v7378_v58  ;;  %v7460_v38 = vmax.f32 %v6714_v17, %v7380_v32  ;;  %v7898_v27 = vsel %vm1936_vm10, %v7896_v0, %v7897_v54  ;;  %v7900_v23 = vsel %vm1936_vm10, %v7897_v54, %v7899_v62  ;;  %v7094_v47 = vpop.f32.mrf.mxu2 }
 0x473   : > { %v8158_v36 = vsel %vm2469_vm11, %v8156_v3, %v8157_v16  ;;  %v8160_v37 = vsel %vm2469_vm11, %v8157_v16, %v8159_v29  ;;  %10120 = vpow2.f32 %v9877_v15  ;;  %v15638_v33 = vadd.f32 %v16710_v6, %v8913_v7  ;;  %v4117_v41 = vpop.f32.mrf.mxu0 }
 0x474   : > { %v7719_v21 = vmax.f32 %v7459_v18, %v7638_v59  ;;  %v7720_v24 = vmax.f32 %v7460_v38, %v7640_v4  ;;  %v8914_v19 = vadd.f32 %v8858_v45, %v7145_v12  ;;  %v4303_v25 = vadd.f32 %v4302_v9, %v4114_v48  ;;  %v4305_v49 = vpop.f32.mrf.mxu1 }
 0x475   : > { %v9878_v22 = vmul.f32 -1.442695, %v15638_v33 }
 0x476   : > { %v7979_v46 = vmax.f32 %v7719_v21, %v7898_v27  ;;  %v7980_v14 = vmax.f32 %v7720_v24, %v7900_v23  ;;  %v15642_v35 = vadd.f32 %v16710_v6, %v8914_v19  ;;  %v7146_v26 = vadd.f32 %v7091_v52, %v4303_v25 }
 0x477   : > { %10122 = vpow2.f32 %v9878_v22  ;;  %v8860_v17 = vpop.f32.mrf.mxu3  ;;  %v4306_v6 = vadd.f32 %v4305_v49, %v4117_v41 }
 0x478   : > { %v8239_v42 = vmax.f32 %v7979_v46, %v8158_v36  ;;  %v8240_v39 = vmax.f32 %v7980_v14, %v8160_v37  ;;  %v9879_v10 = vmul.f32 -1.442695, %v15642_v35  ;;  %v8915_v5 = vadd.f32 %v8860_v17, %v7146_v26 }
 0x479   : > { %v10121_v1 = vpop.eup %10120  ;;  %v7147_v54 = vadd.f32 %v7094_v47, %v4306_v6 }
 0x47a   : > { %v8639_v28 = vmax.f32 %v8541_v60, %v8239_v42  ;;  %v8640_v63 = vmax.f32 %v8542_v56, %v8240_v39  ;;  %v9076_v11 = vadd.f32 1.0, %v10121_v1  ;;  %10124 = vpow2.f32 %v9879_v10  ;;  %v7096_v3 = vpop.f32.mrf.mxu2 }
 0x47b   : > { %v15653_v55 = vadd.f32 %v15650_v8, %v8915_v5  ;;  %v4119_v61 = vpop.f32.mrf.mxu0 }
 0x47c   : > { %v8671_v13 = vpack.c.bf16 %v8639_v28, %v8639_v28  ;;  %v8672_v34 = vpack.c.bf16 %v8640_v63, %v8640_v63  ;;  %10126 = vrcp.f32 %v9076_v11  ;;  %v4307_v20 = vpop.f32.mrf.mxu1  ;;  %v9313_v9 = vand.u32 2147483647, %v9076_v11 }
 0x47d   : > { %v10123_v50 = vpop.eup %10122  ;;  %v9880_v32 = vmul.f32 -1.442695, %v15653_v55  ;;  %v9315_v38 = vand.u32 2147483648, %v9076_v11  ;;  %v4308_v43 = vadd.f32 %v4307_v20, %v4119_v61  ;;  %vm9309_vm9 = vweird.f32 %v9076_v11 }
 0x47e   : > { %v8736_v2 = vunpack.c.l.b16 %v8671_v13  ;;  %v8737_v57 = vunpack.c.l.b16 %v8672_v34  ;;  %v15645_v29 = vadd.f32 1.0, %v10123_v50  ;;  %vm15665_vm10 = vcmp.eq.f32.partialorder %v9313_v9, 8.507059e+37 }
 0x47f   : > { %v8863_v4 = vpop.f32.mrf.mxu3  ;;  %v9316_v36 = vor.u32 1.1754944e-38, %v9315_v38  ;;  %v7148_v45 = vadd.f32 %v7096_v3, %v4308_v43 }
 0x480   : > { %v8753_v62 = vpack.c.b16 %v8737_v57, %v8736_v2  ;;  %v10125_v0 = vpop.eup %10124  ;;  %10128 = vrcp.f32 %v15645_v29  ;;  %v8916_v18 = vadd.f32 %v8863_v4, %v7147_v54  ;;  %v9330_v24 = vand.u32 2147483648, %v15645_v29 }
 0x481   : > { %v15657_v58 = vadd.f32 1.0, %v10125_v0  ;;  %v9328_v12 = vand.u32 2147483647, %v15645_v29  ;;  %vm9324_vm13 = vweird.f32 %v15645_v29 }
 0x482   : > { %9862 = vmatmul.msk.bf16.gmra.mxu3 %vm4010_vm12, %v8753_v62  ;;  %v10127_v16 = vpop.eup %10126  ;;  %v15662_v27 = vadd.f32 %v15650_v8, %v8916_v18  ;;  %v7099_v60 = vpop.f32.mrf.mxu2  ;;  %v9331_v41 = vor.u32 1.1754944e-38, %v9330_v24 }
 0x483   : > { %v9305_v59 = vmul.f32 %v10127_v16, %v9076_v11  ;;  %10130 = vrcp.f32 %v15657_v58  ;;  %vm9310_vm6 = vweird.f32 %v10127_v16  ;;  %v4122_v23 = vpop.f32.mrf.mxu0  ;;  %v9345_v63 = vand.u32 2147483648, %v15657_v58 }
 0x484   : > { %10132 = vpow2.f32 %v9880_v32  ;;  %v4310_v15 = vpop.f32.mrf.mxu1  ;;  %v9881_v51 = vmul.f32 -1.442695, %v15662_v27  ;;  %vm9311_vm11 = vmor %vm9309_vm9, %vm9310_vm6  ;;  %v9343_v47 = vand.u32 2147483647, %v15657_v58  ;;  %vm9329_vm15 = vcmp.eq.f32.partialorder %v9328_v12, 8.507059e+37 }
 0x485   : > { %v9306_v48 = vsub.f32 1.0, %v9305_v59  ;;  %v4311_v1 = vadd.f32 %v4310_v15, %v4122_v23  ;;  %vm9339_vm1 = vweird.f32 %v15657_v58  ;;  %v9346_v50 = vor.u32 1.1754944e-38, %v9345_v63 }
 0x486   : > { %v10129_v31 = vpop.eup %10128  ;;  %10134 = vpow2.f32 %v9881_v51  ;;  %vm9344_vm2 = vcmp.eq.f32.partialorder %v9343_v47, 8.507059e+37 }
 0x487   : > { %v9307_v44 = vmul.f32 %v10127_v16, %v9306_v48  ;;  %v9320_v30 = vmul.f32 %v10129_v31, %v15645_v29  ;;  %vm9325_vm12 = vweird.f32 %v10129_v31  ;;  %v8865_v56 = vpop.f32.mrf.mxu3  ;;  %v7149_v29 = vadd.f32 %v7099_v60, %v4311_v1 }
 0x488   : > { %v8917_v22 = vadd.f32 %v8865_v56, %v7148_v45  ;;  %vm9326_vm14 = vmor %vm9324_vm13, %vm9325_vm12 }
 0x489   : > { %v9308_v52 = vadd.f32 %v10127_v16, %v9307_v44  ;;  %v10131_v7 = vpop.eup %10130  ;;  %v9321_v37 = vsub.f32 1.0, %v9320_v30 }
 0x48a   : > { %v10133_v46 = vpop.eup %10132  ;;  %v9335_v53 = vmul.f32 %v10131_v7, %v15657_v58  ;;  %vm9340_vm5 = vweird.f32 %v10131_v7  ;;  %v7101_v6 = vpop.f32.mrf.mxu2 }
 0x48b   : > { %v9312_v14 = vsel %vm9311_vm11, %v10127_v16, %v9308_v52  ;;  %v9322_v42 = vmul.f32 %v10129_v31, %v9321_v37  ;;  %v15675_v39 = vadd.f32 1.0, %v10133_v46  ;;  %v4124_v13 = vpop.f32.mrf.mxu0  ;;  %vm9341_vm0 = vmor %vm9339_vm1, %vm9340_vm5 }
 0x48c   : > { %v9317_v19 = vsel %vm15665_vm10, %v9316_v36, %v9312_v14  ;;  %v9336_v49 = vsub.f32 1.0, %v9335_v53  ;;  %v4312_v34 = vpop.f32.mrf.mxu1  ;;  %v10135_v26 = vpop.eup %10134 }
 0x48d   : > { %v9588_v25 = vmul.f32 %v9317_v19, %v15622_v40  ;;  %v9323_v28 = vadd.f32 %v10129_v31, %v9322_v42  ;;  %10136 = vrcp.f32 %v15675_v39  ;;  %v15686_v40 = vadd.f32 %v15650_v8, %v8917_v22 }
 0x48e   : > { %v9337_v10 = vmul.f32 %v10131_v7, %v9336_v49  ;;  %v15691_v62 = vadd.f32 1.0, %v10135_v26  ;;  %v4313_v32 = vadd.f32 %v4312_v34, %v4124_v13  ;;  %v9358_v48 = vand.u32 2147483647, %v15675_v39 }
 0x48f   : > { %9621 = vst.msk [vmem:[%s14185_s4 + $0x70] sm:$0xff] %vm9606_vm3, %v9588_v25  ;;  %v9327_v11 = vsel %vm9326_vm14, %v10129_v31, %v9323_v28  ;;  %v9882_v57 = vmul.f32 -1.442695, %v15686_v40  ;;  %v8868_v20 = vpop.f32.mrf.mxu3  ;;  %v9360_v9 = vand.u32 2147483648, %v15675_v39  ;;  %vm9354_vm7 = vweird.f32 %v15675_v39 }
 0x490   : > { %v9332_v17 = vsel %vm9329_vm15, %v9331_v41, %v9327_v11  ;;  %v9338_v2 = vadd.f32 %v10131_v7, %v9337_v10  ;;  %v8918_v16 = vadd.f32 %v8868_v20, %v7149_v29  ;;  %v7150_v52 = vadd.f32 %v7101_v6, %v4313_v32 }
 0x491   : > { %v9589_v5 = vmul.f32 %v9332_v17, %v15638_v33  ;;  %10138 = vpow2.f32 %v9882_v57  ;;  %vm9359_vm6 = vcmp.eq.f32.partialorder %v9358_v48, 8.507059e+37  ;;  %v9361_v24 = vor.u32 1.1754944e-38, %v9360_v9 }
 0x492   : > { %v9342_v61 = vsel %vm9341_vm0, %v10131_v7, %v9338_v2  ;;  %10140 = vrcp.f32 %v15691_v62  ;;  %v15703_v18 = vadd.f32 %v15650_v8, %v8918_v16  ;;  %v9373_v12 = vand.u32 2147483647, %v15691_v62 }
 0x493   : > { %v10137_v0 = vpop.eup %10136  ;;  %9622 = vst.msk [vmem:[%s14185_s4 + $0x78] sm:$0xff] %vm9606_vm3, %v9589_v5  ;;  %v9347_v54 = vsel %vm9344_vm2, %v9346_v50, %v9342_v61  ;;  %v4127_v59 = vpop.f32.mrf.mxu0  ;;  %v9375_v45 = vand.u32 2147483648, %v15691_v62  ;;  %vm9369_vm10 = vweird.f32 %v15691_v62 }
 0x494   : > { %v9590_v3 = vmul.f32 %v9347_v54, %v15642_v35  ;;  %v9350_v33 = vmul.f32 %v10137_v0, %v15675_v39  ;;  %v4315_v4 = vpop.f32.mrf.mxu1  ;;  %vm9355_vm4 = vweird.f32 %v10137_v0  ;;  %v7104_v35 = vpop.f32.mrf.mxu2  ;;  %v9883_v23 = vmul.f32 -1.442695, %v15703_v18 }
 0x495   : > { %vm9356_vm8 = vmor %vm9354_vm7, %vm9355_vm4  ;;  %v4316_v51 = vadd.f32 %v4315_v4, %v4127_v59  ;;  %vm9374_vm12 = vcmp.eq.f32.partialorder %v9373_v12, 8.507059e+37 }
 0x496   : > { %9623 = vst.msk [vmem:[%s14185_s4 + $0x80] sm:$0xff] %vm9606_vm3, %v9590_v3  ;;  %v9351_v58 = vsub.f32 1.0, %v9350_v33 }
 0x497   : > { %v10139_v38 = vpop.eup %10138  ;;  %v8870_v21 = vpop.f32.mrf.mxu3  ;;  %v7151_v42 = vadd.f32 %v7104_v35, %v4316_v51 }
 0x498   : > { %v9352_v43 = vmul.f32 %v10137_v0, %v9351_v58  ;;  %v10141_v31 = vpop.eup %10140  ;;  %v15705_v44 = vadd.f32 1.0, %v10139_v38  ;;  %v8919_v36 = vadd.f32 %v8870_v21, %v7150_v52 }
 0x499   : > { %v9365_v30 = vmul.f32 %v10141_v31, %v15691_v62  ;;  %vm9370_vm9 = vweird.f32 %v10141_v31 }
 0x49a   : > { %v9353_v15 = vadd.f32 %v10137_v0, %v9352_v43  ;;  %10142 = vrcp.f32 %v15705_v44  ;;  %v15715_v53 = vadd.f32 %v15650_v8, %v8919_v36  ;;  %vm9371_vm11 = vmor %vm9369_vm10, %vm9370_vm9  ;;  %v9390_v26 = vand.u32 2147483648, %v15705_v44 }
 0x49b   : > { %v9366_v7 = vsub.f32 1.0, %v9365_v30  ;;  %10144 = vpow2.f32 %v9883_v23  ;;  %v4129_v56 = vpop.f32.mrf.mxu0  ;;  %v9388_v2 = vand.u32 2147483647, %v15705_v44  ;;  %vm9384_vm14 = vweird.f32 %v15705_v44 }
 0x49c   : > { %v9357_v60 = vsel %vm9356_vm8, %v10137_v0, %v9353_v15  ;;  %v4317_v19 = vpop.f32.mrf.mxu1  ;;  %v9884_v22 = vmul.f32 -1.442695, %v15715_v53  ;;  %v7106_v25 = vpop.f32.mrf.mxu2  ;;  %v9391_v20 = vor.u32 1.1754944e-38, %v9390_v26 }
 0x49d   : > { %v9362_v37 = vsel %vm9359_vm6, %v9361_v24, %v9357_v60  ;;  %v9367_v14 = vmul.f32 %v10141_v31, %v9366_v7  ;;  %v4318_v50 = vadd.f32 %v4317_v19, %v4129_v56  ;;  %vm9389_vm15 = vcmp.eq.f32.partialorder %v9388_v2, 8.507059e+37 }
 0x49e   : > { %v9591_v46 = vmul.f32 %v9362_v37, %v15653_v55  ;;  %v9376_v55 = vor.u32 1.1754944e-38, %v9375_v45  ;;  %10146 = vpow2.f32 %v9884_v22 }
 0x49f   : > { %v9368_v39 = vadd.f32 %v10141_v31, %v9367_v14  ;;  %v8873_v1 = vpop.f32.mrf.mxu3  ;;  %v7152_v58 = vadd.f32 %v7106_v25, %v4318_v50 }
 0x4a0   : > { %9624 = vst.msk [vmem:[%s14185_s4 + $0x88] sm:$0xff] %vm9606_vm3, %v9591_v46  ;;  %v10143_v41 = vpop.eup %10142  ;;  %v8920_v13 = vadd.f32 %v8873_v1, %v7151_v42 }
 0x4a1   : > { %v10145_v49 = vpop.eup %10144  ;;  %v9372_v28 = vsel %vm9371_vm11, %v10141_v31, %v9368_v39  ;;  %v9380_v63 = vmul.f32 %v10143_v41, %v15705_v44  ;;  %vm9385_vm13 = vweird.f32 %v10143_v41 }
 0x4a2   : > { %v9377_v10 = vsel %vm9374_vm12, %v9376_v55, %v9372_v28  ;;  %v9082_v47 = vadd.f32 1.0, %v10145_v49  ;;  %v15728_v57 = vadd.f32 %v15650_v8, %v8920_v13  ;;  %vm9386_vm5 = vmor %vm9384_vm14, %vm9385_vm13 }
 0x4a3   : > { %v9592_v34 = vmul.f32 %v9377_v10, %v15662_v27  ;;  %v9381_v11 = vsub.f32 1.0, %v9380_v63  ;;  %v4132_v6 = vpop.f32.mrf.mxu0 }
 0x4a4   : > { %10148 = vrcp.f32 %v9082_v47  ;;  %v4320_v5 = vpop.f32.mrf.mxu1  ;;  %v10147_v62 = vpop.eup %10146  ;;  %v9885_v27 = vmul.f32 -1.442695, %v15728_v57  ;;  %v9403_v35 = vand.u32 2147483647, %v9082_v47  ;;  %v9405_v31 = vand.u32 2147483648, %v9082_v47 }
 0x4a5   : > { %9625 = vst.msk [vmem:[%s14185_s4 + $0x90] sm:$0xff] %vm9606_vm3, %v9592_v34  ;;  %v9382_v17 = vmul.f32 %v10143_v41, %v9381_v11  ;;  %v7109_v61 = vpop.f32.mrf.mxu2  ;;  %v9083_v0 = vadd.f32 1.0, %v10147_v62  ;;  %v4321_v4 = vadd.f32 %v4320_v5, %v4132_v6  ;;  %vm9399_vm0 = vweird.f32 %v9082_v47 }
 0x4a6   : > { %10150 = vpow2.f32 %v9885_v27  ;;  %vm9404_vm4 = vcmp.eq.f32.partialorder %v9403_v35, 8.507059e+37  ;;  %v9406_v36 = vor.u32 1.1754944e-38, %v9405_v31 }
 0x4a7   : > { %v9383_v29 = vadd.f32 %v10143_v41, %v9382_v17  ;;  %v8875_v3 = vpop.f32.mrf.mxu3  ;;  %10152 = vrcp.f32 %v9083_v0  ;;  %v7153_v30 = vadd.f32 %v7109_v61, %v4321_v4  ;;  %v9418_v14 = vand.u32 2147483647, %v9083_v0 }
 0x4a8   : > { %v8921_v48 = vadd.f32 %v8875_v3, %v7152_v58  ;;  %v9420_v56 = vand.u32 2147483648, %v9083_v0  ;;  %vm9414_vm8 = vweird.f32 %v9083_v0 }
 0x4a9   : > { %v9387_v54 = vsel %vm9386_vm5, %v10143_v41, %v9383_v29  ;;  %vm9419_vm9 = vcmp.eq.f32.partialorder %v9418_v14, 8.507059e+37 }
 0x4aa   : > { %v10149_v33 = vpop.eup %10148  ;;  %v9392_v16 = vsel %vm9389_vm15, %v9391_v20, %v9387_v54  ;;  %v15736_v44 = vadd.f32 %v15650_v8, %v8921_v48  ;;  %v9421_v63 = vor.u32 1.1754944e-38, %v9420_v56 }
 0x4ab   : > { %v9593_v32 = vmul.f32 %v9392_v16, %v15686_v40  ;;  %v9395_v59 = vmul.f32 %v10149_v33, %v9082_v47  ;;  %v4134_v38 = vpop.f32.mrf.mxu0  ;;  %vm9400_vm1 = vweird.f32 %v10149_v33 }
 0x4ac   : > { %v4322_v43 = vpop.f32.mrf.mxu1  ;;  %v10151_v23 = vpop.eup %10150  ;;  %v9886_v24 = vmul.f32 -1.442695, %v15736_v44  ;;  %vm9401_vm2 = vmor %vm9399_vm0, %vm9400_vm1 }
 0x4ad   : > { %9626 = vst.msk [vmem:[%s14185_s4 + $0x98] sm:$0xff] %vm9606_vm3, %v9593_v32  ;;  %v9396_v9 = vsub.f32 1.0, %v9395_v59  ;;  %v7111_v52 = vpop.f32.mrf.mxu2  ;;  %v10153_v21 = vpop.eup %10152  ;;  %v15738_v40 = vadd.f32 1.0, %v10151_v23  ;;  %v4323_v19 = vadd.f32 %v4322_v43, %v4134_v38 }
 0x4ae   : > { %v9410_v60 = vmul.f32 %v10153_v21, %v9083_v0  ;;  %vm9415_vm7 = vweird.f32 %v10153_v21 }
 0x4af   : > { %v9397_v15 = vmul.f32 %v10149_v33, %v9396_v9  ;;  %v8878_v7 = vpop.f32.mrf.mxu3  ;;  %10154 = vrcp.f32 %v15738_v40  ;;  %vm9416_vm6 = vmor %vm9414_vm8, %vm9415_vm7  ;;  %v7154_v1 = vadd.f32 %v7111_v52, %v4323_v19  ;;  %v9435_v5 = vand.u32 2147483648, %v15738_v40 }
 0x4b0   : > { %v9411_v12 = vsub.f32 1.0, %v9410_v60  ;;  %10156 = vpow2.f32 %v9886_v24  ;;  %v8922_v45 = vadd.f32 %v8878_v7, %v7153_v30  ;;  %v9433_v29 = vand.u32 2147483647, %v15738_v40 }
 0x4b1   : > { %v9398_v51 = vadd.f32 %v10149_v33, %v9397_v15  ;;  %vm9429_vm11 = vweird.f32 %v15738_v40  ;;  %v9436_v3 = vor.u32 1.1754944e-38, %v9435_v5 }
 0x4b2   : > { %v9412_v39 = vmul.f32 %v10153_v21, %v9411_v12  ;;  %v15744_v22 = vadd.f32 %v15650_v8, %v8922_v45  ;;  %vm9434_vm13 = vcmp.eq.f32.partialorder %v9433_v29, 8.507059e+37 }
 0x4b3   : > { %v9402_v37 = vsel %vm9401_vm2, %v10149_v33, %v9398_v51  ;;  %v4137_v25 = vpop.f32.mrf.mxu0 }
 0x4b4   : > { %v9407_v46 = vsel %vm9404_vm4, %v9406_v36, %v9402_v37  ;;  %v4325_v41 = vpop.f32.mrf.mxu1  ;;  %v9413_v55 = vadd.f32 %v10153_v21, %v9412_v39  ;;  %v9887_v49 = vmul.f32 -1.442695, %v15744_v22 }
 0x4b5   : > { %v9594_v42 = vmul.f32 %v9407_v46, %v15703_v18  ;;  %v10155_v28 = vpop.eup %10154  ;;  %v7114_v13 = vpop.f32.mrf.mxu2  ;;  %v4326_v50 = vadd.f32 %v4325_v41, %v4137_v25 }
 0x4b6   : > { %v10157_v10 = vpop.eup %10156  ;;  %v9417_v18 = vsel %vm9416_vm6, %v10153_v21, %v9413_v55  ;;  %v9425_v47 = vmul.f32 %v10155_v28, %v15738_v40  ;;  %10158 = vpow2.f32 %v9887_v49  ;;  %vm9430_vm10 = vweird.f32 %v10155_v28 }
 0x4b7   : > { %9627 = vst.msk [vmem:[%s14185_s4 + $0xa0] sm:$0xff] %vm9606_vm3, %v9594_v42  ;;  %v8880_v34 = vpop.f32.mrf.mxu3  ;;  %v9422_v11 = vsel %vm9419_vm9, %v9421_v63, %v9417_v18  ;;  %v9085_v26 = vadd.f32 1.0, %v10157_v10  ;;  %vm9431_vm12 = vmor %vm9429_vm11, %vm9430_vm10  ;;  %v7155_v16 = vadd.f32 %v7114_v13, %v4326_v50 }
 0x4b8   : > { %v8923_v17 = vadd.f32 %v8880_v34, %v7154_v1  ;;  %v9595_v2 = vmul.f32 %v9422_v11, %v15715_v53  ;;  %v9426_v6 = vsub.f32 1.0, %v9425_v47 }
 0x4b9   : > { %10160 = vrcp.f32 %v9085_v26  ;;  %v9448_v23 = vand.u32 2147483647, %v9085_v26  ;;  %v9450_v15 = vand.u32 2147483648, %v9085_v26  ;;  %vm9444_vm5 = vweird.f32 %v9085_v26 }
 0x4ba   : > { %9628 = vst.msk [vmem:[%s14185_s4 + $0xa8] sm:$0xff] %vm9606_vm3, %v9595_v2  ;;  %v9427_v62 = vmul.f32 %v10155_v28, %v9426_v6  ;;  %v15756_v27 = vadd.f32 %v15650_v8, %v8923_v17 }
 0x4bb   : > { %v4139_v61 = vpop.f32.mrf.mxu0  ;;  %vm9449_vm1 = vcmp.eq.f32.partialorder %v9448_v23, 8.507059e+37  ;;  %v9451_v45 = vor.u32 1.1754944e-38, %v9450_v15 }
 0x4bc   : > { %v10159_v20 = vpop.eup %10158  ;;  %v9428_v0 = vadd.f32 %v10155_v28, %v9427_v62  ;;  %v9888_v53 = vmul.f32 -1.442695, %v15756_v27  ;;  %v4327_v54 = vpop.f32.mrf.mxu1 }
 0x4bd   : > { %v9086_v33 = vadd.f32 1.0, %v10159_v20  ;;  %v7116_v38 = vpop.f32.mrf.mxu2  ;;  %v4328_v31 = vadd.f32 %v4327_v54, %v4139_v61 }
 0x4be   : > { %v9432_v58 = vsel %vm9431_vm12, %v10155_v28, %v9428_v0  ;;  %10162 = vpow2.f32 %v9888_v53 }
 0x4bf   : > { %v8883_v32 = vpop.f32.mrf.mxu3  ;;  %v10161_v59 = vpop.eup %10160  ;;  %v9437_v4 = vsel %vm9434_vm13, %v9436_v3, %v9432_v58  ;;  %10164 = vrcp.f32 %v9086_v33  ;;  %v7156_v36 = vadd.f32 %v7116_v38, %v4328_v31  ;;  %v9463_v39 = vand.u32 2147483647, %v9086_v33 }
 0x4c0   : > { %v9596_v48 = vmul.f32 %v9437_v4, %v15728_v57  ;;  %v9440_v9 = vmul.f32 %v10161_v59, %v9085_v26  ;;  %v8924_v43 = vadd.f32 %v8883_v32, %v7155_v16  ;;  %vm9445_vm14 = vweird.f32 %v10161_v59 }
 0x4c1   : > { %vm9446_vm15 = vmor %vm9444_vm5, %vm9445_vm14  ;;  %v9465_v25 = vand.u32 2147483648, %v9086_v33  ;;  %vm9459_vm2 = vweird.f32 %v9086_v33  ;;  %vm9464_vm7 = vcmp.eq.f32.partialorder %v9463_v39, 8.507059e+37 }
 0x4c2   : > { %9629 = vst.msk [vmem:[%s14185_s4 + $0xb0] sm:$0xff] %vm9606_vm3, %v9596_v48  ;;  %v9441_v35 = vsub.f32 1.0, %v9440_v9  ;;  %v15764_v30 = vadd.f32 %v15650_v8, %v8924_v43 }
 0x4c3   : > { %v4142_v51 = vpop.f32.mrf.mxu0  ;;  %v9466_v47 = vor.u32 1.1754944e-38, %v9465_v25 }
 0x4c4   : > { %v10163_v52 = vpop.eup %10162  ;;  %v9442_v21 = vmul.f32 %v10161_v59, %v9441_v35  ;;  %v9889_v57 = vmul.f32 -1.442695, %v15764_v30  ;;  %v4330_v37 = vpop.f32.mrf.mxu1 }
 0x4c5   : > { %v10165_v40 = vpop.eup %10164  ;;  %v15766_v24 = vadd.f32 1.0, %v10163_v52  ;;  %v4331_v46 = vadd.f32 %v4330_v37, %v4142_v51  ;;  %v7119_v49 = vpop.f32.mrf.mxu2 }
 0x4c6   : > { %v9443_v60 = vadd.f32 %v10161_v59, %v9442_v21  ;;  %v9455_v7 = vmul.f32 %v10165_v40, %v9086_v33  ;;  %vm9460_vm0 = vweird.f32 %v10165_v40 }
 0x4c7   : > { %v8885_v12 = vpop.f32.mrf.mxu3  ;;  %10166 = vrcp.f32 %v15766_v24  ;;  %v7157_v63 = vadd.f32 %v7119_v49, %v4331_v46  ;;  %vm9461_vm4 = vmor %vm9459_vm2, %vm9460_vm0  ;;  %v9480_v29 = vand.u32 2147483648, %v15766_v24  ;;  %v9478_v20 = vand.u32 2147483647, %v15766_v24 }
 0x4c8   : > { %v9447_v14 = vsel %vm9446_vm15, %v10161_v59, %v9443_v60  ;;  %v9456_v56 = vsub.f32 1.0, %v9455_v7  ;;  %10168 = vpow2.f32 %v9889_v57  ;;  %v8925_v19 = vadd.f32 %v8885_v12, %v7156_v36 }
 0x4c9   : > { %v9452_v42 = vsel %vm9449_vm1, %v9451_v45, %v9447_v14  ;;  %vm9474_vm6 = vweird.f32 %v15766_v24  ;;  %v9481_v16 = vor.u32 1.1754944e-38, %v9480_v29  ;;  %vm9479_vm10 = vcmp.eq.f32.partialorder %v9478_v20, 8.507059e+37 }
 0x4ca   : > { %v9597_v41 = vmul.f32 %v9452_v42, %v15736_v44  ;;  %v9457_v55 = vmul.f32 %v10165_v40, %v9456_v56  ;;  %v15772_v28 = vadd.f32 %v15650_v8, %v8925_v19 }
 0x4cb   : > { %v4144_v50 = vpop.f32.mrf.mxu0 }
 0x4cc   : > { %9630 = vst.msk [vmem:[%s14185_s4 + $0xb8] sm:$0xff] %vm9606_vm3, %v9597_v41  ;;  %v9458_v1 = vadd.f32 %v10165_v40, %v9457_v55  ;;  %v9890_v10 = vmul.f32 -1.442695, %v15772_v28  ;;  %v4332_v62 = vpop.f32.mrf.mxu1 }
 0x4cd   : > { %v10167_v18 = vpop.eup %10166  ;;  %v4333_v53 = vadd.f32 %v4332_v62, %v4144_v50 }
 0x4ce   : > { %v10169_v13 = vpop.eup %10168  ;;  %v9462_v34 = vsel %vm9461_vm4, %v10165_v40, %v9458_v1  ;;  %v9470_v44 = vmul.f32 %v10167_v18, %v15766_v24  ;;  %10170 = vpow2.f32 %v9890_v10  ;;  %vm9475_vm8 = vweird.f32 %v10167_v18 }
 0x4cf   : > { %v9467_v26 = vsel %vm9464_vm7, %v9466_v47, %v9462_v34  ;;  %v9088_v17 = vadd.f32 1.0, %v10169_v13  ;;  %vm9476_vm9 = vmor %vm9474_vm6, %vm9475_vm8 }
 0x4d0   : > { %v9598_v6 = vmul.f32 %v9467_v26, %v15744_v22  ;;  %v9471_v5 = vsub.f32 1.0, %v9470_v44  ;;  %v7121_v22 = vpop.f32.mrf.mxu2 }
 0x4d1   : > { %10172 = vrcp.f32 %v9088_v17  ;;  %v7158_v9 = vadd.f32 %v7121_v22, %v4333_v53  ;;  %v9495_v23 = vand.u32 2147483648, %v9088_v17  ;;  %v9493_v40 = vand.u32 2147483647, %v9088_v17 }
 0x4d2   : > { %v8888_v11 = vpop.f32.mrf.mxu3  ;;  %9631 = vst.msk [vmem:[%s14185_s4 + $0xc0] sm:$0xff] %vm9606_vm3, %v9598_v6  ;;  %v9472_v61 = vmul.f32 %v10167_v18, %v9471_v5  ;;  %vm9489_vm12 = vweird.f32 %v9088_v17 }
 0x4d3   : > { %v8926_v2 = vadd.f32 %v8888_v11, %v7157_v63  ;;  %v9496_v7 = vor.u32 1.1754944e-38, %v9495_v23  ;;  %vm9494_vm14 = vcmp.eq.f32.partialorder %v9493_v40, 8.507059e+37  ;;  %v4147_v6 = vpop.f32.mrf.mxu0 }
 0x4d4   : > { %v10171_v54 = vpop.eup %10170  ;;  %v9473_v3 = vadd.f32 %v10167_v18, %v9472_v61  ;;  %v4335_v50 = vpop.f32.mrf.mxu1 }
 0x4d5   : > { %v15784_v0 = vadd.f32 %v15650_v8, %v8926_v2  ;;  %v9089_v58 = vadd.f32 1.0, %v10171_v54  ;;  %v4336_v20 = vadd.f32 %v4335_v50, %v4147_v6 }
 0x4d6   : > { %v9477_v32 = vsel %vm9476_vm9, %v10167_v18, %v9473_v3 }
 0x4d7   : > { %v9891_v33 = vmul.f32 -1.442695, %v15784_v0  ;;  %v10173_v4 = vpop.eup %10172  ;;  %v9482_v48 = vsel %vm9479_vm10, %v9481_v16, %v9477_v32  ;;  %v9510_v45 = vand.u32 2147483648, %v9089_v58  ;;  %v9508_v56 = vand.u32 2147483647, %v9089_v58 }
 0x4d8   : > { %v9599_v38 = vmul.f32 %v9482_v48, %v15756_v27  ;;  %v9485_v43 = vmul.f32 %v10173_v4, %v9088_v17  ;;  %vm9490_vm11 = vweird.f32 %v10173_v4  ;;  %vm9504_vm15 = vweird.f32 %v9089_v58  ;;  %v7124_v54 = vpop.f32.mrf.mxu2 }
 0x4d9   : > { %10174 = vpow2.f32 %v9891_v33  ;;  %vm9491_vm13 = vmor %vm9489_vm12, %vm9490_vm11  ;;  %v9511_v39 = vor.u32 1.1754944e-38, %v9510_v45  ;;  %vm9509_vm0 = vcmp.eq.f32.partialorder %v9508_v56, 8.507059e+37  ;;  %v7159_v33 = vadd.f32 %v7124_v54, %v4336_v20 }
 0x4da   : > { %v8890_v59 = vpop.f32.mrf.mxu3  ;;  %10176 = vrcp.f32 %v9089_v58  ;;  %9632 = vst.msk [vmem:[%s14185_s4 + $0xc8] sm:$0xff] %vm9606_vm3, %v9599_v38  ;;  %v9486_v31 = vsub.f32 1.0, %v9485_v43 }
 0x4db   : > { %v8927_v35 = vadd.f32 %v8890_v59, %v7158_v9  ;;  %v4149_v16 = vpop.f32.mrf.mxu0 }
 0x4dc   : > { %v9487_v21 = vmul.f32 %v10173_v4, %v9486_v31 }
 0x4dd   : > { %v15792_v15 = vadd.f32 %v15650_v8, %v8927_v35 }
 0x4de   : > { %v9488_v60 = vadd.f32 %v10173_v4, %v9487_v21 }
 0x4df   : > { %v10175_v52 = vpop.eup %10174  ;;  %v9892_v51 = vmul.f32 -1.442695, %v15792_v15 }
 0x4e0   : > { %v10177_v24 = vpop.eup %10176  ;;  %v9090_v57 = vadd.f32 1.0, %v10175_v52  ;;  %v9492_v36 = vsel %vm9491_vm13, %v10173_v4, %v9488_v60  ;;  %v7126_v9 = vpop.f32.mrf.mxu2 }
 0x4e1   : > { %v9500_v27 = vmul.f32 %v10177_v24, %v9089_v58  ;;  %v9497_v12 = vsel %vm9494_vm14, %v9496_v7, %v9492_v36  ;;  %vm9505_vm5 = vweird.f32 %v10177_v24  ;;  %v4337_v58 = vpop.f32.mrf.mxu1 }
 0x4e2   : > { %10178 = vrcp.f32 %v9090_v57  ;;  %v9600_v46 = vmul.f32 %v9497_v12, %v15764_v30  ;;  %vm9506_vm1 = vmor %vm9504_vm15, %vm9505_vm5  ;;  %v9525_v10 = vand.u32 2147483648, %v9090_v57  ;;  %v9523_v47 = vand.u32 2147483647, %v9090_v57 }
 0x4e3   : > { %v9501_v37 = vsub.f32 1.0, %v9500_v27  ;;  %10180 = vpow2.f32 %v9892_v51  ;;  %vm9519_vm4 = vweird.f32 %v9090_v57  ;;  %v4338_v4 = vadd.f32 %v4337_v58, %v4149_v16 }
 0x4e4   : > { %9633 = vst.msk [vmem:[%s14185_s4 + $0xd0] sm:$0xff] %vm9606_vm3, %v9600_v46  ;;  %v9526_v34 = vor.u32 1.1754944e-38, %v9525_v10  ;;  %vm9524_vm8 = vcmp.eq.f32.partialorder %v9523_v47, 8.507059e+37 }
 0x4e5   : > { %v9502_v14 = vmul.f32 %v10177_v24, %v9501_v37  ;;  %v7160_v43 = vadd.f32 %v7126_v9, %v4338_v4 }
 0x4e7   : > { %v9503_v19 = vadd.f32 %v10177_v24, %v9502_v14 }
 0x4e8   : > { %v10179_v42 = vpop.eup %10178 }
 0x4e9   : > { %v10181_v25 = vpop.eup %10180  ;;  %v9507_v41 = vsel %vm9506_vm1, %v10177_v24, %v9503_v19  ;;  %v9515_v55 = vmul.f32 %v10179_v42, %v9090_v57  ;;  %vm9520_vm2 = vweird.f32 %v10179_v42 }
 0x4ea   : > { %v9512_v49 = vsel %vm9509_vm0, %v9511_v39, %v9507_v41  ;;  %v9091_v63 = vadd.f32 1.0, %v10181_v25  ;;  %vm9521_vm7 = vmor %vm9519_vm4, %vm9520_vm2 }
 0x4eb   : > { %v9601_v1 = vmul.f32 %v9512_v49, %v15772_v28  ;;  %v9516_v30 = vsub.f32 1.0, %v9515_v55 }
 0x4ec   : > { %10182 = vrcp.f32 %v9091_v63  ;;  %v9540_v5 = vand.u32 2147483648, %v9091_v63  ;;  %v9538_v29 = vand.u32 2147483647, %v9091_v63  ;;  %vm9534_vm9 = vweird.f32 %v9091_v63 }
 0x4ed   : > { %9634 = vst.msk [vmem:[%s14185_s4 + $0xd8] sm:$0xff] %vm9606_vm3, %v9601_v1  ;;  %v9517_v18 = vmul.f32 %v10179_v42, %v9516_v30 }
 0x4ee   : > { %v9541_v53 = vor.u32 1.1754944e-38, %v9540_v5  ;;  %vm9539_vm11 = vcmp.eq.f32.partialorder %v9538_v29, 8.507059e+37 }
 0x4ef   : > { %v9518_v13 = vadd.f32 %v10179_v42, %v9517_v18 }
 0x4f1   : > { %v9522_v44 = vsel %vm9521_vm7, %v10179_v42, %v9518_v13 }
 0x4f2   : > { %v10183_v11 = vpop.eup %10182  ;;  %v9527_v26 = vsel %vm9524_vm8, %v9526_v34, %v9522_v44 }
 0x4f3   : > { %v9602_v17 = vmul.f32 %v9527_v26, %v15784_v0  ;;  %v9530_v28 = vmul.f32 %v10183_v11, %v9091_v63  ;;  %vm9535_vm6 = vweird.f32 %v10183_v11 }
 0x4f4   : > { %vm9536_vm10 = vmor %vm9534_vm9, %vm9535_vm6 }
 0x4f5   : > { %9635 = vst.msk [vmem:[%s14185_s4 + $0xe0] sm:$0xff] %vm9606_vm3, %v9602_v17  ;;  %v9531_v2 = vsub.f32 1.0, %v9530_v28 }
 0x4f7   : > { %v9532_v62 = vmul.f32 %v10183_v11, %v9531_v2 }
 0x4f9   : > { %v9533_v61 = vadd.f32 %v10183_v11, %v9532_v62 }
 0x4fb   : > { %v9537_v3 = vsel %vm9536_vm10, %v10183_v11, %v9533_v61 }
 0x4fc   : > { %v9542_v0 = vsel %vm9539_vm11, %v9541_v53, %v9537_v3 }
 0x4fd   : > { %v9603_v22 = vmul.f32 %v9542_v0, %v15792_v15 }
 0x4ff   : > { %9636 = vst.msk [vmem:[%s14185_s4 + $0xe8] sm:$0xff] %vm9606_vm3, %v9603_v22 }
 0x505   : > { %v8893_v32 = vpop.f32.mrf.mxu3 }
 0x506   : > { %v8928_v59 = vadd.f32 %v8893_v32, %v7159_v33 }
 0x508   : > { %v8964_v48 = vadd.f32 %v15650_v8, %v8928_v59 }
 0x50a   : > { %v9893_v38 = vmul.f32 -1.442695, %v8964_v48 }
 0x50c   : > { %10184 = vpow2.f32 %v9893_v38 }
 0x50d   : > { %v8895_v35 = vpop.f32.mrf.mxu3 }
 0x50e   : > { %v8929_v31 = vadd.f32 %v8895_v35, %v7160_v43 }
 0x510   : > { %v8965_v23 = vadd.f32 %v15650_v8, %v8929_v31 }
 0x512   : > { %v10185_v52 = vpop.eup %10184  ;;  %v9894_v15 = vmul.f32 -1.442695, %v8965_v23 }
 0x513   : > { %v9092_v21 = vadd.f32 1.0, %v10185_v52 }
 0x514   : > { %10186 = vpow2.f32 %v9894_v15 }
 0x515   : > { %10188 = vrcp.f32 %v9092_v21  ;;  %v9555_v27 = vand.u32 2147483648, %v9092_v21  ;;  %v9553_v36 = vand.u32 2147483647, %v9092_v21  ;;  %vm9549_vm13 = vweird.f32 %v9092_v21 }
 0x517   : > { %v9556_v8 = vor.u32 1.1754944e-38, %v9555_v27  ;;  %vm9554_vm5 = vcmp.eq.f32.partialorder %v9553_v36, 8.507059e+37 }
 0x51a   : > { %v10187_v40 = vpop.eup %10186 }
 0x51b   : > { %v10189_v24 = vpop.eup %10188  ;;  %v9093_v57 = vadd.f32 1.0, %v10187_v40 }
 0x51c   : > { %v9545_v51 = vmul.f32 %v10189_v24, %v9092_v21  ;;  %vm9550_vm12 = vweird.f32 %v10189_v24 }
 0x51d   : > { %10190 = vrcp.f32 %v9093_v57  ;;  %vm9551_vm14 = vmor %vm9549_vm13, %vm9550_vm12  ;;  %v9570_v42 = vand.u32 2147483648, %v9093_v57  ;;  %v9568_v25 = vand.u32 2147483647, %v9093_v57  ;;  %vm9564_vm1 = vweird.f32 %v9093_v57 }
 0x51e   : > { %v9546_v60 = vsub.f32 1.0, %v9545_v51 }
 0x51f   : > { %v9571_v55 = vor.u32 1.1754944e-38, %v9570_v42  ;;  %vm9569_vm2 = vcmp.eq.f32.partialorder %v9568_v25, 8.507059e+37 }
 0x520   : > { %v9547_v7 = vmul.f32 %v10189_v24, %v9546_v60 }
 0x522   : > { %v9548_v37 = vadd.f32 %v10189_v24, %v9547_v7 }
 0x523   : > { %v10191_v12 = vpop.eup %10190 }
 0x524   : > { %v9552_v45 = vsel %vm9551_vm14, %v10189_v24, %v9548_v37  ;;  %v9560_v46 = vmul.f32 %v10191_v12, %v9093_v57  ;;  %vm9565_vm15 = vweird.f32 %v10191_v12 }
 0x525   : > { %v9557_v14 = vsel %vm9554_vm5, %v9556_v8, %v9552_v45  ;;  %vm9566_vm0 = vmor %vm9564_vm1, %vm9565_vm15 }
 0x526   : > { %v9604_v56 = vmul.f32 %v9557_v14, %v8964_v48  ;;  %v9561_v19 = vsub.f32 1.0, %v9560_v46 }
 0x528   : > { %9637 = vst.msk [vmem:[%s14185_s4 + $0xf0] sm:$0xff] %vm9606_vm3, %v9604_v56  ;;  %v9562_v39 = vmul.f32 %v10191_v12, %v9561_v19 }
 0x52a   : > { %v9563_v41 = vadd.f32 %v10191_v12, %v9562_v39 }
 0x52c   : > { %v9567_v49 = vsel %vm9566_vm0, %v10191_v12, %v9563_v41 }
 0x52d   : > { %v9572_v63 = vsel %vm9569_vm2, %v9571_v55, %v9567_v49 }
 0x52e   : > { %v9605_v1 = vmul.f32 %v9572_v63, %v8965_v23 }
 0x530   : > { %9638 = vst.msk [vmem:[%s14185_s4 + $0xf8] sm:$0xff] %vm9606_vm3, %v9605_v1 }
 0x531 PF: > { %s13_s12 = sadd.s32 1, %s10201_s12  }
 0x532   : > { %p10_p4 = scmp.ge.s32.totalorder %s13_s12, 4  }
 0x534   :  { %12 = sbr.rel (!%p10_p4) target bundleno = 1 (0x1), region = 63 }

</bundles_post_ra>
